<compile_context>
chip_gen: v7x
topology: tpu7x:2x2x1
jax: 0.10.0
libtpu: 0.0.40
codegen_flags: <defaults>
</compile_context>

<pallas_src>
import time
from functools import partial
from math import sqrt

import numpy as np
import jax
import jax.numpy as jnp
from jax.experimental import pallas as pl
from jax.experimental.pallas import tpu as pltpu

_INV_SQRT2 = 0.7071067811865476
_VMEM_LIMIT = 40 * 1024 * 1024  # safely below v7x's 64 MiB physical VMEM


# --------------------------------------------------------------------------
# elementwise helpers (Pallas-safe ops only: exp / mul / add / where)
# --------------------------------------------------------------------------
def _erf(x):
    # Abramowitz & Stegun 7.1.26 polynomial (|err| < 1.5e-7).
    a1, a2, a3, a4, a5 = (0.254829592, -0.284496736, 1.421413741,
                          -1.453152027, 1.061405429)
    p = 0.3275911
    ax = jnp.where(x < 0.0, -x, x)
    t = 1.0 / (1.0 + p * ax)
    poly = ((((a5 * t + a4) * t + a3) * t + a2) * t + a1) * t
    y = 1.0 - poly * jnp.exp(-ax * ax)
    return jnp.where(x < 0.0, -y, y)


def _apply_act(y, act):
    if act == "gelu":          # matches torch.nn.GELU() (erf-based)
        return 0.5 * y * (1.0 + _erf(y * _INV_SQRT2))
    if act == "sigmoid":
        return 1.0 / (1.0 + jnp.exp(-y))
    return y


def _row_tile(m):
    # 2 grid steps when possible (both v7x TensorCores), rows stay mult. of 8.
    if m >= 16 and m % 16 == 0:
        return m // 2
    return m


# --------------------------------------------------------------------------
# Pallas kernels
# --------------------------------------------------------------------------
def _mlp_kernel(x_ref, *refs, n_layers, acts):
    # refs = (w1, b1, w2, b2, ..., out)
    o_ref = refs[-1]
    y = x_ref[...].astype(jnp.float32)
    for li in range(n_layers):
        w = refs[2 * li][...]
        b = refs[2 * li + 1][...]
        y = jnp.dot(y, w, preferred_element_type=jnp.float32) + b
        y = _apply_act(y, acts[li])
    o_ref[...] = y.astype(o_ref.dtype)


def mlp_fused(x, layers, acts):
    """Fused chain of 1x1x1 convs: act_n(...act_1(x @ w1 + b1)...).

    x: (M, C0) f32, layers: list of (w (Cin, Cout), b (1, Cout)) in f32.
    """
    M = x.shape[0]
    n = len(layers)
    cout = layers[-1][0].shape[1]
    tile_m = _row_tile(M)

    in_specs = [pl.BlockSpec((tile_m, x.shape[1]), lambda i: (i, 0))]
    args = [x]
    for (w, b) in layers:
        in_specs.append(pl.BlockSpec(w.shape, lambda i: (0, 0)))
        in_specs.append(pl.BlockSpec(b.shape, lambda i: (0, 0)))
        args += [w, b]

    return pl.pallas_call(
        partial(_mlp_kernel, n_layers=n, acts=tuple(acts)),
        out_shape=jax.ShapeDtypeStruct((M, cout), jnp.float32),
        grid_spec=pltpu.PrefetchScalarGridSpec(
            num_scalar_prefetch=0,
            grid=(M // tile_m,),
            in_specs=in_specs,
            out_specs=pl.BlockSpec((tile_m, cout), lambda i: (i, 0)),
        ),
        compiler_params=pltpu.CompilerParams(
            dimension_semantics=("parallel",),
            vmem_limit_bytes=_VMEM_LIMIT,
        ),
    )(*args)


def _matmul_bias_act_kernel(x_ref, w_ref, b_ref, o_ref, *, act):
    y = jnp.dot(x_ref[...], w_ref[...], preferred_element_type=jnp.float32)
    y = y + b_ref[...]
    o_ref[...] = _apply_act(y, act).astype(o_ref.dtype)


def matmul_bias_act(p, t, b, act):
    """act(p @ t + b); p: (M, K) bf16, t: (K, N) bf16, b: (1, N) f32."""
    M, K = p.shape
    N = t.shape[1]
    tile_m = _row_tile(M)
    return pl.pallas_call(
        partial(_matmul_bias_act_kernel, act=act),
        out_shape=jax.ShapeDtypeStruct((M, N), jnp.float32),
        grid_spec=pltpu.PrefetchScalarGridSpec(
            num_scalar_prefetch=0,
            grid=(M // tile_m,),
            in_specs=[
                pl.BlockSpec((tile_m, K), lambda i: (i, 0)),
                pl.BlockSpec((K, N), lambda i: (0, 0)),   # resident weight
                pl.BlockSpec((1, N), lambda i: (0, 0)),
            ],
            out_specs=pl.BlockSpec((tile_m, N), lambda i: (i, 0)),
        ),
        compiler_params=pltpu.CompilerParams(
            dimension_semantics=("parallel",),
            vmem_limit_bytes=_VMEM_LIMIT,
        ),
    )(p, t, b)


# --------------------------------------------------------------------------
# Conv3d (stride 1, 'same' padding for odd k) as a single Toeplitz matmul
# --------------------------------------------------------------------------
def conv3d_toeplitz(x, t_packed, b_tiled, kD, kH, kW, act):
    """Direct Conv3d + bias + activation via one lane-dense Pallas matmul.

    x        : (B, D, H, W, Cin) channels-last, f32
    t_packed : (kD*kH*Wp*Cin, W*Cout) block-Toeplitz weight (bf16)
    b_tiled  : (1, W*Cout) f32
    """
    B, D, H, W, Cin = x.shape
    pd, ph, pw = (kD - 1) // 2, (kH - 1) // 2, (kW - 1) // 2
    Wp = W + 2 * pw
    xp = jnp.pad(x.astype(jnp.bfloat16),
                 ((0, 0), (pd, pd), (ph, ph), (pw, pw), (0, 0)))
    # (dt, dh)-shifted slabs; the kW taps live inside the Toeplitz weight.
    slabs = []
    for dt in range(kD):
        for dh in range(kH):
            slabs.append(jax.lax.slice(
                xp, (0, dt, dh, 0, 0), (B, dt + D, dh + H, Wp, Cin)))
    patches = jnp.stack(slabs, axis=3)                # (B, D, H, kD*kH, Wp, Cin)
    patches = patches.reshape(B * D * H, kD * kH * Wp * Cin)

    cout = b_tiled.shape[1] // W
    y = matmul_bias_act(patches, t_packed, b_tiled, act)   # (B*D*H, W*Cout)
    return y.reshape(B, D, H, W, cout)


def _pack_toeplitz(w, out_w):
    """Pack conv weight (kD,kH,kW,Cin,Cout) into (kD*kH*Wp*Cin, out_w*Cout).

    T[((dt*kH+dh)*Wp + wp)*Cin + ci, w*Cout + co] = w[dt, dh, wp - w, ci, co]
    when 0 <= wp - w < kW, else 0.
    """
    kD, kH, kW, cin, cout = w.shape
    pw = (kW - 1) // 2
    wp_dim = out_w + 2 * pw
    t = np.zeros((kD, kH, wp_dim, cin, out_w, cout), dtype=np.float32)
    w_np = np.asarray(w, dtype=np.float32)
    for ww in range(out_w):
        t[:, :, ww:ww + kW, :, ww, :] = w_np
    return t.reshape(kD * kH * wp_dim * cin, out_w * cout)


def pixel_shuffle_hw(x, r):
    """PyTorch PixelShuffle(r) on H/W of a channels-last tensor (B,D,H,W,C*r*r)."""
    B, D, H, W, Crr = x.shape
    C = Crr // (r * r)
    x = x.reshape(B, D, H, W, C, r, r)
    x = jnp.transpose(x, (0, 1, 2, 5, 3, 6, 4))  # (B, D, H, i, W, j, C)
    return x.reshape(B, D, H * r, W * r, C)


def _make_conv_params(key, k, cin, cout):
    fan_in = cin * k * k * k
    bound = 1.0 / sqrt(fan_in)
    kw_, kb_ = jax.random.split(key)
    w = jax.random.uniform(kw_, (k, k, k, cin, cout), jnp.float32, -bound, bound)
    b = jax.random.uniform(kb_, (cout,), jnp.float32, -bound, bound)
    return w, b


# --------------------------------------------------------------------------
# Decoder
# --------------------------------------------------------------------------
class NeRV3DDecoderPallas:
    """Pallas re-implementation of NeRV3DDecoder (decoder stack + head + sigmoid)."""

    def __init__(self, key, embed_dim=8, frame_interval=4, embed_size=(4, 4),
                 decode_dim=16, lower_kernel=1, upper_kernel=5,
                 scales=(2, 2), reduce=1.2, lower_width=4):
        self.embed_dim = embed_dim
        self.frame_interval = frame_interval
        self.embed_h, self.embed_w = embed_size
        self.scales = tuple(scales)

        # Block configs mirror NeRV3D.__init__: (scale, cin, cout_base, kernel)
        cfgs = [(1, embed_dim, decode_dim, 1)]
        ngf = decode_dim
        for i, scale in enumerate(scales):
            reduction = sqrt(scale) if reduce == -1 else reduce
            new_ngf = int(max(round(ngf / reduction), lower_width))
            k = min(lower_kernel + 2 * i, upper_kernel)
            cfgs.append((scale, ngf, new_ngf, k))
            ngf = new_ngf
        self.block_cfgs = cfgs

        # Execution plan + packed parameters.
        #   ("mlp",  n_layers, ps_scale): fused consecutive 1x1x1 convs (+GELU)
        #   ("conv", (kD,kH,kW), act, ps_scale): Toeplitz-packed k>1 conv
        self.plan = []
        self.params = {"mlp": [], "conv": []}
        cur_mlp = []
        w_cur = self.embed_w          # spatial W seen by the next conv
        key_iter = key

        def _flush_mlp(ps_scale):
            if cur_mlp:
                self.params["mlp"].append(list(cur_mlp))
                self.plan.append(("mlp", len(cur_mlp), ps_scale))
                cur_mlp.clear()

        for (scale, cin, cout_base, k) in cfgs:
            key_iter, sub = jax.random.split(key_iter)
            cout = cout_base * scale * scale
            w, b = _make_conv_params(sub, k, cin, cout)
            if k == 1:
                cur_mlp.append((w.reshape(cin, cout), b.reshape(1, cout)))
                if scale != 1:
                    _flush_mlp(scale)
            else:
                _flush_mlp(1)
                t = jnp.asarray(_pack_toeplitz(w, w_cur), jnp.bfloat16)
                bt = jnp.tile(b, w_cur).reshape(1, w_cur * cout)
                self.params["conv"].append((t, bt))
                self.plan.append(("conv", (k, k, k), "gelu", scale))
            w_cur *= scale
        _flush_mlp(1)

        # head_proj (k=7, Cout=3) + head_norm (Identity) + Sigmoid
        key_iter, sub = jax.random.split(key_iter)
        hw, hb = _make_conv_params(sub, 7, ngf, 3)
        th = jnp.asarray(_pack_toeplitz(hw, w_cur), jnp.bfloat16)
        tb = jnp.tile(hb, w_cur).reshape(1, w_cur * 3)
        self.params["conv"].append((th, tb))
        self.plan.append(("conv", (7, 7, 7), "sigmoid", 1))

        self._forward = jax.jit(self._forward_impl)

    def _forward_impl(self, params, embedding):
        B = embedding.shape[0]
        # reshape exactly like the PyTorch module (NCDHW) ...
        x = embedding.reshape(B, self.embed_dim, self.frame_interval,
                              self.embed_h, self.embed_w)
        # ... then to the kernels' channels-last layout (B, D, H, W, C)
        x = jnp.transpose(x, (0, 2, 3, 4, 1))

        mlp_i = 0
        conv_i = 0
        for entry in self.plan:
            if entry[0] == "mlp":
                _, n_layers, ps_scale = entry
                layers = params["mlp"][mlp_i]
                mlp_i += 1
                Bn, D, H, W, C = x.shape
                y = mlp_fused(x.reshape(Bn * D * H * W, C), layers,
                              acts=("gelu",) * n_layers)
                x = y.reshape(Bn, D, H, W, -1)
                if ps_scale != 1:
                    x = pixel_shuffle_hw(x, ps_scale)
            else:
                _, (kD, kH, kW), act, ps_scale = entry
                t, bt = params["conv"][conv_i]
                conv_i += 1
                x = conv3d_toeplitz(x, t, bt, kD, kH, kW, act)
                if ps_scale != 1:
                    x = pixel_shuffle_hw(x, ps_scale)

        # NeRV3DDecoder returns NCDHW (B, 3, T, H, W) (no final permute).
        return jnp.transpose(x, (0, 4, 1, 2, 3))

    def __call__(self, embedding):
        dec_start = time.time()
        out = self._forward(self.params, embedding)
        # TODO(synk): jax.block_until_ready replaces torch.cuda.synchronize()
        out = jax.block_until_ready(out)
        dec_time = time.time() - dec_start
        return out, dec_time


if __name__ == "__main__":
    key = jax.random.PRNGKey(0)
    pkey, xkey = jax.random.split(key)

    dec = NeRV3DDecoderPallas(pkey)

    B = 2
    emb_len = dec.embed_dim * dec.frame_interval * dec.embed_h * dec.embed_w
    embedding = jax.random.normal(xkey, (B, emb_len), dtype=jnp.float32)

    # warm-up run (includes jit compilation), then a timed run
    out, _ = dec(embedding)
    out, dec_time = dec(embedding)
    out = jax.block_until_ready(out)

    up = 1
    for s in dec.scales:
        up *= s
    expected = (B, 3, dec.frame_interval, dec.embed_h * up, dec.embed_w * up)
    assert out.shape == expected, (out.shape, expected)
    assert bool(jnp.all(jnp.isfinite(out)))
    assert bool(jnp.all((out >= 0.0) & (out <= 1.0)))  # sigmoid output range
    print("KERNEL_OK")
</pallas_src>

<mosaic_0001>
module attributes {stable_mosaic.version = 11 : i64} {
  func.func @_mlp_kernel(%arg0: i32, %arg1: memref<64x8xf32, #tpu.memory_space<vmem>>, %arg2: memref<8x16xf32, #tpu.memory_space<vmem>>, %arg3: memref<1x16xf32, #tpu.memory_space<vmem>>, %arg4: memref<16x52xf32, #tpu.memory_space<vmem>>, %arg5: memref<1x52xf32, #tpu.memory_space<vmem>>, %arg6: memref<64x52xf32, #tpu.memory_space<vmem>>) attributes {dimension_semantics = [#tpu.dimension_semantics<parallel>], iteration_bounds = array<i64: 2>, scalar_prefetch = 0 : i64, scratch_operands = 0 : i64, tpu.core_type = #tpu.core_type<tc>, window_params = [{transform_indices = @transform_0, window_bounds = array<i64: 64, 8>}, {pipeline_mode = #tpu.pipeline_mode<synchronous>, transform_indices = @transform_1, window_bounds = array<i64: 8, 16>}, {pipeline_mode = #tpu.pipeline_mode<synchronous>, transform_indices = @transform_2, window_bounds = array<i64: 1, 16>}, {pipeline_mode = #tpu.pipeline_mode<synchronous>, transform_indices = @transform_3, window_bounds = array<i64: 16, 52>}, {pipeline_mode = #tpu.pipeline_mode<synchronous>, transform_indices = @transform_4, window_bounds = array<i64: 1, 52>}, {transform_indices = @transform_5, window_bounds = array<i64: 64, 52>}]} {
    %c0 = arith.constant 0 : index
    %c0_0 = arith.constant 0 : index
    %0 = vector.load %arg1[%c0, %c0_0] : memref<64x8xf32, #tpu.memory_space<vmem>>, vector<64x8xf32>
    %c0_1 = arith.constant 0 : index
    %c0_2 = arith.constant 0 : index
    %1 = vector.load %arg2[%c0_1, %c0_2] : memref<8x16xf32, #tpu.memory_space<vmem>>, vector<8x16xf32>
    %c0_3 = arith.constant 0 : index
    %c0_4 = arith.constant 0 : index
    %2 = vector.load %arg3[%c0_3, %c0_4] : memref<1x16xf32, #tpu.memory_space<vmem>>, vector<1x16xf32>
    %cst = arith.constant dense<0.000000e+00> : vector<64x16xf32>
    %3 = tpu.matmul %0, %1, %cst {dimension_numbers = #tpu.dot_dimension_numbers<[1], [0], [0], [1], [0, 0, 1, 1], [], []>} : vector<64x8xf32>, vector<8x16xf32>, vector<64x16xf32> -> vector<64x16xf32>
    %4 = vector.broadcast %2 : vector<1x16xf32> to vector<64x16xf32>
    %5 = arith.addf %3, %4 : vector<64x16xf32>
    %cst_5 = arith.constant 5.000000e-01 : f32
    %6 = vector.broadcast %cst_5 : f32 to vector<64x16xf32>
    %7 = arith.mulf %6, %5 : vector<64x16xf32>
    %cst_6 = arith.constant 0.707106769 : f32
    %8 = vector.broadcast %cst_6 : f32 to vector<64x16xf32>
    %9 = arith.mulf %5, %8 : vector<64x16xf32>
    %cst_7 = arith.constant 0.000000e+00 : f32
    %10 = vector.broadcast %cst_7 : f32 to vector<64x16xf32>
    %11 = arith.cmpf olt, %9, %10 : vector<64x16xf32>
    %cst_8 = arith.constant 0.000000e+00 : f32
    %12 = vector.broadcast %cst_8 : f32 to vector<64x16xf32>
    %13 = arith.subf %12, %9 : vector<64x16xf32>
    %14 = arith.select %11, %13, %9 : vector<64x16xi1>, vector<64x16xf32>
    %cst_9 = arith.constant 0.327591091 : f32
    %15 = vector.broadcast %cst_9 : f32 to vector<64x16xf32>
    %16 = arith.mulf %15, %14 : vector<64x16xf32>
    %cst_10 = arith.constant 1.000000e+00 : f32
    %17 = vector.broadcast %cst_10 : f32 to vector<64x16xf32>
    %18 = arith.addf %17, %16 : vector<64x16xf32>
    %cst_11 = arith.constant 1.000000e+00 : f32
    %19 = vector.broadcast %cst_11 : f32 to vector<64x16xf32>
    %20 = arith.divf %19, %18 : vector<64x16xf32>
    %cst_12 = arith.constant 1.06140542 : f32
    %21 = vector.broadcast %cst_12 : f32 to vector<64x16xf32>
    %22 = arith.mulf %21, %20 : vector<64x16xf32>
    %cst_13 = arith.constant -1.45315206 : f32
    %23 = vector.broadcast %cst_13 : f32 to vector<64x16xf32>
    %24 = arith.addf %22, %23 : vector<64x16xf32>
    %25 = arith.mulf %24, %20 : vector<64x16xf32>
    %cst_14 = arith.constant 1.42141378 : f32
    %26 = vector.broadcast %cst_14 : f32 to vector<64x16xf32>
    %27 = arith.addf %25, %26 : vector<64x16xf32>
    %28 = arith.mulf %27, %20 : vector<64x16xf32>
    %cst_15 = arith.constant -0.284496725 : f32
    %29 = vector.broadcast %cst_15 : f32 to vector<64x16xf32>
    %30 = arith.addf %28, %29 : vector<64x16xf32>
    %31 = arith.mulf %30, %20 : vector<64x16xf32>
    %cst_16 = arith.constant 0.254829586 : f32
    %32 = vector.broadcast %cst_16 : f32 to vector<64x16xf32>
    %33 = arith.addf %31, %32 : vector<64x16xf32>
    %34 = arith.mulf %33, %20 : vector<64x16xf32>
    %cst_17 = arith.constant 0.000000e+00 : f32
    %35 = vector.broadcast %cst_17 : f32 to vector<64x16xf32>
    %36 = arith.subf %35, %14 : vector<64x16xf32>
    %37 = arith.mulf %36, %14 : vector<64x16xf32>
    %38 = math.exp %37 : vector<64x16xf32>
    %39 = arith.mulf %34, %38 : vector<64x16xf32>
    %cst_18 = arith.constant 1.000000e+00 : f32
    %40 = vector.broadcast %cst_18 : f32 to vector<64x16xf32>
    %41 = arith.subf %40, %39 : vector<64x16xf32>
    %cst_19 = arith.constant 0.000000e+00 : f32
    %42 = vector.broadcast %cst_19 : f32 to vector<64x16xf32>
    %43 = arith.cmpf olt, %9, %42 : vector<64x16xf32>
    %cst_20 = arith.constant 0.000000e+00 : f32
    %44 = vector.broadcast %cst_20 : f32 to vector<64x16xf32>
    %45 = arith.subf %44, %41 : vector<64x16xf32>
    %46 = arith.select %43, %45, %41 : vector<64x16xi1>, vector<64x16xf32>
    %cst_21 = arith.constant 1.000000e+00 : f32
    %47 = vector.broadcast %cst_21 : f32 to vector<64x16xf32>
    %48 = arith.addf %47, %46 : vector<64x16xf32>
    %49 = arith.mulf %7, %48 : vector<64x16xf32>
    %c0_22 = arith.constant 0 : index
    %c0_23 = arith.constant 0 : index
    %50 = vector.load %arg4[%c0_22, %c0_23] : memref<16x52xf32, #tpu.memory_space<vmem>>, vector<16x52xf32>
    %c0_24 = arith.constant 0 : index
    %c0_25 = arith.constant 0 : index
    %51 = vector.load %arg5[%c0_24, %c0_25] : memref<1x52xf32, #tpu.memory_space<vmem>>, vector<1x52xf32>
    %cst_26 = arith.constant dense<0.000000e+00> : vector<64x52xf32>
    %52 = tpu.matmul %49, %50, %cst_26 {dimension_numbers = #tpu.dot_dimension_numbers<[1], [0], [0], [1], [0, 0, 1, 1], [], []>} : vector<64x16xf32>, vector<16x52xf32>, vector<64x52xf32> -> vector<64x52xf32>
    %53 = vector.broadcast %51 : vector<1x52xf32> to vector<64x52xf32>
    %54 = arith.addf %52, %53 : vector<64x52xf32>
    %cst_27 = arith.constant 5.000000e-01 : f32
    %55 = vector.broadcast %cst_27 : f32 to vector<64x52xf32>
    %56 = arith.mulf %55, %54 : vector<64x52xf32>
    %cst_28 = arith.constant 0.707106769 : f32
    %57 = vector.broadcast %cst_28 : f32 to vector<64x52xf32>
    %58 = arith.mulf %54, %57 : vector<64x52xf32>
    %cst_29 = arith.constant 0.000000e+00 : f32
    %59 = vector.broadcast %cst_29 : f32 to vector<64x52xf32>
    %60 = arith.cmpf olt, %58, %59 : vector<64x52xf32>
    %cst_30 = arith.constant 0.000000e+00 : f32
    %61 = vector.broadcast %cst_30 : f32 to vector<64x52xf32>
    %62 = arith.subf %61, %58 : vector<64x52xf32>
    %63 = arith.select %60, %62, %58 : vector<64x52xi1>, vector<64x52xf32>
    %cst_31 = arith.constant 0.327591091 : f32
    %64 = vector.broadcast %cst_31 : f32 to vector<64x52xf32>
    %65 = arith.mulf %64, %63 : vector<64x52xf32>
    %cst_32 = arith.constant 1.000000e+00 : f32
    %66 = vector.broadcast %cst_32 : f32 to vector<64x52xf32>
    %67 = arith.addf %66, %65 : vector<64x52xf32>
    %cst_33 = arith.constant 1.000000e+00 : f32
    %68 = vector.broadcast %cst_33 : f32 to vector<64x52xf32>
    %69 = arith.divf %68, %67 : vector<64x52xf32>
    %cst_34 = arith.constant 1.06140542 : f32
    %70 = vector.broadcast %cst_34 : f32 to vector<64x52xf32>
    %71 = arith.mulf %70, %69 : vector<64x52xf32>
    %cst_35 = arith.constant -1.45315206 : f32
    %72 = vector.broadcast %cst_35 : f32 to vector<64x52xf32>
    %73 = arith.addf %71, %72 : vector<64x52xf32>
    %74 = arith.mulf %73, %69 : vector<64x52xf32>
    %cst_36 = arith.constant 1.42141378 : f32
    %75 = vector.broadcast %cst_36 : f32 to vector<64x52xf32>
    %76 = arith.addf %74, %75 : vector<64x52xf32>
    %77 = arith.mulf %76, %69 : vector<64x52xf32>
    %cst_37 = arith.constant -0.284496725 : f32
    %78 = vector.broadcast %cst_37 : f32 to vector<64x52xf32>
    %79 = arith.addf %77, %78 : vector<64x52xf32>
    %80 = arith.mulf %79, %69 : vector<64x52xf32>
    %cst_38 = arith.constant 0.254829586 : f32
    %81 = vector.broadcast %cst_38 : f32 to vector<64x52xf32>
    %82 = arith.addf %80, %81 : vector<64x52xf32>
    %83 = arith.mulf %82, %69 : vector<64x52xf32>
    %cst_39 = arith.constant 0.000000e+00 : f32
    %84 = vector.broadcast %cst_39 : f32 to vector<64x52xf32>
    %85 = arith.subf %84, %63 : vector<64x52xf32>
    %86 = arith.mulf %85, %63 : vector<64x52xf32>
    %87 = math.exp %86 : vector<64x52xf32>
    %88 = arith.mulf %83, %87 : vector<64x52xf32>
    %cst_40 = arith.constant 1.000000e+00 : f32
    %89 = vector.broadcast %cst_40 : f32 to vector<64x52xf32>
    %90 = arith.subf %89, %88 : vector<64x52xf32>
    %cst_41 = arith.constant 0.000000e+00 : f32
    %91 = vector.broadcast %cst_41 : f32 to vector<64x52xf32>
    %92 = arith.cmpf olt, %58, %91 : vector<64x52xf32>
    %cst_42 = arith.constant 0.000000e+00 : f32
    %93 = vector.broadcast %cst_42 : f32 to vector<64x52xf32>
    %94 = arith.subf %93, %90 : vector<64x52xf32>
    %95 = arith.select %92, %94, %90 : vector<64x52xi1>, vector<64x52xf32>
    %cst_43 = arith.constant 1.000000e+00 : f32
    %96 = vector.broadcast %cst_43 : f32 to vector<64x52xf32>
    %97 = arith.addf %96, %95 : vector<64x52xf32>
    %98 = arith.mulf %56, %97 : vector<64x52xf32>
    %c0_44 = arith.constant 0 : index
    %c0_45 = arith.constant 0 : index
    %99 = vector.load %arg6[%c0_44, %c0_45] : memref<64x52xf32, #tpu.memory_space<vmem>>, vector<64x52xf32>
    tpu.vector_store %arg6[%c0_44, %c0_45], %98 {strides = array<i32>} : memref<64x52xf32, #tpu.memory_space<vmem>>, vector<64x52xf32>,
    return
  }
  func.func @transform_0(%arg0: i32) -> (i32, i32) {
    %c0_i32 = arith.constant 0 : i32
    %c0_i32_0 = arith.constant 0 : i32
    return %arg0, %c0_i32 : i32, i32
  }
  func.func @transform_1(%arg0: i32) -> (i32, i32) {
    %c0_i32 = arith.constant 0 : i32
    %c0_i32_0 = arith.constant 0 : i32
    %c0_i32_1 = arith.constant 0 : i32
    return %c0_i32, %c0_i32_0 : i32, i32
  }
  func.func @transform_2(%arg0: i32) -> (i32, i32) {
    %c0_i32 = arith.constant 0 : i32
    %c0_i32_0 = arith.constant 0 : i32
    %c0_i32_1 = arith.constant 0 : i32
    return %c0_i32, %c0_i32_0 : i32, i32
  }
  func.func @transform_3(%arg0: i32) -> (i32, i32) {
    %c0_i32 = arith.constant 0 : i32
    %c0_i32_0 = arith.constant 0 : i32
    %c0_i32_1 = arith.constant 0 : i32
    return %c0_i32, %c0_i32_0 : i32, i32
  }
  func.func @transform_4(%arg0: i32) -> (i32, i32) {
    %c0_i32 = arith.constant 0 : i32
    %c0_i32_0 = arith.constant 0 : i32
    %c0_i32_1 = arith.constant 0 : i32
    return %c0_i32, %c0_i32_0 : i32, i32
  }
  func.func @transform_5(%arg0: i32) -> (i32, i32) {
    %c0_i32 = arith.constant 0 : i32
    %c0_i32_0 = arith.constant 0 : i32
    return %arg0, %c0_i32 : i32, i32
  }
}

module attributes {stable_mosaic.version = 11 : i64} {
  func.func @_matmul_bias_act_kernel(%arg0: i32, %arg1: memref<32x1170xbf16, #tpu.memory_space<vmem>>, %arg2: memref<1170x352xbf16, #tpu.memory_space<vmem>>, %arg3: memref<1x352xf32, #tpu.memory_space<vmem>>, %arg4: memref<32x352xf32, #tpu.memory_space<vmem>>) attributes {dimension_semantics = [#tpu.dimension_semantics<parallel>], iteration_bounds = array<i64: 2>, scalar_prefetch = 0 : i64, scratch_operands = 0 : i64, tpu.core_type = #tpu.core_type<tc>, window_params = [{transform_indices = @transform_0, window_bounds = array<i64: 32, 1170>}, {pipeline_mode = #tpu.pipeline_mode<synchronous>, transform_indices = @transform_1, window_bounds = array<i64: 1170, 352>}, {pipeline_mode = #tpu.pipeline_mode<synchronous>, transform_indices = @transform_2, window_bounds = array<i64: 1, 352>}, {transform_indices = @transform_3, window_bounds = array<i64: 32, 352>}]} {
    %c0 = arith.constant 0 : index
    %c0_0 = arith.constant 0 : index
    %0 = vector.load %arg1[%c0, %c0_0] : memref<32x1170xbf16, #tpu.memory_space<vmem>>, vector<32x1170xbf16>
    %c0_1 = arith.constant 0 : index
    %c0_2 = arith.constant 0 : index
    %1 = vector.load %arg2[%c0_1, %c0_2] : memref<1170x352xbf16, #tpu.memory_space<vmem>>, vector<1170x352xbf16>
    %cst = arith.constant dense<0.000000e+00> : vector<32x352xf32>
    %2 = tpu.matmul %0, %1, %cst {dimension_numbers = #tpu.dot_dimension_numbers<[1], [0], [0], [1], [0, 0, 1, 1], [], []>} : vector<32x1170xbf16>, vector<1170x352xbf16>, vector<32x352xf32> -> vector<32x352xf32>
    %c0_3 = arith.constant 0 : index
    %c0_4 = arith.constant 0 : index
    %3 = vector.load %arg3[%c0_3, %c0_4] : memref<1x352xf32, #tpu.memory_space<vmem>>, vector<1x352xf32>
    %4 = vector.broadcast %3 : vector<1x352xf32> to vector<32x352xf32>
    %5 = arith.addf %2, %4 : vector<32x352xf32>
    %cst_5 = arith.constant 5.000000e-01 : f32
    %6 = vector.broadcast %cst_5 : f32 to vector<32x352xf32>
    %7 = arith.mulf %6, %5 : vector<32x352xf32>
    %cst_6 = arith.constant 0.707106769 : f32
    %8 = vector.broadcast %cst_6 : f32 to vector<32x352xf32>
    %9 = arith.mulf %5, %8 : vector<32x352xf32>
    %cst_7 = arith.constant 0.000000e+00 : f32
    %10 = vector.broadcast %cst_7 : f32 to vector<32x352xf32>
    %11 = arith.cmpf olt, %9, %10 : vector<32x352xf32>
    %cst_8 = arith.constant 0.000000e+00 : f32
    %12 = vector.broadcast %cst_8 : f32 to vector<32x352xf32>
    %13 = arith.subf %12, %9 : vector<32x352xf32>
    %14 = arith.select %11, %13, %9 : vector<32x352xi1>, vector<32x352xf32>
    %cst_9 = arith.constant 0.327591091 : f32
    %15 = vector.broadcast %cst_9 : f32 to vector<32x352xf32>
    %16 = arith.mulf %15, %14 : vector<32x352xf32>
    %cst_10 = arith.constant 1.000000e+00 : f32
    %17 = vector.broadcast %cst_10 : f32 to vector<32x352xf32>
    %18 = arith.addf %17, %16 : vector<32x352xf32>
    %cst_11 = arith.constant 1.000000e+00 : f32
    %19 = vector.broadcast %cst_11 : f32 to vector<32x352xf32>
    %20 = arith.divf %19, %18 : vector<32x352xf32>
    %cst_12 = arith.constant 1.06140542 : f32
    %21 = vector.broadcast %cst_12 : f32 to vector<32x352xf32>
    %22 = arith.mulf %21, %20 : vector<32x352xf32>
    %cst_13 = arith.constant -1.45315206 : f32
    %23 = vector.broadcast %cst_13 : f32 to vector<32x352xf32>
    %24 = arith.addf %22, %23 : vector<32x352xf32>
    %25 = arith.mulf %24, %20 : vector<32x352xf32>
    %cst_14 = arith.constant 1.42141378 : f32
    %26 = vector.broadcast %cst_14 : f32 to vector<32x352xf32>
    %27 = arith.addf %25, %26 : vector<32x352xf32>
    %28 = arith.mulf %27, %20 : vector<32x352xf32>
    %cst_15 = arith.constant -0.284496725 : f32
    %29 = vector.broadcast %cst_15 : f32 to vector<32x352xf32>
    %30 = arith.addf %28, %29 : vector<32x352xf32>
    %31 = arith.mulf %30, %20 : vector<32x352xf32>
    %cst_16 = arith.constant 0.254829586 : f32
    %32 = vector.broadcast %cst_16 : f32 to vector<32x352xf32>
    %33 = arith.addf %31, %32 : vector<32x352xf32>
    %34 = arith.mulf %33, %20 : vector<32x352xf32>
    %cst_17 = arith.constant 0.000000e+00 : f32
    %35 = vector.broadcast %cst_17 : f32 to vector<32x352xf32>
    %36 = arith.subf %35, %14 : vector<32x352xf32>
    %37 = arith.mulf %36, %14 : vector<32x352xf32>
    %38 = math.exp %37 : vector<32x352xf32>
    %39 = arith.mulf %34, %38 : vector<32x352xf32>
    %cst_18 = arith.constant 1.000000e+00 : f32
    %40 = vector.broadcast %cst_18 : f32 to vector<32x352xf32>
    %41 = arith.subf %40, %39 : vector<32x352xf32>
    %cst_19 = arith.constant 0.000000e+00 : f32
    %42 = vector.broadcast %cst_19 : f32 to vector<32x352xf32>
    %43 = arith.cmpf olt, %9, %42 : vector<32x352xf32>
    %cst_20 = arith.constant 0.000000e+00 : f32
    %44 = vector.broadcast %cst_20 : f32 to vector<32x352xf32>
    %45 = arith.subf %44, %41 : vector<32x352xf32>
    %46 = arith.select %43, %45, %41 : vector<32x352xi1>, vector<32x352xf32>
    %cst_21 = arith.constant 1.000000e+00 : f32
    %47 = vector.broadcast %cst_21 : f32 to vector<32x352xf32>
    %48 = arith.addf %47, %46 : vector<32x352xf32>
    %49 = arith.mulf %7, %48 : vector<32x352xf32>
    %c0_22 = arith.constant 0 : index
    %c0_23 = arith.constant 0 : index
    %50 = vector.load %arg4[%c0_22, %c0_23] : memref<32x352xf32, #tpu.memory_space<vmem>>, vector<32x352xf32>
    tpu.vector_store %arg4[%c0_22, %c0_23], %49 {strides = array<i32>} : memref<32x352xf32, #tpu.memory_space<vmem>>, vector<32x352xf32>,
    return
  }
  func.func @transform_0(%arg0: i32) -> (i32, i32) {
    %c0_i32 = arith.constant 0 : i32
    %c0_i32_0 = arith.constant 0 : i32
    return %arg0, %c0_i32 : i32, i32
  }
  func.func @transform_1(%arg0: i32) -> (i32, i32) {
    %c0_i32 = arith.constant 0 : i32
    %c0_i32_0 = arith.constant 0 : i32
    %c0_i32_1 = arith.constant 0 : i32
    return %c0_i32, %c0_i32_0 : i32, i32
  }
  func.func @transform_2(%arg0: i32) -> (i32, i32) {
    %c0_i32 = arith.constant 0 : i32
    %c0_i32_0 = arith.constant 0 : i32
    %c0_i32_1 = arith.constant 0 : i32
    return %c0_i32, %c0_i32_0 : i32, i32
  }
  func.func @transform_3(%arg0: i32) -> (i32, i32) {
    %c0_i32 = arith.constant 0 : i32
    %c0_i32_0 = arith.constant 0 : i32
    return %arg0, %c0_i32 : i32, i32
  }
}

module attributes {stable_mosaic.version = 11 : i64} {
  func.func @_matmul_bias_act_kernel(%arg0: i32, %arg1: memref<64x11858xbf16, #tpu.memory_space<vmem>>, %arg2: memref<11858x48xbf16, #tpu.memory_space<vmem>>, %arg3: memref<1x48xf32, #tpu.memory_space<vmem>>, %arg4: memref<64x48xf32, #tpu.memory_space<vmem>>) attributes {dimension_semantics = [#tpu.dimension_semantics<parallel>], iteration_bounds = array<i64: 2>, scalar_prefetch = 0 : i64, scratch_operands = 0 : i64, tpu.core_type = #tpu.core_type<tc>, window_params = [{transform_indices = @transform_0, window_bounds = array<i64: 64, 11858>}, {pipeline_mode = #tpu.pipeline_mode<synchronous>, transform_indices = @transform_1, window_bounds = array<i64: 11858, 48>}, {pipeline_mode = #tpu.pipeline_mode<synchronous>, transform_indices = @transform_2, window_bounds = array<i64: 1, 48>}, {transform_indices = @transform_3, window_bounds = array<i64: 64, 48>}]} {
    %c0 = arith.constant 0 : index
    %c0_0 = arith.constant 0 : index
    %0 = vector.load %arg1[%c0, %c0_0] : memref<64x11858xbf16, #tpu.memory_space<vmem>>, vector<64x11858xbf16>
    %c0_1 = arith.constant 0 : index
    %c0_2 = arith.constant 0 : index
    %1 = vector.load %arg2[%c0_1, %c0_2] : memref<11858x48xbf16, #tpu.memory_space<vmem>>, vector<11858x48xbf16>
    %cst = arith.constant dense<0.000000e+00> : vector<64x48xf32>
    %2 = tpu.matmul %0, %1, %cst {dimension_numbers = #tpu.dot_dimension_numbers<[1], [0], [0], [1], [0, 0, 1, 1], [], []>} : vector<64x11858xbf16>, vector<11858x48xbf16>, vector<64x48xf32> -> vector<64x48xf32>
    %c0_3 = arith.constant 0 : index
    %c0_4 = arith.constant 0 : index
    %3 = vector.load %arg3[%c0_3, %c0_4] : memref<1x48xf32, #tpu.memory_space<vmem>>, vector<1x48xf32>
    %4 = vector.broadcast %3 : vector<1x48xf32> to vector<64x48xf32>
    %5 = arith.addf %2, %4 : vector<64x48xf32>
    %cst_5 = arith.constant 0.000000e+00 : f32
    %6 = vector.broadcast %cst_5 : f32 to vector<64x48xf32>
    %7 = arith.subf %6, %5 : vector<64x48xf32>
    %8 = math.exp %7 : vector<64x48xf32>
    %cst_6 = arith.constant 1.000000e+00 : f32
    %9 = vector.broadcast %cst_6 : f32 to vector<64x48xf32>
    %10 = arith.addf %9, %8 : vector<64x48xf32>
    %cst_7 = arith.constant 1.000000e+00 : f32
    %11 = vector.broadcast %cst_7 : f32 to vector<64x48xf32>
    %12 = arith.divf %11, %10 : vector<64x48xf32>
    %c0_8 = arith.constant 0 : index
    %c0_9 = arith.constant 0 : index
    %13 = vector.load %arg4[%c0_8, %c0_9] : memref<64x48xf32, #tpu.memory_space<vmem>>, vector<64x48xf32>
    tpu.vector_store %arg4[%c0_8, %c0_9], %12 {strides = array<i32>} : memref<64x48xf32, #tpu.memory_space<vmem>>, vector<64x48xf32>,
    return
  }
  func.func @transform_0(%arg0: i32) -> (i32, i32) {
    %c0_i32 = arith.constant 0 : i32
    %c0_i32_0 = arith.constant 0 : i32
    return %arg0, %c0_i32 : i32, i32
  }
  func.func @transform_1(%arg0: i32) -> (i32, i32) {
    %c0_i32 = arith.constant 0 : i32
    %c0_i32_0 = arith.constant 0 : i32
    %c0_i32_1 = arith.constant 0 : i32
    return %c0_i32, %c0_i32_0 : i32, i32
  }
  func.func @transform_2(%arg0: i32) -> (i32, i32) {
    %c0_i32 = arith.constant 0 : i32
    %c0_i32_0 = arith.constant 0 : i32
    %c0_i32_1 = arith.constant 0 : i32
    return %c0_i32, %c0_i32_0 : i32, i32
  }
  func.func @transform_3(%arg0: i32) -> (i32, i32) {
    %c0_i32 = arith.constant 0 : i32
    %c0_i32_0 = arith.constant 0 : i32
    return %arg0, %c0_i32 : i32, i32
  }
}

</mosaic_0001>

<bundles_post_ra>
// kernel: _forward_impl.3
= control target key start
LH: loop header
LB: loop body
LE: loop exit
PB: predicated region body
PF: predicated region fallthrough
CT: control target
= control target key end

     0   :  { %10 = vsyncpa [#allocation3], 0  ;;  %s2024_s0 = inlined_call_operand.vmem [shape: f32[128,8], index: 0, kind: input, shape index: {}]   ;;  %s2025_s1 = inlined_call_operand.hbm [shape: f32[8,16], index: 1, kind: input, shape index: {}]   ;;  %s2026_s2 = inlined_call_operand.hbm [shape: f32[1,16], index: 2, kind: input, shape index: {}]   ;;  %s2027_s3 = inlined_call_operand.hbm [shape: f32[16,52], index: 3, kind: input, shape index: {}]   ;;  %s2028_s4 = inlined_call_operand.hbm [shape: f32[1,52], index: 4, kind: input, shape index: {}]   ;;  %s2029_s5 = inlined_call_operand.vmem [shape: f32[128,52], index: 5, kind: output, shape index: {}]  }
   0x1   :  { %11 = vsyncpa [#allocation5], 0 }
   0x2   :  { %12 = vsyncpa [#allocation8], 0  ;;  %s1493_s18 = smov 0  }
   0x3 LB: > { %s1457_s19 = smov [#allocation4]   ;;  %s1120_s21 = sadd.s32 4294967295, %s1455_s18   ;;  %s1455_s18 = sphi %s1493_s18, %s18_s18  }
   0x4   : > { %s183_s20 = sshll.u32 %s1457_s19, 4  ;;  %p1122_p0 = scmp.ge.s32.totalorder %s1455_s18, 1  ;;  %s1507_s20 = int_to_ptr.vmem [resolvable:$true] %s183_s20 }
   0x5   : > { %p159_p1 = scmp.lt.s32.totalorder %s1455_s18, 3  ;;  %p1503_p2 = scmp.eq.s32.totalorder %s1120_s21, 0 }
   0x6   : > { %s1458_s24 = smov [#allocation2]   ;;  %s1459_s26 = smov [#allocation6]  }
   0x7   : > { %s2033_s22 = scalar_select %p1503_p2, 1, 0 }
   0x8   : > { %p1509_p3 = pnand %p1122_p0, %p159_p1  ;;  %s172_s25 = sshll.u32 %s1458_s24, 4  ;;  %s1515_s25 = int_to_ptr.vmem [resolvable:$true] %s172_s25 }
   0x9   : > { %s193_s27 = sshll.u32 %s1459_s26, 4  ;;  %s1460_s29 = smov [#allocation7]   ;;  %s1523_s27 = int_to_ptr.vmem [resolvable:$true] %s193_s27 }
   0xa   : > { %s2034_s23 = scalar_select %p1509_p3, 1, 0 }
   0xb   : > { %p1226_p4 = pneg %p1509_p3  ;;  %s1525_s30 = sshll.u32 %s1460_s29, 4  ;;  %s208_s30 = int_to_ptr.vmem [resolvable:$true] %s1525_s30 }
   0xc   : > { %s1325_s8 = scalar_lea.hbm %s2026_s2, 16 }
   0xd   : > { %p1519_p5 = pnand %p1503_p2, %p1226_p4  ;;  %p1326_p6 = scmp.ne.s32.totalorder %s2026_s2, %s1325_s8 }
   0xe   : > { %p1332_p10 = scmp.lt.u32.totalorder %s1325_s8, %s2026_s2 }
   0xf   : > { %p1535_p7 = pneg %p1519_p5 }
  0x11   : > { %p1328_p8 = pnand %p1535_p7, %p1326_p6 }
  0x13   : > { %p1329_p9 = pneg %p1328_p8 }
  0x15   : > { %p1334_p11 = pnand %p1332_p10, %p1329_p9 }
  0x17   : > { %1337 = shalt.err (!%p1334_p11)
}
  0x18   : > { %s1338_s14 = scalar_lea.vmem %s1507_s20, 16  ;;  %s1345_s15 = scalar_lea.vmem %s1507_s20, 32 }
  0x19   : > { %p1339_p12 = scmp.ne.s32.totalorder %s1507_s20, %s1338_s14  ;;  %p1346_p1 = scmp.lt.s32.totalorder %s1507_s20, %s1507_s20 }
  0x1a   : > { %p1347_p4 = scmp.lt.s32.totalorder %s1345_s15, %s1338_s14 }
  0x1b   : > { %p1341_p13 = pnand %p1339_p12, %p1535_p7 }
  0x1c   : > { %p1348_p6 = por %p1347_p4, %p1346_p1 }
  0x1d   : > { %p1342_p0 = pneg %p1341_p13 }
  0x1f   : > { %p1349_p8 = pnand %p1348_p6, %p1342_p0 }
  0x21   : > { %1352 = shalt.err (!%p1349_p8)
}
  0x22   : > { %1232 = dma.hbm_to_vmem [thread:$0]  (!%p1519_p5), %s2026_s2, 16, %s1507_s20, [#allocation5]  }
  0x23   : > { %s1353_s26 = scalar_lea.hbm %s2025_s1, 128 }
  0x24   : > { %p1354_p9 = scmp.ne.s32.totalorder %s2025_s1, %s1353_s26  ;;  %p1360_p12 = scmp.lt.u32.totalorder %s1353_s26, %s2025_s1 }
  0x26   : > { %p1356_p10 = pnand %p1354_p9, %p1535_p7 }
  0x28   : > { %p1357_p11 = pneg %p1356_p10 }
  0x2a   : > { %p1362_p13 = pnand %p1360_p12, %p1357_p11 }
  0x2c   : > { %1365 = shalt.err (!%p1362_p13)
}
  0x2d   : > { %s1366_s20 = scalar_lea.vmem %s1515_s25, 128  ;;  %p1374_p6 = scmp.lt.s32.totalorder %s1515_s25, %s1515_s25 }
  0x2e   : > { %p1367_p0 = scmp.ne.s32.totalorder %s1515_s25, %s1366_s20  ;;  %p1375_p8 = scmp.lt.s32.totalorder %s1366_s20, %s1366_s20 }
  0x30   : > { %p1369_p1 = pnand %p1367_p0, %p1535_p7  ;;  %p1376_p9 = por %p1375_p8, %p1374_p6 }
  0x32   : > { %p1370_p4 = pneg %p1369_p1 }
  0x34   : > { %p1377_p10 = pnand %p1376_p9, %p1370_p4 }
  0x36   : > { %1380 = shalt.err (!%p1377_p10)
}
  0x37   : > { %1229 = dma.hbm_to_vmem [thread:$0]  (!%p1519_p5), %s2025_s1, 128, %s1515_s25, [#allocation3]  }
  0x38   : > { %s1381_s14 = scalar_lea.hbm %s2027_s3, 256 }
  0x39   : > { %p1382_p11 = scmp.ne.s32.totalorder %s2027_s3, %s1381_s14  ;;  %p1388_p0 = scmp.lt.u32.totalorder %s1381_s14, %s2027_s3 }
  0x3b   : > { %p1384_p12 = pnand %p1382_p11, %p1535_p7 }
  0x3d   : > { %p1385_p13 = pneg %p1384_p12 }
  0x3f   : > { %p1390_p1 = pnand %p1388_p0, %p1385_p13 }
  0x41   : > { %1393 = shalt.err (!%p1390_p1)
}
  0x42   : > { %s1394_s25 = scalar_lea.vmem %s1523_s27, 256  ;;  %p1402_p9 = scmp.lt.s32.totalorder %s1523_s27, %s1523_s27 }
  0x43   : > { %p1395_p4 = scmp.ne.s32.totalorder %s1523_s27, %s1394_s25  ;;  %p1403_p10 = scmp.lt.s32.totalorder %s1394_s25, %s1394_s25 }
  0x45   : > { %p1397_p6 = pnand %p1395_p4, %p1535_p7  ;;  %p1404_p11 = por %p1403_p10, %p1402_p9 }
  0x47   : > { %p1398_p8 = pneg %p1397_p6 }
  0x49   : > { %p1405_p12 = pnand %p1404_p11, %p1398_p8 }
  0x4b   : > { %1408 = shalt.err (!%p1405_p12)
}
  0x4c   : > { %s1461_s24 = smov 128   ;;  %s1462_s26 = smov 8  }
  0x4d   : > { %1235 = dma.hbm_to_vmem [thread:$0]  (!%p1519_p5), %s2027_s3, 256, %s1523_s27, [#allocation5], %s1461_s24, %s1461_s24, %s1462_s26  }
  0x4e   : > { %s1409_s20 = scalar_lea.hbm %s2028_s4, 16 }
  0x4f   : > { %p1410_p13 = scmp.ne.s32.totalorder %s2028_s4, %s1409_s20  ;;  %p1416_p4 = scmp.lt.u32.totalorder %s1409_s20, %s2028_s4 }
  0x51   : > { %p1412_p0 = pnand %p1410_p13, %p1535_p7 }
  0x53   : > { %p1413_p1 = pneg %p1412_p0 }
  0x55   : > { %p1418_p6 = pnand %p1416_p4, %p1413_p1 }
  0x57   : > { %1421 = shalt.err (!%p1418_p6)
}
  0x58   : > { %s1422_s14 = scalar_lea.vmem %s208_s30, 16  ;;  %s1429_s27 = scalar_lea.vmem %s208_s30, 32 }
  0x59   : > { %p1423_p8 = scmp.ne.s32.totalorder %s208_s30, %s1422_s14  ;;  %p1430_p11 = scmp.lt.s32.totalorder %s208_s30, %s208_s30 }
  0x5a   : > { %p1431_p12 = scmp.lt.s32.totalorder %s1429_s27, %s1422_s14 }
  0x5b   : > { %p1425_p9 = pnand %p1423_p8, %p1535_p7 }
  0x5c   : > { %p1432_p2 = por %p1431_p12, %p1430_p11 }
  0x5d   : > { %p1426_p10 = pneg %p1425_p9 }
  0x5f   : > { %p1433_p3 = pnand %p1432_p2, %p1426_p10 }
  0x61   : > { %1436 = shalt.err (!%p1433_p3)
}
  0x62   : > { %1238 = dma.hbm_to_vmem [thread:$0]  (!%p1519_p5), %s2028_s4, 16, %s208_s30, [#allocation8]  }
  0x63   : > { %p2037_p13 = scmp.ne.s32.totalorder %s2034_s23, 0 }
  0x64   : > { %p2038_p0 = scmp.ne.s32.totalorder (!%p2037_p13), %s2033_s22, 0 }
  0x65   : > { %229 = sbr.rel (%p2037_p13) target bundleno = 688 (0x2b0), region = 40 }
  0x6c   : > { %1442 = dma.done.wait (%p2038_p0), [#allocation3], 128  }
  0x6d   : > { %1444 = vsyncadd (%p2038_p0), [#allocation3], 4294967168 }
  0x6e   : > { %1446 = dma.done.wait (%p2038_p0), [#allocation5], 272  }
  0x6f   : > { %1448 = vsyncadd (%p2038_p0), [#allocation5], 4294967024 }
  0x70   : > { %1450 = dma.done.wait (%p2038_p0), [#allocation8], 16  }
  0x71   : > { %1452 = vsyncadd (%p2038_p0), [#allocation8], 4294967280  ;;  %s1133_s23 = sshll.u32 %s1120_s21, 3  ;;  %vm297_vm0 = vcmask 64512   ;;  %v289_v0 = vld [vmem:[#allocation2] sm:$0xff]  ;;  %v651_v9 = vld [vmem:[#allocation6] sm:$0xff] }
  0x72   : > { %p270_p2 = scmp.lt.s32.totalorder %s1133_s23, 15  ;;  %1176 = vmatprep.subr.mxu0 %v289_v0  ;;  %v652_v10 = vld [vmem:[#allocation6 + $0x8] sm:$0xff]  ;;  %v1137_v12 = vld [vmem:[#allocation4] ss:$0 sm:$0xff]  ;;  %vm660_vm9 = vcmask 130048  }
  0x73   : > { %1177 = vmatpush3.msra.mxu0 %v289_v0  ;;  %v1206_v11 = vpack.c.bf16 %v652_v10, %v651_v9 }
  0x74   : > { %s2040_s23 = smov (!%p270_p2, %s1133_s23), 15 }
  0x75   : > { %s1134_s28 = sshll.u32 %s2040_s23, 3  ;;  %1207 = vmatprep.subr.bf16.mxu1 %v1206_v11 }
  0x76   : > { %s273_s17 = scalar_lea.vmem %s2024_s0, %s1134_s28  ;;  %1209 = vmatpush3.bf16.msra.mxu1 %v1206_v11  ;;  %s1972_s19 = scalar_lea.vmem %s2029_s5, %s1134_s28 }
  0x77   : > { %v281_v1 = vld [vmem:[%s273_s17] sm:$0xff]  ;;  %v282_v2 = vld [vmem:[%s273_s17 + $0x8] sm:$0xff]  ;;  %v283_v3 = vld [vmem:[%s273_s17 + $0x10] sm:$0xff] }
  0x78   : > { %1178 = vmatprep.mubr.msk.f32.mxu0 %vm297_vm0, %v281_v1  ;;  %v284_v4 = vld [vmem:[%s273_s17 + $0x18] sm:$0xff]  ;;  %v285_v5 = vld [vmem:[%s273_s17 + $0x20] sm:$0xff]  ;;  %v286_v6 = vld [vmem:[%s273_s17 + $0x28] sm:$0xff] }
  0x79   : > { %1179 = vmatmul.mubr.msk.f32.vlgmr.msra.gmra.mrb[0].mxu0 %vm297_vm0, %v282_v2  ;;  %v287_v7 = vld [vmem:[%s273_s17 + $0x30] sm:$0xff]  ;;  %v288_v8 = vld [vmem:[%s273_s17 + $0x38] sm:$0xff] }
  0x7a   : > { %1181 = vmatprep.mubr.msk.f32.mxu0 %vm297_vm0, %v283_v3 }
  0x7d   : > { %1182 = vmatmul.mubr.msk.f32.gmra.mrb[2].mxu0 %vm297_vm0, %v284_v4 }
  0x7e   : > { %1184 = vmatprep.mubr.msk.f32.mxu0 %vm297_vm0, %v285_v5 }
  0x81   : > { %1185 = vmatmul.mubr.msk.f32.gmra.mrb[4].mxu0 %vm297_vm0, %v286_v6 }
  0x82   : > { %1187 = vmatprep.mubr.msk.f32.mxu0 %vm297_vm0, %v287_v7 }
  0x85   : > { %1188 = vmatmul.mubr.msk.f32.gmra.mrb[6].mxu0 %vm297_vm0, %v288_v8 }
 0x14c   : > { %v1180_v13 = vpop.f32.mrb[0].mxu0 }
 0x14d   : > { %v1654_v14 = vadd.f32 %v1180_v13, %v1137_v12  ;;  %v388_v15 = vpop.f32.mrb[1].mxu0 }
 0x14e   : > { %v1668_v23 = vadd.f32 %v1137_v12, %v388_v15 }
 0x14f   : > { %v1657_v16 = vmul.f32 0.70710677, %v1654_v14 }
 0x150   : > { %v1183_v17 = vpop.f32.mrb[2].mxu0  ;;  %v1681_v32 = vmul.f32 0.70710677, %v1668_v23 }
 0x151   : > { %vm444_vm1 = vcmp.lt.f32.partialorder %v1657_v16, 0.0  ;;  %v452_v18 = vsub.f32 0.0, %v1657_v16  ;;  %v1661_v19 = vadd.f32 %v1183_v17, %v1137_v12  ;;  %v398_v20 = vpop.f32.mrb[3].mxu0 }
 0x152   : > { %v1663_v21 = vadd.f32 %v1137_v12, %v398_v20  ;;  %v451_v43 = vsub.f32 0.0, %v1681_v32  ;;  %vm443_vm5 = vcmp.lt.f32.partialorder %v1681_v32, 0.0 }
 0x153   : > { %v460_v22 = vsel %vm444_vm1, %v452_v18, %v1657_v16  ;;  %v1671_v24 = vmul.f32 0.70710677, %v1661_v19 }
 0x154   : > { %v468_v25 = vmul.f32 0.3275911, %v460_v22  ;;  %v1674_v26 = vmul.f32 0.70710677, %v1663_v21  ;;  %v1186_v28 = vpop.f32.mrb[4].mxu0  ;;  %v1719_v53 = vsel %vm443_vm5, %v451_v43, %v1681_v32  ;;  %v572_v59 = vsub.f32 0.0, %v460_v22 }
 0x155   : > { %vm446_vm2 = vcmp.lt.f32.partialorder %v1671_v24, 0.0  ;;  %v454_v27 = vsub.f32 0.0, %v1671_v24  ;;  %v408_v31 = vpop.f32.mrb[5].mxu0  ;;  %v1686_v34 = vadd.f32 %v1186_v28, %v1137_v12  ;;  %v467_v61 = vmul.f32 0.3275911, %v1719_v53 }
 0x156   : > { %v476_v29 = vadd.f32 1.0, %v468_v25  ;;  %vm445_vm3 = vcmp.lt.f32.partialorder %v1674_v26, 0.0  ;;  %v453_v30 = vsub.f32 0.0, %v1674_v26  ;;  %v1688_v35 = vadd.f32 %v1137_v12, %v408_v31 }
 0x157   : > { %v462_v33 = vsel %vm446_vm2, %v454_v27, %v1671_v24  ;;  %v1694_v39 = vmul.f32 0.70710677, %v1686_v34  ;;  %v580_v7 = vmul.f32 %v572_v59, %v460_v22  ;;  %v475_v9 = vadd.f32 1.0, %v467_v61 }
 0x158   : > { %1261 = vrcp.f32 %v476_v29  ;;  %v470_v36 = vmul.f32 0.3275911, %v462_v33  ;;  %v1189_v37 = vpop.f32.mrb[6].mxu0  ;;  %v461_v38 = vsel %vm445_vm3, %v453_v30, %v1674_v26  ;;  %v1700_v45 = vmul.f32 0.70710677, %v1688_v35 }
 0x159   : > { %v418_v40 = vpop.f32.mrb[7].mxu0  ;;  %v469_v42 = vmul.f32 0.3275911, %v461_v38  ;;  %vm448_vm4 = vcmp.lt.f32.partialorder %v1694_v39, 0.0  ;;  %v456_v44 = vsub.f32 0.0, %v1694_v39  ;;  %v1702_v47 = vadd.f32 %v1189_v37, %v1137_v12 }
 0x15a   : > { %v478_v41 = vadd.f32 1.0, %v470_v36  ;;  %vm447_vm6 = vcmp.lt.f32.partialorder %v1700_v45, 0.0  ;;  %v455_v49 = vsub.f32 0.0, %v1700_v45  ;;  %v1723_v57 = vadd.f32 %v1137_v12, %v418_v40 }
 0x15b   : > { %v477_v46 = vadd.f32 1.0, %v469_v42  ;;  %v464_v48 = vsel %vm448_vm4, %v456_v44, %v1694_v39  ;;  %v1714_v52 = vmul.f32 0.70710677, %v1702_v47  ;;  %v574_v63 = vsub.f32 0.0, %v462_v33 }
 0x15c   : > { %1263 = vrcp.f32 %v478_v41  ;;  %v472_v50 = vmul.f32 0.3275911, %v464_v48  ;;  %v463_v51 = vsel %vm447_vm6, %v455_v49, %v1700_v45  ;;  %v1735_v1 = vmul.f32 0.70710677, %v1723_v57 }
 0x15d   : > { %1265 = vrcp.f32 %v477_v46  ;;  %v471_v55 = vmul.f32 0.3275911, %v463_v51  ;;  %vm450_vm7 = vcmp.lt.f32.partialorder %v1714_v52, 0.0  ;;  %v458_v56 = vsub.f32 0.0, %v1714_v52 }
 0x15e   : > { %v480_v54 = vadd.f32 1.0, %v472_v50  ;;  %v573_v2 = vsub.f32 0.0, %v461_v38  ;;  %vm449_vm8 = vcmp.lt.f32.partialorder %v1735_v1, 0.0  ;;  %v457_v5 = vsub.f32 0.0, %v1735_v1 }
 0x15f   : > { %v479_v60 = vadd.f32 1.0, %v471_v55  ;;  %v1732_v0 = vsel %vm450_vm7, %v458_v56, %v1714_v52  ;;  %v582_v12 = vmul.f32 %v574_v63, %v462_v33  ;;  %v575_v17 = vsub.f32 0.0, %v463_v51  ;;  %v1146_v52 = vld [vmem:[#allocation7] ss:$0 sm:$0xff] }
 0x160   : > { %1267 = vrcp.f32 %v480_v54  ;;  %v474_v3 = vmul.f32 0.3275911, %v1732_v0  ;;  %v465_v13 = vsel %vm449_vm8, %v457_v5, %v1735_v1  ;;  %v581_v15 = vmul.f32 %v573_v2, %v461_v38 }
 0x161   : > { %1269 = vrcp.f32 %v479_v60  ;;  %v473_v18 = vmul.f32 0.3275911, %v465_v13  ;;  %v589_v22 = vmul.f32 1.442695, %v580_v7  ;;  %v576_v29 = vsub.f32 0.0, %v464_v48 }
 0x162   : > { %v1725_v58 = vpop.eup %1261  ;;  %v482_v8 = vadd.f32 1.0, %v474_v3  ;;  %v593_v36 = vmul.f32 1.442695, %v582_v12  ;;  %v591_v40 = vmul.f32 1.442695, %v581_v15  ;;  %v583_v41 = vmul.f32 %v575_v17, %v463_v51 }
 0x163   : > { %v500_v62 = vmul.f32 1.0614054, %v1725_v58  ;;  %v481_v30 = vadd.f32 1.0, %v473_v18  ;;  %v584_v49 = vmul.f32 %v576_v29, %v464_v48  ;;  %v571_v59 = vsub.f32 0.0, %v1719_v53 }
 0x164   : > { %1271 = vrcp.f32 %v482_v8  ;;  %v595_v61 = vmul.f32 1.442695, %v583_v41  ;;  %v578_v48 = vsub.f32 0.0, %v1732_v0  ;;  %v577_v7 = vsub.f32 0.0, %v465_v13 }
 0x165   : > { %v508_v4 = vadd.f32 -1.4531521, %v500_v62  ;;  %1273 = vrcp.f32 %v475_v9  ;;  %v579_v12 = vmul.f32 %v571_v59, %v1719_v53  ;;  %v431_v32 = vmul.f32 0.5, %v1688_v35 }
 0x166   : > { %v1740_v6 = vpop.eup %1263  ;;  %1275 = vrcp.f32 %v481_v30  ;;  %v433_v39 = vmul.f32 0.5, %v1723_v57  ;;  %v432_v35 = vmul.f32 0.5, %v1686_v34 }
 0x167   : > { %v516_v10 = vmul.f32 %v1725_v58, %v508_v4  ;;  %v502_v11 = vmul.f32 1.0614054, %v1740_v6  ;;  %v1747_v20 = vpop.eup %1265  ;;  %1277 = vpow2.f32 %v589_v22  ;;  %v597_v4 = vmul.f32 1.442695, %v584_v49 }
 0x168   : > { %v501_v28 = vmul.f32 1.0614054, %v1747_v20  ;;  %1279 = vpow2.f32 %v593_v36  ;;  %v587_v41 = vmul.f32 1.442695, %v579_v12 }
 0x169   : > { %v524_v25 = vadd.f32 1.4214138, %v516_v10  ;;  %v510_v27 = vadd.f32 -1.4531521, %v502_v11  ;;  %1281 = vpow2.f32 %v591_v40 }
 0x16a   : > { %v1752_v37 = vpop.eup %1267  ;;  %v509_v38 = vadd.f32 -1.4531521, %v501_v28  ;;  %1283 = vpow2.f32 %v595_v61  ;;  %v586_v28 = vmul.f32 %v578_v48, %v1732_v0 }
 0x16b   : > { %v532_v31 = vmul.f32 %v1725_v58, %v524_v25  ;;  %v518_v33 = vmul.f32 %v1740_v6, %v510_v27  ;;  %v504_v44 = vmul.f32 1.0614054, %v1752_v37  ;;  %v1756_v50 = vpop.eup %1269  ;;  %1285 = vpow2.f32 %v597_v4 }
 0x16c   : > { %v517_v46 = vmul.f32 %v1747_v20, %v509_v38  ;;  %v503_v60 = vmul.f32 1.0614054, %v1756_v50  ;;  %1287 = vpow2.f32 %v587_v41 }
 0x16d   : > { %v540_v42 = vadd.f32 -0.28449672, %v532_v31  ;;  %v526_v43 = vadd.f32 1.4214138, %v518_v33  ;;  %v512_v56 = vadd.f32 -1.4531521, %v504_v44  ;;  %v585_v33 = vmul.f32 %v577_v7, %v465_v13 }
 0x16e   : > { %v525_v51 = vadd.f32 1.4214138, %v517_v46  ;;  %v1764_v2 = vpop.eup %1271  ;;  %v511_v5 = vadd.f32 -1.4531521, %v503_v60  ;;  %v601_v13 = vmul.f32 1.442695, %v586_v28 }
 0x16f   : > { %v548_v54 = vmul.f32 %v1725_v58, %v540_v42  ;;  %v534_v55 = vmul.f32 %v1740_v6, %v526_v43  ;;  %v520_v63 = vmul.f32 %v1752_v37, %v512_v56  ;;  %v1767_v8 = vpop.eup %1273  ;;  %v506_v11 = vmul.f32 1.0614054, %v1764_v2 }
 0x170   : > { %v533_v3 = vmul.f32 %v1747_v20, %v525_v51  ;;  %v519_v17 = vmul.f32 %v1756_v50, %v511_v5  ;;  %v499_v18 = vmul.f32 1.0614054, %v1767_v8  ;;  %v1776_v29 = vpop.eup %1275  ;;  %1289 = vpow2.f32 %v601_v13 }
 0x171   : > { %v542_v62 = vadd.f32 -0.28449672, %v534_v55  ;;  %v556_v9 = vadd.f32 0.2548296, %v548_v54  ;;  %v528_v10 = vadd.f32 1.4214138, %v520_v63  ;;  %v1278_v42 = vpop.eup %1277 }
 0x172   : > { %v541_v15 = vadd.f32 -0.28449672, %v533_v3  ;;  %v514_v22 = vadd.f32 -1.4531521, %v506_v11  ;;  %v527_v31 = vadd.f32 1.4214138, %v519_v17  ;;  %v1280_v56 = vpop.eup %1279 }
 0x173   : > { %v550_v25 = vmul.f32 %v1740_v6, %v542_v62  ;;  %v536_v27 = vmul.f32 %v1752_v37, %v528_v10  ;;  %v507_v53 = vadd.f32 -1.4531521, %v499_v18  ;;  %v564_v36 = vmul.f32 %v1725_v58, %v556_v9  ;;  %v1282_v61 = vpop.eup %1281 }
 0x174   : > { %v549_v30 = vmul.f32 %v1747_v20, %v541_v15  ;;  %v522_v40 = vmul.f32 %v1764_v2, %v514_v22  ;;  %v535_v44 = vmul.f32 %v1756_v50, %v527_v31  ;;  %v505_v46 = vmul.f32 1.0614054, %v1776_v29  ;;  %v1284_v11 = vpop.eup %1283 }
 0x175   : > { %v544_v38 = vadd.f32 -0.28449672, %v536_v27  ;;  %v515_v0 = vmul.f32 %v1767_v8, %v507_v53  ;;  %v558_v49 = vadd.f32 0.2548296, %v550_v25  ;;  %v599_v63 = vmul.f32 1.442695, %v585_v33  ;;  %v1286_v41 = vpop.eup %1285 }
 0x176   : > { %v557_v43 = vadd.f32 0.2548296, %v549_v30  ;;  %v530_v55 = vadd.f32 1.4214138, %v522_v40  ;;  %v543_v59 = vadd.f32 -0.28449672, %v535_v44  ;;  %v604_v48 = vmul.f32 %v1278_v42, %v564_v36 }
 0x177   : > { %v552_v54 = vmul.f32 %v1752_v37, %v544_v38  ;;  %v513_v51 = vadd.f32 -1.4531521, %v505_v46  ;;  %v523_v60 = vadd.f32 1.4214138, %v515_v0  ;;  %v566_v7 = vmul.f32 %v1740_v6, %v558_v49  ;;  %v1288_v46 = vpop.eup %1287 }
 0x178   : > { %v565_v58 = vmul.f32 %v1747_v20, %v557_v43  ;;  %v538_v62 = vmul.f32 %v1764_v2, %v530_v55  ;;  %v551_v3 = vmul.f32 %v1756_v50, %v543_v59  ;;  %1291 = vpow2.f32 %v599_v63 }
 0x179   : > { %v521_v5 = vmul.f32 %v1776_v29, %v513_v51  ;;  %v531_v20 = vmul.f32 %v1767_v8, %v523_v60  ;;  %v560_v12 = vadd.f32 0.2548296, %v552_v54  ;;  %v612_v22 = vsub.f32 1.0, %v604_v48 }
 0x17a   : > { %v605_v9 = vmul.f32 %v1282_v61, %v565_v58  ;;  %v546_v10 = vadd.f32 -0.28449672, %v538_v62  ;;  %v559_v15 = vadd.f32 0.2548296, %v551_v3  ;;  %v606_v28 = vmul.f32 %v1280_v56, %v566_v7 }
 0x17b   : > { %v529_v4 = vadd.f32 1.4214138, %v521_v5  ;;  %v539_v18 = vadd.f32 -0.28449672, %v531_v20  ;;  %v568_v31 = vmul.f32 %v1752_v37, %v560_v12  ;;  %v620_v0 = vsub.f32 0.0, %v612_v22  ;;  %v1290_v37 = vpop.eup %1289 }
 0x17c   : > { %v554_v17 = vmul.f32 %v1764_v2, %v546_v10  ;;  %v567_v25 = vmul.f32 %v1756_v50, %v559_v15  ;;  %v613_v6 = vsub.f32 1.0, %v605_v9  ;;  %v614_v42 = vsub.f32 1.0, %v606_v28 }
 0x17d   : > { %v537_v27 = vmul.f32 %v1776_v29, %v529_v4  ;;  %v547_v30 = vmul.f32 %v1767_v8, %v539_v18  ;;  %v608_v49 = vmul.f32 %v1286_v41, %v568_v31  ;;  %v429_v5 = vmul.f32 0.5, %v1663_v21 }
 0x17e   : > { %v607_v33 = vmul.f32 %v1284_v11, %v567_v25  ;;  %v562_v53 = vadd.f32 0.2548296, %v554_v17  ;;  %v621_v43 = vsub.f32 0.0, %v613_v6  ;;  %v622_v59 = vsub.f32 0.0, %v614_v42 }
 0x17f   : > { %v545_v36 = vadd.f32 -0.28449672, %v537_v27  ;;  %v555_v38 = vadd.f32 0.2548296, %v547_v30  ;;  %v616_v62 = vsub.f32 1.0, %v608_v49 }
 0x180   : > { %v615_v44 = vsub.f32 1.0, %v607_v33  ;;  %v570_v54 = vmul.f32 %v1764_v2, %v562_v53  ;;  %v629_v51 = vsel %vm445_vm3, %v621_v43, %v613_v6  ;;  %v427_v2 = vmul.f32 0.5, %v1668_v23 }
 0x181   : > { %v553_v40 = vmul.f32 %v1776_v29, %v545_v36  ;;  %v563_v50 = vmul.f32 %v1767_v8, %v555_v38  ;;  %v628_v8 = vsel %vm444_vm1, %v620_v0, %v612_v22  ;;  %v637_v7 = vadd.f32 1.0, %v629_v51 }
 0x182   : > { %v1292_v58 = vpop.eup %1291  ;;  %v623_v60 = vsub.f32 0.0, %v615_v44  ;;  %v610_v63 = vmul.f32 %v1290_v37, %v570_v54  ;;  %v636_v9 = vadd.f32 1.0, %v628_v8  ;;  %v630_v26 = vsel %vm446_vm2, %v622_v59, %v614_v42 }
 0x183   : > { %v561_v55 = vadd.f32 0.2548296, %v553_v40  ;;  %v603_v13 = vmul.f32 %v1288_v46, %v563_v50  ;;  %v624_v20 = vsub.f32 0.0, %v616_v62  ;;  %v428_v23 = vmul.f32 0.5, %v1654_v14 }
 0x184   : > { %v631_v10 = vsel %vm447_vm6, %v623_v60, %v615_v44  ;;  %v618_v11 = vsub.f32 1.0, %v610_v63  ;;  %v645_v21 = vmul.f32 %v637_v7, %v429_v5  ;;  %v638_v25 = vadd.f32 1.0, %v630_v26 }
 0x185   : > { %v569_v56 = vmul.f32 %v1776_v29, %v561_v55  ;;  %v611_v61 = vsub.f32 1.0, %v603_v13  ;;  %v639_v4 = vadd.f32 1.0, %v631_v10  ;;  %v644_v18 = vmul.f32 %v636_v9, %v428_v23 }
 0x186   : > { %v632_v45 = vsel %vm448_vm4, %v624_v20, %v616_v62  ;;  %v626_v27 = vsub.f32 0.0, %v618_v11  ;;  %v430_v22 = vmul.f32 0.5, %v1661_v19  ;;  %v434_v53 = vmul.f32 0.5, %v1702_v47 }
 0x187   : > { %v609_v48 = vmul.f32 %v1292_v58, %v569_v56  ;;  %v619_v3 = vsub.f32 0.0, %v611_v61  ;;  %v647_v14 = vmul.f32 %v639_v4, %v431_v32  ;;  %v640_v30 = vadd.f32 1.0, %v632_v45 }
 0x188   : > { %v646_v6 = vmul.f32 %v638_v25, %v430_v22  ;;  %v634_v1 = vsel %vm450_vm7, %v626_v27, %v618_v11  ;;  %vm1014_vm2 = vcmask 424960  }
 0x189   : > { %v617_v29 = vsub.f32 1.0, %v609_v48  ;;  %v627_v16 = vsel %vm443_vm5, %v619_v3, %v611_v61  ;;  %v648_v19 = vmul.f32 %v640_v30, %v432_v35  ;;  %v642_v33 = vadd.f32 1.0, %v634_v1 }
 0x18a   : > { %v635_v15 = vadd.f32 1.0, %v627_v16 }
 0x18b   : > { %v625_v12 = vsub.f32 0.0, %v617_v29  ;;  %v650_v36 = vmul.f32 %v642_v33, %v434_v53 }
 0x18c   : > { %v643_v17 = vmul.f32 %v635_v15, %v427_v2 }
 0x18d   : > { %v633_v24 = vsel %vm449_vm8, %v625_v12, %v617_v29 }
 0x18e   : > { %1194 = vmatprep.mubr.msk.f32.mxu1 %vm660_vm9, %v643_v17  ;;  %v641_v28 = vadd.f32 1.0, %v633_v24 }
 0x18f   : > { %1195 = vmatmul.mubr.msk.f32.vlgmr.msra.gmra.mrb[0].mxu1 %vm660_vm9, %v644_v18 }
 0x190   : > { %1197 = vmatprep.mubr.msk.f32.mxu1 %vm660_vm9, %v645_v21  ;;  %v649_v31 = vmul.f32 %v641_v28, %v433_v39 }
 0x193   : > { %1198 = vmatmul.mubr.msk.f32.gmra.mrb[2].mxu1 %vm660_vm9, %v646_v6 }
 0x194   : > { %1200 = vmatprep.mubr.msk.f32.mxu1 %vm660_vm9, %v647_v14 }
 0x197   : > { %1201 = vmatmul.mubr.msk.f32.gmra.mrb[4].mxu1 %vm660_vm9, %v648_v19 }
 0x198   : > { %1203 = vmatprep.mubr.msk.f32.mxu1 %vm660_vm9, %v649_v31 }
 0x19b   : > { %1204 = vmatmul.mubr.msk.f32.gmra.mrb[6].mxu1 %vm660_vm9, %v650_v36 }
 0x262   : > { %v1196_v57 = vpop.f32.mrb[0].mxu1 }
 0x263   : > { %v757_v38 = vadd.f32 %v1196_v57, %v1146_v52  ;;  %v751_v34 = vpop.f32.mrb[1].mxu1 }
 0x264   : > { %v752_v40 = vadd.f32 %v1146_v52, %v751_v34 }
 0x265   : > { %v1832_v41 = vmul.f32 0.70710677, %v757_v38  ;;  %v1887_v25 = vmul.f32 0.5, %v757_v38 }
 0x266   : > { %v1834_v42 = vmul.f32 0.70710677, %v752_v40  ;;  %v1199_v43 = vpop.f32.mrb[2].mxu1  ;;  %v1889_v24 = vmul.f32 0.5, %v752_v40 }
 0x267   : > { %vm807_vm10 = vcmp.lt.f32.partialorder %v1832_v41, 0.0  ;;  %v815_v47 = vsub.f32 0.0, %v1832_v41  ;;  %v1838_v44 = vadd.f32 %v1199_v43, %v1146_v52  ;;  %v761_v50 = vpop.f32.mrb[3].mxu1 }
 0x268   : > { %vm806_vm11 = vcmp.lt.f32.partialorder %v1834_v42, 0.0  ;;  %v814_v46 = vsub.f32 0.0, %v1834_v42  ;;  %v1842_v0 = vadd.f32 %v1146_v52, %v761_v50 }
 0x269   : > { %v823_v49 = vsel %vm807_vm10, %v815_v47, %v1832_v41  ;;  %v1848_v54 = vmul.f32 0.70710677, %v1838_v44 }
 0x26a   : > { %v831_v55 = vmul.f32 0.3275911, %v823_v49  ;;  %v822_v13 = vsel %vm806_vm11, %v814_v46, %v1834_v42  ;;  %v1202_v37 = vpop.f32.mrb[4].mxu1  ;;  %v1856_v60 = vmul.f32 0.70710677, %v1842_v0  ;;  %v935_v63 = vsub.f32 0.0, %v823_v49 }
 0x26b   : > { %v830_v56 = vmul.f32 0.3275911, %v822_v13  ;;  %vm809_vm12 = vcmp.lt.f32.partialorder %v1848_v54, 0.0  ;;  %v817_v58 = vsub.f32 0.0, %v1848_v54  ;;  %v771_v59 = vpop.f32.mrb[5].mxu1  ;;  %v1861_v62 = vadd.f32 %v1202_v37, %v1146_v52 }
 0x26c   : > { %v839_v51 = vadd.f32 1.0, %v831_v55  ;;  %vm808_vm13 = vcmp.lt.f32.partialorder %v1856_v60, 0.0  ;;  %v816_v2 = vsub.f32 0.0, %v1856_v60  ;;  %v1865_v5 = vadd.f32 %v1146_v52, %v771_v59 }
 0x26d   : > { %v838_v61 = vadd.f32 1.0, %v830_v56  ;;  %v825_v8 = vsel %vm809_vm12, %v817_v58, %v1848_v54  ;;  %v934_v29 = vsub.f32 0.0, %v822_v13  ;;  %v1871_v10 = vmul.f32 0.70710677, %v1861_v62 }
 0x26e   : > { %1293 = vrcp.f32 %v839_v51  ;;  %v833_v48 = vmul.f32 0.3275911, %v825_v8  ;;  %v1205_v3 = vpop.f32.mrb[6].mxu1  ;;  %v824_v26 = vsel %vm808_vm13, %v816_v2, %v1856_v60  ;;  %v943_v16 = vmul.f32 %v935_v63, %v823_v49 }
 0x26f   : > { %1295 = vrcp.f32 %v838_v61  ;;  %v781_v7 = vpop.f32.mrb[7].mxu1  ;;  %v832_v20 = vmul.f32 0.3275911, %v824_v26  ;;  %vm811_vm14 = vcmp.lt.f32.partialorder %v1871_v10, 0.0  ;;  %v819_v11 = vsub.f32 0.0, %v1871_v10 }
 0x270   : > { %v841_v9 = vadd.f32 1.0, %v833_v48  ;;  %v1876_v12 = vmul.f32 0.70710677, %v1865_v5  ;;  %v1878_v15 = vadd.f32 %v1205_v3, %v1146_v52  ;;  %v942_v23 = vmul.f32 %v934_v29, %v822_v13 }
 0x271   : > { %v840_v21 = vadd.f32 1.0, %v832_v20  ;;  %v827_v4 = vsel %vm811_vm14, %v819_v11, %v1871_v10  ;;  %v1885_v18 = vadd.f32 %v1146_v52, %v781_v7  ;;  %v952_v32 = vmul.f32 1.442695, %v943_v16 }
 0x272   : > { %1297 = vrcp.f32 %v841_v9  ;;  %vm810_vm15 = vcmp.lt.f32.partialorder %v1876_v12, 0.0  ;;  %v818_v17 = vsub.f32 0.0, %v1876_v12  ;;  %v835_v45 = vmul.f32 0.3275911, %v827_v4 }
 0x273   : > { %1299 = vrcp.f32 %v840_v21  ;;  %v937_v27 = vsub.f32 0.0, %v825_v8  ;;  %v1895_v14 = vmul.f32 0.70710677, %v1878_v15  ;;  %v950_v6 = vmul.f32 1.442695, %v942_v23 }
 0x274   : > { %v826_v22 = vsel %vm810_vm15, %v818_v17, %v1876_v12  ;;  %v936_v30 = vsub.f32 0.0, %v824_v26  ;;  %v843_v1 = vadd.f32 1.0, %v835_v45  ;;  %v1905_v33 = vmul.f32 0.70710677, %v1885_v18 }
 0x275   : > { %v834_v39 = vmul.f32 0.3275911, %v826_v22  ;;  %vm813_vm0 = vcmp.lt.f32.partialorder %v1895_v14, 0.0  ;;  %v821_v19 = vsub.f32 0.0, %v1895_v14  ;;  %v939_v36 = vsub.f32 0.0, %v827_v4 }
 0x276   : > { %1301 = vrcp.f32 %v843_v1  ;;  %v945_v38 = vmul.f32 %v937_v27, %v825_v8  ;;  %v944_v47 = vmul.f32 %v936_v30, %v824_v26  ;;  %v938_v50 = vsub.f32 0.0, %v826_v22 }
 0x277   : > { %v842_v52 = vadd.f32 1.0, %v834_v39  ;;  %1303 = vpow2.f32 %v952_v32  ;;  %v829_v34 = vsel %vm813_vm0, %v821_v19, %v1895_v14  ;;  %vm812_vm1 = vcmp.lt.f32.partialorder %v1905_v33, 0.0 }
 0x278   : > { %v1897_v28 = vpop.eup %1293  ;;  %v837_v46 = vmul.f32 0.3275911, %v829_v34  ;;  %v947_v37 = vmul.f32 %v939_v36, %v827_v4  ;;  %v820_v58 = vsub.f32 0.0, %v1905_v33  ;;  %v956_v61 = vmul.f32 1.442695, %v945_v38 }
 0x279   : > { %v1899_v35 = vpop.eup %1295  ;;  %v863_v31 = vmul.f32 1.0614054, %v1897_v28  ;;  %1305 = vrcp.f32 %v842_v52  ;;  %v946_v48 = vmul.f32 %v938_v50, %v826_v22  ;;  %v954_v16 = vmul.f32 1.442695, %v944_v47 }
 0x27a   : > { %v862_v53 = vmul.f32 1.0614054, %v1899_v35  ;;  %v845_v56 = vadd.f32 1.0, %v837_v46  ;;  %1307 = vpow2.f32 %v950_v6  ;;  %v1923_v3 = vsel %vm812_vm1, %v820_v58, %v1905_v33 }
 0x27b   : > { %v871_v57 = vadd.f32 -1.4531521, %v863_v31  ;;  %v836_v9 = vmul.f32 0.3275911, %v1923_v3  ;;  %v960_v20 = vmul.f32 1.442695, %v947_v37 }
 0x27c   : > { %v1911_v40 = vpop.eup %1297  ;;  %v870_v43 = vadd.f32 -1.4531521, %v862_v53  ;;  %1309 = vrcp.f32 %v845_v56  ;;  %v941_v11 = vsub.f32 0.0, %v829_v34  ;;  %v958_v32 = vmul.f32 1.442695, %v946_v48 }
 0x27d   : > { %v879_v49 = vmul.f32 %v1897_v28, %v871_v57  ;;  %v865_v55 = vmul.f32 1.0614054, %v1911_v40  ;;  %v1918_v8 = vpop.eup %1299  ;;  %1311 = vpow2.f32 %v956_v61  ;;  %v844_v27 = vadd.f32 1.0, %v836_v9 }
 0x27e   : > { %v878_v13 = vmul.f32 %v1899_v35, %v870_v43  ;;  %v864_v29 = vmul.f32 1.0614054, %v1918_v8  ;;  %v1938_v19 = vmul.f32 0.5, %v1838_v44  ;;  %1313 = vpow2.f32 %v954_v16 }
 0x27f   : > { %v887_v59 = vadd.f32 1.4214138, %v879_v49  ;;  %v873_v51 = vadd.f32 -1.4531521, %v865_v55  ;;  %v949_v53 = vmul.f32 %v941_v11, %v829_v34  ;;  %1315 = vrcp.f32 %v844_v27 }
 0x280   : > { %v886_v63 = vadd.f32 1.4214138, %v878_v13  ;;  %v872_v4 = vadd.f32 -1.4531521, %v864_v29  ;;  %v1930_v17 = vpop.eup %1301  ;;  %1317 = vpow2.f32 %v960_v20  ;;  %v796_v14 = vmul.f32 0.5, %v1885_v18 }
 0x281   : > { %v895_v2 = vmul.f32 %v1897_v28, %v887_v59  ;;  %v881_v7 = vmul.f32 %v1911_v40, %v873_v51  ;;  %v1304_v22 = vpop.eup %1303  ;;  %v867_v39 = vmul.f32 1.0614054, %v1930_v17  ;;  %1319 = vpow2.f32 %v958_v32 }
 0x282   : > { %v894_v26 = vmul.f32 %v1899_v35, %v886_v63  ;;  %v880_v1 = vmul.f32 %v1918_v8, %v872_v4  ;;  %v964_v58 = vmul.f32 1.442695, %v949_v53 }
 0x283   : > { %v903_v23 = vadd.f32 -0.28449672, %v895_v2  ;;  %v889_v21 = vadd.f32 1.4214138, %v881_v7  ;;  %v1940_v36 = vpop.eup %1305  ;;  %v875_v47 = vadd.f32 -1.4531521, %v867_v39 }
 0x284   : > { %v902_v45 = vadd.f32 -0.28449672, %v894_v26  ;;  %v888_v38 = vadd.f32 1.4214138, %v880_v1  ;;  %v866_v50 = vmul.f32 1.0614054, %v1940_v36  ;;  %v1308_v46 = vpop.eup %1307  ;;  %1321 = vpow2.f32 %v964_v58 }
 0x285   : > { %v911_v6 = vmul.f32 %v1897_v28, %v903_v23  ;;  %v897_v30 = vmul.f32 %v1911_v40, %v889_v21  ;;  %v883_v37 = vmul.f32 %v1930_v17, %v875_v47  ;;  %v940_v7 = vsub.f32 0.0, %v1923_v3 }
 0x286   : > { %v910_v31 = vmul.f32 %v1899_v35, %v902_v45  ;;  %v896_v44 = vmul.f32 %v1918_v8, %v888_v38  ;;  %v1946_v34 = vpop.eup %1309  ;;  %v874_v56 = vadd.f32 -1.4531521, %v866_v50 }
 0x287   : > { %v919_v52 = vadd.f32 0.2548296, %v911_v6  ;;  %v905_v57 = vadd.f32 -0.28449672, %v897_v30  ;;  %v869_v63 = vmul.f32 1.0614054, %v1946_v34  ;;  %v1312_v16 = vpop.eup %1311  ;;  %v948_v30 = vmul.f32 %v940_v7, %v1923_v3 }
 0x288   : > { %v918_v43 = vadd.f32 0.2548296, %v910_v31  ;;  %v904_v61 = vadd.f32 -0.28449672, %v896_v44  ;;  %v891_v48 = vadd.f32 1.4214138, %v883_v37  ;;  %v882_v2 = vmul.f32 %v1940_v36, %v874_v56  ;;  %v1314_v27 = vpop.eup %1313 }
 0x289   : > { %v927_v49 = vmul.f32 %v1897_v28, %v919_v52  ;;  %v913_v55 = vmul.f32 %v1911_v40, %v905_v57  ;;  %v877_v26 = vadd.f32 -1.4531521, %v869_v63  ;;  %v1959_v1 = vpop.eup %1315 }
 0x28a   : > { %v926_v13 = vmul.f32 %v1899_v35, %v918_v43  ;;  %v912_v35 = vmul.f32 %v1918_v8, %v904_v61  ;;  %v899_v11 = vmul.f32 %v1930_v17, %v891_v48  ;;  %v890_v23 = vadd.f32 1.4214138, %v882_v2  ;;  %v1318_v57 = vpop.eup %1317 }
 0x28b   : > { %v967_v59 = vmul.f32 %v1304_v22, %v927_v49  ;;  %v921_v51 = vadd.f32 0.2548296, %v913_v55  ;;  %v885_v32 = vmul.f32 %v1946_v34, %v877_v26  ;;  %v962_v2 = vmul.f32 1.442695, %v948_v30 }
 0x28c   : > { %v966_v28 = vmul.f32 %v1308_v46, %v926_v13  ;;  %v920_v45 = vadd.f32 0.2548296, %v912_v35  ;;  %v907_v6 = vadd.f32 -0.28449672, %v899_v11  ;;  %v1320_v46 = vpop.eup %1319  ;;  %v868_v13 = vmul.f32 1.0614054, %v1959_v1 }
 0x28d   : > { %v975_v29 = vsub.f32 1.0, %v967_v59  ;;  %v929_v9 = vmul.f32 %v1911_v40, %v921_v51  ;;  %v898_v40 = vmul.f32 %v1940_v36, %v890_v23  ;;  %v893_v52 = vadd.f32 1.4214138, %v885_v32 }
 0x28e   : > { %v974_v20 = vsub.f32 1.0, %v966_v28  ;;  %v928_v53 = vmul.f32 %v1918_v8, %v920_v45  ;;  %v915_v47 = vmul.f32 %v1930_v17, %v907_v6  ;;  %v792_v35 = vmul.f32 0.5, %v1842_v0 }
 0x28f   : > { %v983_v21 = vsub.f32 0.0, %v975_v29  ;;  %v969_v4 = vmul.f32 %v1312_v16, %v929_v9  ;;  %v906_v50 = vadd.f32 -0.28449672, %v898_v40  ;;  %v901_v49 = vmul.f32 %v1946_v34, %v893_v52 }
 0x290   : > { %v982_v22 = vsub.f32 0.0, %v974_v20  ;;  %v968_v8 = vmul.f32 %v1314_v27, %v928_v53  ;;  %v923_v55 = vadd.f32 0.2548296, %v915_v47  ;;  %1323 = vpow2.f32 %v962_v2 }
 0x291   : > { %v991_v39 = vsel %vm807_vm10, %v983_v21, %v975_v29  ;;  %v977_v31 = vsub.f32 1.0, %v969_v4  ;;  %v914_v44 = vmul.f32 %v1940_v36, %v906_v50  ;;  %v909_v59 = vadd.f32 -0.28449672, %v901_v49 }
 0x292   : > { %v999_v38 = vadd.f32 1.0, %v991_v39  ;;  %v990_v43 = vsel %vm806_vm11, %v982_v22, %v974_v20  ;;  %v976_v58 = vsub.f32 1.0, %v968_v8  ;;  %v931_v61 = vmul.f32 %v1930_v17, %v923_v55 }
 0x293   : > { %v998_v41 = vadd.f32 1.0, %v990_v43  ;;  %v985_v3 = vsub.f32 0.0, %v977_v31  ;;  %v922_v63 = vadd.f32 0.2548296, %v914_v44  ;;  %v917_v48 = vmul.f32 %v1946_v34, %v909_v59 }
 0x294   : > { %v1007_v42 = vmul.f32 %v999_v38, %v1887_v25  ;;  %v876_v25 = vadd.f32 -1.4531521, %v868_v13  ;;  %v984_v28 = vsub.f32 0.0, %v976_v58  ;;  %v971_v7 = vmul.f32 %v1318_v57, %v931_v61 }
 0x295   : > { %v1006_v37 = vmul.f32 %v998_v41, %v1889_v24  ;;  %v993_v56 = vsel %vm809_vm12, %v985_v3, %v977_v31  ;;  %v1322_v24 = vpop.eup %1321  ;;  %v930_v29 = vmul.f32 %v1940_v36, %v922_v63  ;;  %v925_v26 = vadd.f32 0.2548296, %v917_v48 }
 0x296   : > { %1016 = vst.msk [vmem:[%s1972_s19 + $0x8] sm:$0xff] %vm1014_vm2, %v1007_v42  ;;  %v1001_v51 = vadd.f32 1.0, %v993_v56  ;;  %v884_v9 = vmul.f32 %v1959_v1, %v876_v25  ;;  %v992_v17 = vsel %vm808_vm13, %v984_v28, %v976_v58  ;;  %v979_v20 = vsub.f32 1.0, %v971_v7 }
 0x297   : > { %1015 = vst.msk [vmem:[%s1972_s19] sm:$0xff] %vm1014_vm2, %v1006_v37  ;;  %v1000_v16 = vadd.f32 1.0, %v992_v17  ;;  %v970_v11 = vmul.f32 %v1320_v46, %v930_v29  ;;  %v795_v22 = vmul.f32 0.5, %v1861_v62  ;;  %v794_v31 = vmul.f32 0.5, %v1865_v5 }
 0x298   : > { %v1009_v54 = vmul.f32 %v1001_v51, %v1938_v19  ;;  %v892_v23 = vadd.f32 1.4214138, %v884_v9  ;;  %v933_v19 = vmul.f32 %v1946_v34, %v925_v26  ;;  %v987_v36 = vsub.f32 0.0, %v979_v20 }
 0x299   : > { %v1008_v21 = vmul.f32 %v1000_v16, %v792_v35  ;;  %v978_v4 = vsub.f32 1.0, %v970_v11  ;;  %v797_v38 = vmul.f32 0.5, %v1878_v15 }
 0x29a   : > { %1018 = vst.msk [vmem:[%s1972_s19 + $0x18] sm:$0xff] %vm1014_vm2, %v1009_v54  ;;  %v900_v45 = vmul.f32 %v1959_v1, %v892_v23  ;;  %v973_v0 = vmul.f32 %v1322_v24, %v933_v19  ;;  %v995_v60 = vsel %vm811_vm14, %v987_v36, %v979_v20  ;;  %v1324_v47 = vpop.eup %1323 }
 0x29b   : > { %1017 = vst.msk [vmem:[%s1972_s19 + $0x10] sm:$0xff] %vm1014_vm2, %v1008_v21  ;;  %v986_v32 = vsub.f32 0.0, %v978_v4  ;;  %v1003_v6 = vadd.f32 1.0, %v995_v60 }
 0x29c   : > { %v908_v27 = vadd.f32 -0.28449672, %v900_v45  ;;  %v981_v34 = vsub.f32 1.0, %v973_v0 }
 0x29d   : > { %v994_v40 = vsel %vm810_vm15, %v986_v32, %v978_v4  ;;  %v1011_v39 = vmul.f32 %v1003_v6, %v795_v22 }
 0x29e   : > { %v916_v30 = vmul.f32 %v1959_v1, %v908_v27  ;;  %v1002_v53 = vadd.f32 1.0, %v994_v40  ;;  %v989_v52 = vsub.f32 0.0, %v981_v34 }
 0x29f   : > { %1020 = vst.msk [vmem:[%s1972_s19 + $0x28] sm:$0xff] %vm1014_vm2, %v1011_v39 }
 0x2a0   : > { %v924_v10 = vadd.f32 0.2548296, %v916_v30  ;;  %v1010_v57 = vmul.f32 %v1002_v53, %v794_v31  ;;  %v997_v62 = vsel %vm813_vm0, %v989_v52, %v981_v34 }
 0x2a1   : > { %v1005_v12 = vadd.f32 1.0, %v997_v62 }
 0x2a2   : > { %v932_v43 = vmul.f32 %v1959_v1, %v924_v10  ;;  %1019 = vst.msk [vmem:[%s1972_s19 + $0x20] sm:$0xff] %vm1014_vm2, %v1010_v57 }
 0x2a3   : > { %v1013_v50 = vmul.f32 %v1005_v12, %v797_v38 }
 0x2a4   : > { %v972_v5 = vmul.f32 %v1324_v47, %v932_v43 }
 0x2a5   : > { %1022 = vst.msk [vmem:[%s1972_s19 + $0x38] sm:$0xff] %vm1014_vm2, %v1013_v50 }
 0x2a6   : > { %v980_v46 = vsub.f32 1.0, %v972_v5 }
 0x2a8   : > { %v988_v41 = vsub.f32 0.0, %v980_v46 }
 0x2aa   : > { %v996_v3 = vsel %vm812_vm1, %v988_v41, %v980_v46 }
 0x2ab   : > { %v1004_v8 = vadd.f32 1.0, %v996_v3 }
 0x2ad   : > { %v1012_v49 = vmul.f32 %v1004_v8, %v796_v14 }
 0x2af   : > { %1021 = vst.msk [vmem:[%s1972_s19 + $0x30] sm:$0xff] %vm1014_vm2, %v1012_v49 }
 0x2b0 PF: > { %s18_s18 = sadd.s32 1, %s1455_s18  }
 0x2b1   : > { %p15_p3 = scmp.ge.s32.totalorder %s18_s18, 4  }
 0x2b3   :  { %17 = sbr.rel (!%p15_p3) target bundleno = 3 (0x3), region = 87 }
 0x2ba   :  { %1045 = vsyncpa [#allocation3], 1 }
 0x2bb   :  { %1047 = vsyncpa [#allocation3 + $0x1], 1 }
 0x2bc   :  { %1048 = vsyncpa [#allocation5], 1 }
 0x2bd   :  { %1049 = vsyncpa [#allocation8], 1 }

// kernel: _forward_impl.4
= control target key start
LH: loop header
LB: loop body
LE: loop exit
PB: predicated region body
PF: predicated region fallthrough
CT: control target
= control target key end

     0   :  { %8 = vsyncpa [#allocation3], 0  ;;  %s3613_s12 = smov 0   ;;  %s4751_s0 = inlined_call_operand.vmem [shape: bf16[64,1170], index: 0, kind: input, shape index: {}]   ;;  %s4752_s1 = inlined_call_operand.vmem [shape: bf16[1170,352], index: 1, kind: input, shape index: {}]   ;;  %s4753_s2 = inlined_call_operand.hbm [shape: f32[1,352], index: 2, kind: input, shape index: {}]   ;;  %s4754_s3 = inlined_call_operand.vmem [shape: f32[64,352], index: 3, kind: output, shape index: {}]  }
   0x1 LB: > { %s2744_s13 = sadd.s32 4294967295, %s3589_s12   ;;  %p2746_p0 = scmp.ge.s32.totalorder %s3589_s12, 1  ;;  %s3589_s12 = sphi %s3613_s12, %s14_s12  }
   0x2   : > { %p113_p1 = scmp.lt.s32.totalorder %s3589_s12, 3  ;;  %p3627_p3 = scmp.eq.s32.totalorder %s2744_s13, 0 }
   0x3   : > { %s3591_s16 = smov [#allocation2]   ;;  %s3551_s21 = scalar_lea.hbm %s4753_s2, 48 }
   0x4   : > { %p3621_p2 = pnand %p2746_p0, %p113_p1  ;;  %s129_s17 = sshll.u32 %s3591_s16, 4  ;;  %s130_s17 = int_to_ptr.vmem [resolvable:$true] %s129_s17 }
   0x5   : > { %s4759_s15 = scalar_select %p3627_p3, 1, 0 }
   0x6   : > { %s4758_s14 = scalar_select %p3621_p2, 1, 0 }
   0x7   : > { %p3162_p4 = pneg %p3621_p2  ;;  %p3552_p6 = scmp.ne.s32.totalorder %s4753_s2, %s3551_s21 }
   0x8   : > { %p3558_p10 = scmp.lt.u32.totalorder %s3551_s21, %s4753_s2 }
   0x9   : > { %p3635_p5 = pnand %p3627_p3, %p3162_p4 }
   0xb   : > { %p3553_p7 = pneg %p3635_p5 }
   0xd   : > { %p3554_p8 = pnand %p3553_p7, %p3552_p6 }
   0xf   : > { %p3555_p9 = pneg %p3554_p8 }
  0x11   : > { %p3560_p11 = pnand %p3558_p10, %p3555_p9 }
  0x13   : > { %3563 = shalt.err (!%p3560_p11)
}
  0x14   : > { %s3564_s26 = scalar_lea.vmem %s130_s17, 48  ;;  %s3571_s27 = scalar_lea.vmem %s130_s17, 64 }
  0x15   : > { %p3565_p12 = scmp.ne.s32.totalorder %s130_s17, %s3564_s26  ;;  %p3572_p1 = scmp.lt.s32.totalorder %s130_s17, %s130_s17 }
  0x16   : > { %p3573_p4 = scmp.lt.s32.totalorder %s3571_s27, %s3564_s26 }
  0x17   : > { %p3567_p13 = pnand %p3565_p12, %p3553_p7 }
  0x18   : > { %p3574_p3 = por %p3573_p4, %p3572_p1 }
  0x19   : > { %p3568_p0 = pneg %p3567_p13 }
  0x1b   : > { %p3575_p2 = pnand %p3574_p3, %p3568_p0 }
  0x1d   : > { %3578 = shalt.err (!%p3575_p2)
}
  0x1e   : > { %3165 = dma.hbm_to_vmem [thread:$0]  (!%p3635_p5), %s4753_s2, 48, %s130_s17, [#allocation3]  }
  0x1f   : > { %p4761_p6 = scmp.ne.s32.totalorder %s4758_s14, 0 }
  0x20   : > { %p4762_p8 = scmp.ne.s32.totalorder (!%p4761_p6), %s4759_s15, 0 }
  0x21   : > { %152 = sbr.rel (%p4761_p6) target bundleno = 599 (0x257), region = 32 }
  0x28   : > { %3584 = dma.done.wait (%p4762_p8), [#allocation3], 48  }
  0x29   : > { %3586 = vsyncadd (%p4762_p8), [#allocation3], 4294967248  ;;  %v3178_v0 = vld [vmem:[%s4752_s1 + $0x4] ss:$12 sps:$4 sm:$0xff]   ;;  %v3182_v2 = vld [vmem:[%s4752_s1] ss:$12 sps:$4 sm:$0xff]  }
  0x2a   : > { %v3180_v1 = vld [vmem:[%s4752_s1 + $0x184] ss:$12 sps:$4 sm:$0xff]   ;;  %1815 = vmatprep.subr.bf16.mxu1 %v3178_v0  ;;  %v3183_v3 = vld [vmem:[%s4752_s1 + $0x180] ss:$12 sps:$4 sm:$0xff]   ;;  %v3184_v4 = vld [vmem:[%s4752_s1 + $0x1c] ss:$12 sps:$4 sm:$0xff]  }
  0x2b   : > { %1868 = vmatprep.subr.bf16.mxu0 %v3180_v1  ;;  %1816 = vmatpush1.bf16.msra.mxu1 %v3182_v2  ;;  %v3186_v5 = vld [vmem:[%s4752_s1 + $0x19c] ss:$12 sps:$4 sm:$0xff]   ;;  %v3188_v6 = vld [vmem:[%s4752_s1 + $0x18] ss:$12 sps:$4 sm:$0xff]   ;;  %v3190_v8 = vld [vmem:[%s4752_s1 + $0x34] ss:$12 sps:$4 sm:$0xff]  }
  0x2c   : > { %1869 = vmatpush1.bf16.msra.mxu0 %v3183_v3  ;;  %1817 = vmatprep.subr.bf16.mxu1 %v3184_v4  ;;  %v3189_v7 = vld [vmem:[%s4752_s1 + $0x198] ss:$12 sps:$4 sm:$0xff]   ;;  %v3192_v9 = vld [vmem:[%s4752_s1 + $0x1b4] ss:$12 sps:$4 sm:$0xff]   ;;  %v3194_v10 = vld [vmem:[%s4752_s1 + $0x30] ss:$12 sps:$4 sm:$0xff]  }
  0x2d   : > { %1870 = vmatprep.subr.bf16.mxu0 %v3186_v5  ;;  %v3195_v11 = vld [vmem:[%s4752_s1 + $0x1b0] ss:$12 sps:$4 sm:$0xff]   ;;  %v3196_v12 = vld [vmem:[%s4752_s1 + $0x4c] ss:$12 sps:$4 sm:$0xff]   ;;  %v3200_v14 = vld [vmem:[%s4752_s1 + $0x48] ss:$12 sps:$4 sm:$0xff]  }
  0x2e   : > { %v3198_v13 = vld [vmem:[%s4752_s1 + $0x1cc] ss:$12 sps:$4 sm:$0xff]   ;;  %v3201_v15 = vld [vmem:[%s4752_s1 + $0x1c8] ss:$12 sps:$4 sm:$0xff]   ;;  %v3202_v16 = vld [vmem:[%s4752_s1 + $0x64] ss:$12 sps:$4 sm:$0xff]  }
  0x2f   : > { %1818 = vmatpush1.bf16.msra.mxu1 %v3188_v6  ;;  %v3204_v17 = vld [vmem:[%s4752_s1 + $0x1e4] ss:$12 sps:$4 sm:$0xff]   ;;  %v3206_v18 = vld [vmem:[%s4752_s1 + $0x60] ss:$12 sps:$4 sm:$0xff]   ;;  %v3208_v20 = vld [vmem:[%s4752_s1 + $0x7c] ss:$12 sps:$4 sm:$0xff]  }
  0x30   : > { %1871 = vmatpush1.bf16.msra.mxu0 %v3189_v7  ;;  %1819 = vmatprep.subr.bf16.mxu1 %v3190_v8  ;;  %v3207_v19 = vld [vmem:[%s4752_s1 + $0x1e0] ss:$12 sps:$4 sm:$0xff]   ;;  %v3210_v21 = vld [vmem:[%s4752_s1 + $0x1fc] ss:$12 sps:$4 sm:$0xff]   ;;  %v3212_v22 = vld [vmem:[%s4752_s1 + $0x78] ss:$12 sps:$4 sm:$0xff]  }
  0x31   : > { %1872 = vmatprep.subr.bf16.mxu0 %v3192_v9  ;;  %v3213_v23 = vld [vmem:[%s4752_s1 + $0x1f8] ss:$12 sps:$4 sm:$0xff]   ;;  %v3214_v24 = vld [vmem:[%s4752_s1 + $0x94] ss:$12 sps:$4 sm:$0xff]   ;;  %v3218_v26 = vld [vmem:[%s4752_s1 + $0x90] ss:$12 sps:$4 sm:$0xff]  }
  0x32   : > { %v3216_v25 = vld [vmem:[%s4752_s1 + $0x214] ss:$12 sps:$4 sm:$0xff]   ;;  %v3219_v27 = vld [vmem:[%s4752_s1 + $0x210] ss:$12 sps:$4 sm:$0xff]   ;;  %v3220_v28 = vld [vmem:[%s4752_s1 + $0xac] ss:$12 sps:$4 sm:$0xff]  }
  0x33   : > { %1820 = vmatpush1.bf16.msra.mxu1 %v3194_v10  ;;  %v3222_v29 = vld [vmem:[%s4752_s1 + $0x22c] ss:$12 sps:$4 sm:$0xff]   ;;  %s2751_s15 = sshll.u32 %s2744_s13, 2  ;;  %v3224_v30 = vld [vmem:[%s4752_s1 + $0xa8] ss:$12 sps:$4 sm:$0xff]   ;;  %vm1798_vm0 = vcmask 146432  }
  0x34   : > { %1873 = vmatpush1.bf16.msra.mxu0 %v3195_v11  ;;  %1821 = vmatprep.subr.bf16.mxu1 %v3196_v12  ;;  %v3225_v31 = vld [vmem:[%s4752_s1 + $0x228] ss:$12 sps:$4 sm:$0xff]   ;;  %v3226_v32 = vld [vmem:[%s4752_s1 + $0xc4] ss:$12 sps:$4 sm:$0xff]   ;;  %p179_p2 = scmp.lt.s32.totalorder %s2751_s15, 7  ;;  %vm1805_vm1 = vcmask 1040384  }
  0x35   : > { %1874 = vmatprep.subr.bf16.mxu0 %v3198_v13  ;;  %v3228_v33 = vld [vmem:[%s4752_s1 + $0x244] ss:$12 sps:$4 sm:$0xff]   ;;  %v3230_v34 = vld [vmem:[%s4752_s1 + $0xc0] ss:$12 sps:$4 sm:$0xff]   ;;  %v3232_v36 = vld [vmem:[%s4752_s1 + $0xdc] ss:$12 sps:$4 sm:$0xff]  }
  0x36   : > { %v3231_v35 = vld [vmem:[%s4752_s1 + $0x240] ss:$12 sps:$4 sm:$0xff]   ;;  %s4764_s15 = smov (!%p179_p2, %s2751_s15), 7  ;;  %v3234_v37 = vld [vmem:[%s4752_s1 + $0x25c] ss:$12 sps:$4 sm:$0xff]   ;;  %vm2663_vm11 = vcmask 785408  }
  0x37   : > { %1822 = vmatpush1.bf16.msra.mxu1 %v3200_v14  ;;  %v3236_v38 = vld [vmem:[%s4752_s1 + $0xd8] ss:$12 sps:$4 sm:$0xff]   ;;  %v3238_v40 = vld [vmem:[%s4752_s1 + $0xf4] ss:$12 sps:$4 sm:$0xff]   ;;  %s3156_s10 = smul.u32 40, %s4764_s15 }
  0x38   : > { %1875 = vmatpush1.bf16.msra.mxu0 %v3201_v15  ;;  %1823 = vmatprep.subr.bf16.mxu1 %v3202_v16  ;;  %v3237_v39 = vld [vmem:[%s4752_s1 + $0x258] ss:$12 sps:$4 sm:$0xff]   ;;  %v3240_v41 = vld [vmem:[%s4752_s1 + $0x274] ss:$12 sps:$4 sm:$0xff]   ;;  %v3242_v42 = vld [vmem:[%s4752_s1 + $0xf0] ss:$12 sps:$4 sm:$0xff]  }
  0x39   : > { %1876 = vmatprep.subr.bf16.mxu0 %v3204_v17  ;;  %v3243_v43 = vld [vmem:[%s4752_s1 + $0x270] ss:$12 sps:$4 sm:$0xff]   ;;  %v3244_v44 = vld [vmem:[%s4752_s1 + $0x10c] ss:$12 sps:$4 sm:$0xff]   ;;  %s3804_s13 = scalar_lea.vmem %s4751_s0, %s3156_s10  ;;  %v3248_v46 = vld [vmem:[%s4752_s1 + $0x108] ss:$12 sps:$4 sm:$0xff]  }
  0x3a   : > { %v3246_v45 = vld [vmem:[%s4752_s1 + $0x28c] ss:$12 sps:$4 sm:$0xff]   ;;  %v3249_v47 = vld [vmem:[%s4752_s1 + $0x288] ss:$12 sps:$4 sm:$0xff]   ;;  %v3250_v48 = vld [vmem:[%s4752_s1 + $0x124] ss:$12 sps:$4 sm:$0xff]  }
  0x3b   : > { %1824 = vmatpush1.bf16.msra.mxu1 %v3206_v18  ;;  %v3819_v49 = vld [vmem:[%s3804_s13 + $0x4] ss:$40 sps:$4 sm:$0xff]   ;;  %v3256_v54 = vld [vmem:[%s4752_s1 + $0x13c] ss:$12 sps:$4 sm:$0xff]   ;;  %v3262_v58 = vld [vmem:[%s4752_s1 + $0x154] ss:$12 sps:$4 sm:$0xff]  }
  0x3c   : > { %1877 = vmatpush1.bf16.msra.mxu0 %v3207_v19  ;;  %1825 = vmatprep.subr.bf16.mxu1 %v3208_v20  ;;  %v3252_v50 = vld [vmem:[%s4752_s1 + $0x2a4] ss:$12 sps:$4 sm:$0xff]   ;;  %v3825_v51 = vld [vmem:[%s3804_s13 + $0xc] ss:$40 sps:$4 sm:$0xff]   ;;  %v3258_v55 = vld [vmem:[%s4752_s1 + $0x2bc] ss:$12 sps:$4 sm:$0xff]  }
  0x3d   : > { %1878 = vmatprep.subr.bf16.mxu0 %v3210_v21  ;;  %1847 = vmatprep.mubr.bf16.mxu1 %v3819_v49  ;;  %v3254_v52 = vld [vmem:[%s4752_s1 + $0x120] ss:$12 sps:$4 sm:$0xff]   ;;  %v3260_v56 = vld [vmem:[%s4752_s1 + $0x138] ss:$12 sps:$4 sm:$0xff]   ;;  %v3266_v60 = vld [vmem:[%s4752_s1 + $0x150] ss:$12 sps:$4 sm:$0xff]  }
  0x3e   : > { %1900 = vmatprep.mubr.bf16.mxu0 %v3825_v51  ;;  %v3255_v53 = vld [vmem:[%s4752_s1 + $0x2a0] ss:$12 sps:$4 sm:$0xff]   ;;  %v3261_v57 = vld [vmem:[%s4752_s1 + $0x2b8] ss:$12 sps:$4 sm:$0xff]   ;;  %v3267_v61 = vld [vmem:[%s4752_s1 + $0x2d0] ss:$12 sps:$4 sm:$0xff]  }
  0x3f   : > { %1826 = vmatpush1.bf16.msra.mxu1 %v3212_v22  ;;  %v3264_v59 = vld [vmem:[%s4752_s1 + $0x2d4] ss:$12 sps:$4 sm:$0xff]   ;;  %v3268_v62 = vld [vmem:[%s4752_s1 + $0x16c] ss:$12 sps:$4 sm:$0xff]   ;;  %v3282_v2 = vld [vmem:[%s4752_s1 + $0x304] ss:$12 sps:$4 sm:$0xff]  }
  0x40   : > { %1879 = vmatpush1.bf16.msra.mxu0 %v3213_v23  ;;  %1827 = vmatprep.subr.bf16.mxu1 %v3214_v24  ;;  %v3270_v63 = vld [vmem:[%s4752_s1 + $0x2ec] ss:$12 sps:$4 sm:$0xff]   ;;  %v3272_v0 = vld [vmem:[%s4752_s1 + $0x168] ss:$12 sps:$4 sm:$0xff]   ;;  %v3290_v15 = vld [vmem:[%s4752_s1 + $0x330] ss:$12 sps:$4 sm:$0xff]  }
  0x41   : > { %1880 = vmatprep.subr.bf16.mxu0 %v3216_v25  ;;  %v3273_v1 = vld [vmem:[%s4752_s1 + $0x2e8] ss:$12 sps:$4 sm:$0xff]   ;;  %v3280_v6 = vld [vmem:[%s4752_s1 + $0x300] ss:$12 sps:$4 sm:$0xff]   ;;  %v3285_v11 = vld [vmem:[%s4752_s1 + $0x318] ss:$12 sps:$4 sm:$0xff]  }
  0x42   : > { %v3875_v3 = vld [vmem:[%s3804_s13] ss:$40 sps:$4 sm:$0xff]   ;;  %v3896_v10 = vld [vmem:[%s3804_s13 + $0x54] ss:$40 sps:$4 sm:$0xff]   ;;  %v3293_v14 = vld [vmem:[%s4752_s1 + $0xf8] ss:$12 sps:$4 sm:$0xff]  }
  0x43   : > { %1828 = vmatpush1.bf16.msra.mxu1 %v3218_v26  ;;  %v3878_v4 = vld [vmem:[%s3804_s13 + $0x8] ss:$40 sps:$4 sm:$0xff]   ;;  %v3288_v9 = vld [vmem:[%s4752_s1 + $0xe0] ss:$12 sps:$4 sm:$0xff]   ;;  %v3294_v16 = vld [vmem:[%s4752_s1 + $0x38] ss:$12 sps:$4 sm:$0xff]  }
  0x44   : > { %1881 = vmatpush1.bf16.msra.mxu0 %v3219_v27  ;;  %1829 = vmatprep.subr.bf16.mxu1 %v3220_v28  ;;  %v3283_v5 = vld [vmem:[%s4752_s1 + $0xc8] ss:$12 sps:$4 sm:$0xff]   ;;  %v3289_v12 = vld [vmem:[%s4752_s1 + $0x20] ss:$12 sps:$4 sm:$0xff]   ;;  %v3920_v17 = vld [vmem:[%s3804_s13 + $0x50] ss:$40 sps:$4 sm:$0xff]  }
  0x45   : > { %1882 = vmatprep.subr.bf16.mxu0 %v3222_v29  ;;  %v3284_v7 = vld [vmem:[%s4752_s1 + $0x8] ss:$12 sps:$4 sm:$0xff]   ;;  %v3297_v18 = vld [vmem:[%s4752_s1 + $0x34c] ss:$12 sps:$4 sm:$0xff]   ;;  %v3298_v19 = vld [vmem:[%s4752_s1 + $0x110] ss:$12 sps:$4 sm:$0xff]  }
  0x46   : > { %v3287_v8 = vld [vmem:[%s4752_s1 + $0x31c] ss:$12 sps:$4 sm:$0xff]   ;;  %v3292_v13 = vld [vmem:[%s4752_s1 + $0x334] ss:$12 sps:$4 sm:$0xff]   ;;  %v3302_v22 = vld [vmem:[%s4752_s1 + $0x364] ss:$12 sps:$4 sm:$0xff]  }
  0x47   : > { %1830 = vmatpush1.bf16.msra.mxu1 %v3224_v30  ;;  %v3295_v20 = vld [vmem:[%s4752_s1 + $0x348] ss:$12 sps:$4 sm:$0xff]   ;;  %v3299_v21 = vld [vmem:[%s4752_s1 + $0x50] ss:$12 sps:$4 sm:$0xff]   ;;  %v3300_v24 = vld [vmem:[%s4752_s1 + $0x360] ss:$12 sps:$4 sm:$0xff]  }
  0x48   : > { %1883 = vmatpush1.bf16.msra.mxu0 %v3225_v31  ;;  %1831 = vmatprep.subr.bf16.mxu1 %v3226_v32  ;;  %v3303_v23 = vld [vmem:[%s4752_s1 + $0x128] ss:$12 sps:$4 sm:$0xff]   ;;  %v3308_v27 = vld [vmem:[%s4752_s1 + $0x140] ss:$12 sps:$4 sm:$0xff]   ;;  %v3305_v28 = vld [vmem:[%s4752_s1 + $0x378] ss:$12 sps:$4 sm:$0xff]  }
  0x49   : > { %1884 = vmatprep.subr.bf16.mxu0 %v3228_v33  ;;  %v3304_v25 = vld [vmem:[%s4752_s1 + $0x68] ss:$12 sps:$4 sm:$0xff]   ;;  %v3309_v29 = vld [vmem:[%s4752_s1 + $0x80] ss:$12 sps:$4 sm:$0xff]   ;;  %v3316_v31 = vld [vmem:[%s4752_s1 + $0x158] ss:$12 sps:$4 sm:$0xff]  }
  0x4a   : > { %v3307_v26 = vld [vmem:[%s4752_s1 + $0x37c] ss:$12 sps:$4 sm:$0xff]   ;;  %v3315_v30 = vld [vmem:[%s4752_s1 + $0x394] ss:$12 sps:$4 sm:$0xff]   ;;  %v3317_v33 = vld [vmem:[%s4752_s1 + $0x98] ss:$12 sps:$4 sm:$0xff]  }
  0x4b   : > { %1832 = vmatpush1.bf16.msra.mxu1 %v3230_v34  ;;  %v3313_v32 = vld [vmem:[%s4752_s1 + $0x390] ss:$12 sps:$4 sm:$0xff]   ;;  %v3320_v34 = vld [vmem:[%s4752_s1 + $0x3ac] ss:$12 sps:$4 sm:$0xff]  }
  0x4c   : > { %1885 = vmatpush1.bf16.msra.mxu0 %v3231_v35  ;;  %1833 = vmatprep.subr.bf16.mxu1 %v3232_v36  ;;  %v3321_v35 = vld [vmem:[%s4752_s1 + $0x170] ss:$12 sps:$4 sm:$0xff]   ;;  %v3318_v36 = vld [vmem:[%s4752_s1 + $0x3a8] ss:$12 sps:$4 sm:$0xff]  }
  0x4d   : > { %1886 = vmatprep.subr.bf16.mxu0 %v3234_v37  ;;  %v3322_v37 = vld [vmem:[%s4752_s1 + $0xb0] ss:$12 sps:$4 sm:$0xff]  }
  0x4f   : > { %1834 = vmatpush1.bf16.msra.mxu1 %v3236_v38  ;;  %v3325_v38 = vld [vmem:[%s4752_s1 + $0x3c4] ss:$12 sps:$4 sm:$0xff]  }
  0x50   : > { %1887 = vmatpush1.bf16.msra.mxu0 %v3237_v39  ;;  %1835 = vmatprep.subr.bf16.mxu1 %v3238_v40  ;;  %v3326_v39 = vld [vmem:[%s4752_s1 + $0x248] ss:$12 sps:$4 sm:$0xff]   ;;  %v3991_v40 = vld [vmem:[%s3804_s13 + $0x5c] ss:$40 sps:$4 sm:$0xff]  }
  0x51   : > { %1888 = vmatprep.subr.bf16.mxu0 %v3240_v41  ;;  %v3323_v41 = vld [vmem:[%s4752_s1 + $0x3c0] ss:$12 sps:$4 sm:$0xff]  }
  0x53   : > { %1836 = vmatpush1.bf16.msra.mxu1 %v3242_v42  ;;  %v3327_v42 = vld [vmem:[%s4752_s1 + $0x188] ss:$12 sps:$4 sm:$0xff]  }
  0x54   : > { %1889 = vmatpush1.bf16.msra.mxu0 %v3243_v43  ;;  %1837 = vmatprep.subr.bf16.mxu1 %v3244_v44  ;;  %v3330_v43 = vld [vmem:[%s4752_s1 + $0x3dc] ss:$12 sps:$4 sm:$0xff]   ;;  %v4003_v44 = vld [vmem:[%s3804_s13 + $0x58] ss:$40 sps:$4 sm:$0xff]  }
  0x55   : > { %1890 = vmatprep.subr.bf16.mxu0 %v3246_v45  ;;  %v3331_v45 = vld [vmem:[%s4752_s1 + $0x260] ss:$12 sps:$4 sm:$0xff]  }
  0x57   : > { %1838 = vmatpush1.bf16.msra.mxu1 %v3248_v46  ;;  %v3328_v46 = vld [vmem:[%s4752_s1 + $0x3d8] ss:$12 sps:$4 sm:$0xff]  }
  0x58   : > { %1891 = vmatpush1.bf16.msra.mxu0 %v3249_v47  ;;  %1839 = vmatprep.subr.bf16.mxu1 %v3250_v48  ;;  %v3332_v47 = vld [vmem:[%s4752_s1 + $0x1a0] ss:$12 sps:$4 sm:$0xff]  }
  0x59   : > { %1892 = vmatprep.subr.bf16.mxu0 %v3252_v50  ;;  %v3335_v48 = vld [vmem:[%s4752_s1 + $0x3f4] ss:$12 sps:$4 sm:$0xff]  }
  0x5a   : > { %v4025_v50 = vld [vmem:[%s3804_s13 + $0x14] ss:$40 sps:$4 sm:$0xff]  }
  0x5b   : > { %1840 = vmatpush1.bf16.msra.mxu1 %v3254_v52  ;;  %v3333_v52 = vld [vmem:[%s4752_s1 + $0x3f0] ss:$12 sps:$4 sm:$0xff]  }
  0x5c   : > { %1893 = vmatpush1.bf16.msra.mxu0 %v3255_v53  ;;  %1841 = vmatprep.subr.bf16.mxu1 %v3256_v54  ;;  %v3337_v53 = vld [vmem:[%s4752_s1 + $0x1b8] ss:$12 sps:$4 sm:$0xff]  }
  0x5d   : > { %1894 = vmatprep.subr.bf16.mxu0 %v3258_v55  ;;  %v3340_v54 = vld [vmem:[%s4752_s1 + $0x40c] ss:$12 sps:$4 sm:$0xff]   ;;  %v3341_v55 = vld [vmem:[%s4752_s1 + $0x290] ss:$12 sps:$4 sm:$0xff]  }
  0x5f   : > { %1842 = vmatpush1.bf16.msra.mxu1 %v3260_v56  ;;  %v3338_v56 = vld [vmem:[%s4752_s1 + $0x408] ss:$12 sps:$4 sm:$0xff]  }
  0x60   : > { %1895 = vmatpush1.bf16.msra.mxu0 %v3261_v57  ;;  %1843 = vmatprep.subr.bf16.mxu1 %v3262_v58  ;;  %v3342_v57 = vld [vmem:[%s4752_s1 + $0x1d0] ss:$12 sps:$4 sm:$0xff]  }
  0x61   : > { %1896 = vmatprep.subr.bf16.mxu0 %v3264_v59  ;;  %v3345_v58 = vld [vmem:[%s4752_s1 + $0x424] ss:$12 sps:$4 sm:$0xff]   ;;  %v3346_v59 = vld [vmem:[%s4752_s1 + $0x2a8] ss:$12 sps:$4 sm:$0xff]  }
  0x63   : > { %1844 = vmatpush1.bf16.msra.mxu1 %v3266_v60  ;;  %v3343_v60 = vld [vmem:[%s4752_s1 + $0x420] ss:$12 sps:$4 sm:$0xff]  }
  0x64   : > { %1897 = vmatpush1.bf16.msra.mxu0 %v3267_v61  ;;  %1845 = vmatprep.subr.bf16.mxu1 %v3268_v62  ;;  %v3347_v61 = vld [vmem:[%s4752_s1 + $0x1e8] ss:$12 sps:$4 sm:$0xff]  }
  0x65   : > { %1898 = vmatprep.subr.bf16.mxu0 %v3270_v63  ;;  %v3350_v62 = vld [vmem:[%s4752_s1 + $0x43c] ss:$12 sps:$4 sm:$0xff]   ;;  %v3348_v63 = vld [vmem:[%s4752_s1 + $0x438] ss:$12 sps:$4 sm:$0xff]  }
  0x67   : > { %1846 = vmatpush1.bf16.msra.mxu1 %v3272_v0  ;;  %v3352_v0 = vld [vmem:[%s4752_s1 + $0x200] ss:$12 sps:$4 sm:$0xff]  }
  0x68   : > { %1899 = vmatpush1.bf16.msra.mxu0 %v3273_v1  ;;  %3004 = vmatprep.subr.bf16.mxu1 %v3283_v5  ;;  %v3357_v1 = vld [vmem:[%s4752_s1 + $0x454] ss:$12 sps:$4 sm:$0xff]   ;;  %v3360_v5 = vld [vmem:[%s4752_s1 + $0x218] ss:$12 sps:$4 sm:$0xff]  }
  0x69   : > { %1921 = vmatprep.subr.bf16.mxu0 %v3282_v2  ;;  %v3358_v2 = vld [vmem:[%s4752_s1 + $0x2d8] ss:$12 sps:$4 sm:$0xff]  }
  0x6a   : > { %1848 = vmatmul.mubr.bf16.vlgmr.msra.gmra.mrb[0].mxu1 %v3875_v3 }
  0x6b   : > { %1901 = vmatmul.mubr.bf16.vlgmr.msra.gmra.mrb[0].mxu0 %v3878_v4  ;;  %3005 = vmatpush3.bf16.msra.mxu1 %v3284_v7  ;;  %v3364_v7 = vld [vmem:[%s4752_s1 + $0x2f0] ss:$12 sps:$4 sm:$0xff]  }
  0x6c   : > { %1922 = vmatpush1.bf16.msra.mxu0 %v3280_v6  ;;  %3006 = vmatprep.subr.bf16.mxu1 %v3288_v9  ;;  %v3363_v6 = vld [vmem:[%s4752_s1 + $0x46c] ss:$12 sps:$4 sm:$0xff]   ;;  %v3365_v9 = vld [vmem:[%s4752_s1 + $0x230] ss:$12 sps:$4 sm:$0xff]  }
  0x6d   : > { %1923 = vmatprep.subr.bf16.mxu0 %v3287_v8  ;;  %1857 = vmatprep.mubr.bf16.mxu1 %v3896_v10  ;;  %v3361_v8 = vld [vmem:[%s4752_s1 + $0x468] ss:$12 sps:$4 sm:$0xff]  }
  0x6e   : > { %1910 = vmatprep.mubr.bf16.mxu0 %v3991_v40 }
  0x6f   : > { %3007 = vmatpush3.bf16.msra.mxu1 %v3289_v12  ;;  %v3372_v12 = vld [vmem:[%s4752_s1 + $0x3c8] ss:$12 sps:$4 sm:$0xff]  }
  0x70   : > { %1924 = vmatpush1.bf16.msra.mxu0 %v3285_v11  ;;  %3008 = vmatprep.subr.bf16.mxu1 %v3293_v14  ;;  %v4100_v11 = vld [vmem:[%s3804_s13 + $0x10] ss:$40 sps:$4 sm:$0xff]   ;;  %v3373_v14 = vld [vmem:[%s4752_s1 + $0x308] ss:$12 sps:$4 sm:$0xff]  }
  0x71   : > { %1925 = vmatprep.subr.bf16.mxu0 %v3292_v13  ;;  %v3369_v13 = vld [vmem:[%s4752_s1 + $0x480] ss:$12 sps:$4 sm:$0xff]  }
  0x72   : > { %1858 = vmatmul.mubr.bf16.gmra.mrb[4].mxu1 %v3920_v17 }
  0x73   : > { %3009 = vmatpush3.bf16.msra.mxu1 %v3294_v16  ;;  %2112 = vmatprep.mubr.bf16.mxu1 %v3819_v49  ;;  %v3336_v49 = vld [vmem:[%s4752_s1 + $0x278] ss:$12 sps:$4 sm:$0xff]   ;;  %v3377_v16 = vld [vmem:[%s4752_s1 + $0x3e0] ss:$12 sps:$4 sm:$0xff]  }
  0x74   : > { %1926 = vmatpush1.bf16.msra.mxu0 %v3290_v15  ;;  %3010 = vmatprep.subr.bf16.mxu1 %v3298_v19  ;;  %v3376_v15 = vld [vmem:[%s4752_s1 + $0x49c] ss:$12 sps:$4 sm:$0xff]   ;;  %v3381_v19 = vld [vmem:[%s4752_s1 + $0x4b4] ss:$12 sps:$4 sm:$0xff]  }
  0x75   : > { %1927 = vmatprep.subr.bf16.mxu0 %v3297_v18  ;;  %1911 = vmatmul.mubr.bf16.gmra.mrb[4].mxu0 %v4003_v44  ;;  %v3378_v18 = vld [vmem:[%s4752_s1 + $0x320] ss:$12 sps:$4 sm:$0xff]  }
  0x76   : > { %1953 = vmatprep.mubr.bf16.mxu0 %v4025_v50 }
  0x77   : > { %3011 = vmatpush3.bf16.msra.mxu1 %v3299_v21  ;;  %v3383_v21 = vld [vmem:[%s4752_s1 + $0x338] ss:$12 sps:$4 sm:$0xff]  }
  0x78   : > { %1928 = vmatpush1.bf16.msra.mxu0 %v3295_v20  ;;  %3012 = vmatprep.subr.bf16.mxu1 %v3303_v23  ;;  %v3379_v20 = vld [vmem:[%s4752_s1 + $0x4b0] ss:$12 sps:$4 sm:$0xff]   ;;  %v4142_v23 = vld [vmem:[%s3804_s13 + $0x64] ss:$40 sps:$4 sm:$0xff]  }
  0x79   : > { %1929 = vmatprep.subr.bf16.mxu0 %v3302_v22  ;;  %v3386_v22 = vld [vmem:[%s4752_s1 + $0x4cc] ss:$12 sps:$4 sm:$0xff]  }
  0x7b   : > { %3013 = vmatpush3.bf16.msra.mxu1 %v3304_v25  ;;  %v3384_v25 = vld [vmem:[%s4752_s1 + $0x4c8] ss:$12 sps:$4 sm:$0xff]  }
  0x7c   : > { %1930 = vmatpush1.bf16.msra.mxu0 %v3300_v24  ;;  %3014 = vmatprep.subr.bf16.mxu1 %v3308_v27  ;;  %v3387_v24 = vld [vmem:[%s4752_s1 + $0x410] ss:$12 sps:$4 sm:$0xff]   ;;  %v4156_v27 = vld [vmem:[%s3804_s13 + $0x60] ss:$40 sps:$4 sm:$0xff]  }
  0x7d   : > { %1931 = vmatprep.subr.bf16.mxu0 %v3307_v26  ;;  %v3388_v26 = vld [vmem:[%s4752_s1 + $0x350] ss:$12 sps:$4 sm:$0xff]  }
  0x7f   : > { %3015 = vmatpush3.bf16.msra.mxu1 %v3309_v29  ;;  %v3392_v29 = vld [vmem:[%s4752_s1 + $0x428] ss:$12 sps:$4 sm:$0xff]  }
  0x80   : > { %1932 = vmatpush1.bf16.msra.mxu0 %v3305_v28  ;;  %3016 = vmatprep.subr.bf16.mxu1 %v3316_v31  ;;  %v3391_v28 = vld [vmem:[%s4752_s1 + $0x4e4] ss:$12 sps:$4 sm:$0xff]   ;;  %v3393_v31 = vld [vmem:[%s4752_s1 + $0x368] ss:$12 sps:$4 sm:$0xff]  }
  0x81   : > { %1933 = vmatprep.subr.bf16.mxu0 %v3315_v30  ;;  %v3389_v30 = vld [vmem:[%s4752_s1 + $0x4e0] ss:$12 sps:$4 sm:$0xff]  }
  0x83   : > { %3017 = vmatpush3.bf16.msra.mxu1 %v3317_v33  ;;  %v3397_v33 = vld [vmem:[%s4752_s1 + $0x440] ss:$12 sps:$4 sm:$0xff]  }
  0x84   : > { %1934 = vmatpush1.bf16.msra.mxu0 %v3313_v32  ;;  %3018 = vmatprep.subr.bf16.mxu1 %v3321_v35  ;;  %v3396_v32 = vld [vmem:[%s4752_s1 + $0x4fc] ss:$12 sps:$4 sm:$0xff]   ;;  %v3398_v35 = vld [vmem:[%s4752_s1 + $0x380] ss:$12 sps:$4 sm:$0xff]  }
  0x85   : > { %1935 = vmatprep.subr.bf16.mxu0 %v3320_v34  ;;  %v3394_v34 = vld [vmem:[%s4752_s1 + $0x4f8] ss:$12 sps:$4 sm:$0xff]  }
  0x87   : > { %3019 = vmatpush3.bf16.msra.mxu1 %v3322_v37  ;;  %v3402_v37 = vld [vmem:[%s4752_s1 + $0x458] ss:$12 sps:$4 sm:$0xff]  }
  0x88   : > { %1936 = vmatpush1.bf16.msra.mxu0 %v3318_v36  ;;  %3032 = vmatprep.subr.bf16.mxu1 %v3326_v39  ;;  %v3401_v36 = vld [vmem:[%s4752_s1 + $0x514] ss:$12 sps:$4 sm:$0xff]   ;;  %v3403_v39 = vld [vmem:[%s4752_s1 + $0x398] ss:$12 sps:$4 sm:$0xff]  }
  0x89   : > { %1937 = vmatprep.subr.bf16.mxu0 %v3325_v38  ;;  %v3399_v38 = vld [vmem:[%s4752_s1 + $0x510] ss:$12 sps:$4 sm:$0xff]  }
  0x8a   : > { %2113 = vmatmul.mubr.bf16.vlgmr.msra.gmra.mrb[8].mxu1 %v3875_v3  ;;  %v3355_v3 = vld [vmem:[%s4752_s1 + $0x450] ss:$12 sps:$4 sm:$0xff]  }
  0x8b   : > { %3033 = vmatpush3.bf16.msra.mxu1 %v3327_v42  ;;  %2120 = vmatprep.mubr.bf16.mxu1 %v3896_v10  ;;  %v3371_v10 = vld [vmem:[%s4752_s1 + $0x484] ss:$12 sps:$4 sm:$0xff]   ;;  %v3404_v42 = vld [vmem:[%s4752_s1 + $0x528] ss:$12 sps:$4 sm:$0xff]  }
  0x8c   : > { %1938 = vmatpush1.bf16.msra.mxu0 %v3323_v41  ;;  %3034 = vmatprep.subr.bf16.mxu1 %v3331_v45  ;;  %v3407_v41 = vld [vmem:[%s4752_s1 + $0x470] ss:$12 sps:$4 sm:$0xff]   ;;  %v3412_v45 = vld [vmem:[%s4752_s1 + $0x548] ss:$12 sps:$4 sm:$0xff]  }
  0x8d   : > { %1939 = vmatprep.subr.bf16.mxu0 %v3330_v43  ;;  %v3408_v43 = vld [vmem:[%s4752_s1 + $0x3b0] ss:$12 sps:$4 sm:$0xff]  }
  0x8f   : > { %3035 = vmatpush3.bf16.msra.mxu1 %v3332_v47  ;;  %v3409_v47 = vld [vmem:[%s4752_s1 + $0x540] ss:$12 sps:$4 sm:$0xff]  }
  0x90   : > { %1940 = vmatpush1.bf16.msra.mxu0 %v3328_v46  ;;  %3036 = vmatprep.subr.bf16.mxu1 %v3336_v49  ;;  %v3454_v46 = vld [vmem:[%s3804_s13 + $0x1c] ss:$40 sps:$4 sm:$0xff]  }
  0x91   : > { %1941 = vmatprep.subr.bf16.mxu0 %v3335_v48  ;;  %v3413_v48 = vld [vmem:[%s4752_s1 + $0x488] ss:$12 sps:$4 sm:$0xff]  }
  0x92   : > { %2121 = vmatmul.mubr.bf16.gmra.mrb[12].mxu1 %v3920_v17  ;;  %v3374_v17 = vld [vmem:[%s4752_s1 + $0x498] ss:$12 sps:$4 sm:$0xff]   ;;  %v3416_v49 = vld [vmem:[%s4752_s1 + $0x55c] ss:$12 sps:$4 sm:$0xff]  }
  0x93   : > { %3037 = vmatpush3.bf16.msra.mxu1 %v3337_v53  ;;  %2161 = vmatprep.mubr.bf16.mxu1 %v3825_v51  ;;  %v3351_v51 = vld [vmem:[%s4752_s1 + $0x2c0] ss:$12 sps:$4 sm:$0xff]  }
  0x94   : > { %1942 = vmatpush1.bf16.msra.mxu0 %v3333_v52  ;;  %3038 = vmatprep.subr.bf16.mxu1 %v3341_v55  ;;  %v3414_v52 = vld [vmem:[%s4752_s1 + $0x558] ss:$12 sps:$4 sm:$0xff]   ;;  %v3418_v53 = vld [vmem:[%s4752_s1 + $0x4a0] ss:$12 sps:$4 sm:$0xff]  }
  0x95   : > { %1943 = vmatprep.subr.bf16.mxu0 %v3340_v54  ;;  %v3423_v54 = vld [vmem:[%s4752_s1 + $0x574] ss:$12 sps:$4 sm:$0xff]   ;;  %v3425_v55 = vld [vmem:[%s4752_s1 + $0x578] ss:$12 sps:$4 sm:$0xff]  }
  0x97   : > { %3039 = vmatpush3.bf16.msra.mxu1 %v3342_v57  ;;  %v3426_v57 = vld [vmem:[%s4752_s1 + $0x4b8] ss:$12 sps:$4 sm:$0xff]  }
  0x98   : > { %1944 = vmatpush1.bf16.msra.mxu0 %v3338_v56  ;;  %3040 = vmatprep.subr.bf16.mxu1 %v3346_v59  ;;  %v3421_v56 = vld [vmem:[%s4752_s1 + $0x570] ss:$12 sps:$4 sm:$0xff]  }
  0x99   : > { %1945 = vmatprep.subr.bf16.mxu0 %v3345_v58  ;;  %v3429_v58 = vld [vmem:[%s4752_s1 + $0x58c] ss:$12 sps:$4 sm:$0xff]   ;;  %v3430_v59 = vld [vmem:[%s4752_s1 + $0x590] ss:$12 sps:$4 sm:$0xff]  }
  0x9b   : > { %3041 = vmatpush3.bf16.msra.mxu1 %v3347_v61  ;;  %v3431_v61 = vld [vmem:[%s4752_s1 + $0x4d0] ss:$12 sps:$4 sm:$0xff]  }
  0x9c   : > { %1946 = vmatpush1.bf16.msra.mxu0 %v3343_v60  ;;  %3042 = vmatprep.subr.bf16.mxu1 %v3351_v51  ;;  %v3427_v60 = vld [vmem:[%s4752_s1 + $0x588] ss:$12 sps:$4 sm:$0xff]  }
  0x9d   : > { %1947 = vmatprep.subr.bf16.mxu0 %v3350_v62  ;;  %v3434_v62 = vld [vmem:[%s4752_s1 + $0x5a4] ss:$12 sps:$4 sm:$0xff]   ;;  %v3435_v51 = vld [vmem:[%s4752_s1 + $0x5a8] ss:$12 sps:$4 sm:$0xff]  }
  0x9f   : > { %3043 = vmatpush3.bf16.msra.mxu1 %v3352_v0  ;;  %v3436_v0 = vld [vmem:[%s4752_s1 + $0x4e8] ss:$12 sps:$4 sm:$0xff]  }
  0xa0   : > { %1948 = vmatpush1.bf16.msra.mxu0 %v3348_v63  ;;  %3044 = vmatprep.subr.bf16.mxu1 %v3358_v2  ;;  %v3432_v63 = vld [vmem:[%s4752_s1 + $0x5a0] ss:$12 sps:$4 sm:$0xff]  }
  0xa1   : > { %1949 = vmatprep.subr.bf16.mxu0 %v3357_v1  ;;  %v3439_v1 = vld [vmem:[%s4752_s1 + $0x5bc] ss:$12 sps:$4 sm:$0xff]   ;;  %v3440_v2 = vld [vmem:[%s4752_s1 + $0x5c0] ss:$12 sps:$4 sm:$0xff]  }
  0xa3   : > { %3045 = vmatpush3.bf16.msra.mxu1 %v3360_v5  ;;  %v3441_v5 = vld [vmem:[%s4752_s1 + $0x500] ss:$12 sps:$4 sm:$0xff]  }
  0xa4   : > { %1950 = vmatpush1.bf16.msra.mxu0 %v3355_v3  ;;  %3046 = vmatprep.subr.bf16.mxu1 %v3364_v7  ;;  %v3437_v3 = vld [vmem:[%s4752_s1 + $0x5b8] ss:$12 sps:$4 sm:$0xff]  }
  0xa5   : > { %1951 = vmatprep.subr.bf16.mxu0 %v3363_v6  ;;  %v3444_v6 = vld [vmem:[%s4752_s1 + $0x5d4] ss:$12 sps:$4 sm:$0xff]   ;;  %v3445_v7 = vld [vmem:[%s4752_s1 + $0x5d8] ss:$12 sps:$4 sm:$0xff]  }
  0xa7   : > { %3047 = vmatpush3.bf16.msra.mxu1 %v3365_v9  ;;  %v3446_v9 = vld [vmem:[%s4752_s1 + $0x518] ss:$12 sps:$4 sm:$0xff]  }
  0xa8   : > { %1952 = vmatpush1.bf16.msra.mxu0 %v3361_v8  ;;  %3060 = vmatprep.subr.bf16.mxu1 %v3372_v12  ;;  %v3442_v8 = vld [vmem:[%s4752_s1 + $0x5d0] ss:$12 sps:$4 sm:$0xff]   ;;  %v3447_v12 = vld [vmem:[%s4752_s1 + $0x5e8] ss:$12 sps:$4 sm:$0xff]  }
  0xa9   : > { %1974 = vmatprep.subr.bf16.mxu0 %v3371_v10  ;;  %v3449_v10 = vld [vmem:[%s4752_s1 + $0x5ec] ss:$12 sps:$4 sm:$0xff]  }
  0xaa   : > { %2162 = vmatmul.mubr.bf16.vlgmr.msra.gmra.mrb[16].mxu1 %v3878_v4  ;;  %v3382_v4 = vld [vmem:[%s4752_s1 + $0x3f8] ss:$12 sps:$4 sm:$0xff]  }
  0xab   : > { %1954 = vmatmul.mubr.bf16.vlgmr.msra.gmra.mrb[0].mxu0 %v4100_v11  ;;  %3061 = vmatpush3.bf16.msra.mxu1 %v3373_v14  ;;  %v3457_v14 = vld [vmem:[%s4752_s1 + $0x604] ss:$12 sps:$4 sm:$0xff]  }
  0xac   : > { %1975 = vmatpush1.bf16.msra.mxu0 %v3369_v13  ;;  %3062 = vmatprep.subr.bf16.mxu1 %v3377_v16  ;;  %v3451_v13 = vld [vmem:[%s4752_s1 + $0x530] ss:$12 sps:$4 sm:$0xff]   ;;  %v3455_v16 = vld [vmem:[%s4752_s1 + $0x600] ss:$12 sps:$4 sm:$0xff]  }
  0xad   : > { %1976 = vmatprep.subr.bf16.mxu0 %v3376_v15  ;;  %2169 = vmatprep.mubr.bf16.mxu1 %v3991_v40  ;;  %v3406_v40 = vld [vmem:[%s4752_s1 + $0x52c] ss:$12 sps:$4 sm:$0xff]  }
  0xae   : > { %1963 = vmatprep.mubr.bf16.mxu0 %v4142_v23  ;;  %v3452_v15 = vld [vmem:[%s3804_s13 + $0x18] ss:$40 sps:$4 sm:$0xff]  }
  0xaf   : > { %3063 = vmatpush3.bf16.msra.mxu1 %v3378_v18  ;;  %v3592_v18 = vmov 0  }
  0xb0   : > { %1977 = vmatpush1.bf16.msra.mxu0 %v3374_v17  ;;  %3064 = vmatprep.subr.bf16.mxu1 %v3382_v4  ;;  %v3458_v17 = vld [vmem:[%s4752_s1 + $0x608] ss:$12 sps:$4 sm:$0xff]  }
  0xb1   : > { %1978 = vmatprep.subr.bf16.mxu0 %v3381_v19  ;;  %v3461_v19 = vld [vmem:[%s4752_s1 + $0x61c] ss:$12 sps:$4 sm:$0xff]   ;;  %v3463_v4 = vld [vmem:[%s3804_s13 + $0x6c] ss:$40 sps:$4 sm:$0xff]  }
  0xb2   : > { %2170 = vmatmul.mubr.bf16.gmra.mrb[20].mxu1 %v4003_v44  ;;  %v3411_v44 = vld [vmem:[%s4752_s1 + $0x544] ss:$12 sps:$4 sm:$0xff]  }
  0xb3   : > { %3065 = vmatpush3.bf16.msra.mxu1 %v3383_v21  ;;  %2210 = vmatprep.mubr.bf16.mxu1 %v4025_v50  ;;  %v3417_v50 = vld [vmem:[%s4752_s1 + $0x560] ss:$12 sps:$4 sm:$0xff]  }
  0xb4   : > { %1979 = vmatpush1.bf16.msra.mxu0 %v3379_v20  ;;  %3066 = vmatprep.subr.bf16.mxu1 %v3387_v24  ;;  %v3459_v20 = vld [vmem:[%s4752_s1 + $0x618] ss:$12 sps:$4 sm:$0xff]   ;;  %v3462_v21 = vld [vmem:[%s4752_s1 + $0x620] ss:$12 sps:$4 sm:$0xff]   ;;  %v3465_v24 = vld [vmem:[%s4752_s1 + $0x630] ss:$12 sps:$4 sm:$0xff]  }
  0xb5   : > { %1980 = vmatprep.subr.bf16.mxu0 %v3386_v22  ;;  %1964 = vmatmul.mubr.bf16.gmra.mrb[4].mxu0 %v4156_v27  ;;  %v3467_v22 = vld [vmem:[%s4752_s1 + $0x634] ss:$12 sps:$4 sm:$0xff]  }
  0xb6   : > { %2006 = vmatprep.mubr.bf16.mxu0 %v3454_v46 }
  0xb7   : > { %3067 = vmatpush3.bf16.msra.mxu1 %v3388_v26  ;;  %v3472_v26 = vld [vmem:[%s4752_s1 + $0x64c] ss:$12 sps:$4 sm:$0xff]  }
  0xb8   : > { %1981 = vmatpush1.bf16.msra.mxu0 %v3384_v25  ;;  %3068 = vmatprep.subr.bf16.mxu1 %v3392_v29  ;;  %v3469_v25 = vld [vmem:[%s4752_s1 + $0x638] ss:$12 sps:$4 sm:$0xff]   ;;  %v3473_v29 = vld [vmem:[%s4752_s1 + $0x650] ss:$12 sps:$4 sm:$0xff]  }
  0xb9   : > { %1982 = vmatprep.subr.bf16.mxu0 %v3391_v28  ;;  %v3470_v28 = vld [vmem:[%s4752_s1 + $0x648] ss:$12 sps:$4 sm:$0xff]  }
  0xbb   : > { %3069 = vmatpush3.bf16.msra.mxu1 %v3393_v31  ;;  %v3474_v31 = vld [vmem:[%s4752_s1 + $0x660] ss:$12 sps:$4 sm:$0xff]  }
  0xbc   : > { %1983 = vmatpush1.bf16.msra.mxu0 %v3389_v30  ;;  %3070 = vmatprep.subr.bf16.mxu1 %v3397_v33  ;;  %v3476_v30 = vld [vmem:[%s4752_s1 + $0x664] ss:$12 sps:$4 sm:$0xff]   ;;  %v3480_v33 = vld [vmem:[%s4752_s1 + $0x67c] ss:$12 sps:$4 sm:$0xff]  }
  0xbd   : > { %1984 = vmatprep.subr.bf16.mxu0 %v3396_v32  ;;  %v3477_v32 = vld [vmem:[%s4752_s1 + $0x668] ss:$12 sps:$4 sm:$0xff]  }
  0xbf   : > { %3071 = vmatpush3.bf16.msra.mxu1 %v3398_v35  ;;  %v3481_v35 = vld [vmem:[%s4752_s1 + $0x680] ss:$12 sps:$4 sm:$0xff]  }
  0xc0   : > { %1985 = vmatpush1.bf16.msra.mxu0 %v3394_v34  ;;  %3072 = vmatprep.subr.bf16.mxu1 %v3402_v37  ;;  %v3478_v34 = vld [vmem:[%s4752_s1 + $0x678] ss:$12 sps:$4 sm:$0xff]   ;;  %v3482_v37 = vld [vmem:[%s4752_s1 + $0x690] ss:$12 sps:$4 sm:$0xff]  }
  0xc1   : > { %1986 = vmatprep.subr.bf16.mxu0 %v3401_v36  ;;  %v3484_v36 = vld [vmem:[%s4752_s1 + $0x694] ss:$12 sps:$4 sm:$0xff]  }
  0xc3   : > { %3073 = vmatpush3.bf16.msra.mxu1 %v3403_v39  ;;  %v3488_v39 = vld [vmem:[%s4752_s1 + $0x6ac] ss:$12 sps:$4 sm:$0xff]  }
  0xc4   : > { %1987 = vmatpush1.bf16.msra.mxu0 %v3399_v38  ;;  %3074 = vmatprep.subr.bf16.mxu1 %v3407_v41  ;;  %v3485_v38 = vld [vmem:[%s4752_s1 + $0x698] ss:$12 sps:$4 sm:$0xff]   ;;  %v3489_v41 = vld [vmem:[%s4752_s1 + $0x6b0] ss:$12 sps:$4 sm:$0xff]  }
  0xc5   : > { %1988 = vmatprep.subr.bf16.mxu0 %v3406_v40  ;;  %v3486_v40 = vld [vmem:[%s4752_s1 + $0x6a8] ss:$12 sps:$4 sm:$0xff]  }
  0xc7   : > { %3075 = vmatpush3.bf16.msra.mxu1 %v3408_v43  ;;  %v505_v43 = vld [vmem:[%s4752_s1 + $0x6d8] sm:$0x11] }
  0xc8   : > { %1989 = vmatpush1.bf16.msra.mxu0 %v3404_v42  ;;  %3088 = vmatprep.subr.bf16.mxu1 %v3412_v45  ;;  %v3492_v42 = vld [vmem:[%s4752_s1 + $0x6c4] ss:$12 sps:$4 sm:$0xff]   ;;  %v3493_v45 = vld [vmem:[%s4752_s1 + $0x6c8] ss:$12 sps:$4 sm:$0xff]  }
  0xc9   : > { %1990 = vmatprep.subr.bf16.mxu0 %v3411_v44  ;;  %v3490_v44 = vld [vmem:[%s4752_s1 + $0x6c0] ss:$12 sps:$4 sm:$0xff]  }
  0xca   : > { %2211 = vmatmul.mubr.bf16.vlgmr.msra.gmra.mrb[24].mxu1 %v4100_v11  ;;  %v3450_v11 = vld [vmem:[%s4752_s1 + $0x5f0] ss:$12 sps:$4 sm:$0xff]  }
  0xcb   : > { %3089 = vmatpush3.bf16.msra.mxu1 %v3413_v48  ;;  %2218 = vmatprep.mubr.bf16.mxu1 %v4142_v23  ;;  %v3468_v23 = vld [vmem:[%s3804_s13 + $0x68] ss:$40 sps:$4 sm:$0xff]   ;;  %v3496_v48 = vld [vmem:[%s4752_s1 + $0x6e0] ss:$0 sps:$4 sm:$0x11]  }
  0xcc   : > { %1991 = vmatpush1.bf16.msra.mxu0 %v3409_v47  ;;  %3090 = vmatprep.subr.bf16.mxu1 %v3417_v50  ;;  %v2994_v47 = vcombine.low %v505_v43, %v505_v43  ;;  %v1813_v50 = vsel %vm1805_vm1, %v3496_v48, 0 }
  0xcd   : > { %1992 = vmatprep.subr.bf16.mxu0 %v3416_v49 }
  0xce   : > { %v1807_v49 = vsel %vm1805_vm1, %v2994_v47, 0 }
  0xcf   : > { %3091 = vmatpush3.bf16.msra.mxu1 %v3418_v53  ;;  %v3500_v53 = vld [vmem:[%s3804_s13 + $0x74] ss:$40 sps:$4 sm:$0xff]  }
  0xd0   : > { %1993 = vmatpush1.bf16.msra.mxu0 %v3414_v52  ;;  %3092 = vmatprep.subr.bf16.mxu1 %v3425_v55  ;;  %v3497_v52 = vld [vmem:[%s3804_s13 + $0x20] ss:$40 sps:$4 sm:$0xff]  }
  0xd1   : > { %1994 = vmatprep.subr.bf16.mxu0 %v3423_v54  ;;  %v3502_v54 = vld [vmem:[%s3804_s13 + $0x70] ss:$40 sps:$4 sm:$0xff]  }
  0xd2   : > { %2219 = vmatmul.mubr.bf16.gmra.mrb[28].mxu1 %v4156_v27  ;;  %v3499_v27 = vld [vmem:[%s3804_s13 + $0x24] ss:$40 sps:$4 sm:$0xff]   ;;  %s3157_s13 = smul.u32 24, %s4764_s15 }
  0xd3   : > { %3093 = vmatpush3.bf16.msra.mxu1 %v3426_v57  ;;  %2259 = vmatprep.mubr.bf16.mxu1 %v3454_v46  ;;  %v2995_v46 = vcombine.high %v505_v43, %v505_v43 }
  0xd4   : > { %1995 = vmatpush1.bf16.msra.mxu0 %v3421_v56  ;;  %3094 = vmatprep.subr.bf16.mxu1 %v3430_v59  ;;  %s4651_s17 = scalar_lea.vmem %s4754_s3, %s3157_s13 }
  0xd5   : > { %1996 = vmatprep.subr.bf16.mxu0 %v3429_v58 }
  0xd7   : > { %3095 = vmatpush3.bf16.msra.mxu1 %v3431_v61 }
  0xd8   : > { %1997 = vmatpush1.bf16.msra.mxu0 %v3427_v60  ;;  %3096 = vmatprep.subr.bf16.mxu1 %v3435_v51 }
  0xd9   : > { %1998 = vmatprep.subr.bf16.mxu0 %v3434_v62 }
  0xdb   : > { %3097 = vmatpush3.bf16.msra.mxu1 %v3436_v0 }
  0xdc   : > { %1999 = vmatpush1.bf16.msra.mxu0 %v3432_v63  ;;  %3098 = vmatprep.subr.bf16.mxu1 %v3440_v2 }
  0xdd   : > { %2000 = vmatprep.subr.bf16.mxu0 %v3439_v1 }
  0xdf   : > { %3099 = vmatpush3.bf16.msra.mxu1 %v3441_v5 }
  0xe0   : > { %2001 = vmatpush1.bf16.msra.mxu0 %v3437_v3  ;;  %3100 = vmatprep.subr.bf16.mxu1 %v3445_v7 }
  0xe1   : > { %2002 = vmatprep.subr.bf16.mxu0 %v3444_v6 }
  0xe3   : > { %3101 = vmatpush3.bf16.msra.mxu1 %v3446_v9 }
  0xe4   : > { %2003 = vmatpush1.bf16.msra.mxu0 %v3442_v8  ;;  %3102 = vmatprep.subr.bf16.mxu1 %v3450_v11  ;;  %v509_v11 = vlaneseq }
  0xe5   : > { %2004 = vmatprep.subr.bf16.mxu0 %v3449_v10 }
  0xe7   : > { %3103 = vmatpush3.bf16.msra.mxu1 %v3451_v13 }
  0xe8   : > { %2005 = vmatpush1.bf16.msra.mxu0 %v3447_v12  ;;  %2276 = vmatprep.subr.bf16.mxu1 %v3592_v18  ;;  %v510_v12 = vshrl.u32 %v509_v11, 7 }
  0xe9   : > { %2027 = vmatprep.subr.bf16.mxu0 %v3457_v14  ;;  %v507_v14 = vld [vmem:[#allocation2] sm:$0x7] }
  0xea   : > { %2260 = vmatmul.mubr.bf16.vlgmr.msra.gmra.mrb[32].mxu1 %v3452_v15  ;;  %v519_v13 = vsub.s32 2, %v510_v12 }
  0xeb   : > { %2007 = vmatmul.mubr.bf16.vlgmr.msra.gmra.mrb[0].mxu0 %v3452_v15  ;;  %2277 = vmatpush1.bf16.msra.mxu1 %v3458_v17 }
  0xec   : > { %2028 = vmatpush1.bf16.msra.mxu0 %v3455_v16  ;;  %2278 = vmatprep.subr.bf16.mxu1 %v3592_v18  ;;  %v520_v15 = vrot.slane %v507_v14, %v519_v13  ;;  %v511_v13 = vsub.s32 0, %v510_v12 }
  0xed   : > { %2029 = vmatprep.subr.bf16.mxu0 %v3461_v19  ;;  %2267 = vmatprep.mubr.bf16.mxu1 %v3463_v4 }
  0xee   : > { %2016 = vmatprep.mubr.bf16.mxu0 %v3463_v4 }
  0xef   : > { %2279 = vmatpush1.bf16.msra.mxu1 %v3462_v21 }
  0xf0   : > { %2030 = vmatpush1.bf16.msra.mxu0 %v3459_v20  ;;  %2280 = vmatprep.subr.bf16.mxu1 %v3592_v18 }
  0xf1   : > { %2031 = vmatprep.subr.bf16.mxu0 %v3467_v22 }
  0xf2   : > { %2268 = vmatmul.mubr.bf16.gmra.mrb[36].mxu1 %v3468_v23 }
  0xf3   : > { %2017 = vmatmul.mubr.bf16.gmra.mrb[4].mxu0 %v3468_v23  ;;  %2281 = vmatpush1.bf16.msra.mxu1 %v3469_v25 }
  0xf4   : > { %2032 = vmatpush1.bf16.msra.mxu0 %v3465_v24  ;;  %2282 = vmatprep.subr.bf16.mxu1 %v3592_v18 }
  0xf5   : > { %2033 = vmatprep.subr.bf16.mxu0 %v3472_v26  ;;  %2998 = vmatprep.mubr.msk.bf16.mxu0 %vm1798_vm0, %v3499_v27 }
  0xf6   : > { %3000 = vmatprep.mubr.msk.bf16.mxu1 %vm1798_vm0, %v3499_v27 }
  0xf7   : > { %2283 = vmatpush1.bf16.msra.mxu1 %v3473_v29 }
  0xf8   : > { %2034 = vmatpush1.bf16.msra.mxu0 %v3470_v28  ;;  %2284 = vmatprep.subr.bf16.mxu1 %v3592_v18 }
  0xf9   : > { %2035 = vmatprep.subr.bf16.mxu0 %v3476_v30 }
  0xfb   : > { %2285 = vmatpush1.bf16.msra.mxu1 %v3477_v32 }
  0xfc   : > { %2036 = vmatpush1.bf16.msra.mxu0 %v3474_v31  ;;  %2286 = vmatprep.subr.bf16.mxu1 %v3592_v18 }
  0xfd   : > { %2037 = vmatprep.subr.bf16.mxu0 %v3480_v33 }
  0xff   : > { %2287 = vmatpush1.bf16.msra.mxu1 %v3481_v35 }
 0x100   : > { %2038 = vmatpush1.bf16.msra.mxu0 %v3478_v34  ;;  %2288 = vmatprep.subr.bf16.mxu1 %v3592_v18 }
 0x101   : > { %2039 = vmatprep.subr.bf16.mxu0 %v3484_v36 }
 0x103   : > { %2289 = vmatpush1.bf16.msra.mxu1 %v3485_v38 }
 0x104   : > { %2040 = vmatpush1.bf16.msra.mxu0 %v3482_v37  ;;  %2290 = vmatprep.subr.bf16.mxu1 %v3592_v18 }
 0x105   : > { %2041 = vmatprep.subr.bf16.mxu0 %v3488_v39 }
 0x107   : > { %2291 = vmatpush1.bf16.msra.mxu1 %v3489_v41 }
 0x108   : > { %2042 = vmatpush1.bf16.msra.mxu0 %v3486_v40  ;;  %2292 = vmatprep.subr.bf16.mxu1 %v3592_v18 }
 0x109   : > { %2043 = vmatprep.subr.bf16.mxu0 %v3492_v42 }
 0x10b   : > { %2293 = vmatpush1.bf16.msra.mxu1 %v3493_v45 }
 0x10c   : > { %2044 = vmatpush1.bf16.msra.mxu0 %v3490_v44  ;;  %2294 = vmatprep.subr.bf16.mxu1 %v3592_v18 }
 0x10d   : > { %2997 = vmatprep.subr.msk.bf16.mxu0 %vm1805_vm1, %v2995_v46 }
 0x10f   : > { %2295 = vmatpush1.bf16.msra.mxu1 %v1813_v50 }
 0x110   : > { %2046 = vmatpush1.bf16.msra.mxu0 %v1807_v49 }
 0x112   : > { %2309 = vmatmul.mubr.bf16.vlgmr.msra.gmra.mrb[40].mxu1 %v3497_v52 }
 0x113   : > { %2060 = vmatmul.mubr.bf16.vlgmr.msra.gmra.mrb[0].mxu0 %v3497_v52  ;;  %3001 = vmatprep.mubr.msk.bf16.mxu1 %vm1798_vm0, %v3500_v53 }
 0x114   : > { %2999 = vmatprep.mubr.msk.bf16.mxu0 %vm1798_vm0, %v3500_v53 }
 0x11a   : > { %2317 = vmatmul.mubr.bf16.gmra.mrb[44].mxu1 %v3502_v54 }
 0x11b   : > { %2070 = vmatmul.mubr.bf16.gmra.mrb[4].mxu0 %v3502_v54 }
 0x13d   : > { %v4416_v55 = vpop.f32.mrb[0].mxu1 }
 0x13e   : > { %v4418_v56 = vpop.f32.mrb[1].mxu1 }
 0x13f   : > { %v4420_v57 = vpop.f32.mrb[2].mxu1 }
 0x140   : > { %v4422_v58 = vpop.f32.mrb[3].mxu1 }
 0x145   : > { %v4424_v59 = vpop.f32.mrb[4].mxu1 }
 0x146   : > { %v4426_v60 = vpop.f32.mrb[5].mxu1 }
 0x147   : > { %v4428_v61 = vpop.f32.mrb[6].mxu1 }
 0x148   : > { %v4430_v62 = vpop.f32.mrb[7].mxu1 }
 0x15d   : > { %v3020_v51 = vpop.f32.mrb[8].mxu1 }
 0x15e   : > { %v3021_v63 = vpop.f32.mrb[9].mxu1 }
 0x15f   : > { %v3022_v0 = vadd.f32 %v3021_v63, %v3020_v51  ;;  %v3023_v1 = vpop.f32.mrb[10].mxu1 }
 0x160   : > { %v3024_v2 = vpop.f32.mrb[11].mxu1 }
 0x161   : > { %v3025_v3 = vadd.f32 %v3024_v2, %v3023_v1  ;;  %v2115_v18 = vadd.f32 %v3022_v0, %v520_v15 }
 0x163   : > { %v2118_v21 = vadd.f32 %v3025_v3, %v520_v15 }
 0x165   : > { %v3026_v5 = vpop.f32.mrb[12].mxu1 }
 0x166   : > { %v3027_v6 = vpop.f32.mrb[13].mxu1 }
 0x167   : > { %v3028_v7 = vadd.f32 %v3027_v6, %v3026_v5  ;;  %v3029_v8 = vpop.f32.mrb[14].mxu1 }
 0x168   : > { %v3030_v9 = vpop.f32.mrb[15].mxu1 }
 0x169   : > { %v3031_v10 = vadd.f32 %v3030_v9, %v3029_v8  ;;  %v2123_v27 = vadd.f32 %v3028_v7, %v520_v15 }
 0x16b   : > { %v2126_v31 = vadd.f32 %v3031_v10, %v520_v15  ;;  %v515_v15 = vsub.s32 1, %v510_v12 }
 0x17d   : > { %v3048_v16 = vpop.f32.mrb[16].mxu1 }
 0x17e   : > { %v3049_v17 = vpop.f32.mrb[17].mxu1 }
 0x17f   : > { %v3050_v19 = vadd.f32 %v3049_v17, %v3048_v16  ;;  %v3051_v4 = vpop.f32.mrb[18].mxu1  ;;  %v512_v16 = vrot.slane %v507_v14, %v511_v13  ;;  %v516_v17 = vrot.slane %v507_v14, %v515_v15 }
 0x180   : > { %v3052_v20 = vpop.f32.mrb[19].mxu1 }
 0x181   : > { %v2164_v22 = vadd.f32 %v3050_v19, %v2115_v18  ;;  %v3053_v23 = vadd.f32 %v3052_v20, %v3051_v4  ;;  %v1850_v18 = vadd.f32 %v4416_v55, %v512_v16  ;;  %v1852_v19 = vadd.f32 %v4418_v56, %v516_v17 }
 0x182   : > { %v1856_v12 = vadd.f32 %v4422_v58, %v516_v17  ;;  %v4445_v14 = vadd.f32 %v4424_v59, %v512_v16 }
 0x183   : > { %v2167_v24 = vadd.f32 %v3053_v23, %v2118_v21 }
 0x185   : > { %v3054_v25 = vpop.f32.mrb[20].mxu1 }
 0x186   : > { %v3055_v26 = vpop.f32.mrb[21].mxu1 }
 0x187   : > { %v3056_v28 = vadd.f32 %v3055_v26, %v3054_v25  ;;  %v3057_v29 = vpop.f32.mrb[22].mxu1  ;;  %v1854_v25 = vadd.f32 %v4420_v57, %v512_v16 }
 0x188   : > { %v3058_v30 = vpop.f32.mrb[23].mxu1 }
 0x189   : > { %v2172_v32 = vadd.f32 %v3056_v28, %v2123_v27  ;;  %v3059_v33 = vadd.f32 %v3058_v30, %v3057_v29  ;;  %v4453_v29 = vadd.f32 %v4426_v60, %v516_v17  ;;  %v4467_v60 = vadd.f32 %v4428_v61, %v512_v16 }
 0x18b   : > { %v2175_v34 = vadd.f32 %v3059_v33, %v2126_v31 }
 0x19d   : > { %v3076_v35 = vpop.f32.mrb[24].mxu1 }
 0x19e   : > { %v3077_v36 = vpop.f32.mrb[25].mxu1 }
 0x19f   : > { %v3078_v37 = vadd.f32 %v3077_v36, %v3076_v35  ;;  %v3079_v38 = vpop.f32.mrb[26].mxu1  ;;  %v4475_v36 = vadd.f32 %v4430_v62, %v516_v17 }
 0x1a0   : > { %v3080_v39 = vpop.f32.mrb[27].mxu1 }
 0x1a1   : > { %v2213_v40 = vadd.f32 %v3078_v37, %v2164_v22  ;;  %v3081_v41 = vadd.f32 %v3080_v39, %v3079_v38 }
 0x1a3   : > { %v2216_v42 = vadd.f32 %v3081_v41, %v2167_v24 }
 0x1a5   : > { %v3082_v43 = vpop.f32.mrb[28].mxu1 }
 0x1a6   : > { %v3083_v44 = vpop.f32.mrb[29].mxu1 }
 0x1a7   : > { %v3084_v45 = vadd.f32 %v3083_v44, %v3082_v43  ;;  %v3085_v46 = vpop.f32.mrb[30].mxu1 }
 0x1a8   : > { %v3086_v47 = vpop.f32.mrb[31].mxu1 }
 0x1a9   : > { %v2221_v48 = vadd.f32 %v3084_v45, %v2172_v32  ;;  %v3087_v49 = vadd.f32 %v3086_v47, %v3085_v46 }
 0x1ab   : > { %v2224_v50 = vadd.f32 %v3087_v49, %v2175_v34 }
 0x1bd   : > { %v3104_v52 = vpop.f32.mrb[32].mxu1 }
 0x1be   : > { %v3105_v53 = vpop.f32.mrb[33].mxu1 }
 0x1bf   : > { %v3106_v54 = vadd.f32 %v3105_v53, %v3104_v52  ;;  %v3107_v51 = vpop.f32.mrb[34].mxu1 }
 0x1c0   : > { %v3108_v63 = vpop.f32.mrb[35].mxu1 }
 0x1c1   : > { %v3109_v0 = vadd.f32 %v3108_v63, %v3107_v51  ;;  %v2262_v1 = vadd.f32 %v3106_v54, %v2213_v40 }
 0x1c3   : > { %v2265_v2 = vadd.f32 %v3109_v0, %v2216_v42 }
 0x1c5   : > { %v3110_v3 = vpop.f32.mrb[36].mxu1 }
 0x1c6   : > { %v3111_v5 = vpop.f32.mrb[37].mxu1 }
 0x1c7   : > { %v3112_v6 = vadd.f32 %v3111_v5, %v3110_v3  ;;  %v3113_v7 = vpop.f32.mrb[38].mxu1 }
 0x1c8   : > { %v3114_v8 = vpop.f32.mrb[39].mxu1 }
 0x1c9   : > { %v3115_v9 = vadd.f32 %v3114_v8, %v3113_v7  ;;  %v4432_v10 = vadd.f32 %v3112_v6, %v2221_v48 }
 0x1cb   : > { %v4434_v11 = vadd.f32 %v3115_v9, %v2224_v50 }
 0x1e5   : > { %v2310_v20 = vpop.f32.mrb[40].mxu1 }
 0x1e6   : > { %v2061_v4 = vpop.f32.mrb[0].mxu0  ;;  %v4438_v22 = vadd.f32 %v2310_v20, %v2262_v1  ;;  %v2312_v24 = vpop.f32.mrb[41].mxu1 }
 0x1e7   : > { %v3117_v21 = vadd.f32 %v2061_v4, %v1850_v18  ;;  %v2063_v23 = vpop.f32.mrb[1].mxu0  ;;  %v2313_v28 = vpop.f32.mrb[42].mxu1 }
 0x1e8   : > { %v4441_v26 = vadd.f32 %v2063_v23, %v1852_v19  ;;  %v2065_v27 = vpop.f32.mrb[2].mxu0  ;;  %v4450_v56 = vmul.f32 0.70710677, %v4438_v22  ;;  %v4460_v31 = vadd.f32 %v2313_v28, %v2265_v2  ;;  %v2315_v58 = vpop.f32.mrb[43].mxu1  ;;  %v4510_v23 = vmul.f32 0.5, %v4438_v22 }
 0x1e9   : > { %v4447_v55 = vmul.f32 0.70710677, %v3117_v21  ;;  %v4458_v57 = vadd.f32 %v2065_v27, %v1854_v25  ;;  %v2067_v32 = vpop.f32.mrb[3].mxu0  ;;  %v4502_v15 = vmul.f32 0.5, %v3117_v21 }
 0x1ea   : > { %v4456_v30 = vmul.f32 0.70710677, %v4441_v26  ;;  %vm2351_vm3 = vcmp.lt.f32.partialorder %v4450_v56, 0.0  ;;  %v2363_v33 = vsub.f32 0.0, %v4450_v56  ;;  %v4484_v61 = vmul.f32 0.70710677, %v4460_v31 }
 0x1eb   : > { %vm2349_vm2 = vcmp.lt.f32.partialorder %v4447_v55, 0.0  ;;  %v2361_v59 = vsub.f32 0.0, %v4447_v55  ;;  %v4472_v35 = vmul.f32 0.70710677, %v4458_v57  ;;  %v4507_v18 = vadd.f32 %v2067_v32, %v1856_v12 }
 0x1ec   : > { %vm2350_vm4 = vcmp.lt.f32.partialorder %v4456_v30, 0.0  ;;  %v2362_v34 = vsub.f32 0.0, %v4456_v30  ;;  %v2375_v38 = vsel %vm2351_vm3, %v2363_v33, %v4450_v56  ;;  %vm2354_vm6 = vcmp.lt.f32.partialorder %v4484_v61, 0.0 }
 0x1ed   : > { %v2373_v37 = vsel %vm2349_vm2, %v2361_v59, %v4447_v55  ;;  %v2387_v41 = vmul.f32 0.3275911, %v2375_v38  ;;  %v2543_v42 = vsub.f32 0.0, %v2375_v38  ;;  %vm2352_vm5 = vcmp.lt.f32.partialorder %v4472_v35, 0.0  ;;  %v2318_v45 = vpop.f32.mrb[44].mxu1 }
 0x1ee   : > { %v2385_v39 = vmul.f32 0.3275911, %v2373_v37  ;;  %v2541_v40 = vsub.f32 0.0, %v2373_v37  ;;  %v2374_v62 = vsel %vm2350_vm4, %v2362_v34, %v4456_v30  ;;  %v2364_v43 = vsub.f32 0.0, %v4472_v35  ;;  %v2071_v44 = vpop.f32.mrb[4].mxu0  ;;  %v2320_v52 = vpop.f32.mrb[45].mxu1 }
 0x1ef   : > { %v2399_v48 = vadd.f32 1.0, %v2387_v41  ;;  %v2555_v49 = vmul.f32 %v2543_v42, %v2375_v38  ;;  %v2073_v50 = vpop.f32.mrb[5].mxu0  ;;  %v2386_v53 = vmul.f32 0.3275911, %v2374_v62  ;;  %v2542_v54 = vsub.f32 0.0, %v2374_v62  ;;  %v4498_v1 = vpop.f32.mrb[46].mxu1 }
 0x1f0   : > { %v2397_v46 = vadd.f32 1.0, %v2385_v39  ;;  %v2553_v47 = vmul.f32 %v2541_v40, %v2373_v37  ;;  %v2376_v51 = vsel %vm2352_vm5, %v2364_v43, %v4472_v35  ;;  %v2366_v63 = vsub.f32 0.0, %v4484_v61  ;;  %v4496_v0 = vpop.f32.mrb[6].mxu0  ;;  %v2323_v13 = vpop.f32.mrb[47].mxu1 }
 0x1f1   : > { %v2569_v3 = vmul.f32 1.442695, %v2555_v49  ;;  %v2388_v5 = vmul.f32 0.3275911, %v2376_v51  ;;  %v2398_v6 = vadd.f32 1.0, %v2386_v53  ;;  %v2554_v7 = vmul.f32 %v2542_v54, %v2374_v62  ;;  %v4500_v9 = vpop.f32.mrb[7].mxu0 }
 0x1f2   : > { %3503 = vrcp.f32 %v2397_v46  ;;  %v2565_v2 = vmul.f32 1.442695, %v2553_v47  ;;  %v2544_v8 = vsub.f32 0.0, %v2376_v51  ;;  %v2378_v17 = vsel %vm2354_vm6, %v2366_v63, %v4484_v61 }
 0x1f3   : > { %3505 = vrcp.f32 %v2399_v48  ;;  %v2400_v16 = vadd.f32 1.0, %v2388_v5  ;;  %v2567_v19 = vmul.f32 1.442695, %v2554_v7  ;;  %v2390_v20 = vmul.f32 0.3275911, %v2378_v17 }
 0x1f4   : > { %3507 = vpow2.f32 %v2565_v2  ;;  %v2556_v4 = vmul.f32 %v2544_v8, %v2376_v51  ;;  %v2546_v24 = vsub.f32 0.0, %v2378_v17  ;;  %v4513_v25 = vmul.f32 0.70710677, %v4507_v18 }
 0x1f5   : > { %3509 = vrcp.f32 %v2398_v6  ;;  %v2402_v27 = vadd.f32 1.0, %v2390_v20  ;;  %v4516_v28 = vadd.f32 %v2071_v44, %v4445_v14  ;;  %v4521_v22 = vmul.f32 0.5, %v4441_v26 }
 0x1f6   : > { %3511 = vpow2.f32 %v2569_v3  ;;  %v2571_v21 = vmul.f32 1.442695, %v2556_v4  ;;  %v2558_v12 = vmul.f32 %v2546_v24, %v2378_v17  ;;  %vm2353_vm7 = vcmp.lt.f32.partialorder %v4513_v25, 0.0 }
 0x1f7   : > { %3513 = vrcp.f32 %v2400_v16  ;;  %v2365_v32 = vsub.f32 0.0, %v4513_v25  ;;  %v4524_v58 = vmul.f32 0.70710677, %v4516_v28  ;;  %v4527_v59 = vadd.f32 %v2318_v45, %v4432_v10 }
 0x1f8   : > { %3515 = vpow2.f32 %v2567_v19  ;;  %v4530_v33 = vmul.f32 0.5, %v4458_v57  ;;  %v4536_v34 = vadd.f32 %v2073_v50, %v4453_v29  ;;  %v4543_v10 = vmul.f32 0.5, %v4460_v31 }
 0x1f9   : > { %3517 = vrcp.f32 %v2402_v27  ;;  %v2377_v14 = vsel %vm2353_vm7, %v2365_v32, %v4513_v25  ;;  %vm2355_vm8 = vcmp.lt.f32.partialorder %v4524_v58, 0.0  ;;  %v2367_v38 = vsub.f32 0.0, %v4524_v58 }
 0x1fa   : > { %v2389_v26 = vmul.f32 0.3275911, %v2377_v14  ;;  %v2545_v37 = vsub.f32 0.0, %v2377_v14  ;;  %3519 = vpow2.f32 %v2571_v21  ;;  %v2575_v57 = vmul.f32 1.442695, %v2558_v12 }
 0x1fb   : > { %v4546_v40 = vmul.f32 0.70710677, %v4527_v59  ;;  %v2379_v43 = vsel %vm2355_vm8, %v2367_v38, %v4524_v58  ;;  %v4572_v8 = vmul.f32 0.70710677, %v4536_v34  ;;  %v4579_v4 = vadd.f32 %v4496_v0, %v4467_v60 }
 0x1fc   : > { %v4540_v39 = vpop.eup %3503  ;;  %v2401_v42 = vadd.f32 1.0, %v2389_v26  ;;  %v2557_v62 = vmul.f32 %v2545_v37, %v2377_v14  ;;  %v2391_v45 = vmul.f32 0.3275911, %v2379_v43  ;;  %v2547_v46 = vsub.f32 0.0, %v2379_v43 }
 0x1fd   : > { %v4548_v41 = vpop.eup %3505  ;;  %v2433_v29 = vmul.f32 1.0614054, %v4540_v39  ;;  %vm2357_vm9 = vcmp.lt.f32.partialorder %v4546_v40, 0.0  ;;  %v2369_v49 = vsub.f32 0.0, %v4546_v40  ;;  %vm2356_vm10 = vcmp.lt.f32.partialorder %v4572_v8, 0.0 }
 0x1fe   : > { %v2435_v44 = vmul.f32 1.0614054, %v4548_v41  ;;  %v4556_v31 = vpop.eup %3507  ;;  %3521 = vrcp.f32 %v2401_v42  ;;  %v2573_v48 = vmul.f32 1.442695, %v2557_v62  ;;  %v2403_v53 = vadd.f32 1.0, %v2391_v45 }
 0x1ff   : > { %v2445_v47 = vadd.f32 -1.4531521, %v2433_v29  ;;  %v4559_v50 = vpop.eup %3509  ;;  %3523 = vpow2.f32 %v2575_v57  ;;  %v2559_v54 = vmul.f32 %v2547_v46, %v2379_v43  ;;  %v2381_v3 = vsel %vm2357_vm9, %v2369_v49, %v4546_v40 }
 0x200   : > { %v2447_v52 = vadd.f32 -1.4531521, %v2435_v44  ;;  %v4561_v51 = vpop.eup %3511  ;;  %v2434_v2 = vmul.f32 1.0614054, %v4559_v50  ;;  %3525 = vpow2.f32 %v2573_v48  ;;  %v2393_v7 = vmul.f32 0.3275911, %v2381_v3 }
 0x201   : > { %v2457_v63 = vmul.f32 %v4540_v39, %v2445_v47  ;;  %v4568_v5 = vpop.eup %3513  ;;  %3527 = vrcp.f32 %v2403_v53  ;;  %v2577_v21 = vmul.f32 1.442695, %v2559_v54  ;;  %v2549_v12 = vsub.f32 0.0, %v2381_v3 }
 0x202   : > { %v2459_v6 = vmul.f32 %v4548_v41, %v2447_v52  ;;  %v4574_v13 = vpop.eup %3515  ;;  %v2446_v17 = vadd.f32 -1.4531521, %v2434_v2  ;;  %v2436_v19 = vmul.f32 1.0614054, %v4568_v5  ;;  %v2405_v27 = vadd.f32 1.0, %v2393_v7 }
 0x203   : > { %v2469_v16 = vadd.f32 1.4214138, %v2457_v63  ;;  %v4581_v20 = vpop.eup %3517  ;;  %v2561_v60 = vmul.f32 %v2549_v12, %v2381_v3  ;;  %v2368_v45 = vsub.f32 0.0, %v4572_v8  ;;  %v4614_v12 = vadd.f32 %v4498_v1, %v4434_v11 }
 0x204   : > { %v2471_v24 = vadd.f32 1.4214138, %v2459_v6  ;;  %v2458_v14 = vmul.f32 %v4559_v50, %v2446_v17  ;;  %v2448_v26 = vadd.f32 -1.4531521, %v2436_v19  ;;  %v2438_v37 = vmul.f32 1.0614054, %v4581_v20  ;;  %v4586_v38 = vpop.eup %3519 }
 0x205   : > { %v2481_v32 = vmul.f32 %v4540_v39, %v2469_v16  ;;  %3529 = vrcp.f32 %v2405_v27  ;;  %v2581_v44 = vmul.f32 1.442695, %v2561_v60  ;;  %v4604_v2 = vsel %vm2356_vm10, %v2368_v45, %v4572_v8 }
 0x206   : > { %v2483_v57 = vmul.f32 %v4548_v41, %v2471_v24  ;;  %v2470_v29 = vadd.f32 1.4214138, %v2458_v14  ;;  %v2460_v42 = vmul.f32 %v4568_v5, %v2448_v26  ;;  %v2450_v62 = vadd.f32 -1.4531521, %v2438_v37 }
 0x207   : > { %v2493_v0 = vadd.f32 -0.28449672, %v2481_v32  ;;  %3531 = vpow2.f32 %v2577_v21  ;;  %v2392_v27 = vmul.f32 0.3275911, %v4604_v2  ;;  %v4681_v61 = vmul.f32 0.70710677, %v4579_v4 }
 0x208   : > { %v2495_v43 = vadd.f32 -0.28449672, %v2483_v57  ;;  %v4592_v46 = vpop.eup %3521  ;;  %v2482_v48 = vmul.f32 %v4559_v50, %v2470_v29  ;;  %v2472_v49 = vadd.f32 1.4214138, %v2460_v42  ;;  %v2462_v52 = vmul.f32 %v4581_v20, %v2450_v62 }
 0x209   : > { %v2505_v47 = vmul.f32 %v4540_v39, %v2493_v0  ;;  %v4597_v53 = vpop.eup %3523  ;;  %v2437_v63 = vmul.f32 1.0614054, %v4592_v46  ;;  %3533 = vpow2.f32 %v2581_v44  ;;  %v2404_v29 = vadd.f32 1.0, %v2392_v27 }
 0x20a   : > { %v2507_v54 = vmul.f32 %v4548_v41, %v2495_v43  ;;  %v4606_v3 = vpop.eup %3525  ;;  %v2494_v7 = vadd.f32 -0.28449672, %v2482_v48  ;;  %v2484_v16 = vmul.f32 %v4568_v5, %v2472_v49  ;;  %v2474_v17 = vadd.f32 1.4214138, %v2462_v52 }
 0x20b   : > { %v2517_v6 = vadd.f32 0.2548296, %v2505_v47  ;;  %v4609_v19 = vpop.eup %3527  ;;  %v2449_v21 = vadd.f32 -1.4531521, %v2437_v63  ;;  %3535 = vrcp.f32 %v2404_v29  ;;  %vm2358_vm12 = vcmp.lt.f32.partialorder %v4681_v61, 0.0 }
 0x20c   : > { %v2519_v24 = vadd.f32 0.2548296, %v2507_v54  ;;  %v2506_v14 = vmul.f32 %v4559_v50, %v2494_v7  ;;  %v2496_v26 = vadd.f32 -0.28449672, %v2484_v16  ;;  %v2486_v37 = vmul.f32 %v4581_v20, %v2474_v17 }
 0x20d   : > { %v2529_v32 = vmul.f32 %v4540_v39, %v2517_v6  ;;  %v2461_v60 = vmul.f32 %v4592_v46, %v2449_v21  ;;  %v2439_v0 = vmul.f32 1.0614054, %v4609_v19  ;;  %v2332_v40 = vmul.f32 0.5, %v4536_v34 }
 0x20e   : > { %v2531_v57 = vmul.f32 %v4548_v41, %v2519_v24  ;;  %v2518_v62 = vadd.f32 0.2548296, %v2506_v14  ;;  %v2508_v11 = vmul.f32 %v4568_v5, %v2496_v26  ;;  %v2498_v1 = vadd.f32 -0.28449672, %v2486_v37 }
 0x20f   : > { %v2589_v42 = vmul.f32 %v4556_v31, %v2529_v32  ;;  %v4624_v39 = vpop.eup %3529  ;;  %v2473_v44 = vadd.f32 1.4214138, %v2461_v60  ;;  %v2451_v45 = vadd.f32 -1.4531521, %v2439_v0  ;;  %v2548_v32 = vsub.f32 0.0, %v4604_v2 }
 0x210   : > { %v2591_v43 = vmul.f32 %v4561_v51, %v2531_v57  ;;  %v2530_v47 = vmul.f32 %v4559_v50, %v2518_v62  ;;  %v2520_v48 = vadd.f32 0.2548296, %v2508_v11  ;;  %v2510_v49 = vmul.f32 %v4581_v20, %v2498_v1 }
 0x211   : > { %v2601_v41 = vsub.f32 1.0, %v2589_v42  ;;  %v4629_v31 = vpop.eup %3531  ;;  %v2485_v54 = vmul.f32 %v4592_v46, %v2473_v44  ;;  %v2463_v63 = vmul.f32 %v4609_v19, %v2451_v45  ;;  %v2441_v6 = vmul.f32 1.0614054, %v4624_v39 }
 0x212   : > { %v2603_v52 = vsub.f32 1.0, %v2591_v43  ;;  %v2590_v7 = vmul.f32 %v4574_v13, %v2530_v47  ;;  %v2532_v16 = vmul.f32 %v4568_v5, %v2520_v48  ;;  %v2522_v17 = vadd.f32 0.2548296, %v2510_v49 }
 0x213   : > { %v2613_v51 = vsub.f32 0.0, %v2601_v41  ;;  %v4637_v50 = vpop.eup %3533  ;;  %v2497_v21 = vadd.f32 -0.28449672, %v2485_v54  ;;  %v2475_v27 = vadd.f32 1.4214138, %v2463_v63 }
 0x214   : > { %v2615_v24 = vsub.f32 0.0, %v2603_v52  ;;  %v2602_v26 = vsub.f32 1.0, %v2590_v7  ;;  %v2592_v37 = vmul.f32 %v4586_v38, %v2532_v16  ;;  %v2534_v57 = vmul.f32 %v4581_v20, %v2522_v17 }
 0x215   : > { %v2625_v14 = vsel %vm2349_vm2, %v2613_v51, %v2601_v41  ;;  %v2509_v13 = vmul.f32 %v4592_v46, %v2497_v21  ;;  %v2487_v0 = vmul.f32 %v4609_v19, %v2475_v27  ;;  %v2453_v11 = vadd.f32 -1.4531521, %v2441_v6  ;;  %v4658_v41 = vpop.eup %3535 }
 0x216   : > { %v2637_v60 = vadd.f32 1.0, %v2625_v14  ;;  %v2627_v5 = vsel %vm2351_vm3, %v2615_v24, %v2603_v52  ;;  %v2614_v29 = vsub.f32 0.0, %v2602_v26  ;;  %v2604_v42 = vsub.f32 1.0, %v2592_v37 }
 0x217   : > { %v2639_v55 = vadd.f32 1.0, %v2627_v5  ;;  %v2594_v20 = vmul.f32 %v4597_v53, %v2534_v57  ;;  %v2521_v56 = vadd.f32 0.2548296, %v2509_v13  ;;  %v2499_v62 = vadd.f32 -0.28449672, %v2487_v0 }
 0x218   : > { %v2649_v38 = vmul.f32 %v2637_v60, %v4502_v15  ;;  %v2626_v43 = vsel %vm2350_vm4, %v2614_v29, %v2602_v26  ;;  %v2616_v44 = vsub.f32 0.0, %v2604_v42  ;;  %v2465_v15 = vmul.f32 %v4624_v39, %v2453_v11 }
 0x219   : > { %v2651_v1 = vmul.f32 %v2639_v55, %v4510_v23  ;;  %v2606_v45 = vsub.f32 1.0, %v2594_v20  ;;  %v2638_v47 = vadd.f32 1.0, %v2626_v43  ;;  %v2533_v48 = vmul.f32 %v4592_v46, %v2521_v56 }
 0x21a   : > { %2661 = vst [vmem:[%s4651_s17] sm:$0xff] %v2649_v38  ;;  %v2511_v53 = vmul.f32 %v4609_v19, %v2499_v62  ;;  %v2628_v23 = vsel %vm2352_vm5, %v2616_v44, %v2604_v42  ;;  %v2440_v49 = vmul.f32 1.0614054, %v4658_v41  ;;  %v2560_v52 = vmul.f32 %v2548_v32, %v4604_v2 }
 0x21b   : > { %2664 = vst.msk [vmem:[%s4651_s17 + $0x10] sm:$0xff] %vm2663_vm11, %v2651_v1  ;;  %v2618_v30 = vsub.f32 0.0, %v2606_v45  ;;  %v2650_v54 = vmul.f32 %v2638_v47, %v4521_v22  ;;  %v2640_v63 = vadd.f32 1.0, %v2628_v23  ;;  %v2593_v46 = vmul.f32 %v4606_v3, %v2533_v48 }
 0x21c   : > { %v2523_v6 = vadd.f32 0.2548296, %v2511_v53  ;;  %v2477_v7 = vadd.f32 1.4214138, %v2465_v15  ;;  %v2452_v16 = vadd.f32 -1.4531521, %v2440_v49 }
 0x21d   : > { %v2630_v51 = vsel %vm2354_vm6, %v2618_v30, %v2606_v45  ;;  %v2579_v17 = vmul.f32 1.442695, %v2560_v52  ;;  %2662 = vst [vmem:[%s4651_s17 + $0x8] sm:$0xff] %v2650_v54  ;;  %v2652_v35 = vmul.f32 %v2640_v63, %v4530_v33  ;;  %v2605_v21 = vsub.f32 1.0, %v2593_v46 }
 0x21e   : > { %v2642_v24 = vadd.f32 1.0, %v2630_v51  ;;  %v2535_v2 = vmul.f32 %v4609_v19, %v2523_v6  ;;  %v2329_v22 = vmul.f32 0.5, %v4507_v18  ;;  %v2489_v27 = vmul.f32 %v4624_v39, %v2477_v7 }
 0x21f   : > { %v2464_v3 = vmul.f32 %v4658_v41, %v2452_v16  ;;  %2665 = vst [vmem:[%s4651_s17 + $0x18] sm:$0xff] %v2652_v35  ;;  %v2617_v14 = vsub.f32 0.0, %v2605_v21  ;;  %3537 = vpow2.f32 %v2579_v17  ;;  %v2370_v18 = vsub.f32 0.0, %v4681_v61 }
 0x220   : > { %v2654_v32 = vmul.f32 %v2642_v24, %v4543_v10  ;;  %v2595_v33 = vmul.f32 %v4629_v31, %v2535_v2  ;;  %v2501_v26 = vadd.f32 -0.28449672, %v2489_v27  ;;  %v4693_v60 = vmul.f32 0.70710677, %v4614_v12 }
 0x221   : > { %v2476_v37 = vadd.f32 1.4214138, %v2464_v3  ;;  %v2629_v19 = vsel %vm2353_vm7, %v2617_v14, %v2605_v21  ;;  %v4697_v10 = vadd.f32 %v4500_v9, %v4475_v36  ;;  %v2382_v0 = vsel %vm2358_vm12, %v2370_v18, %v4681_v61 }
 0x222   : > { %2667 = vst.msk [vmem:[%s4651_s17 + $0x28] sm:$0xff] %vm2663_vm11, %v2654_v32  ;;  %v2607_v57 = vsub.f32 1.0, %v2595_v33  ;;  %v2641_v31 = vadd.f32 1.0, %v2629_v19  ;;  %v2513_v5 = vmul.f32 %v4624_v39, %v2501_v26  ;;  %v2394_v55 = vmul.f32 0.3275911, %v2382_v0 }
 0x223   : > { %v2488_v13 = vmul.f32 %v4658_v41, %v2476_v37  ;;  %vm2360_vm13 = vcmp.lt.f32.partialorder %v4693_v60, 0.0  ;;  %v2372_v38 = vsub.f32 0.0, %v4693_v60  ;;  %v2331_v36 = vmul.f32 0.5, %v4516_v28 }
 0x224   : > { %v2619_v25 = vsub.f32 0.0, %v2607_v57  ;;  %v2653_v29 = vmul.f32 %v2641_v31, %v2329_v22  ;;  %v2525_v42 = vadd.f32 0.2548296, %v2513_v5  ;;  %v2406_v56 = vadd.f32 1.0, %v2394_v55 }
 0x225   : > { %v2500_v20 = vadd.f32 -0.28449672, %v2488_v13  ;;  %v2384_v43 = vsel %vm2360_vm13, %v2372_v38, %v4693_v60  ;;  %v4717_v58 = vmul.f32 0.70710677, %v4697_v10  ;;  %v2550_v52 = vsub.f32 0.0, %v2382_v0 }
 0x226   : > { %v2631_v9 = vsel %vm2355_vm8, %v2619_v25, %v2607_v57  ;;  %2666 = vst [vmem:[%s4651_s17 + $0x20] sm:$0xff] %v2653_v29  ;;  %v2537_v11 = vmul.f32 %v4624_v39, %v2525_v42  ;;  %3539 = vrcp.f32 %v2406_v56  ;;  %v2396_v44 = vmul.f32 0.3275911, %v2384_v43 }
 0x227   : > { %v2643_v62 = vadd.f32 1.0, %v2631_v9  ;;  %v2512_v1 = vmul.f32 %v4658_v41, %v2500_v20  ;;  %vm2359_vm14 = vcmp.lt.f32.partialorder %v4717_v58, 0.0  ;;  %v2371_v23 = vsub.f32 0.0, %v4717_v58 }
 0x228   : > { %v2597_v28 = vmul.f32 %v4637_v50, %v2537_v11  ;;  %v2408_v53 = vadd.f32 1.0, %v2396_v44  ;;  %v2562_v35 = vmul.f32 %v2550_v52, %v2382_v0  ;;  %v2552_v24 = vsub.f32 0.0, %v2384_v43 }
 0x229   : > { %v2655_v45 = vmul.f32 %v2643_v62, %v2331_v36  ;;  %v2524_v47 = vadd.f32 0.2548296, %v2512_v1  ;;  %v3538_v48 = vpop.eup %3537  ;;  %v2383_v50 = vsel %vm2359_vm14, %v2371_v23, %v4717_v58  ;;  %v2334_v52 = vmul.f32 0.5, %v4579_v4 }
 0x22a   : > { %v2609_v15 = vsub.f32 1.0, %v2597_v28  ;;  %3541 = vrcp.f32 %v2408_v53  ;;  %v2395_v54 = vmul.f32 0.3275911, %v2383_v50  ;;  %v2583_v32 = vmul.f32 1.442695, %v2562_v35 }
 0x22b   : > { %2668 = vst [vmem:[%s4651_s17 + $0x30] sm:$0xff] %v2655_v45  ;;  %v2536_v39 = vmul.f32 %v4658_v41, %v2524_v47  ;;  %v2333_v41 = vmul.f32 0.5, %v4527_v59  ;;  %v2564_v14 = vmul.f32 %v2552_v24, %v2384_v43  ;;  %v2551_v37 = vsub.f32 0.0, %v2383_v50 }
 0x22c   : > { %v2621_v30 = vsub.f32 0.0, %v2609_v15  ;;  %v2407_v51 = vadd.f32 1.0, %v2395_v54 }
 0x22d   : > { %v2596_v49 = vmul.f32 %v3538_v48, %v2536_v39  ;;  %v2587_v8 = vmul.f32 1.442695, %v2564_v14  ;;  %v2563_v13 = vmul.f32 %v2551_v37, %v2383_v50 }
 0x22e   : > { %v2633_v63 = vsel %vm2357_vm9, %v2621_v30, %v2609_v15  ;;  %3543 = vrcp.f32 %v2407_v51 }
 0x22f   : > { %v2608_v46 = vsub.f32 1.0, %v2596_v49  ;;  %v2645_v6 = vadd.f32 1.0, %v2633_v63  ;;  %3545 = vpow2.f32 %v2583_v32  ;;  %v2585_v20 = vmul.f32 1.442695, %v2563_v13 }
 0x230   : > { %v3540_v16 = vpop.eup %3539  ;;  %3547 = vpow2.f32 %v2587_v8 }
 0x231   : > { %v2620_v7 = vsub.f32 0.0, %v2608_v46  ;;  %v2657_v17 = vmul.f32 %v2645_v6, %v2333_v41  ;;  %v2442_v2 = vmul.f32 1.0614054, %v3540_v16  ;;  %3549 = vpow2.f32 %v2585_v20 }
 0x233   : > { %v2632_v21 = vsel %vm2356_vm10, %v2620_v7, %v2608_v46  ;;  %2670 = vst.msk [vmem:[%s4651_s17 + $0x40] sm:$0xff] %vm2663_vm11, %v2657_v17  ;;  %v2454_v27 = vadd.f32 -1.4531521, %v2442_v2 }
 0x234   : > { %v2644_v22 = vadd.f32 1.0, %v2632_v21  ;;  %v3542_v59 = vpop.eup %3541  ;;  %v2335_v21 = vmul.f32 0.5, %v4697_v10 }
 0x235   : > { %v2466_v33 = vmul.f32 %v3540_v16, %v2454_v27  ;;  %v2444_v26 = vmul.f32 1.0614054, %v3542_v59 }
 0x236   : > { %v2656_v3 = vmul.f32 %v2644_v22, %v2332_v40 }
 0x237   : > { %v2478_v18 = vadd.f32 1.4214138, %v2466_v33  ;;  %v2456_v19 = vadd.f32 -1.4531521, %v2444_v26 }
 0x238   : > { %2669 = vst [vmem:[%s4651_s17 + $0x38] sm:$0xff] %v2656_v3  ;;  %v3544_v5 = vpop.eup %3543 }
 0x239   : > { %v2490_v57 = vmul.f32 %v3540_v16, %v2478_v18  ;;  %v2468_v31 = vmul.f32 %v3542_v59, %v2456_v19  ;;  %v2443_v25 = vmul.f32 1.0614054, %v3544_v5  ;;  %v3546_v1 = vpop.eup %3545 }
 0x23a   : > { %v3548_v53 = vpop.eup %3547 }
 0x23b   : > { %v2502_v0 = vadd.f32 -0.28449672, %v2490_v57  ;;  %v2480_v34 = vadd.f32 1.4214138, %v2468_v31  ;;  %v2455_v42 = vadd.f32 -1.4531521, %v2443_v25  ;;  %v3550_v41 = vpop.eup %3549 }
 0x23d   : > { %v2514_v55 = vmul.f32 %v3540_v16, %v2502_v0  ;;  %v2492_v29 = vmul.f32 %v3542_v59, %v2480_v34  ;;  %v2467_v9 = vmul.f32 %v3544_v5, %v2455_v42 }
 0x23f   : > { %v2526_v38 = vadd.f32 0.2548296, %v2514_v55  ;;  %v2504_v36 = vadd.f32 -0.28449672, %v2492_v29  ;;  %v2479_v11 = vadd.f32 1.4214138, %v2467_v9 }
 0x241   : > { %v2538_v56 = vmul.f32 %v3540_v16, %v2526_v38  ;;  %v2516_v62 = vmul.f32 %v3542_v59, %v2504_v36  ;;  %v2491_v45 = vmul.f32 %v3544_v5, %v2479_v11  ;;  %v2336_v16 = vmul.f32 0.5, %v4614_v12 }
 0x243   : > { %v2598_v43 = vmul.f32 %v3546_v1, %v2538_v56  ;;  %v2528_v44 = vadd.f32 0.2548296, %v2516_v62  ;;  %v2503_v48 = vadd.f32 -0.28449672, %v2491_v45 }
 0x245   : > { %v2610_v28 = vsub.f32 1.0, %v2598_v43  ;;  %v2540_v47 = vmul.f32 %v3542_v59, %v2528_v44  ;;  %v2515_v23 = vmul.f32 %v3544_v5, %v2503_v48 }
 0x247   : > { %v2622_v15 = vsub.f32 0.0, %v2610_v28  ;;  %v2600_v39 = vmul.f32 %v3548_v53, %v2540_v47  ;;  %v2527_v50 = vadd.f32 0.2548296, %v2515_v23 }
 0x249   : > { %v2634_v30 = vsel %vm2358_vm12, %v2622_v15, %v2610_v28  ;;  %v2612_v49 = vsub.f32 1.0, %v2600_v39  ;;  %v2539_v46 = vmul.f32 %v3544_v5, %v2527_v50 }
 0x24a   : > { %v2646_v54 = vadd.f32 1.0, %v2634_v30 }
 0x24b   : > { %v2624_v63 = vsub.f32 0.0, %v2612_v49  ;;  %v2599_v7 = vmul.f32 %v3550_v41, %v2539_v46 }
 0x24c   : > { %v2658_v6 = vmul.f32 %v2646_v54, %v2334_v52 }
 0x24d   : > { %v2636_v51 = vsel %vm2360_vm13, %v2624_v63, %v2612_v49  ;;  %v2611_v17 = vsub.f32 1.0, %v2599_v7 }
 0x24e   : > { %2671 = vst [vmem:[%s4651_s17 + $0x48] sm:$0xff] %v2658_v6  ;;  %v2648_v61 = vadd.f32 1.0, %v2636_v51 }
 0x24f   : > { %v2623_v24 = vsub.f32 0.0, %v2611_v17 }
 0x250   : > { %v2660_v35 = vmul.f32 %v2648_v61, %v2336_v16 }
 0x251   : > { %v2635_v4 = vsel %vm2359_vm14, %v2623_v24, %v2611_v17 }
 0x252   : > { %2673 = vst.msk [vmem:[%s4651_s17 + $0x58] sm:$0xff] %vm2663_vm11, %v2660_v35  ;;  %v2647_v2 = vadd.f32 1.0, %v2635_v4 }
 0x254   : > { %v2659_v40 = vmul.f32 %v2647_v2, %v2335_v21 }
 0x256   : > { %2672 = vst [vmem:[%s4651_s17 + $0x50] sm:$0xff] %v2659_v40 }
 0x257 PF: > { %s14_s12 = sadd.s32 1, %s3589_s12  }
 0x258   : > { %p11_p3 = scmp.ge.s32.totalorder %s14_s12, 4  }
 0x25a   :  { %13 = sbr.rel (!%p11_p3) target bundleno = 1 (0x1), region = 67 }
 0x261   :  { %2698 = vsyncpa [#allocation3], 1 }
 0x262   :  { %2700 = vsyncpa [#allocation3 + $0x1], 1 }

// kernel: _forward_impl.5
= control target key start
LH: loop header
LB: loop body
LE: loop exit
PB: predicated region body
PF: predicated region fallthrough
CT: control target
= control target key end

     0   :  { %s15919_s12 = smov 0   ;;  %s19058_s0 = inlined_call_operand.vmem [shape: bf16[128,11858], index: 0, kind: input, shape index: {}]   ;;  %s19059_s1 = inlined_call_operand.vmem [shape: bf16[11858,48], index: 1, kind: input, shape index: {}]   ;;  %s19060_s2 = inlined_call_operand.vmem [shape: f32[1,48], index: 2, kind: input, shape index: {}]   ;;  %s19061_s3 = inlined_call_operand.vmem [shape: f32[128,48], index: 3, kind: output, shape index: {}]  }
   0x1 LB: > { %s11538_s13 = sadd.s32 4294967295, %s15897_s12   ;;  %p11542_p0 = scmp.ge.s32.totalorder %s15897_s12, 1  ;;  %s15897_s12 = sphi %s15919_s12, %s13_s12  }
   0x2   : > { %p139_p1 = scmp.lt.s32.totalorder %s15897_s12, 3 }
   0x4   : > { %p140_p2 = pnand %p11542_p0, %p139_p1 }
   0x5   : > { %v14561_v0 = vld [vmem:[%s19059_s1 + $0x40] sm:$0xff] (!%p140_p2)   ;;  %v14565_v4 = vld [vmem:[%s19059_s1 + $0x48] sm:$0xff] (!%p140_p2)   ;;  %v14569_v8 = vld [vmem:[%s19059_s1 + $0x50] sm:$0xff] (!%p140_p2)   ;;  %s11543_s19 = sshll.u32 (!%p140_p2), %s11538_s13, 3  ;;  %vm8366_vm0 = vcmask (!%p140_p2), 1040384   ;;  %vm8353_vm1 = vcmask (!%p140_p2), 670720  }
   0x6   : > { %143 = sbr.rel (%p140_p2) target bundleno = 1179 (0x49b), region = 32  ;;  %v14562_v1 = vld [vmem:[%s19059_s1 + $0xc0] sm:$0xff] (!%p140_p2)   ;;  %12668 = vmatprep.subr.bf16.mxu0 (!%p140_p2), %v14561_v0  ;;  %v14566_v5 = vld [vmem:[%s19059_s1 + $0xc8] sm:$0xff] (!%p140_p2)   ;;  %v14570_v9 = vld [vmem:[%s19059_s1 + $0xd0] sm:$0xff] (!%p140_p2)   ;;  %p165_p3 = scmp.lt.s32.totalorder (!%p140_p2), %s11543_s19, 15  ;;  %vm11473_vm2 = vcmask (!%p140_p2), 392192  }
   0x7   : > { %v14563_v2 = vld [vmem:[%s19059_s1] sm:$0xff] (!%p140_p2)   ;;  %12708 = vmatprep.subr.bf16.mxu1 (!%p140_p2), %v14562_v1  ;;  %v14567_v6 = vld [vmem:[%s19059_s1 + $0x8] sm:$0xff] (!%p140_p2)   ;;  %v14571_v10 = vld [vmem:[%s19059_s1 + $0x10] sm:$0xff] (!%p140_p2)  }
   0x8   : > { %v14564_v3 = vld [vmem:[%s19059_s1 + $0x80] sm:$0xff] (!%p140_p2)   ;;  %12669 = vmatpush3.bf16.msra.mxu0 (!%p140_p2), %v14563_v2  ;;  %v14568_v7 = vld [vmem:[%s19059_s1 + $0x88] sm:$0xff] (!%p140_p2)   ;;  %v14572_v11 = vld [vmem:[%s19059_s1 + $0x90] sm:$0xff] (!%p140_p2)  }
   0x9   : > { %12709 = vmatpush3.bf16.msra.mxu1 (!%p140_p2), %v14564_v3  ;;  %12670 = vmatprep.subr.bf16.mxu0 (!%p140_p2), %v14565_v4  ;;  %v14573_v12 = vld [vmem:[%s19059_s1 + $0x58] sm:$0xff] (!%p140_p2)   ;;  %v14577_v16 = vld [vmem:[%s19059_s1 + $0x60] sm:$0xff] (!%p140_p2)   ;;  %v14581_v20 = vld [vmem:[%s19059_s1 + $0x68] sm:$0xff] (!%p140_p2)  }
   0xa   : > { %12710 = vmatprep.subr.bf16.mxu1 (!%p140_p2), %v14566_v5  ;;  %v14574_v13 = vld [vmem:[%s19059_s1 + $0xd8] sm:$0xff] (!%p140_p2)   ;;  %v14578_v17 = vld [vmem:[%s19059_s1 + $0xe0] sm:$0xff] (!%p140_p2)   ;;  %v14582_v21 = vld [vmem:[%s19059_s1 + $0xe8] sm:$0xff] (!%p140_p2)  }
   0xb   : > { %v14575_v14 = vld [vmem:[%s19059_s1 + $0x18] sm:$0xff] (!%p140_p2)   ;;  %v14579_v18 = vld [vmem:[%s19059_s1 + $0x20] sm:$0xff] (!%p140_p2)   ;;  %v14583_v22 = vld [vmem:[%s19059_s1 + $0x28] sm:$0xff] (!%p140_p2)  }
   0xc   : > { %12671 = vmatpush3.bf16.msra.mxu0 (!%p140_p2), %v14567_v6  ;;  %v14576_v15 = vld [vmem:[%s19059_s1 + $0x98] sm:$0xff] (!%p140_p2)   ;;  %v14580_v19 = vld [vmem:[%s19059_s1 + $0xa0] sm:$0xff] (!%p140_p2)   ;;  %v14584_v23 = vld [vmem:[%s19059_s1 + $0xa8] sm:$0xff] (!%p140_p2)  }
   0xd   : > { %12711 = vmatpush3.bf16.msra.mxu1 %v14568_v7  ;;  %12672 = vmatprep.subr.bf16.mxu0 %v14569_v8  ;;  %s19063_s19 = smov (!%p165_p3, %s11543_s19), 15  ;;  %v14585_v24 = vld [vmem:[%s19059_s1 + $0x70] sm:$0xff]   ;;  %v14589_v28 = vld [vmem:[%s19059_s1 + $0x78] sm:$0xff]   ;;  %v14599_v36 = vld [vmem:[%s19059_s1 + $0x140] sm:$0xff]  }
   0xe   : > { %12712 = vmatprep.subr.bf16.mxu1 %v14570_v9  ;;  %v14586_v25 = vld [vmem:[%s19059_s1 + $0xf0] sm:$0xff]   ;;  %s14552_s16 = smul.u32 372, %s19063_s19  ;;  %v14590_v29 = vld [vmem:[%s19059_s1 + $0xf8] sm:$0xff]   ;;  %v14600_v37 = vld [vmem:[%s19059_s1 + $0x1c0] sm:$0xff]  }
   0xf   : > { %v14587_v26 = vld [vmem:[%s19059_s1 + $0x30] sm:$0xff]   ;;  %v14591_v30 = vld [vmem:[%s19059_s1 + $0x38] sm:$0xff]   ;;  %v14601_v38 = vld [vmem:[%s19059_s1 + $0x100] sm:$0xff]  }
  0x10   : > { %12673 = vmatpush3.bf16.msra.mxu0 %v14571_v10  ;;  %v14588_v27 = vld [vmem:[%s19059_s1 + $0xb0] sm:$0xff]   ;;  %s16025_s13 = scalar_lea.vmem %s19058_s0, %s14552_s16  ;;  %v14592_v31 = vld [vmem:[%s19059_s1 + $0xb8] sm:$0xff]   ;;  %v14602_v39 = vld [vmem:[%s19059_s1 + $0x180] sm:$0xff]  }
  0x11   : > { %12713 = vmatpush3.bf16.msra.mxu1 %v14572_v11  ;;  %12674 = vmatprep.subr.bf16.mxu0 %v14573_v12  ;;  %v14593_v32 = vld [vmem:[%s16025_s13] ss:$372 sps:$4 sm:$0xff]   ;;  %v14595_v33 = vld [vmem:[%s16025_s13 + $0x4] ss:$372 sps:$4 sm:$0xff]   ;;  %v14596_v34 = vld [vmem:[%s16025_s13 + $0x8] ss:$372 sps:$4 sm:$0xff]  }
  0x12   : > { %12714 = vmatprep.subr.bf16.mxu1 %v14574_v13  ;;  %v14598_v35 = vld [vmem:[%s16025_s13 + $0xc] ss:$372 sps:$4 sm:$0xff]   ;;  %8402 = vmatprep.mubr.bf16.mxu0 %v14595_v33  ;;  %v14609_v45 = vld [vmem:[%s16025_s13 + $0x2f4] ss:$372 sps:$4 sm:$0xff]   ;;  %v14612_v47 = vld [vmem:[%s16025_s13 + $0x2f0] ss:$372 sps:$4 sm:$0xff]  }
  0x13   : > { %8467 = vmatprep.mubr.bf16.mxu1 %v14598_v35  ;;  %v14603_v40 = vld [vmem:[%s19059_s1 + $0x148] sm:$0xff]   ;;  %v14613_v48 = vld [vmem:[%s19059_s1 + $0x150] sm:$0xff]   ;;  %v14617_v52 = vld [vmem:[%s19059_s1 + $0x158] sm:$0xff]  }
  0x14   : > { %12675 = vmatpush3.bf16.msra.mxu0 %v14575_v14  ;;  %v14604_v41 = vld [vmem:[%s19059_s1 + $0x1c8] sm:$0xff]   ;;  %v14614_v49 = vld [vmem:[%s19059_s1 + $0x1d0] sm:$0xff]   ;;  %v14618_v53 = vld [vmem:[%s19059_s1 + $0x1d8] sm:$0xff]  }
  0x15   : > { %12715 = vmatpush3.bf16.msra.mxu1 %v14576_v15  ;;  %12676 = vmatprep.subr.bf16.mxu0 %v14577_v16  ;;  %v14605_v42 = vld [vmem:[%s19059_s1 + $0x108] sm:$0xff]   ;;  %v14615_v50 = vld [vmem:[%s19059_s1 + $0x110] sm:$0xff]   ;;  %v14619_v54 = vld [vmem:[%s19059_s1 + $0x118] sm:$0xff]  }
  0x16   : > { %12716 = vmatprep.subr.bf16.mxu1 %v14578_v17  ;;  %v14606_v43 = vld [vmem:[%s19059_s1 + $0x188] sm:$0xff]   ;;  %v14616_v51 = vld [vmem:[%s19059_s1 + $0x190] sm:$0xff]   ;;  %v14620_v55 = vld [vmem:[%s19059_s1 + $0x198] sm:$0xff]  }
  0x17   : > { %v14607_v44 = vld [vmem:[%s16025_s13 + $0x2ec] ss:$372 sps:$4 sm:$0xff]   ;;  %v14611_v46 = vld [vmem:[%s16025_s13 + $0x2e8] ss:$372 sps:$4 sm:$0xff]   ;;  %v14625_v58 = vld [vmem:[%s16025_s13 + $0x5d0] ss:$372 sps:$4 sm:$0xff]  }
  0x18   : > { %12677 = vmatpush3.bf16.msra.mxu0 %v14579_v18  ;;  %v14621_v56 = vld [vmem:[%s16025_s13 + $0x5d4] ss:$372 sps:$4 sm:$0xff]   ;;  %v14623_v57 = vld [vmem:[%s16025_s13 + $0x5dc] ss:$372 sps:$4 sm:$0xff]   ;;  %v14626_v59 = vld [vmem:[%s16025_s13 + $0x5d8] ss:$372 sps:$4 sm:$0xff]  }
  0x19   : > { %12717 = vmatpush3.bf16.msra.mxu1 %v14580_v19  ;;  %12678 = vmatprep.subr.bf16.mxu0 %v14581_v20  ;;  %v14627_v60 = vld [vmem:[%s19059_s1 + $0x160] sm:$0xff]   ;;  %v14631_v0 = vld [vmem:[%s19059_s1 + $0x168] sm:$0xff]   ;;  %v14635_v4 = vld [vmem:[%s16025_s13 + $0x8bc] ss:$372 sps:$4 sm:$0xff]  }
  0x1a   : > { %12718 = vmatprep.subr.bf16.mxu1 %v14582_v21  ;;  %v14628_v61 = vld [vmem:[%s19059_s1 + $0x1e0] sm:$0xff]   ;;  %v14632_v1 = vld [vmem:[%s19059_s1 + $0x1e8] sm:$0xff]   ;;  %v14641_v8 = vld [vmem:[%s19059_s1 + $0x170] sm:$0xff]  }
  0x1b   : > { %v14629_v62 = vld [vmem:[%s19059_s1 + $0x120] sm:$0xff]   ;;  %v14633_v2 = vld [vmem:[%s19059_s1 + $0x128] sm:$0xff]   ;;  %v14642_v9 = vld [vmem:[%s19059_s1 + $0x1f0] sm:$0xff]  }
  0x1c   : > { %12679 = vmatpush3.bf16.msra.mxu0 %v14583_v22  ;;  %v14630_v63 = vld [vmem:[%s19059_s1 + $0x1a0] sm:$0xff]   ;;  %v14634_v3 = vld [vmem:[%s19059_s1 + $0x1a8] sm:$0xff]   ;;  %v14643_v10 = vld [vmem:[%s19059_s1 + $0x130] sm:$0xff]  }
  0x1d   : > { %12719 = vmatpush3.bf16.msra.mxu1 %v14584_v23  ;;  %12680 = vmatprep.subr.bf16.mxu0 %v14585_v24  ;;  %v14637_v5 = vld [vmem:[%s16025_s13 + $0x8c4] ss:$372 sps:$4 sm:$0xff]   ;;  %v14640_v7 = vld [vmem:[%s16025_s13 + $0x8c0] ss:$372 sps:$4 sm:$0xff]   ;;  %v14654_v19 = vld [vmem:[%s16025_s13 + $0x1c] ss:$372 sps:$4 sm:$0xff]  }
  0x1e   : > { %12720 = vmatprep.subr.bf16.mxu1 %v14586_v25  ;;  %v14639_v6 = vld [vmem:[%s16025_s13 + $0x8b8] ss:$372 sps:$4 sm:$0xff]   ;;  %v14644_v11 = vld [vmem:[%s19059_s1 + $0x1b0] sm:$0xff]   ;;  %v14655_v20 = vld [vmem:[%s19059_s1 + $0x240] sm:$0xff]  }
  0x1f   : > { %v14645_v12 = vld [vmem:[%s19059_s1 + $0x178] sm:$0xff]   ;;  %v14649_v16 = vld [vmem:[%s16025_s13 + $0x10] ss:$372 sps:$4 sm:$0xff]   ;;  %v14651_v17 = vld [vmem:[%s16025_s13 + $0x14] ss:$372 sps:$4 sm:$0xff]  }
  0x20   : > { %12681 = vmatpush3.bf16.msra.mxu0 %v14587_v26  ;;  %v14646_v13 = vld [vmem:[%s19059_s1 + $0x1f8] sm:$0xff]   ;;  %v14656_v21 = vld [vmem:[%s19059_s1 + $0x2c0] sm:$0xff]   ;;  %v14659_v24 = vld [vmem:[%s19059_s1 + $0x248] sm:$0xff]  }
  0x21   : > { %12721 = vmatpush3.bf16.msra.mxu1 %v14588_v27  ;;  %12682 = vmatprep.subr.bf16.mxu0 %v14589_v28  ;;  %v14647_v14 = vld [vmem:[%s19059_s1 + $0x138] sm:$0xff]   ;;  %v14657_v22 = vld [vmem:[%s19059_s1 + $0x200] sm:$0xff]   ;;  %v14660_v25 = vld [vmem:[%s19059_s1 + $0x2c8] sm:$0xff]  }
  0x22   : > { %12722 = vmatprep.subr.bf16.mxu1 %v14590_v29  ;;  %v14648_v15 = vld [vmem:[%s19059_s1 + $0x1b8] sm:$0xff]   ;;  %v14658_v23 = vld [vmem:[%s19059_s1 + $0x280] sm:$0xff]   ;;  %v14661_v26 = vld [vmem:[%s19059_s1 + $0x208] sm:$0xff]  }
  0x23   : > { %v14652_v18 = vld [vmem:[%s16025_s13 + $0x18] ss:$372 sps:$4 sm:$0xff]   ;;  %v14663_v28 = vld [vmem:[%s16025_s13 + $0x2fc] ss:$372 sps:$4 sm:$0xff]  }
  0x24   : > { %12683 = vmatpush3.bf16.msra.mxu0 %v14591_v30  ;;  %v14662_v27 = vld [vmem:[%s19059_s1 + $0x288] sm:$0xff]   ;;  %v14665_v29 = vld [vmem:[%s16025_s13 + $0x304] ss:$372 sps:$4 sm:$0xff]   ;;  %v14670_v33 = vld [vmem:[%s19059_s1 + $0x2d0] sm:$0xff]  }
  0x25   : > { %12723 = vmatpush3.bf16.msra.mxu1 %v14592_v31  ;;  %12748 = vmatprep.subr.bf16.mxu0 %v14599_v36  ;;  %v14667_v30 = vld [vmem:[%s16025_s13 + $0x2f8] ss:$372 sps:$4 sm:$0xff]   ;;  %v14668_v31 = vld [vmem:[%s16025_s13 + $0x300] ss:$372 sps:$4 sm:$0xff]  }
  0x26   : > { %12788 = vmatprep.subr.bf16.mxu1 %v14600_v37  ;;  %v14672_v35 = vld [vmem:[%s19059_s1 + $0x290] sm:$0xff]   ;;  %v14673_v36 = vld [vmem:[%s19059_s1 + $0x258] sm:$0xff]  }
  0x27   : > { %8403 = vmatmul.mubr.bf16.vlgmr.msra.gmra.mrb[0].mxu0 %v14593_v32  ;;  %v14669_v32 = vld [vmem:[%s19059_s1 + $0x250] sm:$0xff]   ;;  %v14674_v37 = vld [vmem:[%s19059_s1 + $0x2d8] sm:$0xff]  }
  0x28   : > { %8468 = vmatmul.mubr.bf16.vlgmr.msra.gmra.mrb[0].mxu1 %v14596_v34  ;;  %12749 = vmatpush3.bf16.msra.mxu0 %v14601_v38  ;;  %v14671_v34 = vld [vmem:[%s19059_s1 + $0x210] sm:$0xff]   ;;  %v14675_v38 = vld [vmem:[%s19059_s1 + $0x218] sm:$0xff]  }
  0x29   : > { %12789 = vmatpush3.bf16.msra.mxu1 %v14602_v39  ;;  %12750 = vmatprep.subr.bf16.mxu0 %v14603_v40  ;;  %v14676_v39 = vld [vmem:[%s19059_s1 + $0x298] sm:$0xff]  }
  0x2a   : > { %12790 = vmatprep.subr.bf16.mxu1 %v14604_v41  ;;  %8410 = vmatprep.mubr.bf16.mxu0 %v14607_v44  ;;  %v14677_v40 = vld [vmem:[%s16025_s13 + $0x5e4] ss:$372 sps:$4 sm:$0xff]   ;;  %v14679_v41 = vld [vmem:[%s16025_s13 + $0x5ec] ss:$372 sps:$4 sm:$0xff]  }
  0x2b   : > { %8475 = vmatprep.mubr.bf16.mxu1 %v14609_v45  ;;  %v14683_v44 = vld [vmem:[%s19059_s1 + $0x260] sm:$0xff]  }
  0x2c   : > { %12751 = vmatpush3.bf16.msra.mxu0 %v14605_v42  ;;  %v14681_v42 = vld [vmem:[%s16025_s13 + $0x5e0] ss:$372 sps:$4 sm:$0xff]  }
  0x2d   : > { %12791 = vmatpush3.bf16.msra.mxu1 %v14606_v43  ;;  %12752 = vmatprep.subr.bf16.mxu0 %v14613_v48  ;;  %v14682_v43 = vld [vmem:[%s16025_s13 + $0x5e8] ss:$372 sps:$4 sm:$0xff]   ;;  %v14684_v45 = vld [vmem:[%s19059_s1 + $0x2e0] sm:$0xff]  }
  0x2e   : > { %12792 = vmatprep.subr.bf16.mxu1 %v14614_v49  ;;  %v14687_v48 = vld [vmem:[%s19059_s1 + $0x268] sm:$0xff]  }
  0x2f   : > { %8411 = vmatmul.mubr.bf16.gmra.mrb[4].mxu0 %v14611_v46  ;;  %v14685_v46 = vld [vmem:[%s19059_s1 + $0x220] sm:$0xff]   ;;  %v14688_v49 = vld [vmem:[%s19059_s1 + $0x2e8] sm:$0xff]  }
  0x30   : > { %8476 = vmatmul.mubr.bf16.gmra.mrb[4].mxu1 %v14612_v47  ;;  %12753 = vmatpush3.bf16.msra.mxu0 %v14615_v50  ;;  %v14686_v47 = vld [vmem:[%s19059_s1 + $0x2a0] sm:$0xff]   ;;  %v14689_v50 = vld [vmem:[%s19059_s1 + $0x228] sm:$0xff]  }
  0x31   : > { %12793 = vmatpush3.bf16.msra.mxu1 %v14616_v51  ;;  %12754 = vmatprep.subr.bf16.mxu0 %v14617_v52  ;;  %v14690_v51 = vld [vmem:[%s19059_s1 + $0x2a8] sm:$0xff]  }
  0x32   : > { %12794 = vmatprep.subr.bf16.mxu1 %v14618_v53  ;;  %8418 = vmatprep.mubr.bf16.mxu0 %v14621_v56  ;;  %v14691_v52 = vld [vmem:[%s16025_s13 + $0x8cc] ss:$372 sps:$4 sm:$0xff]   ;;  %v14693_v53 = vld [vmem:[%s16025_s13 + $0x8d4] ss:$372 sps:$4 sm:$0xff]  }
  0x33   : > { %8483 = vmatprep.mubr.bf16.mxu1 %v14623_v57  ;;  %v14697_v56 = vld [vmem:[%s19059_s1 + $0x270] sm:$0xff]  }
  0x34   : > { %12755 = vmatpush3.bf16.msra.mxu0 %v14619_v54  ;;  %v14695_v54 = vld [vmem:[%s16025_s13 + $0x8c8] ss:$372 sps:$4 sm:$0xff]   ;;  %v14698_v57 = vld [vmem:[%s19059_s1 + $0x2f0] sm:$0xff]  }
  0x35   : > { %12795 = vmatpush3.bf16.msra.mxu1 %v14620_v55  ;;  %12756 = vmatprep.subr.bf16.mxu0 %v14627_v60  ;;  %v14696_v55 = vld [vmem:[%s16025_s13 + $0x8d0] ss:$372 sps:$4 sm:$0xff]   ;;  %v14701_v60 = vld [vmem:[%s19059_s1 + $0x278] sm:$0xff]  }
  0x36   : > { %12796 = vmatprep.subr.bf16.mxu1 %v14628_v61  ;;  %v14702_v61 = vld [vmem:[%s19059_s1 + $0x2f8] sm:$0xff]  }
  0x37   : > { %8419 = vmatmul.mubr.bf16.gmra.mrb[8].mxu0 %v14625_v58  ;;  %v14699_v58 = vld [vmem:[%s19059_s1 + $0x230] sm:$0xff]  }
  0x38   : > { %8484 = vmatmul.mubr.bf16.gmra.mrb[8].mxu1 %v14626_v59  ;;  %12757 = vmatpush3.bf16.msra.mxu0 %v14629_v62  ;;  %v14700_v59 = vld [vmem:[%s19059_s1 + $0x2b0] sm:$0xff]   ;;  %v14703_v62 = vld [vmem:[%s19059_s1 + $0x238] sm:$0xff]  }
  0x39   : > { %12797 = vmatpush3.bf16.msra.mxu1 %v14630_v63  ;;  %12758 = vmatprep.subr.bf16.mxu0 %v14631_v0  ;;  %v14704_v63 = vld [vmem:[%s19059_s1 + $0x2b8] sm:$0xff]   ;;  %v14705_v0 = vld [vmem:[%s16025_s13 + $0x20] ss:$372 sps:$4 sm:$0xff]  }
  0x3a   : > { %12798 = vmatprep.subr.bf16.mxu1 %v14632_v1  ;;  %8426 = vmatprep.mubr.bf16.mxu0 %v14635_v4  ;;  %v14707_v1 = vld [vmem:[%s16025_s13 + $0x24] ss:$372 sps:$4 sm:$0xff]  }
  0x3b   : > { %8491 = vmatprep.mubr.bf16.mxu1 %v14637_v5  ;;  %v14711_v4 = vld [vmem:[%s19059_s1 + $0x340] sm:$0xff]  }
  0x3c   : > { %12759 = vmatpush3.bf16.msra.mxu0 %v14633_v2  ;;  %v14708_v2 = vld [vmem:[%s16025_s13 + $0x28] ss:$372 sps:$4 sm:$0xff]   ;;  %v14712_v5 = vld [vmem:[%s19059_s1 + $0x3c0] sm:$0xff]  }
  0x3d   : > { %12799 = vmatpush3.bf16.msra.mxu1 %v14634_v3  ;;  %12760 = vmatprep.subr.bf16.mxu0 %v14641_v8  ;;  %v14710_v3 = vld [vmem:[%s16025_s13 + $0x2c] ss:$372 sps:$4 sm:$0xff]  }
  0x3e   : > { %12800 = vmatprep.subr.bf16.mxu1 %v14642_v9  ;;  %v14715_v8 = vld [vmem:[%s19059_s1 + $0x348] sm:$0xff]  }
  0x3f   : > { %8427 = vmatmul.mubr.bf16.gmra.mrb[12].mxu0 %v14639_v6  ;;  %v14713_v6 = vld [vmem:[%s19059_s1 + $0x300] sm:$0xff]   ;;  %v14716_v9 = vld [vmem:[%s19059_s1 + $0x3c8] sm:$0xff]  }
  0x40   : > { %8492 = vmatmul.mubr.bf16.gmra.mrb[12].mxu1 %v14640_v7  ;;  %12761 = vmatpush3.bf16.msra.mxu0 %v14643_v10  ;;  %v14714_v7 = vld [vmem:[%s19059_s1 + $0x380] sm:$0xff]   ;;  %v14717_v10 = vld [vmem:[%s19059_s1 + $0x308] sm:$0xff]  }
  0x41   : > { %12801 = vmatpush3.bf16.msra.mxu1 %v14644_v11  ;;  %12762 = vmatprep.subr.bf16.mxu0 %v14645_v12  ;;  %v14718_v11 = vld [vmem:[%s19059_s1 + $0x388] sm:$0xff]  }
  0x42   : > { %12802 = vmatprep.subr.bf16.mxu1 %v14646_v13  ;;  %8532 = vmatprep.mubr.bf16.mxu0 %v14651_v17  ;;  %v14719_v12 = vld [vmem:[%s16025_s13 + $0x30c] ss:$372 sps:$4 sm:$0xff]   ;;  %v14721_v13 = vld [vmem:[%s16025_s13 + $0x314] ss:$372 sps:$4 sm:$0xff]  }
  0x43   : > { %8597 = vmatprep.mubr.bf16.mxu1 %v14654_v19  ;;  %v14726_v17 = vld [vmem:[%s19059_s1 + $0x3d0] sm:$0xff]  }
  0x44   : > { %12763 = vmatpush3.bf16.msra.mxu0 %v14647_v14  ;;  %v14723_v14 = vld [vmem:[%s16025_s13 + $0x308] ss:$372 sps:$4 sm:$0xff]   ;;  %v14728_v19 = vld [vmem:[%s19059_s1 + $0x390] sm:$0xff]  }
  0x45   : > { %12803 = vmatpush3.bf16.msra.mxu1 %v14648_v15  ;;  %12828 = vmatprep.subr.bf16.mxu0 %v14655_v20  ;;  %v14724_v15 = vld [vmem:[%s16025_s13 + $0x310] ss:$372 sps:$4 sm:$0xff]   ;;  %v14729_v20 = vld [vmem:[%s19059_s1 + $0x358] sm:$0xff]  }
  0x46   : > { %12868 = vmatprep.subr.bf16.mxu1 %v14656_v21  ;;  %v14730_v21 = vld [vmem:[%s19059_s1 + $0x3d8] sm:$0xff]  }
  0x47   : > { %8533 = vmatmul.mubr.bf16.vlgmr.msra.gmra.mrb[16].mxu0 %v14649_v16  ;;  %v14725_v16 = vld [vmem:[%s19059_s1 + $0x350] sm:$0xff]  }
  0x48   : > { %8598 = vmatmul.mubr.bf16.vlgmr.msra.gmra.mrb[16].mxu1 %v14652_v18  ;;  %12829 = vmatpush3.bf16.msra.mxu0 %v14657_v22  ;;  %v14727_v18 = vld [vmem:[%s19059_s1 + $0x310] sm:$0xff]   ;;  %v14731_v22 = vld [vmem:[%s19059_s1 + $0x318] sm:$0xff]  }
  0x49   : > { %12869 = vmatpush3.bf16.msra.mxu1 %v14658_v23  ;;  %12830 = vmatprep.subr.bf16.mxu0 %v14659_v24  ;;  %v14732_v23 = vld [vmem:[%s19059_s1 + $0x398] sm:$0xff]   ;;  %v14733_v24 = vld [vmem:[%s16025_s13 + $0x5f4] ss:$372 sps:$4 sm:$0xff]  }
  0x4a   : > { %12870 = vmatprep.subr.bf16.mxu1 %v14660_v25  ;;  %8540 = vmatprep.mubr.bf16.mxu0 %v14663_v28  ;;  %v14735_v25 = vld [vmem:[%s16025_s13 + $0x5fc] ss:$372 sps:$4 sm:$0xff]   ;;  %v14739_v28 = vld [vmem:[%s19059_s1 + $0x360] sm:$0xff]  }
  0x4b   : > { %8605 = vmatprep.mubr.bf16.mxu1 %v14665_v29  ;;  %v14740_v29 = vld [vmem:[%s19059_s1 + $0x3e0] sm:$0xff]  }
  0x4c   : > { %12831 = vmatpush3.bf16.msra.mxu0 %v14661_v26  ;;  %v14737_v26 = vld [vmem:[%s16025_s13 + $0x5f0] ss:$372 sps:$4 sm:$0xff]  }
  0x4d   : > { %12871 = vmatpush3.bf16.msra.mxu1 %v14662_v27  ;;  %12832 = vmatprep.subr.bf16.mxu0 %v14669_v32  ;;  %v14738_v27 = vld [vmem:[%s16025_s13 + $0x5f8] ss:$372 sps:$4 sm:$0xff]  }
  0x4e   : > { %12872 = vmatprep.subr.bf16.mxu1 %v14670_v33  ;;  %v14743_v32 = vld [vmem:[%s19059_s1 + $0x368] sm:$0xff]  }
  0x4f   : > { %8541 = vmatmul.mubr.bf16.gmra.mrb[20].mxu0 %v14667_v30  ;;  %v14741_v30 = vld [vmem:[%s19059_s1 + $0x320] sm:$0xff]   ;;  %v14744_v33 = vld [vmem:[%s19059_s1 + $0x3e8] sm:$0xff]  }
  0x50   : > { %8606 = vmatmul.mubr.bf16.gmra.mrb[20].mxu1 %v14668_v31  ;;  %12833 = vmatpush3.bf16.msra.mxu0 %v14671_v34  ;;  %v14742_v31 = vld [vmem:[%s19059_s1 + $0x3a0] sm:$0xff]   ;;  %v14745_v34 = vld [vmem:[%s19059_s1 + $0x328] sm:$0xff]  }
  0x51   : > { %12873 = vmatpush3.bf16.msra.mxu1 %v14672_v35  ;;  %12834 = vmatprep.subr.bf16.mxu0 %v14673_v36  ;;  %v14746_v35 = vld [vmem:[%s19059_s1 + $0x3a8] sm:$0xff]   ;;  %v14747_v36 = vld [vmem:[%s16025_s13 + $0x8dc] ss:$372 sps:$4 sm:$0xff]  }
  0x52   : > { %12874 = vmatprep.subr.bf16.mxu1 %v14674_v37  ;;  %8548 = vmatprep.mubr.bf16.mxu0 %v14677_v40  ;;  %v14749_v37 = vld [vmem:[%s16025_s13 + $0x8e4] ss:$372 sps:$4 sm:$0xff]   ;;  %v14753_v40 = vld [vmem:[%s19059_s1 + $0x370] sm:$0xff]  }
  0x53   : > { %8613 = vmatprep.mubr.bf16.mxu1 %v14679_v41  ;;  %v14754_v41 = vld [vmem:[%s19059_s1 + $0x3f0] sm:$0xff]  }
  0x54   : > { %12835 = vmatpush3.bf16.msra.mxu0 %v14675_v38  ;;  %v14751_v38 = vld [vmem:[%s16025_s13 + $0x8d8] ss:$372 sps:$4 sm:$0xff]  }
  0x55   : > { %12875 = vmatpush3.bf16.msra.mxu1 %v14676_v39  ;;  %12836 = vmatprep.subr.bf16.mxu0 %v14683_v44  ;;  %v14752_v39 = vld [vmem:[%s16025_s13 + $0x8e0] ss:$372 sps:$4 sm:$0xff]   ;;  %v14757_v44 = vld [vmem:[%s19059_s1 + $0x378] sm:$0xff]  }
  0x56   : > { %12876 = vmatprep.subr.bf16.mxu1 %v14684_v45  ;;  %v14758_v45 = vld [vmem:[%s19059_s1 + $0x3f8] sm:$0xff]  }
  0x57   : > { %8549 = vmatmul.mubr.bf16.gmra.mrb[24].mxu0 %v14681_v42  ;;  %v14755_v42 = vld [vmem:[%s19059_s1 + $0x330] sm:$0xff]  }
  0x58   : > { %8614 = vmatmul.mubr.bf16.gmra.mrb[24].mxu1 %v14682_v43  ;;  %12837 = vmatpush3.bf16.msra.mxu0 %v14685_v46  ;;  %v14756_v43 = vld [vmem:[%s19059_s1 + $0x3b0] sm:$0xff]   ;;  %v14759_v46 = vld [vmem:[%s19059_s1 + $0x338] sm:$0xff]  }
  0x59   : > { %12877 = vmatpush3.bf16.msra.mxu1 %v14686_v47  ;;  %12838 = vmatprep.subr.bf16.mxu0 %v14687_v48  ;;  %v14760_v47 = vld [vmem:[%s19059_s1 + $0x3b8] sm:$0xff]   ;;  %v14761_v48 = vld [vmem:[%s16025_s13 + $0x30] ss:$372 sps:$4 sm:$0xff]  }
  0x5a   : > { %12878 = vmatprep.subr.bf16.mxu1 %v14688_v49  ;;  %8556 = vmatprep.mubr.bf16.mxu0 %v14691_v52  ;;  %v14763_v49 = vld [vmem:[%s16025_s13 + $0x34] ss:$372 sps:$4 sm:$0xff]   ;;  %v14767_v52 = vld [vmem:[%s19059_s1 + $0x440] sm:$0xff]  }
  0x5b   : > { %8621 = vmatprep.mubr.bf16.mxu1 %v14693_v53  ;;  %v14768_v53 = vld [vmem:[%s19059_s1 + $0x4c0] sm:$0xff]  }
  0x5c   : > { %12839 = vmatpush3.bf16.msra.mxu0 %v14689_v50  ;;  %v14764_v50 = vld [vmem:[%s16025_s13 + $0x38] ss:$372 sps:$4 sm:$0xff]  }
  0x5d   : > { %12879 = vmatpush3.bf16.msra.mxu1 %v14690_v51  ;;  %12840 = vmatprep.subr.bf16.mxu0 %v14697_v56  ;;  %v14766_v51 = vld [vmem:[%s16025_s13 + $0x3c] ss:$372 sps:$4 sm:$0xff]   ;;  %v14771_v56 = vld [vmem:[%s19059_s1 + $0x448] sm:$0xff]  }
  0x5e   : > { %12880 = vmatprep.subr.bf16.mxu1 %v14698_v57  ;;  %v14772_v57 = vld [vmem:[%s19059_s1 + $0x4c8] sm:$0xff]  }
  0x5f   : > { %8557 = vmatmul.mubr.bf16.gmra.mrb[28].mxu0 %v14695_v54  ;;  %v14769_v54 = vld [vmem:[%s19059_s1 + $0x400] sm:$0xff]  }
  0x60   : > { %8622 = vmatmul.mubr.bf16.gmra.mrb[28].mxu1 %v14696_v55  ;;  %12841 = vmatpush3.bf16.msra.mxu0 %v14699_v58  ;;  %v14770_v55 = vld [vmem:[%s19059_s1 + $0x480] sm:$0xff]   ;;  %v14773_v58 = vld [vmem:[%s19059_s1 + $0x408] sm:$0xff]  }
  0x61   : > { %12881 = vmatpush3.bf16.msra.mxu1 %v14700_v59  ;;  %12842 = vmatprep.subr.bf16.mxu0 %v14701_v60  ;;  %v14774_v59 = vld [vmem:[%s19059_s1 + $0x488] sm:$0xff]   ;;  %v14775_v60 = vld [vmem:[%s16025_s13 + $0x31c] ss:$372 sps:$4 sm:$0xff]  }
  0x62   : > { %12882 = vmatprep.subr.bf16.mxu1 %v14702_v61  ;;  %8662 = vmatprep.mubr.bf16.mxu0 %v14707_v1  ;;  %v14777_v61 = vld [vmem:[%s16025_s13 + $0x324] ss:$372 sps:$4 sm:$0xff]   ;;  %v14782_v1 = vld [vmem:[%s19059_s1 + $0x4d0] sm:$0xff]  }
  0x63   : > { %8727 = vmatprep.mubr.bf16.mxu1 %v14710_v3  ;;  %v14784_v3 = vld [vmem:[%s19059_s1 + $0x490] sm:$0xff]  }
  0x64   : > { %12843 = vmatpush3.bf16.msra.mxu0 %v14703_v62  ;;  %v14779_v62 = vld [vmem:[%s16025_s13 + $0x318] ss:$372 sps:$4 sm:$0xff]  }
  0x65   : > { %12883 = vmatpush3.bf16.msra.mxu1 %v14704_v63  ;;  %12908 = vmatprep.subr.bf16.mxu0 %v14711_v4  ;;  %v14780_v63 = vld [vmem:[%s16025_s13 + $0x320] ss:$372 sps:$4 sm:$0xff]   ;;  %v14785_v4 = vld [vmem:[%s19059_s1 + $0x458] sm:$0xff]  }
  0x66   : > { %12948 = vmatprep.subr.bf16.mxu1 %v14712_v5  ;;  %v14786_v5 = vld [vmem:[%s19059_s1 + $0x4d8] sm:$0xff]  }
  0x67   : > { %8663 = vmatmul.mubr.bf16.vlgmr.msra.gmra.mrb[32].mxu0 %v14705_v0  ;;  %v14781_v0 = vld [vmem:[%s19059_s1 + $0x450] sm:$0xff]  }
  0x68   : > { %8728 = vmatmul.mubr.bf16.vlgmr.msra.gmra.mrb[32].mxu1 %v14708_v2  ;;  %12909 = vmatpush3.bf16.msra.mxu0 %v14713_v6  ;;  %v14783_v2 = vld [vmem:[%s19059_s1 + $0x410] sm:$0xff]   ;;  %v14787_v6 = vld [vmem:[%s19059_s1 + $0x418] sm:$0xff]  }
  0x69   : > { %12949 = vmatpush3.bf16.msra.mxu1 %v14714_v7  ;;  %12910 = vmatprep.subr.bf16.mxu0 %v14715_v8  ;;  %v14788_v7 = vld [vmem:[%s19059_s1 + $0x498] sm:$0xff]  }
  0x6a   : > { %12950 = vmatprep.subr.bf16.mxu1 %v14716_v9  ;;  %8670 = vmatprep.mubr.bf16.mxu0 %v14719_v12  ;;  %v14789_v8 = vld [vmem:[%s16025_s13 + $0x604] ss:$372 sps:$4 sm:$0xff]   ;;  %v14791_v9 = vld [vmem:[%s16025_s13 + $0x60c] ss:$372 sps:$4 sm:$0xff]  }
  0x6b   : > { %8735 = vmatprep.mubr.bf16.mxu1 %v14721_v13  ;;  %v14795_v12 = vld [vmem:[%s19059_s1 + $0x460] sm:$0xff]  }
  0x6c   : > { %12911 = vmatpush3.bf16.msra.mxu0 %v14717_v10  ;;  %v14793_v10 = vld [vmem:[%s16025_s13 + $0x600] ss:$372 sps:$4 sm:$0xff]  }
  0x6d   : > { %12951 = vmatpush3.bf16.msra.mxu1 %v14718_v11  ;;  %12912 = vmatprep.subr.bf16.mxu0 %v14725_v16  ;;  %v14794_v11 = vld [vmem:[%s16025_s13 + $0x608] ss:$372 sps:$4 sm:$0xff]   ;;  %v14796_v13 = vld [vmem:[%s19059_s1 + $0x4e0] sm:$0xff]  }
  0x6e   : > { %12952 = vmatprep.subr.bf16.mxu1 %v14726_v17  ;;  %v14799_v16 = vld [vmem:[%s19059_s1 + $0x468] sm:$0xff]  }
  0x6f   : > { %8671 = vmatmul.mubr.bf16.gmra.mrb[36].mxu0 %v14723_v14  ;;  %v14797_v14 = vld [vmem:[%s19059_s1 + $0x420] sm:$0xff]   ;;  %v14800_v17 = vld [vmem:[%s19059_s1 + $0x4e8] sm:$0xff]  }
  0x70   : > { %8736 = vmatmul.mubr.bf16.gmra.mrb[36].mxu1 %v14724_v15  ;;  %12913 = vmatpush3.bf16.msra.mxu0 %v14727_v18  ;;  %v14798_v15 = vld [vmem:[%s19059_s1 + $0x4a0] sm:$0xff]   ;;  %v14801_v18 = vld [vmem:[%s19059_s1 + $0x428] sm:$0xff]  }
  0x71   : > { %12953 = vmatpush3.bf16.msra.mxu1 %v14728_v19  ;;  %12914 = vmatprep.subr.bf16.mxu0 %v14729_v20  ;;  %v14802_v19 = vld [vmem:[%s19059_s1 + $0x4a8] sm:$0xff]  }
  0x72   : > { %12954 = vmatprep.subr.bf16.mxu1 %v14730_v21  ;;  %8678 = vmatprep.mubr.bf16.mxu0 %v14733_v24  ;;  %v14803_v20 = vld [vmem:[%s16025_s13 + $0x8ec] ss:$372 sps:$4 sm:$0xff]   ;;  %v14805_v21 = vld [vmem:[%s16025_s13 + $0x8f4] ss:$372 sps:$4 sm:$0xff]  }
  0x73   : > { %8743 = vmatprep.mubr.bf16.mxu1 %v14735_v25  ;;  %v14809_v24 = vld [vmem:[%s19059_s1 + $0x470] sm:$0xff]  }
  0x74   : > { %12915 = vmatpush3.bf16.msra.mxu0 %v14731_v22  ;;  %v14807_v22 = vld [vmem:[%s16025_s13 + $0x8e8] ss:$372 sps:$4 sm:$0xff]   ;;  %v14810_v25 = vld [vmem:[%s19059_s1 + $0x4f0] sm:$0xff]  }
  0x75   : > { %12955 = vmatpush3.bf16.msra.mxu1 %v14732_v23  ;;  %12916 = vmatprep.subr.bf16.mxu0 %v14739_v28  ;;  %v14808_v23 = vld [vmem:[%s16025_s13 + $0x8f0] ss:$372 sps:$4 sm:$0xff]   ;;  %v14813_v28 = vld [vmem:[%s19059_s1 + $0x478] sm:$0xff]  }
  0x76   : > { %12956 = vmatprep.subr.bf16.mxu1 %v14740_v29  ;;  %v14814_v29 = vld [vmem:[%s19059_s1 + $0x4f8] sm:$0xff]  }
  0x77   : > { %8679 = vmatmul.mubr.bf16.gmra.mrb[40].mxu0 %v14737_v26  ;;  %v14811_v26 = vld [vmem:[%s19059_s1 + $0x430] sm:$0xff]  }
  0x78   : > { %8744 = vmatmul.mubr.bf16.gmra.mrb[40].mxu1 %v14738_v27  ;;  %12917 = vmatpush3.bf16.msra.mxu0 %v14741_v30  ;;  %v14812_v27 = vld [vmem:[%s19059_s1 + $0x4b0] sm:$0xff]   ;;  %v14815_v30 = vld [vmem:[%s19059_s1 + $0x438] sm:$0xff]  }
  0x79   : > { %12957 = vmatpush3.bf16.msra.mxu1 %v14742_v31  ;;  %12918 = vmatprep.subr.bf16.mxu0 %v14743_v32  ;;  %v14816_v31 = vld [vmem:[%s19059_s1 + $0x4b8] sm:$0xff]   ;;  %v14817_v32 = vld [vmem:[%s16025_s13 + $0x40] ss:$372 sps:$4 sm:$0xff]  }
  0x7a   : > { %12958 = vmatprep.subr.bf16.mxu1 %v14744_v33  ;;  %8686 = vmatprep.mubr.bf16.mxu0 %v14747_v36  ;;  %v14819_v33 = vld [vmem:[%s16025_s13 + $0x44] ss:$372 sps:$4 sm:$0xff]  }
  0x7b   : > { %8751 = vmatprep.mubr.bf16.mxu1 %v14749_v37  ;;  %v14823_v36 = vld [vmem:[%s19059_s1 + $0x540] sm:$0xff]  }
  0x7c   : > { %12919 = vmatpush3.bf16.msra.mxu0 %v14745_v34  ;;  %v14820_v34 = vld [vmem:[%s16025_s13 + $0x48] ss:$372 sps:$4 sm:$0xff]   ;;  %v14824_v37 = vld [vmem:[%s19059_s1 + $0x5c0] sm:$0xff]  }
  0x7d   : > { %12959 = vmatpush3.bf16.msra.mxu1 %v14746_v35  ;;  %12920 = vmatprep.subr.bf16.mxu0 %v14753_v40  ;;  %v14822_v35 = vld [vmem:[%s16025_s13 + $0x4c] ss:$372 sps:$4 sm:$0xff]  }
  0x7e   : > { %12960 = vmatprep.subr.bf16.mxu1 %v14754_v41  ;;  %v14827_v40 = vld [vmem:[%s19059_s1 + $0x548] sm:$0xff]  }
  0x7f   : > { %8687 = vmatmul.mubr.bf16.gmra.mrb[44].mxu0 %v14751_v38  ;;  %v14825_v38 = vld [vmem:[%s19059_s1 + $0x500] sm:$0xff]   ;;  %v14828_v41 = vld [vmem:[%s19059_s1 + $0x5c8] sm:$0xff]  }
  0x80   : > { %8752 = vmatmul.mubr.bf16.gmra.mrb[44].mxu1 %v14752_v39  ;;  %12921 = vmatpush3.bf16.msra.mxu0 %v14755_v42  ;;  %v14826_v39 = vld [vmem:[%s19059_s1 + $0x580] sm:$0xff]   ;;  %v14829_v42 = vld [vmem:[%s19059_s1 + $0x508] sm:$0xff]  }
  0x81   : > { %12961 = vmatpush3.bf16.msra.mxu1 %v14756_v43  ;;  %12922 = vmatprep.subr.bf16.mxu0 %v14757_v44  ;;  %v14830_v43 = vld [vmem:[%s19059_s1 + $0x588] sm:$0xff]  }
  0x82   : > { %12962 = vmatprep.subr.bf16.mxu1 %v14758_v45  ;;  %8792 = vmatprep.mubr.bf16.mxu0 %v14763_v49  ;;  %v14831_v44 = vld [vmem:[%s16025_s13 + $0x32c] ss:$372 sps:$4 sm:$0xff]   ;;  %v14833_v45 = vld [vmem:[%s16025_s13 + $0x334] ss:$372 sps:$4 sm:$0xff]  }
  0x83   : > { %8857 = vmatprep.mubr.bf16.mxu1 %v14766_v51  ;;  %v14838_v49 = vld [vmem:[%s19059_s1 + $0x5d0] sm:$0xff]  }
  0x84   : > { %12923 = vmatpush3.bf16.msra.mxu0 %v14759_v46  ;;  %v14835_v46 = vld [vmem:[%s16025_s13 + $0x328] ss:$372 sps:$4 sm:$0xff]   ;;  %v14840_v51 = vld [vmem:[%s19059_s1 + $0x590] sm:$0xff]  }
  0x85   : > { %12963 = vmatpush3.bf16.msra.mxu1 %v14760_v47  ;;  %12988 = vmatprep.subr.bf16.mxu0 %v14767_v52  ;;  %v14836_v47 = vld [vmem:[%s16025_s13 + $0x330] ss:$372 sps:$4 sm:$0xff]   ;;  %v14841_v52 = vld [vmem:[%s19059_s1 + $0x558] sm:$0xff]  }
  0x86   : > { %13028 = vmatprep.subr.bf16.mxu1 %v14768_v53  ;;  %v14842_v53 = vld [vmem:[%s19059_s1 + $0x5d8] sm:$0xff]  }
  0x87   : > { %8793 = vmatmul.mubr.bf16.vlgmr.msra.gmra.mrb[48].mxu0 %v14761_v48  ;;  %v14837_v48 = vld [vmem:[%s19059_s1 + $0x550] sm:$0xff]  }
  0x88   : > { %8858 = vmatmul.mubr.bf16.vlgmr.msra.gmra.mrb[48].mxu1 %v14764_v50  ;;  %12989 = vmatpush3.bf16.msra.mxu0 %v14769_v54  ;;  %v14839_v50 = vld [vmem:[%s19059_s1 + $0x510] sm:$0xff]   ;;  %v14843_v54 = vld [vmem:[%s19059_s1 + $0x518] sm:$0xff]  }
  0x89   : > { %13029 = vmatpush3.bf16.msra.mxu1 %v14770_v55  ;;  %12990 = vmatprep.subr.bf16.mxu0 %v14771_v56  ;;  %v14844_v55 = vld [vmem:[%s19059_s1 + $0x598] sm:$0xff]   ;;  %v14845_v56 = vld [vmem:[%s16025_s13 + $0x614] ss:$372 sps:$4 sm:$0xff]  }
  0x8a   : > { %13030 = vmatprep.subr.bf16.mxu1 %v14772_v57  ;;  %8800 = vmatprep.mubr.bf16.mxu0 %v14775_v60  ;;  %v14847_v57 = vld [vmem:[%s16025_s13 + $0x61c] ss:$372 sps:$4 sm:$0xff]   ;;  %v14851_v60 = vld [vmem:[%s19059_s1 + $0x560] sm:$0xff]  }
  0x8b   : > { %8865 = vmatprep.mubr.bf16.mxu1 %v14777_v61  ;;  %v14852_v61 = vld [vmem:[%s19059_s1 + $0x5e0] sm:$0xff]  }
  0x8c   : > { %12991 = vmatpush3.bf16.msra.mxu0 %v14773_v58  ;;  %v14849_v58 = vld [vmem:[%s16025_s13 + $0x610] ss:$372 sps:$4 sm:$0xff]  }
  0x8d   : > { %13031 = vmatpush3.bf16.msra.mxu1 %v14774_v59  ;;  %12992 = vmatprep.subr.bf16.mxu0 %v14781_v0  ;;  %v14850_v59 = vld [vmem:[%s16025_s13 + $0x618] ss:$372 sps:$4 sm:$0xff]  }
  0x8e   : > { %13032 = vmatprep.subr.bf16.mxu1 %v14782_v1  ;;  %v14855_v0 = vld [vmem:[%s19059_s1 + $0x568] sm:$0xff]  }
  0x8f   : > { %8801 = vmatmul.mubr.bf16.gmra.mrb[52].mxu0 %v14779_v62  ;;  %v14853_v62 = vld [vmem:[%s19059_s1 + $0x520] sm:$0xff]   ;;  %v14856_v1 = vld [vmem:[%s19059_s1 + $0x5e8] sm:$0xff]  }
  0x90   : > { %8866 = vmatmul.mubr.bf16.gmra.mrb[52].mxu1 %v14780_v63  ;;  %12993 = vmatpush3.bf16.msra.mxu0 %v14783_v2  ;;  %v14854_v63 = vld [vmem:[%s19059_s1 + $0x5a0] sm:$0xff]   ;;  %v14857_v2 = vld [vmem:[%s19059_s1 + $0x528] sm:$0xff]  }
  0x91   : > { %13033 = vmatpush3.bf16.msra.mxu1 %v14784_v3  ;;  %12994 = vmatprep.subr.bf16.mxu0 %v14785_v4  ;;  %v14858_v3 = vld [vmem:[%s19059_s1 + $0x5a8] sm:$0xff]   ;;  %v14859_v4 = vld [vmem:[%s16025_s13 + $0x8fc] ss:$372 sps:$4 sm:$0xff]  }
  0x92   : > { %13034 = vmatprep.subr.bf16.mxu1 %v14786_v5  ;;  %8808 = vmatprep.mubr.bf16.mxu0 %v14789_v8  ;;  %v14861_v5 = vld [vmem:[%s16025_s13 + $0x904] ss:$372 sps:$4 sm:$0xff]   ;;  %v14865_v8 = vld [vmem:[%s19059_s1 + $0x570] sm:$0xff]  }
  0x93   : > { %8873 = vmatprep.mubr.bf16.mxu1 %v14791_v9  ;;  %v14866_v9 = vld [vmem:[%s19059_s1 + $0x5f0] sm:$0xff]  }
  0x94   : > { %12995 = vmatpush3.bf16.msra.mxu0 %v14787_v6  ;;  %v14863_v6 = vld [vmem:[%s16025_s13 + $0x8f8] ss:$372 sps:$4 sm:$0xff]  }
  0x95   : > { %13035 = vmatpush3.bf16.msra.mxu1 %v14788_v7  ;;  %12996 = vmatprep.subr.bf16.mxu0 %v14795_v12  ;;  %v14864_v7 = vld [vmem:[%s16025_s13 + $0x900] ss:$372 sps:$4 sm:$0xff]   ;;  %v14869_v12 = vld [vmem:[%s19059_s1 + $0x578] sm:$0xff]  }
  0x96   : > { %13036 = vmatprep.subr.bf16.mxu1 %v14796_v13  ;;  %v14870_v13 = vld [vmem:[%s19059_s1 + $0x5f8] sm:$0xff]  }
  0x97   : > { %8809 = vmatmul.mubr.bf16.gmra.mrb[56].mxu0 %v14793_v10  ;;  %v14867_v10 = vld [vmem:[%s19059_s1 + $0x530] sm:$0xff]  }
  0x98   : > { %8874 = vmatmul.mubr.bf16.gmra.mrb[56].mxu1 %v14794_v11  ;;  %12997 = vmatpush3.bf16.msra.mxu0 %v14797_v14  ;;  %v14868_v11 = vld [vmem:[%s19059_s1 + $0x5b0] sm:$0xff]   ;;  %v14871_v14 = vld [vmem:[%s19059_s1 + $0x538] sm:$0xff]  }
  0x99   : > { %13037 = vmatpush3.bf16.msra.mxu1 %v14798_v15  ;;  %12998 = vmatprep.subr.bf16.mxu0 %v14799_v16  ;;  %v14872_v15 = vld [vmem:[%s19059_s1 + $0x5b8] sm:$0xff]   ;;  %v14873_v16 = vld [vmem:[%s16025_s13 + $0x50] ss:$372 sps:$4 sm:$0xff]  }
  0x9a   : > { %13038 = vmatprep.subr.bf16.mxu1 %v14800_v17  ;;  %8816 = vmatprep.mubr.bf16.mxu0 %v14803_v20  ;;  %v14875_v17 = vld [vmem:[%s16025_s13 + $0x54] ss:$372 sps:$4 sm:$0xff]  }
  0x9b   : > { %8881 = vmatprep.mubr.bf16.mxu1 %v14805_v21  ;;  %v14879_v21 = vld [vmem:[%s19059_s1 + $0x640] sm:$0xff]  }
  0x9c   : > { %12999 = vmatpush3.bf16.msra.mxu0 %v14801_v18  ;;  %v14876_v18 = vld [vmem:[%s16025_s13 + $0x58] ss:$372 sps:$4 sm:$0xff]  }
  0x9d   : > { %13039 = vmatpush3.bf16.msra.mxu1 %v14802_v19  ;;  %13000 = vmatprep.subr.bf16.mxu0 %v14809_v24  ;;  %v14878_v19 = vld [vmem:[%s16025_s13 + $0x5c] ss:$372 sps:$4 sm:$0xff]  }
  0x9e   : > { %13040 = vmatprep.subr.bf16.mxu1 %v14810_v25  ;;  %v14881_v25 = vld [vmem:[%s19059_s1 + $0x600] sm:$0xff]  }
  0x9f   : > { %8817 = vmatmul.mubr.bf16.gmra.mrb[60].mxu0 %v14807_v22 }
  0xa0   : > { %8882 = vmatmul.mubr.bf16.gmra.mrb[60].mxu1 %v14808_v23  ;;  %13001 = vmatpush3.bf16.msra.mxu0 %v14811_v26  ;;  %v14880_v23 = vld [vmem:[%s19059_s1 + $0x6c0] sm:$0xff]  }
  0xa1   : > { %13041 = vmatpush3.bf16.msra.mxu1 %v14812_v27  ;;  %13002 = vmatprep.subr.bf16.mxu0 %v14813_v28  ;;  %v14882_v28 = vld [vmem:[%s19059_s1 + $0x680] sm:$0xff]  }
  0xa2   : > { %13042 = vmatprep.subr.bf16.mxu1 %v14814_v29  ;;  %8922 = vmatprep.mubr.bf16.mxu0 %v14819_v33  ;;  %v14884_v33 = vld [vmem:[%s19059_s1 + $0x6c8] sm:$0xff]  }
  0xa3   : > { %8987 = vmatprep.mubr.bf16.mxu1 %v14822_v35  ;;  %v14885_v35 = vld [vmem:[%s19059_s1 + $0x608] sm:$0xff]  }
  0xa4   : > { %13003 = vmatpush3.bf16.msra.mxu0 %v14815_v30 }
  0xa5   : > { %13043 = vmatpush3.bf16.msra.mxu1 %v14816_v31  ;;  %13068 = vmatprep.subr.bf16.mxu0 %v14823_v36  ;;  %v14883_v31 = vld [vmem:[%s19059_s1 + $0x648] sm:$0xff]  }
  0xa6   : > { %13108 = vmatprep.subr.bf16.mxu1 %v14824_v37 }
  0xa7   : > { %8923 = vmatmul.mubr.bf16.vlgmr.msra.gmra.mrb[64].mxu0 %v14817_v32 }
  0xa8   : > { %8988 = vmatmul.mubr.bf16.vlgmr.msra.gmra.mrb[64].mxu1 %v14820_v34  ;;  %13069 = vmatpush3.bf16.msra.mxu0 %v14825_v38  ;;  %v14886_v38 = vld [vmem:[%s19059_s1 + $0x688] sm:$0xff]  }
  0xa9   : > { %13109 = vmatpush3.bf16.msra.mxu1 %v14826_v39  ;;  %13070 = vmatprep.subr.bf16.mxu0 %v14827_v40  ;;  %v14887_v40 = vld [vmem:[%s16025_s13 + $0x33c] ss:$372 sps:$4 sm:$0xff]  }
  0xaa   : > { %13110 = vmatprep.subr.bf16.mxu1 %v14828_v41  ;;  %8930 = vmatprep.mubr.bf16.mxu0 %v14831_v44  ;;  %v14889_v41 = vld [vmem:[%s16025_s13 + $0x344] ss:$372 sps:$4 sm:$0xff]   ;;  %v14892_v44 = vld [vmem:[%s16025_s13 + $0x340] ss:$372 sps:$4 sm:$0xff]  }
  0xab   : > { %8995 = vmatprep.mubr.bf16.mxu1 %v14833_v45  ;;  %v14893_v45 = vld [vmem:[%s19059_s1 + $0x650] sm:$0xff]  }
  0xac   : > { %13071 = vmatpush3.bf16.msra.mxu0 %v14829_v42 }
  0xad   : > { %13111 = vmatpush3.bf16.msra.mxu1 %v14830_v43  ;;  %13072 = vmatprep.subr.bf16.mxu0 %v14837_v48  ;;  %v14891_v43 = vld [vmem:[%s16025_s13 + $0x338] ss:$372 sps:$4 sm:$0xff]  }
  0xae   : > { %13112 = vmatprep.subr.bf16.mxu1 %v14838_v49  ;;  %v14895_v49 = vld [vmem:[%s19059_s1 + $0x610] sm:$0xff]  }
  0xaf   : > { %8931 = vmatmul.mubr.bf16.gmra.mrb[68].mxu0 %v14835_v46 }
  0xb0   : > { %8996 = vmatmul.mubr.bf16.gmra.mrb[68].mxu1 %v14836_v47  ;;  %13073 = vmatpush3.bf16.msra.mxu0 %v14839_v50  ;;  %v14894_v47 = vld [vmem:[%s19059_s1 + $0x6d0] sm:$0xff]  }
  0xb1   : > { %13113 = vmatpush3.bf16.msra.mxu1 %v14840_v51  ;;  %13074 = vmatprep.subr.bf16.mxu0 %v14841_v52  ;;  %v14896_v52 = vld [vmem:[%s19059_s1 + $0x690] sm:$0xff]  }
  0xb2   : > { %13114 = vmatprep.subr.bf16.mxu1 %v14842_v53  ;;  %8938 = vmatprep.mubr.bf16.mxu0 %v14845_v56 }
  0xb3   : > { %9003 = vmatprep.mubr.bf16.mxu1 %v14847_v57  ;;  %v14898_v57 = vld [vmem:[%s19059_s1 + $0x6d8] sm:$0xff]  }
  0xb4   : > { %13075 = vmatpush3.bf16.msra.mxu0 %v14843_v54 }
  0xb5   : > { %13115 = vmatpush3.bf16.msra.mxu1 %v14844_v55  ;;  %13076 = vmatprep.subr.bf16.mxu0 %v14851_v60  ;;  %v14897_v55 = vld [vmem:[%s19059_s1 + $0x658] sm:$0xff]  }
  0xb6   : > { %13116 = vmatprep.subr.bf16.mxu1 %v14852_v61 }
  0xb7   : > { %8939 = vmatmul.mubr.bf16.gmra.mrb[72].mxu0 %v14849_v58 }
  0xb8   : > { %9004 = vmatmul.mubr.bf16.gmra.mrb[72].mxu1 %v14850_v59  ;;  %13077 = vmatpush3.bf16.msra.mxu0 %v14853_v62  ;;  %v14899_v59 = vld [vmem:[%s19059_s1 + $0x618] sm:$0xff]  }
  0xb9   : > { %13117 = vmatpush3.bf16.msra.mxu1 %v14854_v63  ;;  %13078 = vmatprep.subr.bf16.mxu0 %v14855_v0  ;;  %v14900_v62 = vld [vmem:[%s19059_s1 + $0x698] sm:$0xff]  }
  0xba   : > { %13118 = vmatprep.subr.bf16.mxu1 %v14856_v1  ;;  %8946 = vmatprep.mubr.bf16.mxu0 %v14859_v4  ;;  %v14901_v0 = vld [vmem:[%s16025_s13 + $0x624] ss:$372 sps:$4 sm:$0xff]   ;;  %v14903_v1 = vld [vmem:[%s16025_s13 + $0x62c] ss:$372 sps:$4 sm:$0xff]   ;;  %v14906_v4 = vld [vmem:[%s16025_s13 + $0x628] ss:$372 sps:$4 sm:$0xff]  }
  0xbb   : > { %9011 = vmatprep.mubr.bf16.mxu1 %v14861_v5  ;;  %v14907_v5 = vld [vmem:[%s19059_s1 + $0x660] sm:$0xff]  }
  0xbc   : > { %13079 = vmatpush3.bf16.msra.mxu0 %v14857_v2  ;;  %v14905_v2 = vld [vmem:[%s16025_s13 + $0x620] ss:$372 sps:$4 sm:$0xff]  }
  0xbd   : > { %13119 = vmatpush3.bf16.msra.mxu1 %v14858_v3  ;;  %13080 = vmatprep.subr.bf16.mxu0 %v14865_v8 }
  0xbe   : > { %13120 = vmatprep.subr.bf16.mxu1 %v14866_v9  ;;  %v14909_v9 = vld [vmem:[%s19059_s1 + $0x620] sm:$0xff]  }
  0xbf   : > { %8947 = vmatmul.mubr.bf16.gmra.mrb[76].mxu0 %v14863_v6 }
  0xc0   : > { %9012 = vmatmul.mubr.bf16.gmra.mrb[76].mxu1 %v14864_v7  ;;  %13081 = vmatpush3.bf16.msra.mxu0 %v14867_v10  ;;  %v14908_v7 = vld [vmem:[%s19059_s1 + $0x6e0] sm:$0xff]  }
  0xc1   : > { %13121 = vmatpush3.bf16.msra.mxu1 %v14868_v11  ;;  %13082 = vmatprep.subr.bf16.mxu0 %v14869_v12  ;;  %v14910_v12 = vld [vmem:[%s19059_s1 + $0x6a0] sm:$0xff]  }
  0xc2   : > { %13122 = vmatprep.subr.bf16.mxu1 %v14870_v13  ;;  %9052 = vmatprep.mubr.bf16.mxu0 %v14875_v17  ;;  %v14912_v17 = vld [vmem:[%s19059_s1 + $0x6e8] sm:$0xff]  }
  0xc3   : > { %9117 = vmatprep.mubr.bf16.mxu1 %v14878_v19  ;;  %v14913_v19 = vld [vmem:[%s19059_s1 + $0x628] sm:$0xff]  }
  0xc4   : > { %13083 = vmatpush3.bf16.msra.mxu0 %v14871_v14 }
  0xc5   : > { %13123 = vmatpush3.bf16.msra.mxu1 %v14872_v15  ;;  %13148 = vmatprep.subr.bf16.mxu0 %v14879_v21  ;;  %v14911_v15 = vld [vmem:[%s19059_s1 + $0x668] sm:$0xff]  }
  0xc6   : > { %13188 = vmatprep.subr.bf16.mxu1 %v14880_v23 }
  0xc7   : > { %9053 = vmatmul.mubr.bf16.vlgmr.msra.gmra.mrb[80].mxu0 %v14873_v16 }
  0xc8   : > { %9118 = vmatmul.mubr.bf16.vlgmr.msra.gmra.mrb[80].mxu1 %v14876_v18  ;;  %13149 = vmatpush3.bf16.msra.mxu0 %v14881_v25  ;;  %v14917_v25 = vld [vmem:[%s16025_s13 + $0x914] ss:$372 sps:$4 sm:$0xff]  }
  0xc9   : > { %13189 = vmatpush3.bf16.msra.mxu1 %v14882_v28  ;;  %13150 = vmatprep.subr.bf16.mxu0 %v14883_v31  ;;  %v14920_v28 = vld [vmem:[%s16025_s13 + $0x910] ss:$372 sps:$4 sm:$0xff]  }
  0xca   : > { %13190 = vmatprep.subr.bf16.mxu1 %v14884_v33  ;;  %9060 = vmatprep.mubr.bf16.mxu0 %v14887_v40 }
  0xcb   : > { %9125 = vmatprep.mubr.bf16.mxu1 %v14889_v41  ;;  %v14925_v41 = vld [vmem:[%s19059_s1 + $0x678] sm:$0xff]  }
  0xcc   : > { %13151 = vmatpush3.bf16.msra.mxu0 %v14885_v35 }
  0xcd   : > { %13191 = vmatpush3.bf16.msra.mxu1 %v14886_v38  ;;  %13152 = vmatprep.subr.bf16.mxu0 %v14893_v45 }
  0xce   : > { %13192 = vmatprep.subr.bf16.mxu1 %v14894_v47 }
  0xcf   : > { %9061 = vmatmul.mubr.bf16.gmra.mrb[84].mxu0 %v14891_v43 }
  0xd0   : > { %9126 = vmatmul.mubr.bf16.gmra.mrb[84].mxu1 %v14892_v44  ;;  %13153 = vmatpush3.bf16.msra.mxu0 %v14895_v49  ;;  %v14926_v44 = vld [vmem:[%s19059_s1 + $0x6f8] sm:$0xff]  }
  0xd1   : > { %13193 = vmatpush3.bf16.msra.mxu1 %v14896_v52  ;;  %13154 = vmatprep.subr.bf16.mxu0 %v14897_v55  ;;  %v14929_v52 = vld [vmem:[%s16025_s13 + $0x60] ss:$372 sps:$4 sm:$0xff]   ;;  %v14931_v55 = vld [vmem:[%s16025_s13 + $0x64] ss:$372 sps:$4 sm:$0xff]  }
  0xd2   : > { %13194 = vmatprep.subr.bf16.mxu1 %v14898_v57  ;;  %9068 = vmatprep.mubr.bf16.mxu0 %v14901_v0  ;;  %v14932_v57 = vld [vmem:[%s16025_s13 + $0x68] ss:$372 sps:$4 sm:$0xff]  }
  0xd3   : > { %9133 = vmatprep.mubr.bf16.mxu1 %v14903_v1  ;;  %v14937_v1 = vld [vmem:[%s19059_s1 + $0x700] sm:$0xff]  }
  0xd4   : > { %13155 = vmatpush3.bf16.msra.mxu0 %v14899_v59  ;;  %v14935_v59 = vld [vmem:[%s19059_s1 + $0x740] sm:$0xff]  }
  0xd5   : > { %13195 = vmatpush3.bf16.msra.mxu1 %v14900_v62  ;;  %13156 = vmatprep.subr.bf16.mxu0 %v14907_v5  ;;  %v14936_v62 = vld [vmem:[%s19059_s1 + $0x7c0] sm:$0xff]  }
  0xd6   : > { %13196 = vmatprep.subr.bf16.mxu1 %v14908_v7  ;;  %v14939_v7 = vld [vmem:[%s19059_s1 + $0x748] sm:$0xff]  }
  0xd7   : > { %9069 = vmatmul.mubr.bf16.gmra.mrb[88].mxu0 %v14905_v2 }
  0xd8   : > { %9134 = vmatmul.mubr.bf16.gmra.mrb[88].mxu1 %v14906_v4  ;;  %13157 = vmatpush3.bf16.msra.mxu0 %v14909_v9  ;;  %v14938_v4 = vld [vmem:[%s19059_s1 + $0x780] sm:$0xff]   ;;  %v14940_v9 = vld [vmem:[%s19059_s1 + $0x7c8] sm:$0xff]  }
  0xd9   : > { %13197 = vmatpush3.bf16.msra.mxu1 %v14910_v12  ;;  %13158 = vmatprep.subr.bf16.mxu0 %v14911_v15  ;;  %v14941_v12 = vld [vmem:[%s19059_s1 + $0x708] sm:$0xff]  }
  0xda   : > { %13198 = vmatprep.subr.bf16.mxu1 %v14912_v17  ;;  %9141 = vmatprep.mubr.bf16.mxu1 %v14917_v25  ;;  %v14949_v25 = vld [vmem:[%s19059_s1 + $0x750] sm:$0xff]  }
  0xdc   : > { %13159 = vmatpush3.bf16.msra.mxu0 %v14913_v19  ;;  %v14945_v19 = vld [vmem:[%s16025_s13 + $0x354] ss:$372 sps:$4 sm:$0xff]  }
  0xe0   : > { %9142 = vmatmul.mubr.bf16.gmra.mrb[92].mxu1 %v14920_v28  ;;  %v14950_v28 = vld [vmem:[%s19059_s1 + $0x7d0] sm:$0xff]  }
  0xfa   : > { %v12684_v20 = vpop.f32.mrb[0].mxu0 }
  0xfb   : > { %v12724_v22 = vpop.f32.mrb[0].mxu1  ;;  %v12685_v24 = vpop.f32.mrb[1].mxu0 }
  0xfc   : > { %v16606_v26 = vadd.f32 %v12685_v24, %v12684_v20  ;;  %v12725_v27 = vpop.f32.mrb[1].mxu1  ;;  %v12687_v30 = vpop.f32.mrb[2].mxu0  ;;  %v14915_v24 = vld [vmem:[%s16025_s13 + $0x90c] ss:$372 sps:$4 sm:$0xff]  }
  0xfd   : > { %v16611_v29 = vadd.f32 %v12725_v27, %v12724_v22  ;;  %v12727_v32 = vpop.f32.mrb[2].mxu1  ;;  %v12688_v34 = vpop.f32.mrb[3].mxu0  ;;  %v14914_v22 = vld [vmem:[%s19059_s1 + $0x6a8] sm:$0xff]   ;;  %9076 = vmatprep.mubr.bf16.mxu0 %v14915_v24  ;;  %v14948_v24 = vld [vmem:[%s16025_s13 + $0x350] ss:$372 sps:$4 sm:$0xff]  }
  0xfe   : > { %v16622_v36 = vadd.f32 %v12688_v34, %v12687_v30  ;;  %v12728_v37 = vpop.f32.mrb[3].mxu1  ;;  %13199 = vmatpush3.bf16.msra.mxu1 %v14914_v22  ;;  %v14919_v27 = vld [vmem:[%s16025_s13 + $0x908] ss:$372 sps:$4 sm:$0xff]   ;;  %v14921_v30 = vld [vmem:[%s19059_s1 + $0x670] sm:$0xff]  }
  0xff   : > { %v16627_v39 = vadd.f32 %v12728_v37, %v12727_v32  ;;  %9077 = vmatmul.mubr.bf16.gmra.mrb[92].mxu0 %v14919_v27  ;;  %v14922_v32 = vld [vmem:[%s19059_s1 + $0x6f0] sm:$0xff]   ;;  %13160 = vmatprep.subr.bf16.mxu0 %v14921_v30 }
 0x100   : > { %v14923_v34 = vld [vmem:[%s19059_s1 + $0x630] sm:$0xff]   ;;  %13200 = vmatprep.subr.bf16.mxu1 %v14922_v32  ;;  %9182 = vmatprep.mubr.bf16.mxu0 %v14931_v55 }
 0x101   : > { %v14924_v37 = vld [vmem:[%s19059_s1 + $0x6b0] sm:$0xff]   ;;  %13161 = vmatpush3.bf16.msra.mxu0 %v14923_v34 }
 0x102   : > { %v12690_v42 = vpop.f32.mrb[4].mxu0  ;;  %13201 = vmatpush3.bf16.msra.mxu1 %v14924_v37  ;;  %13162 = vmatprep.subr.bf16.mxu0 %v14925_v41  ;;  %v14952_v34 = vld [vmem:[%s19059_s1 + $0x790] sm:$0xff]  }
 0x103   : > { %v12730_v46 = vpop.f32.mrb[4].mxu1  ;;  %v12691_v48 = vpop.f32.mrb[5].mxu0  ;;  %13202 = vmatprep.subr.bf16.mxu1 %v14926_v44  ;;  %v14959_v55 = vld [vmem:[%s16025_s13 + $0x63c] ss:$372 sps:$4 sm:$0xff]  }
 0x104   : > { %v16642_v50 = vadd.f32 %v12691_v48, %v12690_v42  ;;  %v12731_v51 = vpop.f32.mrb[5].mxu1  ;;  %v12693_v54 = vpop.f32.mrb[6].mxu0  ;;  %v14928_v48 = vld [vmem:[%s19059_s1 + $0x6b8] sm:$0xff]  }
 0x105   : > { %v16647_v53 = vadd.f32 %v12731_v51, %v12730_v46  ;;  %v12733_v56 = vpop.f32.mrb[6].mxu1  ;;  %v12694_v58 = vpop.f32.mrb[7].mxu0  ;;  %v14927_v46 = vld [vmem:[%s19059_s1 + $0x638] sm:$0xff]  }
 0x106   : > { %v16658_v60 = vadd.f32 %v12694_v58, %v12693_v54  ;;  %v12734_v61 = vpop.f32.mrb[7].mxu1  ;;  %13163 = vmatpush3.bf16.msra.mxu0 %v14927_v46  ;;  %13203 = vmatpush3.bf16.msra.mxu1 %v14928_v48  ;;  %v14934_v58 = vld [vmem:[%s16025_s13 + $0x6c] ss:$372 sps:$4 sm:$0xff]   ;;  %v14956_v48 = vld [vmem:[%s19059_s1 + $0x798] sm:$0xff]  }
 0x107   : > { %v16663_v63 = vadd.f32 %v12734_v61, %v12733_v56  ;;  %9247 = vmatprep.mubr.bf16.mxu1 %v14934_v58  ;;  %13228 = vmatprep.subr.bf16.mxu0 %v14935_v59  ;;  %v14963_v58 = vld [vmem:[%s19059_s1 + $0x760] sm:$0xff]  }
 0x108   : > { %13268 = vmatprep.subr.bf16.mxu1 %v14936_v62 }
 0x109   : > { %9183 = vmatmul.mubr.bf16.vlgmr.msra.gmra.mrb[96].mxu0 %v14929_v52  ;;  %9248 = vmatmul.mubr.bf16.vlgmr.msra.gmra.mrb[96].mxu1 %v14932_v57  ;;  %v14957_v52 = vld [vmem:[%s16025_s13 + $0x634] ss:$372 sps:$4 sm:$0xff]   ;;  %v14962_v57 = vld [vmem:[%s16025_s13 + $0x638] ss:$372 sps:$4 sm:$0xff]  }
 0x10a   : > { %v12696_v3 = vpop.f32.mrb[8].mxu0  ;;  %13229 = vmatpush3.bf16.msra.mxu0 %v14937_v1  ;;  %13269 = vmatpush3.bf16.msra.mxu1 %v14938_v4 }
 0x10b   : > { %v12736_v6 = vpop.f32.mrb[8].mxu1  ;;  %v12697_v8 = vpop.f32.mrb[9].mxu0  ;;  %13230 = vmatprep.subr.bf16.mxu0 %v14939_v7  ;;  %13270 = vmatprep.subr.bf16.mxu1 %v14940_v9  ;;  %v11547_v7 = vld [vmem:[%s19060_s2] ss:$0 sm:$0xff] }
 0x10c   : > { %v16678_v10 = vadd.f32 %v12697_v8, %v12696_v3  ;;  %v12737_v11 = vpop.f32.mrb[9].mxu1  ;;  %v12699_v14 = vpop.f32.mrb[10].mxu0  ;;  %9255 = vmatprep.mubr.bf16.mxu1 %v14945_v19  ;;  %v8405_v9 = vadd.f32 %v16606_v26, %v11547_v7  ;;  %v14968_v19 = vld [vmem:[%s19059_s1 + $0x7e8] sm:$0xff]  }
 0x10d   : > { %v16683_v13 = vadd.f32 %v12737_v11, %v12736_v6  ;;  %v12739_v16 = vpop.f32.mrb[10].mxu1  ;;  %v12700_v18 = vpop.f32.mrb[11].mxu0 }
 0x10e   : > { %v16694_v20 = vadd.f32 %v12700_v18, %v12699_v14  ;;  %v12740_v21 = vpop.f32.mrb[11].mxu1  ;;  %13231 = vmatpush3.bf16.msra.mxu0 %v14941_v12  ;;  %v14943_v18 = vld [vmem:[%s16025_s13 + $0x34c] ss:$372 sps:$4 sm:$0xff]   ;;  %v8408_v12 = vadd.f32 %v16622_v36, %v11547_v7  ;;  %v8470_v36 = vadd.f32 %v16611_v29, %v8405_v9  ;;  %v14985_v9 = vld [vmem:[%s16025_s13 + $0x70] ss:$372 sps:$4 sm:$0xff]  }
 0x10f   : > { %v16699_v23 = vadd.f32 %v12740_v21, %v12739_v16  ;;  %v14942_v16 = vld [vmem:[%s19059_s1 + $0x788] sm:$0xff]   ;;  %9190 = vmatprep.mubr.bf16.mxu0 %v14943_v18  ;;  %13232 = vmatprep.subr.bf16.mxu0 %v14949_v25 }
 0x110   : > { %13271 = vmatpush3.bf16.msra.mxu1 %v14942_v16  ;;  %v14947_v21 = vld [vmem:[%s16025_s13 + $0x348] ss:$372 sps:$4 sm:$0xff]   ;;  %v8416_v16 = vadd.f32 %v16658_v60, %v11547_v7  ;;  %v8473_v60 = vadd.f32 %v16627_v39, %v8408_v12 }
 0x111   : > { %9191 = vmatmul.mubr.bf16.gmra.mrb[100].mxu0 %v14947_v21  ;;  %9256 = vmatmul.mubr.bf16.gmra.mrb[100].mxu1 %v14948_v24  ;;  %v8421_v21 = vadd.f32 %v16678_v10, %v11547_v7  ;;  %v14987_v12 = vld [vmem:[%s16025_s13 + $0x74] ss:$372 sps:$4 sm:$0xff]  }
 0x112   : > { %v12702_v31 = vpop.f32.mrb[12].mxu0  ;;  %13272 = vmatprep.subr.bf16.mxu1 %v14950_v28  ;;  %9198 = vmatprep.mubr.bf16.mxu0 %v14957_v52  ;;  %v8481_v10 = vadd.f32 %v16663_v63, %v8416_v16  ;;  %v14971_v63 = vld [vmem:[%s16025_s13 + $0x91c] ss:$372 sps:$4 sm:$0xff]   ;;  %v14988_v16 = vld [vmem:[%s16025_s13 + $0x78] ss:$372 sps:$4 sm:$0xff]  }
 0x113   : > { %v12742_v33 = vpop.f32.mrb[12].mxu1  ;;  %v12703_v35 = vpop.f32.mrb[13].mxu0  ;;  %9263 = vmatprep.mubr.bf16.mxu1 %v14959_v55  ;;  %v8486_v29 = vadd.f32 %v16683_v13, %v8421_v21  ;;  %v14975_v13 = vld [vmem:[%s16025_s13 + $0x918] ss:$372 sps:$4 sm:$0xff]   ;;  %v14980_v52 = vld [vmem:[%s19059_s1 + $0x7b0] sm:$0xff]   ;;  %v14991_v21 = vld [vmem:[%s19059_s1 + $0x840] sm:$0xff]  }
 0x114   : > { %v16717_v38 = vadd.f32 %v12703_v35, %v12702_v31  ;;  %v12743_v40 = vpop.f32.mrb[13].mxu1  ;;  %v12705_v43 = vpop.f32.mrb[14].mxu0  ;;  %v14951_v31 = vld [vmem:[%s19059_s1 + $0x710] sm:$0xff]   ;;  %13273 = vmatpush3.bf16.msra.mxu1 %v14952_v34 }
 0x115   : > { %v16722_v42 = vadd.f32 %v12743_v40, %v12742_v33  ;;  %v12745_v45 = vpop.f32.mrb[14].mxu1  ;;  %v12706_v47 = vpop.f32.mrb[15].mxu0  ;;  %13233 = vmatpush3.bf16.msra.mxu0 %v14951_v31  ;;  %v14953_v40 = vld [vmem:[%s19059_s1 + $0x758] sm:$0xff]  }
 0x116   : > { %v16733_v49 = vadd.f32 %v12706_v47, %v12705_v43  ;;  %v12746_v51 = vpop.f32.mrb[15].mxu1  ;;  %v14954_v43 = vld [vmem:[%s19059_s1 + $0x7d8] sm:$0xff]   ;;  %13234 = vmatprep.subr.bf16.mxu0 %v14953_v40  ;;  %v8429_v26 = vadd.f32 %v16717_v38, %v11547_v7  ;;  %v14970_v38 = vld [vmem:[%s19059_s1 + $0x7a8] sm:$0xff]  }
 0x117   : > { %v16736_v54 = vadd.f32 %v12746_v51, %v12745_v45  ;;  %v14955_v45 = vld [vmem:[%s19059_s1 + $0x718] sm:$0xff]   ;;  %13274 = vmatprep.subr.bf16.mxu1 %v14954_v43 }
 0x118   : > { %13275 = vmatpush3.bf16.msra.mxu1 %v14956_v48  ;;  %v8432_v24 = vadd.f32 %v16733_v49, %v11547_v7  ;;  %v8494_v28 = vadd.f32 %v16722_v42, %v8429_v26  ;;  %v14973_v40 = vld [vmem:[%s16025_s13 + $0x924] ss:$372 sps:$4 sm:$0xff]  }
 0x119   : > { %13235 = vmatpush3.bf16.msra.mxu0 %v14955_v45  ;;  %9264 = vmatmul.mubr.bf16.gmra.mrb[104].mxu1 %v14962_v57  ;;  %v14992_v26 = vld [vmem:[%s19059_s1 + $0x8c0] sm:$0xff]  }
 0x11a   : > { %v12764_v56 = vpop.f32.mrb[16].mxu0  ;;  %13236 = vmatprep.subr.bf16.mxu0 %v14963_v58  ;;  %v8497_v39 = vadd.f32 %v16736_v54, %v8432_v24  ;;  %v14977_v54 = vld [vmem:[%s19059_s1 + $0x770] sm:$0xff]   ;;  %9271 = vmatprep.mubr.bf16.mxu1 %v14973_v40  ;;  %v14981_v58 = vld [vmem:[%s19059_s1 + $0x778] sm:$0xff]  }
 0x11b   : > { %v12804_v61 = vpop.f32.mrb[16].mxu1  ;;  %v12765_v0 = vpop.f32.mrb[17].mxu0  ;;  %v15001_v40 = vld [vmem:[%s16025_s13 + $0x364] ss:$372 sps:$4 sm:$0xff]  }
 0x11c   : > { %v16750_v2 = vadd.f32 %v12765_v0, %v12764_v56  ;;  %v12805_v3 = vpop.f32.mrb[17].mxu1  ;;  %v12767_v6 = vpop.f32.mrb[18].mxu0  ;;  %v14961_v56 = vld [vmem:[%s16025_s13 + $0x630] ss:$372 sps:$4 sm:$0xff]  }
 0x11d   : > { %v16755_v5 = vadd.f32 %v12805_v3, %v12804_v61  ;;  %v12807_v8 = vpop.f32.mrb[18].mxu1  ;;  %v12768_v11 = vpop.f32.mrb[19].mxu0  ;;  %9199 = vmatmul.mubr.bf16.gmra.mrb[104].mxu0 %v14961_v56  ;;  %v14964_v61 = vld [vmem:[%s19059_s1 + $0x7e0] sm:$0xff]  }
 0x11e   : > { %v16766_v14 = vadd.f32 %v12768_v11, %v12767_v6  ;;  %v12808_v15 = vpop.f32.mrb[19].mxu1  ;;  %v14965_v0 = vld [vmem:[%s19059_s1 + $0x720] sm:$0xff]   ;;  %13276 = vmatprep.subr.bf16.mxu1 %v14964_v61  ;;  %v14967_v11 = vld [vmem:[%s19059_s1 + $0x768] sm:$0xff]   ;;  %9206 = vmatprep.mubr.bf16.mxu0 %v14971_v63 }
 0x11f   : > { %v16771_v17 = vadd.f32 %v12808_v15, %v12807_v8  ;;  %v14966_v3 = vld [vmem:[%s19059_s1 + $0x7a0] sm:$0xff]   ;;  %13237 = vmatpush3.bf16.msra.mxu0 %v14965_v0  ;;  %v8413_v15 = vadd.f32 %v16642_v50, %v11547_v7  ;;  %v14969_v50 = vld [vmem:[%s19059_s1 + $0x728] sm:$0xff]  }
 0x120   : > { %13277 = vmatpush3.bf16.msra.mxu1 %v14966_v3  ;;  %13238 = vmatprep.subr.bf16.mxu0 %v14967_v11  ;;  %v8538_v31 = vadd.f32 %v16766_v14, %v8473_v60  ;;  %v14994_v60 = vld [vmem:[%s19059_s1 + $0x880] sm:$0xff]  }
 0x121   : > { %13278 = vmatprep.subr.bf16.mxu1 %v14968_v19 }
 0x122   : > { %v12770_v22 = vpop.f32.mrb[20].mxu0  ;;  %v16868_v14 = vadd.f32 %v16771_v17, %v8538_v31  ;;  %v14979_v17 = vld [vmem:[%s19059_s1 + $0x730] sm:$0xff]   ;;  %v14998_v31 = vld [vmem:[%s19059_s1 + $0x888] sm:$0xff]  }
 0x123   : > { %v12810_v27 = vpop.f32.mrb[20].mxu1  ;;  %v12771_v30 = vpop.f32.mrb[21].mxu0  ;;  %13239 = vmatpush3.bf16.msra.mxu0 %v14969_v50 }
 0x124   : > { %v16786_v32 = vadd.f32 %v12771_v30, %v12770_v22  ;;  %v12811_v33 = vpop.f32.mrb[21].mxu1  ;;  %v12773_v37 = vpop.f32.mrb[22].mxu0  ;;  %v8424_v22 = vadd.f32 %v16694_v20, %v11547_v7  ;;  %v8535_v30 = vadd.f32 %v16750_v2, %v8470_v36  ;;  %13279 = vmatpush3.bf16.msra.mxu1 %v14970_v38  ;;  %13240 = vmatprep.subr.bf16.mxu0 %v14977_v54  ;;  %v14984_v7 = vld [vmem:[%s19059_s1 + $0x7b8] sm:$0xff]  }
 0x125   : > { %v16791_v35 = vadd.f32 %v12811_v33, %v12810_v27  ;;  %v12813_v41 = vpop.f32.mrb[22].mxu1  ;;  %v12774_v44 = vpop.f32.mrb[23].mxu0  ;;  %v8478_v27 = vadd.f32 %v16647_v53, %v8413_v15  ;;  %9207 = vmatmul.mubr.bf16.gmra.mrb[108].mxu0 %v14975_v13  ;;  %v15003_v13 = vld [vmem:[%s16025_s13 + $0x358] ss:$372 sps:$4 sm:$0xff]  }
 0x126   : > { %v12775_v46 = vadd.f32 %v12774_v44, %v12773_v37  ;;  %v12814_v47 = vpop.f32.mrb[23].mxu1  ;;  %v8489_v49 = vadd.f32 %v16699_v23, %v8424_v22  ;;  %v16865_v2 = vadd.f32 %v16755_v5, %v8535_v30  ;;  %9312 = vmatprep.mubr.bf16.mxu0 %v14987_v12  ;;  %v15019_v12 = vld [vmem:[%s19059_s1 + $0x860] sm:$0xff]  }
 0x127   : > { %v16805_v51 = vadd.f32 %v12814_v47, %v12813_v41  ;;  %v8543_v33 = vadd.f32 %v16786_v32, %v8478_v27  ;;  %v14976_v41 = vld [vmem:[%s16025_s13 + $0x920] ss:$372 sps:$4 sm:$0xff]   ;;  %13241 = vmatpush3.bf16.msra.mxu0 %v14979_v17 }
 0x128   : > { %v8546_v34 = vadd.f32 %v12775_v46, %v8481_v10  ;;  %v14978_v46 = vld [vmem:[%s19059_s1 + $0x7f0] sm:$0xff]   ;;  %9272 = vmatmul.mubr.bf16.gmra.mrb[108].mxu1 %v14976_v41  ;;  %13242 = vmatprep.subr.bf16.mxu0 %v14981_v58 }
 0x129   : > { %v16871_v32 = vadd.f32 %v16791_v35, %v8543_v33  ;;  %13280 = vmatprep.subr.bf16.mxu1 %v14978_v46 }
 0x12a   : > { %v12776_v59 = vpop.f32.mrb[24].mxu0  ;;  %v16874_v44 = vadd.f32 %v16805_v51, %v8546_v34  ;;  %13281 = vmatpush3.bf16.msra.mxu1 %v14980_v52  ;;  %v14999_v34 = vld [vmem:[%s16025_s13 + $0x35c] ss:$372 sps:$4 sm:$0xff]  }
 0x12b   : > { %v12816_v62 = vpop.f32.mrb[24].mxu1  ;;  %v12777_v1 = vpop.f32.mrb[25].mxu0 }
 0x12c   : > { %v12778_v4 = vadd.f32 %v12777_v1, %v12776_v59  ;;  %v12817_v6 = vpop.f32.mrb[25].mxu1  ;;  %v12779_v18 = vpop.f32.mrb[26].mxu0  ;;  %v14983_v1 = vld [vmem:[%s19059_s1 + $0x738] sm:$0xff]  }
 0x12d   : > { %v12818_v8 = vadd.f32 %v12817_v6, %v12816_v62  ;;  %v12819_v25 = vpop.f32.mrb[26].mxu1  ;;  %v12780_v20 = vpop.f32.mrb[27].mxu0  ;;  %v14982_v62 = vld [vmem:[%s19059_s1 + $0x7f8] sm:$0xff]   ;;  %13243 = vmatpush3.bf16.msra.mxu0 %v14983_v1 }
 0x12e   : > { %v12820_v53 = vpop.f32.mrb[27].mxu1  ;;  %v8551_v23 = vadd.f32 %v12778_v4, %v8486_v29  ;;  %v12781_v43 = vadd.f32 %v12780_v20, %v12779_v18  ;;  %13282 = vmatprep.subr.bf16.mxu1 %v14982_v62  ;;  %v14990_v18 = vld [vmem:[%s16025_s13 + $0x7c] ss:$372 sps:$4 sm:$0xff]   ;;  %13308 = vmatprep.subr.bf16.mxu0 %v14991_v21  ;;  %v14995_v20 = vld [vmem:[%s19059_s1 + $0x848] sm:$0xff]   ;;  %v15021_v21 = vld [vmem:[%s19059_s1 + $0x820] sm:$0xff]  }
 0x12f   : > { %v12821_v42 = vadd.f32 %v12820_v53, %v12819_v25  ;;  %13283 = vmatpush3.bf16.msra.mxu1 %v14984_v7  ;;  %9377 = vmatprep.mubr.bf16.mxu1 %v14990_v18  ;;  %v14993_v25 = vld [vmem:[%s19059_s1 + $0x800] sm:$0xff]  }
 0x130   : > { %v16879_v47 = vadd.f32 %v12818_v8, %v8551_v23  ;;  %v8554_v5 = vadd.f32 %v12781_v43, %v8489_v49  ;;  %9313 = vmatmul.mubr.bf16.vlgmr.msra.gmra.mrb[112].mxu0 %v14985_v9  ;;  %13348 = vmatprep.subr.bf16.mxu1 %v14992_v26  ;;  %v14996_v49 = vld [vmem:[%s19059_s1 + $0x8c8] sm:$0xff]   ;;  %v15004_v23 = vld [vmem:[%s16025_s13 + $0x360] ss:$372 sps:$4 sm:$0xff]  }
 0x131   : > { %13309 = vmatpush3.bf16.msra.mxu0 %v14993_v25  ;;  %9320 = vmatprep.mubr.bf16.mxu0 %v14999_v34  ;;  %v15017_v9 = vld [vmem:[%s16025_s13 + $0x640] ss:$372 sps:$4 sm:$0xff]   ;;  %v15031_v34 = vld [vmem:[%s16025_s13 + $0x928] ss:$372 sps:$4 sm:$0xff]  }
 0x132   : > { %v12782_v37 = vpop.f32.mrb[28].mxu0  ;;  %v16887_v55 = vadd.f32 %v12821_v42, %v8554_v5  ;;  %9378 = vmatmul.mubr.bf16.vlgmr.msra.gmra.mrb[112].mxu1 %v14988_v16  ;;  %13310 = vmatprep.subr.bf16.mxu0 %v14995_v20  ;;  %v15005_v42 = vld [vmem:[%s19059_s1 + $0x850] sm:$0xff]   ;;  %v15020_v18 = vld [vmem:[%s19059_s1 + $0x8e0] sm:$0xff]  }
 0x133   : > { %v12822_v45 = vpop.f32.mrb[28].mxu1  ;;  %v12783_v48 = vpop.f32.mrb[29].mxu0  ;;  %13349 = vmatpush3.bf16.msra.mxu1 %v14994_v60  ;;  %9385 = vmatprep.mubr.bf16.mxu1 %v15001_v40 }
 0x134   : > { %v12784_v35 = vadd.f32 %v12783_v48, %v12782_v37  ;;  %v12823_v51 = vpop.f32.mrb[29].mxu1  ;;  %v12785_v57 = vpop.f32.mrb[30].mxu0  ;;  %13350 = vmatprep.subr.bf16.mxu1 %v14996_v49  ;;  %v15008_v48 = vld [vmem:[%s19059_s1 + $0x890] sm:$0xff]  }
 0x135   : > { %v12824_v56 = vadd.f32 %v12823_v51, %v12822_v45  ;;  %v12825_v61 = vpop.f32.mrb[30].mxu1  ;;  %v12786_v0 = vpop.f32.mrb[31].mxu0  ;;  %v15007_v45 = vld [vmem:[%s19059_s1 + $0x810] sm:$0xff]   ;;  %v15009_v51 = vld [vmem:[%s19059_s1 + $0x858] sm:$0xff]  }
 0x136   : > { %v8559_v59 = vadd.f32 %v12784_v35, %v8494_v28  ;;  %v12787_v4 = vadd.f32 %v12786_v0, %v12785_v57  ;;  %v12826_v6 = vpop.f32.mrb[31].mxu1  ;;  %v15010_v57 = vld [vmem:[%s19059_s1 + $0x8d8] sm:$0xff]  }
 0x137   : > { %v12827_v8 = vadd.f32 %v12826_v6, %v12825_v61  ;;  %13351 = vmatpush3.bf16.msra.mxu1 %v14998_v31  ;;  %v15029_v31 = vld [vmem:[%s16025_s13 + $0x934] ss:$372 sps:$4 sm:$0xff]  }
 0x138   : > { %v16898_v3 = vadd.f32 %v12824_v56, %v8559_v59  ;;  %v8562_v11 = vadd.f32 %v12787_v4, %v8497_v39  ;;  %v14997_v39 = vld [vmem:[%s19059_s1 + $0x808] sm:$0xff]   ;;  %9321 = vmatmul.mubr.bf16.gmra.mrb[116].mxu0 %v15003_v13  ;;  %v15011_v59 = vld [vmem:[%s19059_s1 + $0x818] sm:$0xff]   ;;  %v15033_v13 = vld [vmem:[%s19059_s1 + $0x870] sm:$0xff]  }
 0x139   : > { %13311 = vmatpush3.bf16.msra.mxu0 %v14997_v39  ;;  %v15013_v4 = vld [vmem:[%s16025_s13 + $0x644] ss:$372 sps:$4 sm:$0xff]  }
 0x13a   : > { %v12844_v15 = vpop.f32.mrb[32].mxu0  ;;  %v16907_v19 = vadd.f32 %v12827_v8, %v8562_v11  ;;  %9386 = vmatmul.mubr.bf16.gmra.mrb[116].mxu1 %v15004_v23  ;;  %13312 = vmatprep.subr.bf16.mxu0 %v15005_v42  ;;  %v15015_v8 = vld [vmem:[%s16025_s13 + $0x64c] ss:$372 sps:$4 sm:$0xff]   ;;  %v15018_v11 = vld [vmem:[%s16025_s13 + $0x648] ss:$372 sps:$4 sm:$0xff]   ;;  %v15035_v42 = vld [vmem:[%s19059_s1 + $0x830] sm:$0xff]  }
 0x13b   : > { %v12884_v22 = vpop.f32.mrb[32].mxu1  ;;  %v12845_v24 = vpop.f32.mrb[33].mxu0  ;;  %9328 = vmatprep.mubr.bf16.mxu0 %v15013_v4  ;;  %9393 = vmatprep.mubr.bf16.mxu1 %v15015_v8  ;;  %v15047_v8 = vld [vmem:[%s19059_s1 + $0x940] sm:$0xff]  }
 0x13c   : > { %v12846_v36 = vadd.f32 %v12845_v24, %v12844_v15  ;;  %v12885_v50 = vpop.f32.mrb[33].mxu1  ;;  %v12847_v10 = vpop.f32.mrb[34].mxu0  ;;  %v15022_v24 = vld [vmem:[%s19059_s1 + $0x8a0] sm:$0xff]  }
 0x13d   : > { %v12886_v27 = vadd.f32 %v12885_v50, %v12884_v22  ;;  %v12887_v29 = vpop.f32.mrb[34].mxu1  ;;  %v12848_v28 = vpop.f32.mrb[35].mxu0  ;;  %13313 = vmatpush3.bf16.msra.mxu0 %v15007_v45  ;;  %v15023_v50 = vld [vmem:[%s19059_s1 + $0x868] sm:$0xff]  }
 0x13e   : > { %v8665_v38 = vadd.f32 %v12846_v36, %v16865_v2  ;;  %v12849_v63 = vadd.f32 %v12848_v28, %v12847_v10  ;;  %v12888_v30 = vpop.f32.mrb[35].mxu1  ;;  %v15006_v2 = vld [vmem:[%s19059_s1 + $0x8d0] sm:$0xff]   ;;  %13314 = vmatprep.subr.bf16.mxu0 %v15009_v51  ;;  %v15024_v10 = vld [vmem:[%s19059_s1 + $0x8e8] sm:$0xff]  }
 0x13f   : > { %v12889_v33 = vadd.f32 %v12888_v30, %v12887_v29  ;;  %13352 = vmatprep.subr.bf16.mxu1 %v15006_v2 }
 0x140   : > { %v16931_v53 = vadd.f32 %v12886_v27, %v8665_v38  ;;  %v8668_v37 = vadd.f32 %v12849_v63, %v16868_v14  ;;  %13353 = vmatpush3.bf16.msra.mxu1 %v15008_v48  ;;  %9329 = vmatmul.mubr.bf16.gmra.mrb[120].mxu0 %v15017_v9  ;;  %v15025_v38 = vld [vmem:[%s19059_s1 + $0x828] sm:$0xff]  }
 0x141   : > { %13354 = vmatprep.subr.bf16.mxu1 %v15010_v57  ;;  %13315 = vmatpush3.bf16.msra.mxu0 %v15011_v59  ;;  %v15027_v63 = vld [vmem:[%s16025_s13 + $0x92c] ss:$372 sps:$4 sm:$0xff]  }
 0x142   : > { %v12850_v41 = vpop.f32.mrb[36].mxu0  ;;  %v16941_v43 = vadd.f32 %v12889_v33, %v8668_v37  ;;  %9394 = vmatmul.mubr.bf16.gmra.mrb[120].mxu1 %v15018_v11  ;;  %13316 = vmatprep.subr.bf16.mxu0 %v15019_v12  ;;  %v15032_v37 = vld [vmem:[%s16025_s13 + $0x930] ss:$372 sps:$4 sm:$0xff]  }
 0x143   : > { %v12890_v54 = vpop.f32.mrb[36].mxu1  ;;  %v12851_v14 = vpop.f32.mrb[37].mxu0  ;;  %9336 = vmatprep.mubr.bf16.mxu0 %v15027_v63  ;;  %9401 = vmatprep.mubr.bf16.mxu1 %v15029_v31  ;;  %v15048_v11 = vld [vmem:[%s19059_s1 + $0x9c0] sm:$0xff]   ;;  %v15059_v63 = vld [vmem:[%s16025_s13 + $0x368] ss:$372 sps:$4 sm:$0xff]   ;;  %v15061_v31 = vld [vmem:[%s19059_s1 + $0x950] sm:$0xff]  }
 0x144   : > { %v12852_v46 = vadd.f32 %v12851_v14, %v12850_v41  ;;  %v12891_v5 = vpop.f32.mrb[37].mxu1  ;;  %v12853_v35 = vpop.f32.mrb[38].mxu0  ;;  %v15036_v14 = vld [vmem:[%s19059_s1 + $0x8b0] sm:$0xff]  }
 0x145   : > { %v12892_v17 = vadd.f32 %v12891_v5, %v12890_v54  ;;  %v12893_v56 = vpop.f32.mrb[38].mxu1  ;;  %v12854_v58 = vpop.f32.mrb[39].mxu0  ;;  %13317 = vmatpush3.bf16.msra.mxu0 %v15021_v21  ;;  %v15037_v5 = vld [vmem:[%s19059_s1 + $0x878] sm:$0xff]  }
 0x146   : > { %v8673_v52 = vadd.f32 %v12852_v46, %v16871_v32  ;;  %v12855_v62 = vadd.f32 %v12854_v58, %v12853_v35  ;;  %v12894_v0 = vpop.f32.mrb[39].mxu1  ;;  %v15012_v32 = vld [vmem:[%s19059_s1 + $0x898] sm:$0xff]   ;;  %13318 = vmatprep.subr.bf16.mxu0 %v15023_v50 }
 0x147   : > { %v12895_v1 = vadd.f32 %v12894_v0, %v12893_v56  ;;  %13355 = vmatpush3.bf16.msra.mxu1 %v15012_v32  ;;  %v15038_v35 = vld [vmem:[%s19059_s1 + $0x8f8] sm:$0xff]  }
 0x148   : > { %v16965_v61 = vadd.f32 %v12892_v17, %v8673_v52  ;;  %v8676_v6 = vadd.f32 %v12855_v62, %v16874_v44  ;;  %13356 = vmatprep.subr.bf16.mxu1 %v15020_v18  ;;  %9337 = vmatmul.mubr.bf16.gmra.mrb[124].mxu0 %v15031_v34  ;;  %v15039_v52 = vld [vmem:[%s19059_s1 + $0x838] sm:$0xff]   ;;  %v15041_v62 = vld [vmem:[%s16025_s13 + $0x80] ss:$372 sps:$4 sm:$0xff]  }
 0x149   : > { %13319 = vmatpush3.bf16.msra.mxu0 %v15025_v38  ;;  %v15043_v0 = vld [vmem:[%s16025_s13 + $0x84] ss:$372 sps:$4 sm:$0xff]  }
 0x14a   : > { %v12856_v7 = vpop.f32.mrb[40].mxu0  ;;  %v16978_v15 = vadd.f32 %v12895_v1, %v8676_v6  ;;  %9402 = vmatmul.mubr.bf16.gmra.mrb[124].mxu1 %v15032_v37  ;;  %13320 = vmatprep.subr.bf16.mxu0 %v15033_v13  ;;  %v15044_v1 = vld [vmem:[%s16025_s13 + $0x88] ss:$372 sps:$4 sm:$0xff]   ;;  %v15046_v6 = vld [vmem:[%s16025_s13 + $0x8c] ss:$372 sps:$4 sm:$0xff]   ;;  %v15062_v37 = vld [vmem:[%s19059_s1 + $0x9d0] sm:$0xff]  }
 0x14b   : > { %v12896_v16 = vpop.f32.mrb[40].mxu1  ;;  %v12857_v44 = vpop.f32.mrb[41].mxu0  ;;  %13357 = vmatpush3.bf16.msra.mxu1 %v15022_v24  ;;  %9442 = vmatprep.mubr.bf16.mxu0 %v15043_v0  ;;  %v15063_v13 = vld [vmem:[%s19059_s1 + $0x910] sm:$0xff]   ;;  %v15074_v0 = vld [vmem:[%s16025_s13 + $0x658] ss:$372 sps:$4 sm:$0xff]  }
 0x14c   : > { %v12858_v22 = vadd.f32 %v12857_v44, %v12856_v7  ;;  %v12897_v26 = vpop.f32.mrb[41].mxu1  ;;  %v12859_v36 = vpop.f32.mrb[42].mxu0  ;;  %13358 = vmatprep.subr.bf16.mxu1 %v15024_v10  ;;  %9507 = vmatprep.mubr.bf16.mxu1 %v15046_v6  ;;  %v15050_v44 = vld [vmem:[%s19059_s1 + $0x980] sm:$0xff]  }
 0x14d   : > { %v12898_v25 = vadd.f32 %v12897_v26, %v12896_v16  ;;  %v12899_v27 = vpop.f32.mrb[42].mxu1  ;;  %v12860_v20 = vpop.f32.mrb[43].mxu0  ;;  %13321 = vmatpush3.bf16.msra.mxu0 %v15035_v42  ;;  %v15051_v26 = vld [vmem:[%s19059_s1 + $0x948] sm:$0xff]  }
 0x14e   : > { %v8681_v60 = vadd.f32 %v12858_v22, %v16879_v47  ;;  %v12861_v49 = vadd.f32 %v12860_v20, %v12859_v36  ;;  %v12900_v28 = vpop.f32.mrb[43].mxu1  ;;  %v15026_v47 = vld [vmem:[%s19059_s1 + $0x8a8] sm:$0xff]   ;;  %13322 = vmatprep.subr.bf16.mxu0 %v15037_v5 }
 0x14f   : > { %v12901_v39 = vadd.f32 %v12900_v28, %v12899_v27  ;;  %13359 = vmatpush3.bf16.msra.mxu1 %v15026_v47  ;;  %v15052_v36 = vld [vmem:[%s19059_s1 + $0x9c8] sm:$0xff]  }
 0x150   : > { %v16999_v29 = vadd.f32 %v12898_v25, %v8681_v60  ;;  %v8684_v30 = vadd.f32 %v12861_v49, %v16887_v55  ;;  %v15034_v55 = vld [vmem:[%s19059_s1 + $0x8f0] sm:$0xff]   ;;  %v15053_v60 = vld [vmem:[%s19059_s1 + $0x908] sm:$0xff]  }
 0x151   : > { %13360 = vmatprep.subr.bf16.mxu1 %v15034_v55  ;;  %13323 = vmatpush3.bf16.msra.mxu0 %v15039_v52  ;;  %v15055_v49 = vld [vmem:[%s16025_s13 + $0x36c] ss:$372 sps:$4 sm:$0xff]  }
 0x152   : > { %v12862_v33 = vpop.f32.mrb[44].mxu0  ;;  %v17009_v40 = vadd.f32 %v12901_v39, %v8684_v30  ;;  %13388 = vmatprep.subr.bf16.mxu0 %v15047_v8  ;;  %v15057_v39 = vld [vmem:[%s16025_s13 + $0x374] ss:$372 sps:$4 sm:$0xff]   ;;  %v15060_v30 = vld [vmem:[%s16025_s13 + $0x370] ss:$372 sps:$4 sm:$0xff]  }
 0x153   : > { %v12902_v41 = vpop.f32.mrb[44].mxu1  ;;  %v12863_v23 = vpop.f32.mrb[45].mxu0  ;;  %13361 = vmatpush3.bf16.msra.mxu1 %v15036_v14  ;;  %v15077_v8 = vld [vmem:[%s19059_s1 + $0x920] sm:$0xff]  }
 0x154   : > { %v12864_v54 = vadd.f32 %v12863_v23, %v12862_v33  ;;  %v12903_v2 = vpop.f32.mrb[45].mxu1  ;;  %v12865_v46 = vpop.f32.mrb[46].mxu0  ;;  %13362 = vmatprep.subr.bf16.mxu1 %v15038_v35  ;;  %9443 = vmatmul.mubr.bf16.vlgmr.msra.gmra.mrb[128].mxu0 %v15041_v62  ;;  %v15064_v23 = vld [vmem:[%s19059_s1 + $0x990] sm:$0xff]  }
 0x155   : > { %v12904_v45 = vadd.f32 %v12903_v2, %v12902_v41  ;;  %v12905_v17 = vpop.f32.mrb[46].mxu1  ;;  %v12866_v51 = vpop.f32.mrb[47].mxu0  ;;  %9450 = vmatprep.mubr.bf16.mxu0 %v15055_v49  ;;  %v15065_v2 = vld [vmem:[%s19059_s1 + $0x958] sm:$0xff]   ;;  %v15073_v62 = vld [vmem:[%s16025_s13 + $0x650] ss:$372 sps:$4 sm:$0xff]  }
 0x156   : > { %v8689_v48 = vadd.f32 %v12864_v54, %v16898_v3  ;;  %v12867_v57 = vadd.f32 %v12866_v51, %v12865_v46  ;;  %v12906_v58 = vpop.f32.mrb[47].mxu1  ;;  %v15040_v3 = vld [vmem:[%s19059_s1 + $0x8b8] sm:$0xff]  }
 0x157   : > { %v12907_v59 = vadd.f32 %v12906_v58, %v12905_v17  ;;  %13363 = vmatpush3.bf16.msra.mxu1 %v15040_v3  ;;  %v15066_v46 = vld [vmem:[%s19059_s1 + $0x9d8] sm:$0xff]  }
 0x158   : > { %v17033_v56 = vadd.f32 %v12904_v45, %v8689_v48  ;;  %v8692_v32 = vadd.f32 %v12867_v57, %v16907_v19  ;;  %v15049_v19 = vld [vmem:[%s19059_s1 + $0x900] sm:$0xff]   ;;  %13428 = vmatprep.subr.bf16.mxu1 %v15048_v11  ;;  %v15067_v48 = vld [vmem:[%s19059_s1 + $0x918] sm:$0xff]   ;;  %v15069_v57 = vld [vmem:[%s16025_s13 + $0x654] ss:$372 sps:$4 sm:$0xff]  }
 0x159   : > { %13389 = vmatpush3.bf16.msra.mxu0 %v15049_v19  ;;  %v15071_v3 = vld [vmem:[%s16025_s13 + $0x65c] ss:$372 sps:$4 sm:$0xff]  }
 0x15a   : > { %v12924_v4 = vpop.f32.mrb[48].mxu0  ;;  %v17043_v7 = vadd.f32 %v12907_v59, %v8692_v32  ;;  %9508 = vmatmul.mubr.bf16.vlgmr.msra.gmra.mrb[128].mxu1 %v15044_v1  ;;  %13390 = vmatprep.subr.bf16.mxu0 %v15051_v26  ;;  %v15075_v1 = vld [vmem:[%s19059_s1 + $0x960] sm:$0xff]  }
 0x15b   : > { %v12964_v9 = vpop.f32.mrb[48].mxu1  ;;  %v12925_v12 = vpop.f32.mrb[49].mxu0  ;;  %13429 = vmatpush3.bf16.msra.mxu1 %v15050_v44  ;;  %9515 = vmatprep.mubr.bf16.mxu1 %v15057_v39  ;;  %v15089_v39 = vld [vmem:[%s19059_s1 + $0x970] sm:$0xff]  }
 0x15c   : > { %v12926_v16 = vadd.f32 %v12925_v12, %v12924_v4  ;;  %v12965_v18 = vpop.f32.mrb[49].mxu1  ;;  %v12927_v22 = vpop.f32.mrb[50].mxu0  ;;  %13430 = vmatprep.subr.bf16.mxu1 %v15052_v36  ;;  %9451 = vmatmul.mubr.bf16.gmra.mrb[132].mxu0 %v15059_v63  ;;  %v15078_v12 = vld [vmem:[%s19059_s1 + $0x9a0] sm:$0xff]  }
 0x15d   : > { %v12966_v21 = vadd.f32 %v12965_v18, %v12964_v9  ;;  %v12967_v25 = vpop.f32.mrb[50].mxu1  ;;  %v12928_v50 = vpop.f32.mrb[51].mxu0  ;;  %13391 = vmatpush3.bf16.msra.mxu0 %v15053_v60  ;;  %9458 = vmatprep.mubr.bf16.mxu0 %v15069_v57  ;;  %v15079_v18 = vld [vmem:[%s19059_s1 + $0x968] sm:$0xff]  }
 0x15e   : > { %v8795_v24 = vadd.f32 %v12926_v16, %v16931_v53  ;;  %v12929_v10 = vadd.f32 %v12928_v50, %v12927_v22  ;;  %v12968_v20 = vpop.f32.mrb[51].mxu1  ;;  %v15054_v53 = vld [vmem:[%s19059_s1 + $0x988] sm:$0xff]   ;;  %13392 = vmatprep.subr.bf16.mxu0 %v15061_v31  ;;  %v15091_v31 = vld [vmem:[%s19059_s1 + $0x930] sm:$0xff]  }
 0x15f   : > { %v12969_v38 = vadd.f32 %v12968_v20, %v12967_v25  ;;  %13431 = vmatpush3.bf16.msra.mxu1 %v15054_v53  ;;  %v15080_v22 = vld [vmem:[%s19059_s1 + $0x9e8] sm:$0xff]   ;;  %v15085_v53 = vld [vmem:[%s16025_s13 + $0x944] ss:$372 sps:$4 sm:$0xff]  }
 0x160   : > { %v17067_v27 = vadd.f32 %v12966_v21, %v8795_v24  ;;  %v8798_v28 = vadd.f32 %v12929_v10, %v16941_v43  ;;  %13432 = vmatprep.subr.bf16.mxu1 %v15062_v37  ;;  %v15081_v24 = vld [vmem:[%s19059_s1 + $0x928] sm:$0xff]   ;;  %v15083_v10 = vld [vmem:[%s16025_s13 + $0x93c] ss:$372 sps:$4 sm:$0xff]  }
 0x161   : > { %13393 = vmatpush3.bf16.msra.mxu0 %v15063_v13  ;;  %v15100_v57 = vld [vmem:[%s16025_s13 + $0x98] ss:$372 sps:$4 sm:$0xff]  }
 0x162   : > { %v12930_v47 = vpop.f32.mrb[52].mxu0  ;;  %v17080_v33 = vadd.f32 %v12969_v38, %v8798_v28  ;;  %9516 = vmatmul.mubr.bf16.gmra.mrb[132].mxu1 %v15060_v30  ;;  %13394 = vmatprep.subr.bf16.mxu0 %v15065_v2  ;;  %v15087_v38 = vld [vmem:[%s16025_s13 + $0x938] ss:$372 sps:$4 sm:$0xff]   ;;  %v15088_v28 = vld [vmem:[%s16025_s13 + $0x940] ss:$372 sps:$4 sm:$0xff]  }
 0x163   : > { %v12970_v34 = vpop.f32.mrb[52].mxu1  ;;  %v12931_v43 = vpop.f32.mrb[53].mxu0  ;;  %13433 = vmatpush3.bf16.msra.mxu1 %v15064_v23  ;;  %9523 = vmatprep.mubr.bf16.mxu1 %v15071_v3 }
 0x164   : > { %v12932_v41 = vadd.f32 %v12931_v43, %v12930_v47  ;;  %v12971_v55 = vpop.f32.mrb[53].mxu1  ;;  %v12933_v54 = vpop.f32.mrb[54].mxu0  ;;  %13434 = vmatprep.subr.bf16.mxu1 %v15066_v46  ;;  %9459 = vmatmul.mubr.bf16.gmra.mrb[136].mxu0 %v15073_v62  ;;  %v15092_v43 = vld [vmem:[%s19059_s1 + $0x9b0] sm:$0xff]  }
 0x165   : > { %v12972_v42 = vadd.f32 %v12971_v55, %v12970_v34  ;;  %v12973_v45 = vpop.f32.mrb[54].mxu1  ;;  %v12934_v5 = vpop.f32.mrb[55].mxu0  ;;  %13395 = vmatpush3.bf16.msra.mxu0 %v15067_v48  ;;  %9466 = vmatprep.mubr.bf16.mxu0 %v15083_v10  ;;  %v15093_v55 = vld [vmem:[%s19059_s1 + $0x978] sm:$0xff]  }
 0x166   : > { %v8803_v14 = vadd.f32 %v12932_v41, %v16965_v61  ;;  %v12935_v35 = vadd.f32 %v12934_v5, %v12933_v54  ;;  %v12974_v51 = vpop.f32.mrb[55].mxu1  ;;  %v15068_v61 = vld [vmem:[%s19059_s1 + $0x998] sm:$0xff]   ;;  %13396 = vmatprep.subr.bf16.mxu0 %v15075_v1 }
 0x167   : > { %v12975_v52 = vadd.f32 %v12974_v51, %v12973_v45  ;;  %13435 = vmatpush3.bf16.msra.mxu1 %v15068_v61  ;;  %v15094_v54 = vld [vmem:[%s19059_s1 + $0x9f8] sm:$0xff]   ;;  %v15099_v51 = vld [vmem:[%s16025_s13 + $0x94] ss:$372 sps:$4 sm:$0xff]  }
 0x168   : > { %v17101_v17 = vadd.f32 %v12972_v42, %v8803_v14  ;;  %v8806_v58 = vadd.f32 %v12935_v35, %v16978_v15  ;;  %v15076_v15 = vld [vmem:[%s19059_s1 + $0x9e0] sm:$0xff]   ;;  %v15095_v14 = vld [vmem:[%s19059_s1 + $0x938] sm:$0xff]  }
 0x169   : > { %13436 = vmatprep.subr.bf16.mxu1 %v15076_v15  ;;  %13397 = vmatpush3.bf16.msra.mxu0 %v15077_v8  ;;  %v15097_v35 = vld [vmem:[%s16025_s13 + $0x90] ss:$372 sps:$4 sm:$0xff]  }
 0x16a   : > { %v12936_v59 = vpop.f32.mrb[56].mxu0  ;;  %v17111_v32 = vadd.f32 %v12975_v52, %v8806_v58  ;;  %9524 = vmatmul.mubr.bf16.gmra.mrb[136].mxu1 %v15074_v0  ;;  %13398 = vmatprep.subr.bf16.mxu0 %v15079_v18  ;;  %v15102_v58 = vld [vmem:[%s16025_s13 + $0x9c] ss:$372 sps:$4 sm:$0xff]   ;;  %v15105_v15 = vld [vmem:[%s19059_s1 + $0xa00] sm:$0xff]  }
 0x16b   : > { %v12976_v4 = vpop.f32.mrb[56].mxu1  ;;  %v12937_v6 = vpop.f32.mrb[57].mxu0  ;;  %13437 = vmatpush3.bf16.msra.mxu1 %v15078_v12  ;;  %9531 = vmatprep.mubr.bf16.mxu1 %v15085_v53  ;;  %v15116_v53 = vld [vmem:[%s16025_s13 + $0x380] ss:$372 sps:$4 sm:$0xff]  }
 0x16c   : > { %v12938_v9 = vadd.f32 %v12937_v6, %v12936_v59  ;;  %v12977_v11 = vpop.f32.mrb[57].mxu1  ;;  %v12939_v16 = vpop.f32.mrb[58].mxu0  ;;  %13438 = vmatprep.subr.bf16.mxu1 %v15080_v22  ;;  %9467 = vmatmul.mubr.bf16.gmra.mrb[140].mxu0 %v15087_v38  ;;  %v15103_v59 = vld [vmem:[%s19059_s1 + $0xa40] sm:$0xff]   ;;  %v15109_v22 = vld [vmem:[%s19059_s1 + $0xa08] sm:$0xff]   ;;  %v15117_v38 = vld [vmem:[%s19059_s1 + $0xa50] sm:$0xff]  }
 0x16d   : > { %v12978_v19 = vadd.f32 %v12977_v11, %v12976_v4  ;;  %v12979_v21 = vpop.f32.mrb[58].mxu1  ;;  %v12940_v26 = vpop.f32.mrb[59].mxu0  ;;  %13399 = vmatpush3.bf16.msra.mxu0 %v15081_v24  ;;  %9572 = vmatprep.mubr.bf16.mxu0 %v15099_v51  ;;  %v15106_v11 = vld [vmem:[%s19059_s1 + $0xa80] sm:$0xff]   ;;  %v15110_v24 = vld [vmem:[%s19059_s1 + $0xa88] sm:$0xff]  }
 0x16e   : > { %v8811_v44 = vadd.f32 %v12938_v9, %v16999_v29  ;;  %v12941_v36 = vadd.f32 %v12940_v26, %v12939_v16  ;;  %v12980_v50 = vpop.f32.mrb[59].mxu1  ;;  %v15082_v29 = vld [vmem:[%s19059_s1 + $0x9a8] sm:$0xff]   ;;  %13400 = vmatprep.subr.bf16.mxu0 %v15089_v39  ;;  %v15119_v39 = vld [vmem:[%s19059_s1 + $0xa10] sm:$0xff]  }
 0x16f   : > { %v12981_v60 = vadd.f32 %v12980_v50, %v12979_v21  ;;  %13439 = vmatpush3.bf16.msra.mxu1 %v15082_v29  ;;  %v15111_v50 = vld [vmem:[%s16025_s13 + $0x37c] ss:$372 sps:$4 sm:$0xff]   ;;  %v15113_v29 = vld [vmem:[%s16025_s13 + $0x384] ss:$372 sps:$4 sm:$0xff]  }
 0x170   : > { %v17135_v25 = vadd.f32 %v12978_v19, %v8811_v44  ;;  %v8814_v20 = vadd.f32 %v12941_v36, %v17009_v40  ;;  %v15090_v40 = vld [vmem:[%s19059_s1 + $0x9f0] sm:$0xff]   ;;  %v15107_v19 = vld [vmem:[%s19059_s1 + $0xa48] sm:$0xff]  }
 0x171   : > { %13440 = vmatprep.subr.bf16.mxu1 %v15090_v40  ;;  %13401 = vmatpush3.bf16.msra.mxu0 %v15091_v31  ;;  %v15130_v51 = vld [vmem:[%s16025_s13 + $0x668] ss:$372 sps:$4 sm:$0xff]  }
 0x172   : > { %v12942_v49 = vpop.f32.mrb[60].mxu0  ;;  %v17145_v47 = vadd.f32 %v12981_v60, %v8814_v20  ;;  %9532 = vmatmul.mubr.bf16.gmra.mrb[140].mxu1 %v15088_v28  ;;  %13402 = vmatprep.subr.bf16.mxu0 %v15093_v55  ;;  %v15115_v20 = vld [vmem:[%s16025_s13 + $0x378] ss:$372 sps:$4 sm:$0xff]  }
 0x173   : > { %v12982_v63 = vpop.f32.mrb[60].mxu1  ;;  %v12943_v30 = vpop.f32.mrb[61].mxu0  ;;  %13441 = vmatpush3.bf16.msra.mxu1 %v15092_v43  ;;  %9637 = vmatprep.mubr.bf16.mxu1 %v15102_v58 }
 0x174   : > { %v12944_v34 = vadd.f32 %v12943_v30, %v12942_v49  ;;  %v12983_v37 = vpop.f32.mrb[61].mxu1  ;;  %v12945_v41 = vpop.f32.mrb[62].mxu0  ;;  %13442 = vmatprep.subr.bf16.mxu1 %v15094_v54  ;;  %v15120_v30 = vld [vmem:[%s19059_s1 + $0xa90] sm:$0xff]  }
 0x175   : > { %v12984_v13 = vadd.f32 %v12983_v37, %v12982_v63  ;;  %v12985_v42 = vpop.f32.mrb[62].mxu1  ;;  %v12946_v2 = vpop.f32.mrb[63].mxu0  ;;  %13403 = vmatpush3.bf16.msra.mxu0 %v15095_v14  ;;  %v15121_v37 = vld [vmem:[%s19059_s1 + $0xa58] sm:$0xff]  }
 0x176   : > { %v8819_v23 = vadd.f32 %v12944_v34, %v17033_v56  ;;  %v12947_v46 = vadd.f32 %v12946_v2, %v12945_v41  ;;  %v12986_v5 = vpop.f32.mrb[63].mxu1  ;;  %v15096_v56 = vld [vmem:[%s19059_s1 + $0x9b8] sm:$0xff]   ;;  %13468 = vmatprep.subr.bf16.mxu0 %v15103_v59 }
 0x177   : > { %v12987_v48 = vadd.f32 %v12986_v5, %v12985_v42  ;;  %13443 = vmatpush3.bf16.msra.mxu1 %v15096_v56  ;;  %v15122_v41 = vld [vmem:[%s19059_s1 + $0xad8] sm:$0xff]   ;;  %v15127_v56 = vld [vmem:[%s16025_s13 + $0x66c] ss:$372 sps:$4 sm:$0xff]  }
 0x178   : > { %v17169_v45 = vadd.f32 %v12984_v13, %v8819_v23  ;;  %v8822_v61 = vadd.f32 %v12947_v46, %v17043_v7  ;;  %9573 = vmatmul.mubr.bf16.vlgmr.msra.gmra.mrb[144].mxu0 %v15097_v35  ;;  %v15104_v7 = vld [vmem:[%s19059_s1 + $0xac0] sm:$0xff]   ;;  %v15123_v23 = vld [vmem:[%s19059_s1 + $0xa18] sm:$0xff]  }
 0x179   : > { %13508 = vmatprep.subr.bf16.mxu1 %v15104_v7  ;;  %13469 = vmatpush3.bf16.msra.mxu0 %v15105_v15  ;;  %v15125_v46 = vld [vmem:[%s16025_s13 + $0x664] ss:$372 sps:$4 sm:$0xff]   ;;  %v15135_v15 = vld [vmem:[%s19059_s1 + $0xa68] sm:$0xff]  }
 0x17a   : > { %v13004_v52 = vpop.f32.mrb[64].mxu0  ;;  %v17182_v62 = vadd.f32 %v12987_v48, %v8822_v61  ;;  %9638 = vmatmul.mubr.bf16.vlgmr.msra.gmra.mrb[144].mxu1 %v15100_v57  ;;  %13470 = vmatprep.subr.bf16.mxu0 %v15107_v19  ;;  %v15129_v48 = vld [vmem:[%s16025_s13 + $0x660] ss:$372 sps:$4 sm:$0xff]  }
 0x17b   : > { %v13005_v3 = vpop.f32.mrb[65].mxu0  ;;  %v13044_v0 = vpop.f32.mrb[64].mxu1  ;;  %13509 = vmatpush3.bf16.msra.mxu1 %v15106_v11  ;;  %9580 = vmatprep.mubr.bf16.mxu0 %v15111_v50  ;;  %v15144_v50 = vld [vmem:[%s16025_s13 + $0x950] ss:$372 sps:$4 sm:$0xff]  }
 0x17c   : > { %v13006_v1 = vadd.f32 %v13005_v3, %v13004_v52  ;;  %v13045_v4 = vpop.f32.mrb[65].mxu1  ;;  %v13007_v9 = vpop.f32.mrb[66].mxu0  ;;  %9645 = vmatprep.mubr.bf16.mxu1 %v15113_v29  ;;  %v15131_v52 = vld [vmem:[%s19059_s1 + $0xa60] sm:$0xff]   ;;  %v15145_v29 = vld [vmem:[%s19059_s1 + $0xa70] sm:$0xff]  }
 0x17d   : > { %v13046_v8 = vadd.f32 %v13045_v4, %v13044_v0  ;;  %v13047_v12 = vpop.f32.mrb[66].mxu1  ;;  %v13008_v18 = vpop.f32.mrb[67].mxu0  ;;  %13471 = vmatpush3.bf16.msra.mxu0 %v15109_v22  ;;  %v15133_v3 = vld [vmem:[%s19059_s1 + $0xa20] sm:$0xff]  }
 0x17e   : > { %v8925_v6 = vadd.f32 %v13006_v1, %v17067_v27  ;;  %v15108_v27 = vld [vmem:[%s19059_s1 + $0xac8] sm:$0xff]   ;;  %v13009_v44 = vadd.f32 %v13008_v18, %v13007_v9  ;;  %v13048_v21 = vpop.f32.mrb[67].mxu1  ;;  %13472 = vmatprep.subr.bf16.mxu0 %v15117_v38  ;;  %v15134_v1 = vld [vmem:[%s19059_s1 + $0xaa0] sm:$0xff]   ;;  %v15147_v38 = vld [vmem:[%s19059_s1 + $0xa30] sm:$0xff]  }
 0x17f   : > { %v13049_v26 = vadd.f32 %v13048_v21, %v13047_v12  ;;  %13510 = vmatprep.subr.bf16.mxu1 %v15108_v27  ;;  %v15136_v9 = vld [vmem:[%s19059_s1 + $0xae8] sm:$0xff]  }
 0x180   : > { %v17197_v16 = vadd.f32 %v13046_v8, %v8925_v6  ;;  %v8928_v36 = vadd.f32 %v13009_v44, %v17080_v33  ;;  %13511 = vmatpush3.bf16.msra.mxu1 %v15110_v24  ;;  %9581 = vmatmul.mubr.bf16.gmra.mrb[148].mxu0 %v15115_v20  ;;  %v15118_v33 = vld [vmem:[%s19059_s1 + $0xad0] sm:$0xff]   ;;  %v15137_v12 = vld [vmem:[%s19059_s1 + $0xa28] sm:$0xff]  }
 0x181   : > { %13512 = vmatprep.subr.bf16.mxu1 %v15118_v33  ;;  %13473 = vmatpush3.bf16.msra.mxu0 %v15119_v39  ;;  %v15139_v21 = vld [vmem:[%s16025_s13 + $0x94c] ss:$372 sps:$4 sm:$0xff]   ;;  %v15141_v24 = vld [vmem:[%s16025_s13 + $0x954] ss:$372 sps:$4 sm:$0xff]  }
 0x182   : > { %v17211_v60 = vadd.f32 %v13049_v26, %v8928_v36  ;;  %v13010_v10 = vpop.f32.mrb[68].mxu0  ;;  %9646 = vmatmul.mubr.bf16.gmra.mrb[148].mxu1 %v15116_v53  ;;  %13474 = vmatprep.subr.bf16.mxu0 %v15121_v37  ;;  %v15143_v36 = vld [vmem:[%s16025_s13 + $0x948] ss:$372 sps:$4 sm:$0xff]   ;;  %v15146_v53 = vld [vmem:[%s19059_s1 + $0xaf0] sm:$0xff]  }
 0x183   : > { %v13050_v49 = vpop.f32.mrb[68].mxu1  ;;  %v13011_v28 = vpop.f32.mrb[69].mxu0  ;;  %9588 = vmatprep.mubr.bf16.mxu0 %v15125_v46  ;;  %9653 = vmatprep.mubr.bf16.mxu1 %v15127_v56  ;;  %v15156_v46 = vld [vmem:[%s16025_s13 + $0xa8] ss:$372 sps:$4 sm:$0xff]  }
 0x184   : > { %v13012_v63 = vadd.f32 %v13011_v28, %v13010_v10  ;;  %v13051_v40 = vpop.f32.mrb[69].mxu1  ;;  %v13013_v34 = vpop.f32.mrb[70].mxu0  ;;  %13513 = vmatpush3.bf16.msra.mxu1 %v15120_v30  ;;  %v15148_v28 = vld [vmem:[%s19059_s1 + $0xab0] sm:$0xff]  }
 0x185   : > { %v13052_v31 = vadd.f32 %v13051_v40, %v13050_v49  ;;  %v13053_v13 = vpop.f32.mrb[70].mxu1  ;;  %v13014_v55 = vpop.f32.mrb[71].mxu0  ;;  %13514 = vmatprep.subr.bf16.mxu1 %v15122_v41  ;;  %13475 = vmatpush3.bf16.msra.mxu0 %v15123_v23  ;;  %v15149_v40 = vld [vmem:[%s19059_s1 + $0xa78] sm:$0xff]  }
 0x186   : > { %v8933_v43 = vadd.f32 %v13012_v63, %v17101_v17  ;;  %v13015_v54 = vadd.f32 %v13014_v55, %v13013_v34  ;;  %v13054_v2 = vpop.f32.mrb[71].mxu1  ;;  %v15124_v17 = vld [vmem:[%s19059_s1 + $0xa98] sm:$0xff]   ;;  %13476 = vmatprep.subr.bf16.mxu0 %v15131_v52  ;;  %v15161_v52 = vld [vmem:[%s19059_s1 + $0xb00] sm:$0xff]  }
 0x187   : > { %v13055_v14 = vadd.f32 %v13054_v2, %v13053_v13  ;;  %v15150_v34 = vld [vmem:[%s19059_s1 + $0xaf8] sm:$0xff]  }
 0x188   : > { %v17237_v42 = vadd.f32 %v13052_v31, %v8933_v43  ;;  %v8936_v5 = vadd.f32 %v13015_v54, %v17111_v32  ;;  %13515 = vmatpush3.bf16.msra.mxu1 %v15124_v17  ;;  %9589 = vmatmul.mubr.bf16.gmra.mrb[152].mxu0 %v15129_v48  ;;  %v15132_v32 = vld [vmem:[%s19059_s1 + $0xae0] sm:$0xff]   ;;  %v15151_v43 = vld [vmem:[%s19059_s1 + $0xa38] sm:$0xff]  }
 0x189   : > { %13516 = vmatprep.subr.bf16.mxu1 %v15132_v32  ;;  %13477 = vmatpush3.bf16.msra.mxu0 %v15133_v3  ;;  %v15153_v54 = vld [vmem:[%s16025_s13 + $0xa0] ss:$372 sps:$4 sm:$0xff]   ;;  %v15155_v17 = vld [vmem:[%s16025_s13 + $0xa4] ss:$372 sps:$4 sm:$0xff]  }
 0x18a   : > { %v13016_v35 = vpop.f32.mrb[72].mxu0  ;;  %v17247_v61 = vadd.f32 %v13055_v14, %v8936_v5  ;;  %9654 = vmatmul.mubr.bf16.gmra.mrb[152].mxu1 %v15130_v51  ;;  %13478 = vmatprep.subr.bf16.mxu0 %v15135_v15  ;;  %v15158_v5 = vld [vmem:[%s16025_s13 + $0xac] ss:$372 sps:$4 sm:$0xff]  }
 0x18b   : > { %v13056_v57 = vpop.f32.mrb[72].mxu1  ;;  %v13017_v58 = vpop.f32.mrb[73].mxu0  ;;  %9596 = vmatprep.mubr.bf16.mxu0 %v15139_v21  ;;  %9661 = vmatprep.mubr.bf16.mxu1 %v15141_v24  ;;  %v15159_v48 = vld [vmem:[%s19059_s1 + $0xb40] sm:$0xff]   ;;  %v15173_v24 = vld [vmem:[%s19059_s1 + $0xb50] sm:$0xff]  }
 0x18c   : > { %v13018_v59 = vadd.f32 %v13017_v58, %v13016_v35  ;;  %v13057_v0 = vpop.f32.mrb[73].mxu1  ;;  %v13019_v4 = vpop.f32.mrb[74].mxu0  ;;  %13517 = vmatpush3.bf16.msra.mxu1 %v15134_v1  ;;  %v15160_v51 = vld [vmem:[%s19059_s1 + $0xbc0] sm:$0xff]  }
 0x18d   : > { %v13058_v7 = vadd.f32 %v13057_v0, %v13056_v57  ;;  %v13059_v8 = vpop.f32.mrb[74].mxu1  ;;  %v13020_v11 = vpop.f32.mrb[75].mxu0  ;;  %13518 = vmatprep.subr.bf16.mxu1 %v15136_v9  ;;  %13479 = vmatpush3.bf16.msra.mxu0 %v15137_v12  ;;  %v15162_v58 = vld [vmem:[%s19059_s1 + $0xb80] sm:$0xff]   ;;  %v15163_v0 = vld [vmem:[%s19059_s1 + $0xb48] sm:$0xff]  }
 0x18e   : > { %v8941_v6 = vadd.f32 %v13018_v59, %v17135_v25  ;;  %v13021_v18 = vadd.f32 %v13020_v11, %v13019_v4  ;;  %v13060_v27 = vpop.f32.mrb[75].mxu1  ;;  %v15138_v25 = vld [vmem:[%s19059_s1 + $0xaa8] sm:$0xff]   ;;  %13480 = vmatprep.subr.bf16.mxu0 %v15145_v29  ;;  %v15175_v29 = vld [vmem:[%s19059_s1 + $0xb10] sm:$0xff]  }
 0x18f   : > { %v13061_v44 = vadd.f32 %v13060_v27, %v13059_v8  ;;  %v15164_v4 = vld [vmem:[%s19059_s1 + $0xbc8] sm:$0xff]  }
 0x190   : > { %v17271_v19 = vadd.f32 %v13058_v7, %v8941_v6  ;;  %v8944_v22 = vadd.f32 %v13021_v18, %v17145_v47  ;;  %13519 = vmatpush3.bf16.msra.mxu1 %v15138_v25  ;;  %9597 = vmatmul.mubr.bf16.gmra.mrb[156].mxu0 %v15143_v36  ;;  %v15165_v6 = vld [vmem:[%s19059_s1 + $0xb08] sm:$0xff]  }
 0x191   : > { %13520 = vmatprep.subr.bf16.mxu1 %v15146_v53  ;;  %13481 = vmatpush3.bf16.msra.mxu0 %v15147_v38  ;;  %v15167_v18 = vld [vmem:[%s16025_s13 + $0x38c] ss:$372 sps:$4 sm:$0xff]   ;;  %v15169_v25 = vld [vmem:[%s16025_s13 + $0x394] ss:$372 sps:$4 sm:$0xff]  }
 0x192   : > { %v13022_v26 = vpop.f32.mrb[76].mxu0  ;;  %v17284_v10 = vadd.f32 %v13061_v44, %v8944_v22  ;;  %9662 = vmatmul.mubr.bf16.gmra.mrb[156].mxu1 %v15144_v50  ;;  %13482 = vmatprep.subr.bf16.mxu0 %v15149_v40  ;;  %v15171_v44 = vld [vmem:[%s16025_s13 + $0x388] ss:$372 sps:$4 sm:$0xff]   ;;  %v15172_v22 = vld [vmem:[%s16025_s13 + $0x390] ss:$372 sps:$4 sm:$0xff]  }
 0x193   : > { %v13062_v20 = vpop.f32.mrb[76].mxu1  ;;  %v13023_v47 = vpop.f32.mrb[77].mxu0  ;;  %9702 = vmatprep.mubr.bf16.mxu0 %v15155_v17  ;;  %9767 = vmatprep.mubr.bf16.mxu1 %v15158_v5  ;;  %v15187_v17 = vld [vmem:[%s19059_s1 + $0xb60] sm:$0xff]  }
 0x194   : > { %v13024_v49 = vadd.f32 %v13023_v47, %v13022_v26  ;;  %v13063_v33 = vpop.f32.mrb[77].mxu1  ;;  %v13025_v63 = vpop.f32.mrb[78].mxu0  ;;  %13521 = vmatpush3.bf16.msra.mxu1 %v15148_v28  ;;  %v15176_v47 = vld [vmem:[%s19059_s1 + $0xb90] sm:$0xff]   ;;  %v15188_v5 = vld [vmem:[%s19059_s1 + $0xbe0] sm:$0xff]  }
 0x195   : > { %v13064_v39 = vadd.f32 %v13063_v33, %v13062_v20  ;;  %v13065_v31 = vpop.f32.mrb[78].mxu1  ;;  %v13026_v37 = vpop.f32.mrb[79].mxu0  ;;  %13522 = vmatprep.subr.bf16.mxu1 %v15150_v34  ;;  %13483 = vmatpush3.bf16.msra.mxu0 %v15151_v43  ;;  %v15177_v33 = vld [vmem:[%s19059_s1 + $0xb58] sm:$0xff]  }
 0x196   : > { %v8949_v30 = vadd.f32 %v13024_v49, %v17169_v45  ;;  %v13027_v41 = vadd.f32 %v13026_v37, %v13025_v63  ;;  %v13066_v55 = vpop.f32.mrb[79].mxu1  ;;  %v15152_v45 = vld [vmem:[%s19059_s1 + $0xab8] sm:$0xff]   ;;  %13548 = vmatprep.subr.bf16.mxu0 %v15159_v48  ;;  %v15189_v48 = vld [vmem:[%s19059_s1 + $0xb20] sm:$0xff]  }
 0x197   : > { %v13067_v23 = vadd.f32 %v13066_v55, %v13065_v31  ;;  %v15178_v63 = vld [vmem:[%s19059_s1 + $0xbd8] sm:$0xff]  }
 0x198   : > { %v17305_v13 = vadd.f32 %v13064_v39, %v8949_v30  ;;  %v8952_v2 = vadd.f32 %v13027_v41, %v17182_v62  ;;  %13523 = vmatpush3.bf16.msra.mxu1 %v15152_v45  ;;  %9703 = vmatmul.mubr.bf16.vlgmr.msra.gmra.mrb[160].mxu0 %v15153_v54  ;;  %v15179_v30 = vld [vmem:[%s19059_s1 + $0xb18] sm:$0xff]   ;;  %v15181_v41 = vld [vmem:[%s16025_s13 + $0x674] ss:$372 sps:$4 sm:$0xff]   ;;  %v15185_v54 = vld [vmem:[%s16025_s13 + $0x670] ss:$372 sps:$4 sm:$0xff]  }
 0x199   : > { %13588 = vmatprep.subr.bf16.mxu1 %v15160_v51  ;;  %13549 = vmatpush3.bf16.msra.mxu0 %v15161_v52 }
 0x19a   : > { %v13084_v14 = vpop.f32.mrb[80].mxu0  ;;  %v17315_v56 = vadd.f32 %v13067_v23, %v8952_v2  ;;  %13550 = vmatprep.subr.bf16.mxu0 %v15163_v0  ;;  %9710 = vmatprep.mubr.bf16.mxu0 %v15167_v18  ;;  %v15183_v23 = vld [vmem:[%s16025_s13 + $0x67c] ss:$372 sps:$4 sm:$0xff]   ;;  %v15186_v2 = vld [vmem:[%s16025_s13 + $0x678] ss:$372 sps:$4 sm:$0xff]  }
 0x19b   : > { %v13124_v35 = vpop.f32.mrb[80].mxu1  ;;  %v13085_v62 = vpop.f32.mrb[81].mxu0  ;;  %9768 = vmatmul.mubr.bf16.vlgmr.msra.gmra.mrb[160].mxu1 %v15156_v46  ;;  %v15199_v18 = vld [vmem:[%s16025_s13 + $0x958] ss:$372 sps:$4 sm:$0xff]  }
 0x19c   : > { %v13086_v57 = vadd.f32 %v13085_v62, %v13084_v14  ;;  %v13125_v32 = vpop.f32.mrb[81].mxu1  ;;  %v13087_v59 = vpop.f32.mrb[82].mxu0  ;;  %13589 = vmatpush3.bf16.msra.mxu1 %v15162_v58  ;;  %9775 = vmatprep.mubr.bf16.mxu1 %v15169_v25  ;;  %v15190_v62 = vld [vmem:[%s19059_s1 + $0xba0] sm:$0xff]  }
 0x19d   : > { %v13126_v3 = vadd.f32 %v13125_v32, %v13124_v35  ;;  %v13127_v7 = vpop.f32.mrb[82].mxu1  ;;  %v13088_v15 = vpop.f32.mrb[83].mxu0  ;;  %13590 = vmatprep.subr.bf16.mxu1 %v15164_v4  ;;  %13551 = vmatpush3.bf16.msra.mxu0 %v15165_v6  ;;  %v15191_v32 = vld [vmem:[%s19059_s1 + $0xb68] sm:$0xff]  }
 0x19e   : > { %v9055_v1 = vadd.f32 %v13086_v57, %v17197_v16  ;;  %v13089_v9 = vadd.f32 %v13088_v15, %v13087_v59  ;;  %v13128_v11 = vpop.f32.mrb[83].mxu1  ;;  %v15166_v16 = vld [vmem:[%s19059_s1 + $0xb88] sm:$0xff]   ;;  %13552 = vmatprep.subr.bf16.mxu0 %v15173_v24  ;;  %v15203_v24 = vld [vmem:[%s19059_s1 + $0xb30] sm:$0xff]  }
 0x19f   : > { %v13129_v12 = vadd.f32 %v13128_v11, %v13127_v7  ;;  %v15192_v59 = vld [vmem:[%s19059_s1 + $0xbe8] sm:$0xff]  }
 0x1a0   : > { %v17339_v8 = vadd.f32 %v13126_v3, %v9055_v1  ;;  %v9058_v27 = vadd.f32 %v13089_v9, %v17211_v60  ;;  %13591 = vmatpush3.bf16.msra.mxu1 %v15166_v16  ;;  %9711 = vmatmul.mubr.bf16.gmra.mrb[164].mxu0 %v15171_v44  ;;  %v15174_v60 = vld [vmem:[%s19059_s1 + $0xbd0] sm:$0xff]   ;;  %v15193_v1 = vld [vmem:[%s19059_s1 + $0xb28] sm:$0xff]   ;;  %v15197_v16 = vld [vmem:[%s16025_s13 + $0x964] ss:$372 sps:$4 sm:$0xff]  }
 0x1a1   : > { %13592 = vmatprep.subr.bf16.mxu1 %v15174_v60  ;;  %13553 = vmatpush3.bf16.msra.mxu0 %v15175_v29  ;;  %v15195_v9 = vld [vmem:[%s16025_s13 + $0x95c] ss:$372 sps:$4 sm:$0xff]  }
 0x1a2   : > { %v13090_v21 = vpop.f32.mrb[84].mxu0  ;;  %v17349_v26 = vadd.f32 %v13129_v12, %v9058_v27  ;;  %13554 = vmatprep.subr.bf16.mxu0 %v15177_v33  ;;  %9718 = vmatprep.mubr.bf16.mxu0 %v15181_v41  ;;  %v15200_v27 = vld [vmem:[%s16025_s13 + $0x960] ss:$372 sps:$4 sm:$0xff]  }
 0x1a3   : > { %v13130_v36 = vpop.f32.mrb[84].mxu1  ;;  %9776 = vmatmul.mubr.bf16.gmra.mrb[164].mxu1 %v15172_v22  ;;  %v13091_v50 = vpop.f32.mrb[85].mxu0  ;;  %v15201_v44 = vld [vmem:[%s19059_s1 + $0xb70] sm:$0xff]  }
 0x1a4   : > { %v13092_v20 = vadd.f32 %v13091_v50, %v13090_v21  ;;  %v13131_v53 = vpop.f32.mrb[85].mxu1  ;;  %v13093_v49 = vpop.f32.mrb[86].mxu0  ;;  %13593 = vmatpush3.bf16.msra.mxu1 %v15176_v47  ;;  %9783 = vmatprep.mubr.bf16.mxu1 %v15183_v23  ;;  %v15204_v50 = vld [vmem:[%s19059_s1 + $0xbb0] sm:$0xff]   ;;  %v15215_v23 = vld [vmem:[%s19059_s1 + $0xc40] sm:$0xff]  }
 0x1a5   : > { %v13132_v38 = vadd.f32 %v13131_v53, %v13130_v36  ;;  %v13133_v39 = vpop.f32.mrb[86].mxu1  ;;  %v13094_v40 = vpop.f32.mrb[87].mxu0  ;;  %13594 = vmatprep.subr.bf16.mxu1 %v15178_v63  ;;  %13555 = vmatpush3.bf16.msra.mxu0 %v15179_v30  ;;  %v15205_v53 = vld [vmem:[%s19059_s1 + $0xb78] sm:$0xff]  }
 0x1a6   : > { %v9063_v28 = vadd.f32 %v13092_v20, %v17237_v42  ;;  %v13095_v34 = vadd.f32 %v13094_v40, %v13093_v49  ;;  %v13134_v37 = vpop.f32.mrb[87].mxu1  ;;  %v15180_v42 = vld [vmem:[%s19059_s1 + $0xb98] sm:$0xff]   ;;  %13556 = vmatprep.subr.bf16.mxu0 %v15187_v17 }
 0x1a7   : > { %v13135_v43 = vadd.f32 %v13134_v37, %v13133_v39  ;;  %v15206_v49 = vld [vmem:[%s19059_s1 + $0xbf8] sm:$0xff]   ;;  %v15211_v37 = vld [vmem:[%s16025_s13 + $0xb4] ss:$372 sps:$4 sm:$0xff]  }
 0x1a8   : > { %v17373_v31 = vadd.f32 %v13132_v38, %v9063_v28  ;;  %v9066_v55 = vadd.f32 %v13095_v34, %v17247_v61  ;;  %13595 = vmatpush3.bf16.msra.mxu1 %v15180_v42  ;;  %9719 = vmatmul.mubr.bf16.gmra.mrb[168].mxu0 %v15185_v54  ;;  %v15207_v28 = vld [vmem:[%s19059_s1 + $0xb38] sm:$0xff]   ;;  %v15209_v34 = vld [vmem:[%s16025_s13 + $0xb0] ss:$372 sps:$4 sm:$0xff]  }
 0x1a9   : > { %13596 = vmatprep.subr.bf16.mxu1 %v15188_v5  ;;  %13557 = vmatpush3.bf16.msra.mxu0 %v15189_v48 }
 0x1aa   : > { %v13096_v45 = vpop.f32.mrb[88].mxu0  ;;  %v17386_v14 = vadd.f32 %v13135_v43, %v9066_v55  ;;  %13558 = vmatprep.subr.bf16.mxu0 %v15191_v32  ;;  %9726 = vmatprep.mubr.bf16.mxu0 %v15195_v9  ;;  %v15212_v43 = vld [vmem:[%s16025_s13 + $0xb8] ss:$372 sps:$4 sm:$0xff]   ;;  %v15214_v55 = vld [vmem:[%s16025_s13 + $0xbc] ss:$372 sps:$4 sm:$0xff]  }
 0x1ab   : > { %v13136_v46 = vpop.f32.mrb[88].mxu1  ;;  %v13097_v61 = vpop.f32.mrb[89].mxu0  ;;  %9784 = vmatmul.mubr.bf16.gmra.mrb[168].mxu1 %v15186_v2  ;;  %v15216_v2 = vld [vmem:[%s19059_s1 + $0xcc0] sm:$0xff]   ;;  %v15227_v9 = vld [vmem:[%s16025_s13 + $0x398] ss:$372 sps:$4 sm:$0xff]  }
 0x1ac   : > { %v13098_v35 = vadd.f32 %v13097_v61, %v13096_v45  ;;  %v13137_v51 = vpop.f32.mrb[89].mxu1  ;;  %v13099_v57 = vpop.f32.mrb[90].mxu0  ;;  %13597 = vmatpush3.bf16.msra.mxu1 %v15190_v62  ;;  %9791 = vmatprep.mubr.bf16.mxu1 %v15197_v16  ;;  %v15218_v61 = vld [vmem:[%s19059_s1 + $0xc80] sm:$0xff]   ;;  %v15229_v16 = vld [vmem:[%s19059_s1 + $0xc50] sm:$0xff]  }
 0x1ad   : > { %v13138_v52 = vadd.f32 %v13137_v51, %v13136_v46  ;;  %v13139_v3 = vpop.f32.mrb[90].mxu1  ;;  %v13100_v0 = vpop.f32.mrb[91].mxu0  ;;  %13598 = vmatprep.subr.bf16.mxu1 %v15192_v59  ;;  %13559 = vmatpush3.bf16.msra.mxu0 %v15193_v1  ;;  %v15219_v51 = vld [vmem:[%s19059_s1 + $0xc48] sm:$0xff]  }
 0x1ae   : > { %v9071_v58 = vadd.f32 %v13098_v35, %v17271_v19  ;;  %v13101_v4 = vadd.f32 %v13100_v0, %v13099_v57  ;;  %v13140_v15 = vpop.f32.mrb[91].mxu1  ;;  %v15194_v19 = vld [vmem:[%s19059_s1 + $0xba8] sm:$0xff]   ;;  %13560 = vmatprep.subr.bf16.mxu0 %v15201_v44  ;;  %v15231_v44 = vld [vmem:[%s19059_s1 + $0xc10] sm:$0xff]  }
 0x1af   : > { %v13141_v6 = vadd.f32 %v13140_v15, %v13139_v3  ;;  %v15220_v57 = vld [vmem:[%s19059_s1 + $0xcc8] sm:$0xff]  }
 0x1b0   : > { %v17407_v7 = vadd.f32 %v13138_v52, %v9071_v58  ;;  %v9074_v11 = vadd.f32 %v13101_v4, %v17284_v10  ;;  %13599 = vmatpush3.bf16.msra.mxu1 %v15194_v19  ;;  %9727 = vmatmul.mubr.bf16.gmra.mrb[172].mxu0 %v15199_v18  ;;  %v15202_v10 = vld [vmem:[%s19059_s1 + $0xbf0] sm:$0xff]   ;;  %v15221_v58 = vld [vmem:[%s19059_s1 + $0xc08] sm:$0xff]  }
 0x1b1   : > { %13600 = vmatprep.subr.bf16.mxu1 %v15202_v10  ;;  %13561 = vmatpush3.bf16.msra.mxu0 %v15203_v24  ;;  %v15223_v4 = vld [vmem:[%s16025_s13 + $0x39c] ss:$372 sps:$4 sm:$0xff]  }
 0x1b2   : > { %v17417_v25 = vadd.f32 %v13141_v6, %v9074_v11  ;;  %13562 = vmatprep.subr.bf16.mxu0 %v15205_v53  ;;  %9832 = vmatprep.mubr.bf16.mxu0 %v15211_v37  ;;  %v15225_v6 = vld [vmem:[%s16025_s13 + $0x3a4] ss:$372 sps:$4 sm:$0xff]   ;;  %v15228_v11 = vld [vmem:[%s16025_s13 + $0x3a0] ss:$372 sps:$4 sm:$0xff]   ;;  %v15242_v37 = vld [vmem:[%s16025_s13 + $0x688] ss:$372 sps:$4 sm:$0xff]  }
 0x1b3   : > { %v13142_v21 = vpop.f32.mrb[92].mxu1  ;;  %9792 = vmatmul.mubr.bf16.gmra.mrb[172].mxu1 %v15200_v27  ;;  %v15230_v27 = vld [vmem:[%s19059_s1 + $0xcd0] sm:$0xff]  }
 0x1b4   : > { %v13143_v60 = vpop.f32.mrb[93].mxu1  ;;  %13601 = vmatpush3.bf16.msra.mxu1 %v15204_v50  ;;  %9897 = vmatprep.mubr.bf16.mxu1 %v15214_v55 }
 0x1b5   : > { %v13144_v29 = vadd.f32 %v13143_v60, %v13142_v21  ;;  %v13145_v38 = vpop.f32.mrb[94].mxu1  ;;  %13602 = vmatprep.subr.bf16.mxu1 %v15206_v49  ;;  %13563 = vmatpush3.bf16.msra.mxu0 %v15207_v28  ;;  %v15233_v60 = vld [vmem:[%s19059_s1 + $0xc58] sm:$0xff]  }
 0x1b6   : > { %v13146_v40 = vpop.f32.mrb[95].mxu1  ;;  %13628 = vmatprep.subr.bf16.mxu0 %v15215_v23  ;;  %v15245_v23 = vld [vmem:[%s19059_s1 + $0xc20] sm:$0xff]  }
 0x1b7   : > { %v13147_v30 = vadd.f32 %v13146_v40, %v13145_v38 }
 0x1b8   : > { %9833 = vmatmul.mubr.bf16.vlgmr.msra.gmra.mrb[176].mxu0 %v15209_v34  ;;  %v15241_v34 = vld [vmem:[%s16025_s13 + $0x680] ss:$372 sps:$4 sm:$0xff]  }
 0x1b9   : > { %9840 = vmatprep.mubr.bf16.mxu0 %v15223_v4 }
 0x1c0   : > { %9841 = vmatmul.mubr.bf16.gmra.mrb[180].mxu0 %v15227_v9 }
 0x1d2   : > { %v13102_v12 = vpop.f32.mrb[92].mxu0 }
 0x1d3   : > { %v13103_v22 = vpop.f32.mrb[93].mxu0 }
 0x1d4   : > { %v13104_v36 = vadd.f32 %v13103_v22, %v13102_v12  ;;  %v13105_v20 = vpop.f32.mrb[94].mxu0  ;;  %v15232_v22 = vld [vmem:[%s19059_s1 + $0xc90] sm:$0xff]  }
 0x1d5   : > { %v13106_v33 = vpop.f32.mrb[95].mxu0 }
 0x1d6   : > { %v9079_v47 = vadd.f32 %v13104_v36, %v17305_v13  ;;  %v13107_v63 = vadd.f32 %v13106_v33, %v13105_v20  ;;  %v15208_v13 = vld [vmem:[%s19059_s1 + $0xbb8] sm:$0xff]  }
 0x1d7   : > { %13603 = vmatpush3.bf16.msra.mxu1 %v15208_v13  ;;  %v15234_v20 = vld [vmem:[%s19059_s1 + $0xcd8] sm:$0xff]   ;;  %v15239_v13 = vld [vmem:[%s16025_s13 + $0x68c] ss:$372 sps:$4 sm:$0xff]  }
 0x1d8   : > { %v17441_v39 = vadd.f32 %v13144_v29, %v9079_v47  ;;  %v9082_v42 = vadd.f32 %v13107_v63, %v17315_v56  ;;  %v15217_v56 = vld [vmem:[%s19059_s1 + $0xc00] sm:$0xff]   ;;  %13668 = vmatprep.subr.bf16.mxu1 %v15216_v2  ;;  %v15235_v47 = vld [vmem:[%s19059_s1 + $0xc18] sm:$0xff]  }
 0x1d9   : > { %13629 = vmatpush3.bf16.msra.mxu0 %v15217_v56  ;;  %v15237_v63 = vld [vmem:[%s16025_s13 + $0x684] ss:$372 sps:$4 sm:$0xff]  }
 0x1da   : > { %v17451_v45 = vadd.f32 %v13147_v30, %v9082_v42  ;;  %9898 = vmatmul.mubr.bf16.vlgmr.msra.gmra.mrb[176].mxu1 %v15212_v43  ;;  %13630 = vmatprep.subr.bf16.mxu0 %v15219_v51  ;;  %v15243_v43 = vld [vmem:[%s19059_s1 + $0xc60] sm:$0xff]  }
 0x1db   : > { %13669 = vmatpush3.bf16.msra.mxu1 %v15218_v61  ;;  %9905 = vmatprep.mubr.bf16.mxu1 %v15225_v6  ;;  %v15257_v6 = vld [vmem:[%s19059_s1 + $0xc70] sm:$0xff]  }
 0x1dc   : > { %v13164_v41 = vpop.f32.mrb[96].mxu0  ;;  %v13204_v54 = vpop.f32.mrb[96].mxu1  ;;  %13670 = vmatprep.subr.bf16.mxu1 %v15220_v57  ;;  %9848 = vmatprep.mubr.bf16.mxu0 %v15237_v63  ;;  %v15270_v63 = vld [vmem:[%s16025_s13 + $0xcc] ss:$372 sps:$4 sm:$0xff]  }
 0x1dd   : > { %v13165_v17 = vpop.f32.mrb[97].mxu0  ;;  %v13205_v5 = vpop.f32.mrb[97].mxu1  ;;  %13631 = vmatpush3.bf16.msra.mxu0 %v15221_v58 }
 0x1de   : > { %v13166_v46 = vadd.f32 %v13165_v17, %v13164_v41  ;;  %v13206_v48 = vadd.f32 %v13205_v5, %v13204_v54  ;;  %v13167_v35 = vpop.f32.mrb[98].mxu0  ;;  %v13207_v52 = vpop.f32.mrb[98].mxu1  ;;  %13632 = vmatprep.subr.bf16.mxu0 %v15229_v16  ;;  %9849 = vmatmul.mubr.bf16.gmra.mrb[184].mxu0 %v15241_v34  ;;  %v15246_v17 = vld [vmem:[%s19059_s1 + $0xca0] sm:$0xff]   ;;  %v15247_v5 = vld [vmem:[%s19059_s1 + $0xc68] sm:$0xff]   ;;  %v15259_v16 = vld [vmem:[%s19059_s1 + $0xc30] sm:$0xff]  }
 0x1df   : > { %v13168_v32 = vpop.f32.mrb[99].mxu0  ;;  %v13208_v0 = vpop.f32.mrb[99].mxu1 }
 0x1e0   : > { %v9185_v62 = vadd.f32 %v13166_v46, %v17339_v8  ;;  %v13169_v59 = vadd.f32 %v13168_v32, %v13167_v35  ;;  %v15222_v8 = vld [vmem:[%s19059_s1 + $0xc88] sm:$0xff]   ;;  %v13209_v1 = vadd.f32 %v13208_v0, %v13207_v52 }
 0x1e1   : > { %13671 = vmatpush3.bf16.msra.mxu1 %v15222_v8  ;;  %13633 = vmatpush3.bf16.msra.mxu0 %v15231_v44  ;;  %v15248_v35 = vld [vmem:[%s19059_s1 + $0xce8] sm:$0xff]  }
 0x1e2   : > { %v17475_v3 = vadd.f32 %v13206_v48, %v9185_v62  ;;  %v9188_v15 = vadd.f32 %v13169_v59, %v17349_v26  ;;  %9906 = vmatmul.mubr.bf16.gmra.mrb[180].mxu1 %v15228_v11  ;;  %13672 = vmatprep.subr.bf16.mxu1 %v15230_v27  ;;  %v15249_v62 = vld [vmem:[%s19059_s1 + $0xc28] sm:$0xff]  }
 0x1e3   : > { %13634 = vmatprep.subr.bf16.mxu0 %v15233_v60  ;;  %9913 = vmatprep.mubr.bf16.mxu1 %v15239_v13  ;;  %v15251_v59 = vld [vmem:[%s16025_s13 + $0x96c] ss:$372 sps:$4 sm:$0xff]   ;;  %v15253_v8 = vld [vmem:[%s16025_s13 + $0x974] ss:$372 sps:$4 sm:$0xff]  }
 0x1e4   : > { %v13170_v19 = vpop.f32.mrb[100].mxu0  ;;  %v17488_v12 = vadd.f32 %v13209_v1, %v9188_v15  ;;  %v13210_v18 = vpop.f32.mrb[100].mxu1  ;;  %v15255_v1 = vld [vmem:[%s16025_s13 + $0x968] ss:$372 sps:$4 sm:$0xff]   ;;  %9856 = vmatprep.mubr.bf16.mxu0 %v15251_v59  ;;  %v15256_v15 = vld [vmem:[%s16025_s13 + $0x970] ss:$372 sps:$4 sm:$0xff]  }
 0x1e5   : > { %v13171_v26 = vpop.f32.mrb[101].mxu0  ;;  %v13211_v10 = vpop.f32.mrb[101].mxu1  ;;  %13673 = vmatpush3.bf16.msra.mxu1 %v15232_v22  ;;  %13635 = vmatpush3.bf16.msra.mxu0 %v15235_v47  ;;  %v15271_v13 = vld [vmem:[%s19059_s1 + $0xd40] sm:$0xff]   ;;  %v15283_v59 = vld [vmem:[%s16025_s13 + $0x3a8] ss:$372 sps:$4 sm:$0xff]  }
 0x1e6   : > { %v13172_v21 = vadd.f32 %v13171_v26, %v13170_v19  ;;  %v13212_v24 = vadd.f32 %v13211_v10, %v13210_v18  ;;  %v13173_v36 = vpop.f32.mrb[102].mxu0  ;;  %v13213_v29 = vpop.f32.mrb[102].mxu1  ;;  %13674 = vmatprep.subr.bf16.mxu1 %v15234_v20  ;;  %13636 = vmatprep.subr.bf16.mxu0 %v15243_v43  ;;  %v15260_v26 = vld [vmem:[%s19059_s1 + $0xcb0] sm:$0xff]   ;;  %v15261_v10 = vld [vmem:[%s19059_s1 + $0xc78] sm:$0xff]  }
 0x1e7   : > { %v13174_v53 = vpop.f32.mrb[103].mxu0  ;;  %v13214_v33 = vpop.f32.mrb[103].mxu1  ;;  %9857 = vmatmul.mubr.bf16.gmra.mrb[188].mxu0 %v15255_v1  ;;  %v15285_v1 = vld [vmem:[%s19059_s1 + $0xd50] sm:$0xff]  }
 0x1e8   : > { %v9193_v50 = vadd.f32 %v13172_v21, %v17373_v31  ;;  %v13175_v49 = vadd.f32 %v13174_v53, %v13173_v36  ;;  %v15236_v31 = vld [vmem:[%s19059_s1 + $0xc98] sm:$0xff]   ;;  %v13215_v28 = vadd.f32 %v13214_v33, %v13213_v29 }
 0x1e9   : > { %13675 = vmatpush3.bf16.msra.mxu1 %v15236_v31  ;;  %13637 = vmatpush3.bf16.msra.mxu0 %v15245_v23  ;;  %v15262_v36 = vld [vmem:[%s19059_s1 + $0xcf8] sm:$0xff]  }
 0x1ea   : > { %v17509_v38 = vadd.f32 %v13212_v24, %v9193_v50  ;;  %v9196_v40 = vadd.f32 %v13175_v49, %v17386_v14  ;;  %9914 = vmatmul.mubr.bf16.gmra.mrb[184].mxu1 %v15242_v37  ;;  %v15244_v14 = vld [vmem:[%s19059_s1 + $0xce0] sm:$0xff]   ;;  %13638 = vmatprep.subr.bf16.mxu0 %v15247_v5  ;;  %v15263_v50 = vld [vmem:[%s19059_s1 + $0xc38] sm:$0xff]  }
 0x1eb   : > { %13676 = vmatprep.subr.bf16.mxu1 %v15244_v14  ;;  %9921 = vmatprep.mubr.bf16.mxu1 %v15253_v8  ;;  %v15265_v49 = vld [vmem:[%s16025_s13 + $0xc0] ss:$372 sps:$4 sm:$0xff]   ;;  %v15267_v33 = vld [vmem:[%s16025_s13 + $0xc4] ss:$372 sps:$4 sm:$0xff]  }
 0x1ec   : > { %v17519_v42 = vadd.f32 %v13215_v28, %v9196_v40  ;;  %v13216_v41 = vpop.f32.mrb[104].mxu1  ;;  %v15268_v28 = vld [vmem:[%s16025_s13 + $0xc8] ss:$372 sps:$4 sm:$0xff]   ;;  %9962 = vmatprep.mubr.bf16.mxu0 %v15267_v33  ;;  %v15272_v37 = vld [vmem:[%s19059_s1 + $0xdc0] sm:$0xff]   ;;  %v15298_v33 = vld [vmem:[%s16025_s13 + $0x698] ss:$372 sps:$4 sm:$0xff]  }
 0x1ed   : > { %v13217_v2 = vpop.f32.mrb[105].mxu1  ;;  %13677 = vmatpush3.bf16.msra.mxu1 %v15246_v17  ;;  %13639 = vmatpush3.bf16.msra.mxu0 %v15249_v62 }
 0x1ee   : > { %v13218_v56 = vadd.f32 %v13217_v2, %v13216_v41  ;;  %v13219_v48 = vpop.f32.mrb[106].mxu1  ;;  %13678 = vmatprep.subr.bf16.mxu1 %v15248_v35  ;;  %13640 = vmatprep.subr.bf16.mxu0 %v15257_v6  ;;  %v15275_v2 = vld [vmem:[%s19059_s1 + $0xd48] sm:$0xff]   ;;  %v15287_v6 = vld [vmem:[%s19059_s1 + $0xd10] sm:$0xff]  }
 0x1ef   : > { %v13220_v32 = vpop.f32.mrb[107].mxu1 }
 0x1f0   : > { %v13176_v30 = vpop.f32.mrb[104].mxu0  ;;  %v13221_v58 = vadd.f32 %v13220_v32, %v13219_v48 }
 0x1f1   : > { %v13177_v55 = vpop.f32.mrb[105].mxu0  ;;  %13641 = vmatpush3.bf16.msra.mxu0 %v15259_v16 }
 0x1f2   : > { %v13178_v54 = vadd.f32 %v13177_v55, %v13176_v30  ;;  %v13179_v46 = vpop.f32.mrb[106].mxu0  ;;  %9922 = vmatmul.mubr.bf16.gmra.mrb[188].mxu1 %v15256_v15  ;;  %13642 = vmatprep.subr.bf16.mxu0 %v15261_v10  ;;  %v15274_v55 = vld [vmem:[%s19059_s1 + $0xd80] sm:$0xff]  }
 0x1f3   : > { %v13180_v51 = vpop.f32.mrb[107].mxu0  ;;  %10027 = vmatprep.mubr.bf16.mxu1 %v15270_v63 }
 0x1f4   : > { %v9201_v61 = vadd.f32 %v13178_v54, %v17407_v7  ;;  %v13181_v57 = vadd.f32 %v13180_v51, %v13179_v46  ;;  %v15250_v7 = vld [vmem:[%s19059_s1 + $0xca8] sm:$0xff]  }
 0x1f5   : > { %13679 = vmatpush3.bf16.msra.mxu1 %v15250_v7  ;;  %13643 = vmatpush3.bf16.msra.mxu0 %v15263_v50  ;;  %v15276_v46 = vld [vmem:[%s19059_s1 + $0xdc8] sm:$0xff]  }
 0x1f6   : > { %v17543_v52 = vadd.f32 %v13218_v56, %v9201_v61  ;;  %v9204_v0 = vadd.f32 %v13181_v57, %v17417_v25  ;;  %v15258_v25 = vld [vmem:[%s19059_s1 + $0xcf0] sm:$0xff]   ;;  %13708 = vmatprep.subr.bf16.mxu0 %v15271_v13  ;;  %v15277_v61 = vld [vmem:[%s19059_s1 + $0xd08] sm:$0xff]   ;;  %v15301_v13 = vld [vmem:[%s19059_s1 + $0xd20] sm:$0xff]  }
 0x1f7   : > { %13680 = vmatprep.subr.bf16.mxu1 %v15258_v25  ;;  %v15279_v57 = vld [vmem:[%s16025_s13 + $0x3ac] ss:$372 sps:$4 sm:$0xff]   ;;  %v15281_v7 = vld [vmem:[%s16025_s13 + $0x3b4] ss:$372 sps:$4 sm:$0xff]  }
 0x1f8   : > { %v13182_v4 = vpop.f32.mrb[108].mxu0  ;;  %v17553_v19 = vadd.f32 %v13221_v58, %v9204_v0  ;;  %9963 = vmatmul.mubr.bf16.vlgmr.msra.gmra.mrb[192].mxu0 %v15265_v49  ;;  %v15284_v0 = vld [vmem:[%s16025_s13 + $0x3b0] ss:$372 sps:$4 sm:$0xff]  }
 0x1f9   : > { %v13183_v11 = vpop.f32.mrb[109].mxu0  ;;  %13681 = vmatpush3.bf16.msra.mxu1 %v15260_v26  ;;  %9970 = vmatprep.mubr.bf16.mxu0 %v15279_v57  ;;  %v15312_v57 = vld [vmem:[%s16025_s13 + $0x980] ss:$372 sps:$4 sm:$0xff]  }
 0x1fa   : > { %v13184_v18 = vadd.f32 %v13183_v11, %v13182_v4  ;;  %v13185_v21 = vpop.f32.mrb[110].mxu0  ;;  %13682 = vmatprep.subr.bf16.mxu1 %v15262_v36  ;;  %v15288_v11 = vld [vmem:[%s19059_s1 + $0xd90] sm:$0xff]  }
 0x1fb   : > { %v13222_v9 = vpop.f32.mrb[108].mxu1  ;;  %v13186_v60 = vpop.f32.mrb[111].mxu0 }
 0x1fc   : > { %v13223_v27 = vpop.f32.mrb[109].mxu1  ;;  %v9209_v22 = vadd.f32 %v13184_v18, %v17441_v39  ;;  %v13187_v20 = vadd.f32 %v13186_v60, %v13185_v21  ;;  %v15264_v39 = vld [vmem:[%s19059_s1 + $0xcb8] sm:$0xff]  }
 0x1fd   : > { %v13224_v44 = vadd.f32 %v13223_v27, %v13222_v9  ;;  %v13225_v24 = vpop.f32.mrb[110].mxu1  ;;  %13683 = vmatpush3.bf16.msra.mxu1 %v15264_v39  ;;  %v15289_v27 = vld [vmem:[%s19059_s1 + $0xd58] sm:$0xff]  }
 0x1fe   : > { %v13226_v53 = vpop.f32.mrb[111].mxu1  ;;  %v9212_v31 = vadd.f32 %v13187_v20, %v17451_v45  ;;  %v15273_v45 = vld [vmem:[%s19059_s1 + $0xd00] sm:$0xff]   ;;  %13748 = vmatprep.subr.bf16.mxu1 %v15272_v37  ;;  %v15290_v21 = vld [vmem:[%s19059_s1 + $0xdd8] sm:$0xff]   ;;  %v15293_v20 = vld [vmem:[%s16025_s13 + $0x694] ss:$372 sps:$4 sm:$0xff]  }
 0x1ff   : > { %v17577_v29 = vadd.f32 %v13224_v44, %v9209_v22  ;;  %v13227_v47 = vadd.f32 %v13226_v53, %v13225_v24  ;;  %13709 = vmatpush3.bf16.msra.mxu0 %v15273_v45  ;;  %v15291_v22 = vld [vmem:[%s19059_s1 + $0xd18] sm:$0xff]  }
 0x200   : > { %10028 = vmatmul.mubr.bf16.vlgmr.msra.gmra.mrb[192].mxu1 %v15268_v28  ;;  %13710 = vmatprep.subr.bf16.mxu0 %v15275_v2  ;;  %v15295_v39 = vld [vmem:[%s16025_s13 + $0x69c] ss:$372 sps:$4 sm:$0xff]   ;;  %v15299_v28 = vld [vmem:[%s19059_s1 + $0xd60] sm:$0xff]  }
 0x201   : > { %v17590_v30 = vadd.f32 %v13227_v47, %v9212_v31  ;;  %13749 = vmatpush3.bf16.msra.mxu1 %v15274_v55  ;;  %10035 = vmatprep.mubr.bf16.mxu1 %v15281_v7  ;;  %v15297_v47 = vld [vmem:[%s16025_s13 + $0x690] ss:$372 sps:$4 sm:$0xff]  }
 0x202   : > { %13750 = vmatprep.subr.bf16.mxu1 %v15276_v46  ;;  %9971 = vmatmul.mubr.bf16.gmra.mrb[196].mxu0 %v15283_v59  ;;  %v15314_v59 = vld [vmem:[%s19059_s1 + $0xdf0] sm:$0xff]  }
 0x203   : > { %v13244_v40 = vpop.f32.mrb[112].mxu0  ;;  %13711 = vmatpush3.bf16.msra.mxu0 %v15277_v61  ;;  %9978 = vmatprep.mubr.bf16.mxu0 %v15293_v20  ;;  %v15324_v20 = vld [vmem:[%s16025_s13 + $0xd8] ss:$372 sps:$4 sm:$0xff]  }
 0x204   : > { %v13245_v43 = vpop.f32.mrb[113].mxu0  ;;  %13712 = vmatprep.subr.bf16.mxu0 %v15285_v1 }
 0x205   : > { %v13284_v34 = vpop.f32.mrb[112].mxu1  ;;  %v13246_v41 = vadd.f32 %v13245_v43, %v13244_v40  ;;  %v13247_v54 = vpop.f32.mrb[114].mxu0  ;;  %v15302_v43 = vld [vmem:[%s19059_s1 + $0xda0] sm:$0xff]  }
 0x206   : > { %v13285_v14 = vpop.f32.mrb[113].mxu1  ;;  %v13248_v5 = vpop.f32.mrb[115].mxu0 }
 0x207   : > { %v13286_v23 = vadd.f32 %v13285_v14, %v13284_v34  ;;  %v9315_v17 = vadd.f32 %v13246_v41, %v17475_v3  ;;  %v13287_v56 = vpop.f32.mrb[114].mxu1  ;;  %v13249_v48 = vadd.f32 %v13248_v5, %v13247_v54  ;;  %v15278_v3 = vld [vmem:[%s19059_s1 + $0xd88] sm:$0xff]   ;;  %13713 = vmatpush3.bf16.msra.mxu0 %v15287_v6  ;;  %v15317_v6 = vld [vmem:[%s19059_s1 + $0xd78] sm:$0xff]  }
 0x208   : > { %v13288_v35 = vpop.f32.mrb[115].mxu1  ;;  %13751 = vmatpush3.bf16.msra.mxu1 %v15278_v3  ;;  %13714 = vmatprep.subr.bf16.mxu0 %v15289_v27  ;;  %v15303_v14 = vld [vmem:[%s19059_s1 + $0xd68] sm:$0xff]   ;;  %v15309_v3 = vld [vmem:[%s16025_s13 + $0x984] ss:$372 sps:$4 sm:$0xff]  }
 0x209   : > { %v17611_v51 = vadd.f32 %v13286_v23, %v9315_v17  ;;  %v13289_v62 = vadd.f32 %v13288_v35, %v13287_v56  ;;  %v9318_v32 = vadd.f32 %v13249_v48, %v17488_v12  ;;  %10036 = vmatmul.mubr.bf16.gmra.mrb[196].mxu1 %v15284_v0  ;;  %v15286_v12 = vld [vmem:[%s19059_s1 + $0xdd0] sm:$0xff]   ;;  %v15304_v54 = vld [vmem:[%s19059_s1 + $0xde8] sm:$0xff]   ;;  %v15319_v27 = vld [vmem:[%s19059_s1 + $0xd38] sm:$0xff]  }
 0x20a   : > { %13752 = vmatprep.subr.bf16.mxu1 %v15286_v12  ;;  %10043 = vmatprep.mubr.bf16.mxu1 %v15295_v39  ;;  %v15305_v17 = vld [vmem:[%s19059_s1 + $0xd28] sm:$0xff]   ;;  %v15307_v48 = vld [vmem:[%s16025_s13 + $0x97c] ss:$372 sps:$4 sm:$0xff]   ;;  %v15327_v39 = vld [vmem:[%s19059_s1 + $0xe40] sm:$0xff]  }
 0x20b   : > { %v13250_v58 = vpop.f32.mrb[116].mxu0  ;;  %v17621_v8 = vadd.f32 %v13289_v62, %v9318_v32  ;;  %13715 = vmatpush3.bf16.msra.mxu0 %v15291_v22  ;;  %v15311_v62 = vld [vmem:[%s16025_s13 + $0x978] ss:$372 sps:$4 sm:$0xff]   ;;  %v15313_v32 = vld [vmem:[%s19059_s1 + $0xd70] sm:$0xff]  }
 0x20c   : > { %v13251_v15 = vpop.f32.mrb[117].mxu0  ;;  %13753 = vmatpush3.bf16.msra.mxu1 %v15288_v11  ;;  %9979 = vmatmul.mubr.bf16.gmra.mrb[200].mxu0 %v15297_v47  ;;  %v15318_v11 = vld [vmem:[%s19059_s1 + $0xdf8] sm:$0xff]  }
 0x20d   : > { %v13290_v4 = vpop.f32.mrb[116].mxu1  ;;  %v13252_v9 = vadd.f32 %v13251_v15, %v13250_v58  ;;  %v13253_v18 = vpop.f32.mrb[118].mxu0  ;;  %13754 = vmatprep.subr.bf16.mxu1 %v15290_v21  ;;  %13716 = vmatprep.subr.bf16.mxu0 %v15299_v28 }
 0x20e   : > { %v13291_v25 = vpop.f32.mrb[117].mxu1  ;;  %v13254_v10 = vpop.f32.mrb[119].mxu0  ;;  %9986 = vmatprep.mubr.bf16.mxu0 %v15307_v48 }
 0x20f   : > { %v13292_v16 = vadd.f32 %v13291_v25, %v13290_v4  ;;  %v9323_v26 = vadd.f32 %v13252_v9, %v17509_v38  ;;  %v13293_v44 = vpop.f32.mrb[118].mxu1  ;;  %v13255_v36 = vadd.f32 %v13254_v10, %v13253_v18  ;;  %v15292_v38 = vld [vmem:[%s19059_s1 + $0xd98] sm:$0xff]   ;;  %13717 = vmatpush3.bf16.msra.mxu0 %v15301_v13  ;;  %v15316_v4 = vld [vmem:[%s19059_s1 + $0xdb0] sm:$0xff]  }
 0x210   : > { %v13294_v60 = vpop.f32.mrb[119].mxu1  ;;  %13755 = vmatpush3.bf16.msra.mxu1 %v15292_v38  ;;  %13718 = vmatprep.subr.bf16.mxu0 %v15303_v14 }
 0x211   : > { %v17645_v24 = vadd.f32 %v13292_v16, %v9323_v26  ;;  %v13295_v50 = vadd.f32 %v13294_v60, %v13293_v44  ;;  %v9326_v53 = vadd.f32 %v13255_v36, %v17519_v42  ;;  %10044 = vmatmul.mubr.bf16.gmra.mrb[200].mxu1 %v15298_v33  ;;  %v15300_v42 = vld [vmem:[%s19059_s1 + $0xde0] sm:$0xff]   ;;  %v15320_v44 = vld [vmem:[%s19059_s1 + $0xdb8] sm:$0xff]   ;;  %v15323_v60 = vld [vmem:[%s16025_s13 + $0xd4] ss:$372 sps:$4 sm:$0xff]  }
 0x212   : > { %13756 = vmatprep.subr.bf16.mxu1 %v15300_v42  ;;  %10051 = vmatprep.mubr.bf16.mxu1 %v15309_v3  ;;  %v15328_v33 = vld [vmem:[%s19059_s1 + $0xec0] sm:$0xff]  }
 0x213   : > { %v13256_v49 = vpop.f32.mrb[120].mxu0  ;;  %v17655_v31 = vadd.f32 %v13295_v50, %v9326_v53  ;;  %13719 = vmatpush3.bf16.msra.mxu0 %v15305_v17  ;;  %v15326_v53 = vld [vmem:[%s16025_s13 + $0xdc] ss:$372 sps:$4 sm:$0xff]  }
 0x214   : > { %v13257_v40 = vpop.f32.mrb[121].mxu0  ;;  %13757 = vmatpush3.bf16.msra.mxu1 %v15302_v43  ;;  %9987 = vmatmul.mubr.bf16.gmra.mrb[204].mxu0 %v15311_v62  ;;  %v15341_v62 = vld [vmem:[%s19059_s1 + $0xe50] sm:$0xff]  }
 0x215   : > { %v13296_v63 = vpop.f32.mrb[120].mxu1  ;;  %v13258_v34 = vadd.f32 %v13257_v40, %v13256_v49  ;;  %v13259_v41 = vpop.f32.mrb[122].mxu0  ;;  %13758 = vmatprep.subr.bf16.mxu1 %v15304_v54  ;;  %13720 = vmatprep.subr.bf16.mxu0 %v15313_v32  ;;  %v15330_v40 = vld [vmem:[%s19059_s1 + $0xe80] sm:$0xff]  }
 0x216   : > { %v13297_v37 = vpop.f32.mrb[121].mxu1  ;;  %v13260_v2 = vpop.f32.mrb[123].mxu0  ;;  %10092 = vmatprep.mubr.bf16.mxu0 %v15323_v60  ;;  %v15355_v60 = vld [vmem:[%s19059_s1 + $0xe60] sm:$0xff]  }
 0x217   : > { %v13298_v45 = vadd.f32 %v13297_v37, %v13296_v63  ;;  %v9331_v55 = vadd.f32 %v13258_v34, %v17543_v52  ;;  %v13299_v23 = vpop.f32.mrb[122].mxu1  ;;  %v13261_v46 = vadd.f32 %v13260_v2, %v13259_v41  ;;  %v15306_v52 = vld [vmem:[%s19059_s1 + $0xda8] sm:$0xff]  }
 0x218   : > { %v13300_v5 = vpop.f32.mrb[123].mxu1  ;;  %13759 = vmatpush3.bf16.msra.mxu1 %v15306_v52  ;;  %v15331_v37 = vld [vmem:[%s19059_s1 + $0xe48] sm:$0xff]   ;;  %v15337_v52 = vld [vmem:[%s16025_s13 + $0x3c4] ss:$372 sps:$4 sm:$0xff]  }
 0x219   : > { %v17679_v56 = vadd.f32 %v13298_v45, %v9331_v55  ;;  %v13301_v61 = vadd.f32 %v13300_v5, %v13299_v23  ;;  %v9334_v35 = vadd.f32 %v13261_v46, %v17553_v19  ;;  %10052 = vmatmul.mubr.bf16.gmra.mrb[204].mxu1 %v15312_v57  ;;  %v15315_v19 = vld [vmem:[%s19059_s1 + $0xd30] sm:$0xff]   ;;  %13760 = vmatprep.subr.bf16.mxu1 %v15314_v59  ;;  %v15332_v41 = vld [vmem:[%s19059_s1 + $0xec8] sm:$0xff]  }
 0x21a   : > { %13721 = vmatpush3.bf16.msra.mxu0 %v15315_v19  ;;  %10157 = vmatprep.mubr.bf16.mxu1 %v15326_v53  ;;  %v15333_v55 = vld [vmem:[%s19059_s1 + $0xe08] sm:$0xff]   ;;  %v15335_v46 = vld [vmem:[%s16025_s13 + $0x3bc] ss:$372 sps:$4 sm:$0xff]  }
 0x21b   : > { %v17692_v7 = vadd.f32 %v13301_v61, %v9334_v35  ;;  %v13262_v58 = vpop.f32.mrb[124].mxu0  ;;  %13722 = vmatprep.subr.bf16.mxu0 %v15317_v6  ;;  %v15339_v61 = vld [vmem:[%s16025_s13 + $0x3b8] ss:$372 sps:$4 sm:$0xff]   ;;  %v15340_v35 = vld [vmem:[%s16025_s13 + $0x3c0] ss:$372 sps:$4 sm:$0xff]  }
 0x21c   : > { %v13263_v1 = vpop.f32.mrb[125].mxu0  ;;  %13761 = vmatpush3.bf16.msra.mxu1 %v15316_v4  ;;  %v15344_v19 = vld [vmem:[%s19059_s1 + $0xe90] sm:$0xff]  }
 0x21d   : > { %v13302_v0 = vpop.f32.mrb[124].mxu1  ;;  %v13264_v12 = vadd.f32 %v13263_v1, %v13262_v58  ;;  %v13265_v25 = vpop.f32.mrb[126].mxu0  ;;  %13762 = vmatprep.subr.bf16.mxu1 %v15318_v11  ;;  %v15343_v58 = vld [vmem:[%s19059_s1 + $0xe10] sm:$0xff]   ;;  %v15347_v11 = vld [vmem:[%s19059_s1 + $0xe18] sm:$0xff]  }
 0x21e   : > { %v13303_v15 = vpop.f32.mrb[125].mxu1  ;;  %v13266_v26 = vpop.f32.mrb[127].mxu0  ;;  %13723 = vmatpush3.bf16.msra.mxu0 %v15319_v27 }
 0x21f   : > { %v13304_v9 = vadd.f32 %v13303_v15, %v13302_v0  ;;  %v9339_v16 = vadd.f32 %v13264_v12, %v17577_v29  ;;  %v13305_v18 = vpop.f32.mrb[126].mxu1  ;;  %v13267_v10 = vadd.f32 %v13266_v26, %v13265_v25  ;;  %v15321_v29 = vld [vmem:[%s16025_s13 + $0xd0] ss:$372 sps:$4 sm:$0xff]   ;;  %13788 = vmatprep.subr.bf16.mxu0 %v15327_v39  ;;  %v15345_v12 = vld [vmem:[%s19059_s1 + $0xe58] sm:$0xff]  }
 0x220   : > { %v13306_v22 = vpop.f32.mrb[127].mxu1  ;;  %13763 = vmatpush3.bf16.msra.mxu1 %v15320_v44  ;;  %v15349_v44 = vld [vmem:[%s16025_s13 + $0x6a4] ss:$372 sps:$4 sm:$0xff]  }
 0x221   : > { %v17716_v21 = vadd.f32 %v13304_v9, %v9339_v16  ;;  %v13307_v36 = vadd.f32 %v13306_v22, %v13305_v18  ;;  %v9342_v38 = vadd.f32 %v13267_v10, %v17590_v30  ;;  %10093 = vmatmul.mubr.bf16.vlgmr.msra.gmra.mrb[208].mxu0 %v15321_v29  ;;  %v15329_v30 = vld [vmem:[%s19059_s1 + $0xe00] sm:$0xff]   ;;  %13828 = vmatprep.subr.bf16.mxu1 %v15328_v33  ;;  %v15346_v9 = vld [vmem:[%s19059_s1 + $0xed8] sm:$0xff]  }
 0x222   : > { %13789 = vmatpush3.bf16.msra.mxu0 %v15329_v30  ;;  %10100 = vmatprep.mubr.bf16.mxu0 %v15335_v46  ;;  %v15351_v22 = vld [vmem:[%s16025_s13 + $0x6ac] ss:$372 sps:$4 sm:$0xff]   ;;  %v15367_v46 = vld [vmem:[%s16025_s13 + $0x988] ss:$372 sps:$4 sm:$0xff]  }
 0x223   : > { %v17726_v47 = vadd.f32 %v13307_v36, %v9342_v38  ;;  %10158 = vmatmul.mubr.bf16.vlgmr.msra.gmra.mrb[208].mxu1 %v15324_v20  ;;  %13790 = vmatprep.subr.bf16.mxu0 %v15331_v37  ;;  %v15353_v29 = vld [vmem:[%s16025_s13 + $0x6a0] ss:$372 sps:$4 sm:$0xff]   ;;  %v15354_v36 = vld [vmem:[%s16025_s13 + $0x6a8] ss:$372 sps:$4 sm:$0xff]  }
 0x224   : > { %13829 = vmatpush3.bf16.msra.mxu1 %v15330_v40  ;;  %10165 = vmatprep.mubr.bf16.mxu1 %v15337_v52  ;;  %v15356_v20 = vld [vmem:[%s19059_s1 + $0xee0] sm:$0xff]   ;;  %v15359_v30 = vld [vmem:[%s19059_s1 + $0xe68] sm:$0xff]   ;;  %v15369_v52 = vld [vmem:[%s19059_s1 + $0xe70] sm:$0xff]  }
 0x225   : > { %13830 = vmatprep.subr.bf16.mxu1 %v15332_v41  ;;  %v15360_v40 = vld [vmem:[%s19059_s1 + $0xee8] sm:$0xff]  }
 0x226   : > { %13791 = vmatpush3.bf16.msra.mxu0 %v15333_v55  ;;  %v15361_v37 = vld [vmem:[%s19059_s1 + $0xe28] sm:$0xff]  }
 0x227   : > { %v13324_v50 = vpop.f32.mrb[128].mxu0  ;;  %13792 = vmatprep.subr.bf16.mxu0 %v15341_v62 }
 0x228   : > { %v13325_v28 = vpop.f32.mrb[129].mxu0 }
 0x229   : > { %v13326_v63 = vadd.f32 %v13325_v28, %v13324_v50  ;;  %v13327_v34 = vpop.f32.mrb[130].mxu0  ;;  %10101 = vmatmul.mubr.bf16.gmra.mrb[212].mxu0 %v15339_v61 }
 0x22a   : > { %v13328_v14 = vpop.f32.mrb[131].mxu0  ;;  %13793 = vmatpush3.bf16.msra.mxu0 %v15343_v58  ;;  %10108 = vmatprep.mubr.bf16.mxu0 %v15349_v44 }
 0x22b   : > { %v9445_v43 = vadd.f32 %v13326_v63, %v17611_v51  ;;  %v13329_v54 = vadd.f32 %v13328_v14, %v13327_v34  ;;  %v15334_v51 = vld [vmem:[%s19059_s1 + $0xe88] sm:$0xff]   ;;  %10166 = vmatmul.mubr.bf16.gmra.mrb[212].mxu1 %v15340_v35  ;;  %13794 = vmatprep.subr.bf16.mxu0 %v15345_v12  ;;  %v15370_v35 = vld [vmem:[%s19059_s1 + $0xef0] sm:$0xff]  }
 0x22c   : > { %13831 = vmatpush3.bf16.msra.mxu1 %v15334_v51  ;;  %10173 = vmatprep.mubr.bf16.mxu1 %v15351_v22 }
 0x22d   : > { %v13364_v49 = vpop.f32.mrb[128].mxu1  ;;  %v9448_v5 = vadd.f32 %v13329_v54, %v17621_v8  ;;  %v15342_v8 = vld [vmem:[%s19059_s1 + $0xed0] sm:$0xff]  }
 0x22e   : > { %v13365_v42 = vpop.f32.mrb[129].mxu1  ;;  %13832 = vmatprep.subr.bf16.mxu1 %v15342_v8  ;;  %13795 = vmatpush3.bf16.msra.mxu0 %v15347_v11 }
 0x22f   : > { %v13366_v13 = vadd.f32 %v13365_v42, %v13364_v49  ;;  %v13367_v45 = vpop.f32.mrb[130].mxu1  ;;  %v13330_v48 = vpop.f32.mrb[132].mxu0  ;;  %13796 = vmatprep.subr.bf16.mxu0 %v15355_v60  ;;  %v15358_v49 = vld [vmem:[%s19059_s1 + $0xea0] sm:$0xff]  }
 0x230   : > { %v13368_v2 = vpop.f32.mrb[131].mxu1  ;;  %v13331_v32 = vpop.f32.mrb[133].mxu0  ;;  %13833 = vmatpush3.bf16.msra.mxu1 %v15344_v19  ;;  %v15384_v60 = vld [vmem:[%s19059_s1 + $0xfc0] sm:$0xff]  }
 0x231   : > { %v17747_v23 = vadd.f32 %v13366_v13, %v9445_v43  ;;  %v13369_v17 = vadd.f32 %v13368_v2, %v13367_v45  ;;  %v13332_v59 = vadd.f32 %v13331_v32, %v13330_v48  ;;  %v13333_v4 = vpop.f32.mrb[134].mxu0  ;;  %13834 = vmatprep.subr.bf16.mxu1 %v15346_v9  ;;  %10109 = vmatmul.mubr.bf16.gmra.mrb[216].mxu0 %v15353_v29  ;;  %v15362_v45 = vld [vmem:[%s19059_s1 + $0xea8] sm:$0xff]   ;;  %v15372_v32 = vld [vmem:[%s19059_s1 + $0xeb0] sm:$0xff]   ;;  %v15383_v29 = vld [vmem:[%s19059_s1 + $0xf40] sm:$0xff]  }
 0x232   : > { %v13334_v25 = vpop.f32.mrb[135].mxu0  ;;  %v15365_v2 = vld [vmem:[%s16025_s13 + $0x994] ss:$372 sps:$4 sm:$0xff]  }
 0x233   : > { %v17757_v3 = vadd.f32 %v13369_v17, %v9448_v5  ;;  %v9453_v15 = vadd.f32 %v13332_v59, %v17645_v24  ;;  %v13335_v18 = vadd.f32 %v13334_v25, %v13333_v4  ;;  %v15348_v24 = vld [vmem:[%s19059_s1 + $0xe98] sm:$0xff]   ;;  %10174 = vmatmul.mubr.bf16.gmra.mrb[216].mxu1 %v15354_v36  ;;  %v15368_v5 = vld [vmem:[%s16025_s13 + $0x990] ss:$372 sps:$4 sm:$0xff]  }
 0x234   : > { %13835 = vmatpush3.bf16.msra.mxu1 %v15348_v24  ;;  %10181 = vmatprep.mubr.bf16.mxu1 %v15365_v2  ;;  %v15374_v4 = vld [vmem:[%s19059_s1 + $0xef8] sm:$0xff]   ;;  %v15397_v2 = vld [vmem:[%s19059_s1 + $0xf50] sm:$0xff]  }
 0x235   : > { %v13370_v57 = vpop.f32.mrb[132].mxu1  ;;  %v9456_v10 = vadd.f32 %v13335_v18, %v17655_v31  ;;  %v15357_v31 = vld [vmem:[%s19059_s1 + $0xe20] sm:$0xff]   ;;  %13836 = vmatprep.subr.bf16.mxu1 %v15356_v20 }
 0x236   : > { %v13371_v0 = vpop.f32.mrb[133].mxu1  ;;  %13797 = vmatpush3.bf16.msra.mxu0 %v15357_v31  ;;  %v15377_v18 = vld [vmem:[%s16025_s13 + $0xe0] ss:$372 sps:$4 sm:$0xff]  }
 0x237   : > { %v13372_v1 = vadd.f32 %v13371_v0, %v13370_v57  ;;  %v13373_v6 = vpop.f32.mrb[134].mxu1  ;;  %v13336_v50 = vpop.f32.mrb[136].mxu0  ;;  %13798 = vmatprep.subr.bf16.mxu0 %v15359_v30  ;;  %v15373_v0 = vld [vmem:[%s19059_s1 + $0xe78] sm:$0xff]   ;;  %v15386_v31 = vld [vmem:[%s19059_s1 + $0xf80] sm:$0xff]  }
 0x238   : > { %v13374_v27 = vpop.f32.mrb[135].mxu1  ;;  %v13337_v39 = vpop.f32.mrb[137].mxu0  ;;  %13837 = vmatpush3.bf16.msra.mxu1 %v15358_v49 }
 0x239   : > { %v17781_v16 = vadd.f32 %v13372_v1, %v9453_v15  ;;  %v13375_v26 = vadd.f32 %v13374_v27, %v13373_v6  ;;  %v13338_v33 = vadd.f32 %v13337_v39, %v13336_v50  ;;  %v13339_v42 = vpop.f32.mrb[138].mxu0  ;;  %13838 = vmatprep.subr.bf16.mxu1 %v15360_v40  ;;  %v15375_v15 = vld [vmem:[%s19059_s1 + $0xe38] sm:$0xff]   ;;  %v15389_v40 = vld [vmem:[%s19059_s1 + $0xf08] sm:$0xff]  }
 0x23a   : > { %v13340_v43 = vpop.f32.mrb[139].mxu0  ;;  %13799 = vmatpush3.bf16.msra.mxu0 %v15361_v37  ;;  %v15379_v27 = vld [vmem:[%s16025_s13 + $0xe4] ss:$372 sps:$4 sm:$0xff]  }
 0x23b   : > { %v17794_v38 = vadd.f32 %v13375_v26, %v9456_v10  ;;  %v9461_v13 = vadd.f32 %v13338_v33, %v17679_v56  ;;  %v13341_v14 = vadd.f32 %v13340_v43, %v13339_v42  ;;  %v15363_v56 = vld [vmem:[%s16025_s13 + $0x98c] ss:$372 sps:$4 sm:$0xff]   ;;  %10182 = vmatmul.mubr.bf16.gmra.mrb[220].mxu1 %v15368_v5  ;;  %13800 = vmatprep.subr.bf16.mxu0 %v15369_v52  ;;  %v15380_v26 = vld [vmem:[%s16025_s13 + $0xe8] ss:$372 sps:$4 sm:$0xff]  }
 0x23c   : > { %13839 = vmatpush3.bf16.msra.mxu1 %v15362_v45  ;;  %10116 = vmatprep.mubr.bf16.mxu0 %v15363_v56  ;;  %v15382_v10 = vld [vmem:[%s16025_s13 + $0xec] ss:$372 sps:$4 sm:$0xff]   ;;  %v15395_v56 = vld [vmem:[%s16025_s13 + $0x3c8] ss:$372 sps:$4 sm:$0xff]  }
 0x23d   : > { %v13376_v53 = vpop.f32.mrb[136].mxu1  ;;  %v9464_v51 = vadd.f32 %v13341_v14, %v17692_v7  ;;  %10117 = vmatmul.mubr.bf16.gmra.mrb[220].mxu0 %v15367_v46  ;;  %v15371_v7 = vld [vmem:[%s19059_s1 + $0xe30] sm:$0xff]   ;;  %13840 = vmatprep.subr.bf16.mxu1 %v15370_v35  ;;  %v15387_v33 = vld [vmem:[%s19059_s1 + $0xf48] sm:$0xff]  }
 0x23e   : > { %v13377_v28 = vpop.f32.mrb[137].mxu1  ;;  %13801 = vmatpush3.bf16.msra.mxu0 %v15371_v7  ;;  %10222 = vmatprep.mubr.bf16.mxu0 %v15379_v27  ;;  %v15391_v45 = vld [vmem:[%s16025_s13 + $0x3cc] ss:$372 sps:$4 sm:$0xff]   ;;  %v15398_v46 = vld [vmem:[%s19059_s1 + $0xfd0] sm:$0xff]   ;;  %v15401_v7 = vld [vmem:[%s19059_s1 + $0xf58] sm:$0xff]  }
 0x23f   : > { %v13378_v63 = vadd.f32 %v13377_v28, %v13376_v53  ;;  %v13379_v34 = vpop.f32.mrb[138].mxu1  ;;  %v13342_v17 = vpop.f32.mrb[140].mxu0  ;;  %13802 = vmatprep.subr.bf16.mxu0 %v15373_v0  ;;  %10287 = vmatprep.mubr.bf16.mxu1 %v15382_v10  ;;  %v15403_v0 = vld [vmem:[%s19059_s1 + $0xf18] sm:$0xff]   ;;  %v15412_v10 = vld [vmem:[%s19059_s1 + $0xfe0] sm:$0xff]  }
 0x240   : > { %v13380_v55 = vpop.f32.mrb[139].mxu1  ;;  %v13343_v62 = vpop.f32.mrb[141].mxu0  ;;  %13841 = vmatpush3.bf16.msra.mxu1 %v15372_v32  ;;  %v15402_v32 = vld [vmem:[%s19059_s1 + $0xfd8] sm:$0xff]  }
 0x241   : > { %v17818_v41 = vadd.f32 %v13378_v63, %v9461_v13  ;;  %v13381_v54 = vadd.f32 %v13380_v55, %v13379_v34  ;;  %v13344_v57 = vadd.f32 %v13343_v62, %v13342_v17  ;;  %v13345_v59 = vpop.f32.mrb[142].mxu0  ;;  %13842 = vmatprep.subr.bf16.mxu1 %v15374_v4  ;;  %v15388_v63 = vld [vmem:[%s19059_s1 + $0xfc8] sm:$0xff]  }
 0x242   : > { %v13346_v12 = vpop.f32.mrb[143].mxu0  ;;  %13803 = vmatpush3.bf16.msra.mxu0 %v15375_v15  ;;  %v15393_v55 = vld [vmem:[%s16025_s13 + $0x3d4] ss:$372 sps:$4 sm:$0xff]   ;;  %v15410_v27 = vld [vmem:[%s16025_s13 + $0x6b8] ss:$372 sps:$4 sm:$0xff]  }
 0x243   : > { %v17828_v61 = vadd.f32 %v13381_v54, %v9464_v51  ;;  %v9469_v19 = vadd.f32 %v13344_v57, %v17716_v21  ;;  %v13347_v9 = vadd.f32 %v13346_v12, %v13345_v59  ;;  %v15376_v21 = vld [vmem:[%s19059_s1 + $0xeb8] sm:$0xff]   ;;  %13868 = vmatprep.subr.bf16.mxu0 %v15383_v29  ;;  %v15396_v54 = vld [vmem:[%s16025_s13 + $0x3d0] ss:$372 sps:$4 sm:$0xff]  }
 0x244   : > { %13843 = vmatpush3.bf16.msra.mxu1 %v15376_v21 }
 0x245   : > { %v13382_v48 = vpop.f32.mrb[140].mxu1  ;;  %v9472_v24 = vadd.f32 %v13347_v9, %v17726_v47  ;;  %10223 = vmatmul.mubr.bf16.vlgmr.msra.gmra.mrb[224].mxu0 %v15377_v18  ;;  %v15385_v47 = vld [vmem:[%s19059_s1 + $0xf00] sm:$0xff]   ;;  %13908 = vmatprep.subr.bf16.mxu1 %v15384_v60 }
 0x246   : > { %v13383_v8 = vpop.f32.mrb[141].mxu1  ;;  %13869 = vmatpush3.bf16.msra.mxu0 %v15385_v47  ;;  %10230 = vmatprep.mubr.bf16.mxu0 %v15391_v45  ;;  %v15409_v18 = vld [vmem:[%s16025_s13 + $0x6b0] ss:$372 sps:$4 sm:$0xff]  }
 0x247   : > { %v13384_v58 = vadd.f32 %v13383_v8, %v13382_v48  ;;  %v13385_v1 = vpop.f32.mrb[142].mxu1  ;;  %10288 = vmatmul.mubr.bf16.vlgmr.msra.gmra.mrb[224].mxu1 %v15380_v26  ;;  %13870 = vmatprep.subr.bf16.mxu0 %v15387_v33  ;;  %v15400_v48 = vld [vmem:[%s19059_s1 + $0xf90] sm:$0xff]  }
 0x248   : > { %v13386_v25 = vpop.f32.mrb[143].mxu1  ;;  %13909 = vmatpush3.bf16.msra.mxu1 %v15386_v31  ;;  %10295 = vmatprep.mubr.bf16.mxu1 %v15393_v55 }
 0x249   : > { %v17849_v6 = vadd.f32 %v13384_v58, %v9469_v19  ;;  %v13387_v11 = vadd.f32 %v13386_v25, %v13385_v1  ;;  %13910 = vmatprep.subr.bf16.mxu1 %v15388_v63  ;;  %v15404_v1 = vld [vmem:[%s19059_s1 + $0xf98] sm:$0xff]  }
 0x24a   : > { %13871 = vmatpush3.bf16.msra.mxu0 %v15389_v40  ;;  %v15407_v25 = vld [vmem:[%s16025_s13 + $0x6bc] ss:$372 sps:$4 sm:$0xff]  }
 0x24b   : > { %v13404_v44 = vpop.f32.mrb[144].mxu0  ;;  %v17859_v22 = vadd.f32 %v13387_v11, %v9472_v24  ;;  %13872 = vmatprep.subr.bf16.mxu0 %v15397_v2  ;;  %v15411_v24 = vld [vmem:[%s19059_s1 + $0xf60] sm:$0xff]  }
 0x24c   : > { %v13405_v50 = vpop.f32.mrb[145].mxu0 }
 0x24d   : > { %v13444_v36 = vpop.f32.mrb[144].mxu1  ;;  %v13406_v20 = vadd.f32 %v13405_v50, %v13404_v44  ;;  %v13407_v49 = vpop.f32.mrb[146].mxu0  ;;  %10231 = vmatmul.mubr.bf16.gmra.mrb[228].mxu0 %v15395_v56  ;;  %v15414_v50 = vld [vmem:[%s19059_s1 + $0xfa0] sm:$0xff]   ;;  %v15425_v56 = vld [vmem:[%s19059_s1 + $0xf70] sm:$0xff]  }
 0x24e   : > { %v13445_v53 = vpop.f32.mrb[145].mxu1  ;;  %v13408_v42 = vpop.f32.mrb[147].mxu0 }
 0x24f   : > { %v13446_v39 = vadd.f32 %v13445_v53, %v13444_v36  ;;  %v9575_v28 = vadd.f32 %v13406_v20, %v17747_v23  ;;  %v13447_v30 = vpop.f32.mrb[146].mxu1  ;;  %v13409_v34 = vadd.f32 %v13408_v42, %v13407_v49  ;;  %v15390_v23 = vld [vmem:[%s19059_s1 + $0xf88] sm:$0xff]   ;;  %10296 = vmatmul.mubr.bf16.gmra.mrb[228].mxu1 %v15396_v54 }
 0x250   : > { %v13448_v37 = vpop.f32.mrb[147].mxu1  ;;  %13911 = vmatpush3.bf16.msra.mxu1 %v15390_v23  ;;  %10303 = vmatprep.mubr.bf16.mxu1 %v15407_v25  ;;  %v15415_v53 = vld [vmem:[%s19059_s1 + $0xf68] sm:$0xff]   ;;  %v15421_v23 = vld [vmem:[%s16025_s13 + $0x9a4] ss:$372 sps:$4 sm:$0xff]  }
 0x251   : > { %v17883_v13 = vadd.f32 %v13446_v39, %v9575_v28  ;;  %v13449_v43 = vadd.f32 %v13448_v37, %v13447_v30  ;;  %v9578_v14 = vadd.f32 %v13409_v34, %v17757_v3  ;;  %v15399_v3 = vld [vmem:[%s19059_s1 + $0xf10] sm:$0xff]   ;;  %13912 = vmatprep.subr.bf16.mxu1 %v15398_v46  ;;  %v15416_v49 = vld [vmem:[%s19059_s1 + $0xfe8] sm:$0xff]  }
 0x252   : > { %13873 = vmatpush3.bf16.msra.mxu0 %v15399_v3  ;;  %v15417_v28 = vld [vmem:[%s19059_s1 + $0xf28] sm:$0xff]   ;;  %v15419_v34 = vld [vmem:[%s16025_s13 + $0x99c] ss:$372 sps:$4 sm:$0xff]  }
 0x253   : > { %v17896_v51 = vadd.f32 %v13449_v43, %v9578_v14  ;;  %v13410_v17 = vpop.f32.mrb[148].mxu0  ;;  %13874 = vmatprep.subr.bf16.mxu0 %v15401_v7  ;;  %v15423_v43 = vld [vmem:[%s16025_s13 + $0x998] ss:$372 sps:$4 sm:$0xff]   ;;  %v15424_v14 = vld [vmem:[%s16025_s13 + $0x9a0] ss:$372 sps:$4 sm:$0xff]  }
 0x254   : > { %v13411_v52 = vpop.f32.mrb[149].mxu0  ;;  %13913 = vmatpush3.bf16.msra.mxu1 %v15400_v48  ;;  %v15428_v3 = vld [vmem:[%s19059_s1 + $0xfb0] sm:$0xff]  }
 0x255   : > { %v13450_v5 = vpop.f32.mrb[148].mxu1  ;;  %v13412_v35 = vadd.f32 %v13411_v52, %v13410_v17  ;;  %v13413_v8 = vpop.f32.mrb[150].mxu0  ;;  %13914 = vmatprep.subr.bf16.mxu1 %v15402_v32  ;;  %v15427_v17 = vld [vmem:[%s19059_s1 + $0xf30] sm:$0xff]   ;;  %v15431_v32 = vld [vmem:[%s19059_s1 + $0xf38] sm:$0xff]  }
 0x256   : > { %v13451_v62 = vpop.f32.mrb[149].mxu1  ;;  %v13414_v19 = vpop.f32.mrb[151].mxu0  ;;  %13875 = vmatpush3.bf16.msra.mxu0 %v15403_v0 }
 0x257   : > { %v13452_v57 = vadd.f32 %v13451_v62, %v13450_v5  ;;  %v9583_v58 = vadd.f32 %v13412_v35, %v17781_v16  ;;  %v13453_v59 = vpop.f32.mrb[150].mxu1  ;;  %v13415_v12 = vadd.f32 %v13414_v19, %v13413_v8  ;;  %v15405_v16 = vld [vmem:[%s16025_s13 + $0x6b4] ss:$372 sps:$4 sm:$0xff]   ;;  %10304 = vmatmul.mubr.bf16.gmra.mrb[232].mxu1 %v15410_v27  ;;  %13876 = vmatprep.subr.bf16.mxu0 %v15411_v24  ;;  %v15429_v35 = vld [vmem:[%s19059_s1 + $0xf78] sm:$0xff]   ;;  %v15440_v27 = vld [vmem:[%s19059_s1 + $0x10c0] sm:$0xff]  }
 0x258   : > { %v13454_v15 = vpop.f32.mrb[151].mxu1  ;;  %13915 = vmatpush3.bf16.msra.mxu1 %v15404_v1  ;;  %10238 = vmatprep.mubr.bf16.mxu0 %v15405_v16  ;;  %v15433_v1 = vld [vmem:[%s16025_s13 + $0xf0] ss:$372 sps:$4 sm:$0xff]   ;;  %v15436_v16 = vld [vmem:[%s16025_s13 + $0xf8] ss:$372 sps:$4 sm:$0xff]  }
 0x259   : > { %v17920_v4 = vadd.f32 %v13452_v57, %v9583_v58  ;;  %v13455_v9 = vadd.f32 %v13454_v15, %v13453_v59  ;;  %v9586_v21 = vadd.f32 %v13415_v12, %v17794_v38  ;;  %10239 = vmatmul.mubr.bf16.gmra.mrb[232].mxu0 %v15409_v18  ;;  %v15413_v38 = vld [vmem:[%s19059_s1 + $0xf20] sm:$0xff]   ;;  %13916 = vmatprep.subr.bf16.mxu1 %v15412_v10  ;;  %v15430_v57 = vld [vmem:[%s19059_s1 + $0xff8] sm:$0xff]   ;;  %v15435_v12 = vld [vmem:[%s16025_s13 + $0xf4] ss:$372 sps:$4 sm:$0xff]  }
 0x25a   : > { %13877 = vmatpush3.bf16.msra.mxu0 %v15413_v38  ;;  %10246 = vmatprep.mubr.bf16.mxu0 %v15419_v34  ;;  %v15451_v34 = vld [vmem:[%s16025_s13 + $0x3d8] ss:$372 sps:$4 sm:$0xff]  }
 0x25b   : > { %v13416_v11 = vpop.f32.mrb[152].mxu0  ;;  %v17930_v26 = vadd.f32 %v13455_v9, %v9586_v21  ;;  %13878 = vmatprep.subr.bf16.mxu0 %v15415_v53  ;;  %10311 = vmatprep.mubr.bf16.mxu1 %v15421_v23  ;;  %v15438_v9 = vld [vmem:[%s16025_s13 + $0xfc] ss:$372 sps:$4 sm:$0xff]   ;;  %v15439_v21 = vld [vmem:[%s19059_s1 + $0x1040] sm:$0xff]  }
 0x25c   : > { %v13417_v29 = vpop.f32.mrb[153].mxu0  ;;  %13917 = vmatpush3.bf16.msra.mxu1 %v15414_v50 }
 0x25d   : > { %v13456_v44 = vpop.f32.mrb[152].mxu1  ;;  %v13418_v36 = vadd.f32 %v13417_v29, %v13416_v11  ;;  %v13419_v20 = vpop.f32.mrb[154].mxu0  ;;  %13918 = vmatprep.subr.bf16.mxu1 %v15416_v49  ;;  %v15442_v29 = vld [vmem:[%s19059_s1 + $0x1080] sm:$0xff]  }
 0x25e   : > { %v13457_v60 = vpop.f32.mrb[153].mxu1  ;;  %v13420_v33 = vpop.f32.mrb[155].mxu0  ;;  %13879 = vmatpush3.bf16.msra.mxu0 %v15417_v28 }
 0x25f   : > { %v13458_v47 = vadd.f32 %v13457_v60, %v13456_v44  ;;  %v9591_v31 = vadd.f32 %v13418_v36, %v17818_v41  ;;  %v13459_v39 = vpop.f32.mrb[154].mxu1  ;;  %v13421_v63 = vadd.f32 %v13420_v33, %v13419_v20  ;;  %v15418_v41 = vld [vmem:[%s19059_s1 + $0xfa8] sm:$0xff]   ;;  %10312 = vmatmul.mubr.bf16.gmra.mrb[236].mxu1 %v15424_v14  ;;  %13880 = vmatprep.subr.bf16.mxu0 %v15425_v56  ;;  %v15455_v56 = vld [vmem:[%s19059_s1 + $0x1010] sm:$0xff]  }
 0x260   : > { %v13460_v42 = vpop.f32.mrb[155].mxu1  ;;  %13919 = vmatpush3.bf16.msra.mxu1 %v15418_v41  ;;  %10417 = vmatprep.mubr.bf16.mxu1 %v15438_v9  ;;  %v15443_v60 = vld [vmem:[%s19059_s1 + $0x1048] sm:$0xff]   ;;  %v15449_v41 = vld [vmem:[%s16025_s13 + $0x3e4] ss:$372 sps:$4 sm:$0xff]  }
 0x261   : > { %v17951_v30 = vadd.f32 %v13458_v47, %v9591_v31  ;;  %v13461_v40 = vadd.f32 %v13460_v42, %v13459_v39  ;;  %v9594_v37 = vadd.f32 %v13421_v63, %v17828_v61  ;;  %10247 = vmatmul.mubr.bf16.gmra.mrb[236].mxu0 %v15423_v43  ;;  %v15426_v61 = vld [vmem:[%s19059_s1 + $0xff0] sm:$0xff]   ;;  %v15444_v20 = vld [vmem:[%s19059_s1 + $0x10c8] sm:$0xff]  }
 0x262   : > { %13920 = vmatprep.subr.bf16.mxu1 %v15426_v61  ;;  %13881 = vmatpush3.bf16.msra.mxu0 %v15427_v17  ;;  %v15445_v31 = vld [vmem:[%s19059_s1 + $0x1008] sm:$0xff]   ;;  %v15447_v63 = vld [vmem:[%s16025_s13 + $0x3dc] ss:$372 sps:$4 sm:$0xff]  }
 0x263   : > { %v13422_v45 = vpop.f32.mrb[156].mxu0  ;;  %v17961_v55 = vadd.f32 %v13461_v40, %v9594_v37  ;;  %13882 = vmatprep.subr.bf16.mxu0 %v15429_v35  ;;  %10352 = vmatprep.mubr.bf16.mxu0 %v15435_v12  ;;  %v15452_v37 = vld [vmem:[%s16025_s13 + $0x3e0] ss:$372 sps:$4 sm:$0xff]   ;;  %v15466_v12 = vld [vmem:[%s16025_s13 + $0x6c8] ss:$372 sps:$4 sm:$0xff]  }
 0x264   : > { %v13423_v2 = vpop.f32.mrb[157].mxu0  ;;  %13921 = vmatpush3.bf16.msra.mxu1 %v15428_v3  ;;  %v15453_v43 = vld [vmem:[%s19059_s1 + $0x1050] sm:$0xff]  }
 0x265   : > { %v13462_v54 = vpop.f32.mrb[156].mxu1  ;;  %v13424_v46 = vadd.f32 %v13423_v2, %v13422_v45  ;;  %v13425_v48 = vpop.f32.mrb[158].mxu0  ;;  %13922 = vmatprep.subr.bf16.mxu1 %v15430_v57  ;;  %v15456_v2 = vld [vmem:[%s19059_s1 + $0x1090] sm:$0xff]  }
 0x266   : > { %v13463_v5 = vpop.f32.mrb[157].mxu1  ;;  %v13426_v8 = vpop.f32.mrb[159].mxu0  ;;  %13883 = vmatpush3.bf16.msra.mxu0 %v15431_v32 }
 0x267   : > { %v13464_v52 = vadd.f32 %v13463_v5, %v13462_v54  ;;  %v9599_v62 = vadd.f32 %v13424_v46, %v17849_v6  ;;  %v13465_v7 = vpop.f32.mrb[158].mxu1  ;;  %v13427_v59 = vadd.f32 %v13426_v8, %v13425_v48  ;;  %v15432_v6 = vld [vmem:[%s19059_s1 + $0xfb8] sm:$0xff]   ;;  %13948 = vmatprep.subr.bf16.mxu0 %v15439_v21  ;;  %v15469_v21 = vld [vmem:[%s19059_s1 + $0x1020] sm:$0xff]  }
 0x268   : > { %v13466_v0 = vpop.f32.mrb[159].mxu1  ;;  %13923 = vmatpush3.bf16.msra.mxu1 %v15432_v6  ;;  %v15457_v5 = vld [vmem:[%s19059_s1 + $0x1058] sm:$0xff]   ;;  %v15463_v6 = vld [vmem:[%s16025_s13 + $0x6cc] ss:$372 sps:$4 sm:$0xff]  }
 0x269   : > { %v17985_v58 = vadd.f32 %v13464_v52, %v9599_v62  ;;  %v13467_v19 = vadd.f32 %v13466_v0, %v13465_v7  ;;  %v9602_v15 = vadd.f32 %v13427_v59, %v17859_v22  ;;  %10353 = vmatmul.mubr.bf16.vlgmr.msra.gmra.mrb[240].mxu0 %v15433_v1  ;;  %v15441_v22 = vld [vmem:[%s19059_s1 + $0x1000] sm:$0xff]   ;;  %13988 = vmatprep.subr.bf16.mxu1 %v15440_v27  ;;  %v15458_v48 = vld [vmem:[%s19059_s1 + $0x10d8] sm:$0xff]  }
 0x26a   : > { %13949 = vmatpush3.bf16.msra.mxu0 %v15441_v22  ;;  %10360 = vmatprep.mubr.bf16.mxu0 %v15447_v63  ;;  %v15459_v62 = vld [vmem:[%s19059_s1 + $0x1018] sm:$0xff]   ;;  %v15480_v63 = vld [vmem:[%s16025_s13 + $0x9b0] ss:$372 sps:$4 sm:$0xff]  }
 0x26b   : > { %v13484_v25 = vpop.f32.mrb[160].mxu0  ;;  %v17998_v11 = vadd.f32 %v13467_v19, %v9602_v15  ;;  %10418 = vmatmul.mubr.bf16.vlgmr.msra.gmra.mrb[240].mxu1 %v15436_v16  ;;  %13950 = vmatprep.subr.bf16.mxu0 %v15443_v60  ;;  %v15461_v59 = vld [vmem:[%s16025_s13 + $0x6c4] ss:$372 sps:$4 sm:$0xff]   ;;  %v15465_v19 = vld [vmem:[%s16025_s13 + $0x6c0] ss:$372 sps:$4 sm:$0xff]  }
 0x26c   : > { %v13485_v24 = vpop.f32.mrb[161].mxu0  ;;  %13989 = vmatpush3.bf16.msra.mxu1 %v15442_v29  ;;  %10425 = vmatprep.mubr.bf16.mxu1 %v15449_v41  ;;  %v15467_v16 = vld [vmem:[%s19059_s1 + $0x1060] sm:$0xff]  }
 0x26d   : > { %v13486_v44 = vadd.f32 %v13485_v24, %v13484_v25  ;;  %v13487_v36 = vpop.f32.mrb[162].mxu0  ;;  %13990 = vmatprep.subr.bf16.mxu1 %v15444_v20  ;;  %v15470_v24 = vld [vmem:[%s19059_s1 + $0x10a0] sm:$0xff]  }
 0x26e   : > { %v13524_v18 = vpop.f32.mrb[160].mxu1  ;;  %v13488_v53 = vpop.f32.mrb[163].mxu0  ;;  %13951 = vmatpush3.bf16.msra.mxu0 %v15445_v31 }
 0x26f   : > { %v13525_v10 = vpop.f32.mrb[161].mxu1  ;;  %v9705_v50 = vadd.f32 %v13486_v44, %v17883_v13  ;;  %v13489_v49 = vadd.f32 %v13488_v53, %v13487_v36  ;;  %v15446_v13 = vld [vmem:[%s19059_s1 + $0x1088] sm:$0xff]   ;;  %13952 = vmatprep.subr.bf16.mxu0 %v15453_v43 }
 0x270   : > { %v13526_v38 = vadd.f32 %v13525_v10, %v13524_v18  ;;  %v13527_v47 = vpop.f32.mrb[162].mxu1  ;;  %13991 = vmatpush3.bf16.msra.mxu1 %v15446_v13  ;;  %v15471_v10 = vld [vmem:[%s19059_s1 + $0x1068] sm:$0xff]  }
 0x271   : > { %v13528_v33 = vpop.f32.mrb[163].mxu1  ;;  %v9708_v42 = vadd.f32 %v13489_v49, %v17896_v51  ;;  %10361 = vmatmul.mubr.bf16.gmra.mrb[244].mxu0 %v15451_v34  ;;  %v15454_v51 = vld [vmem:[%s19059_s1 + $0x10d0] sm:$0xff]   ;;  %v15472_v36 = vld [vmem:[%s19059_s1 + $0x10e8] sm:$0xff]  }
 0x272   : > { %v18019_v39 = vadd.f32 %v13526_v38, %v9705_v50  ;;  %v13529_v28 = vadd.f32 %v13528_v33, %v13527_v47  ;;  %13992 = vmatprep.subr.bf16.mxu1 %v15454_v51  ;;  %13953 = vmatpush3.bf16.msra.mxu0 %v15455_v56  ;;  %v15473_v50 = vld [vmem:[%s19059_s1 + $0x1028] sm:$0xff]   ;;  %v15482_v34 = vld [vmem:[%s19059_s1 + $0x10f0] sm:$0xff]   ;;  %v15485_v56 = vld [vmem:[%s19059_s1 + $0x1078] sm:$0xff]  }
 0x273   : > { %v13490_v40 = vpop.f32.mrb[164].mxu0  ;;  %10426 = vmatmul.mubr.bf16.gmra.mrb[244].mxu1 %v15452_v37  ;;  %13954 = vmatprep.subr.bf16.mxu0 %v15457_v5  ;;  %v15475_v49 = vld [vmem:[%s16025_s13 + $0x9ac] ss:$372 sps:$4 sm:$0xff]   ;;  %v15477_v13 = vld [vmem:[%s16025_s13 + $0x9b4] ss:$372 sps:$4 sm:$0xff]   ;;  %v15487_v5 = vld [vmem:[%s19059_s1 + $0x1038] sm:$0xff]  }
 0x274   : > { %v18029_v23 = vadd.f32 %v13529_v28, %v9708_v42  ;;  %v13491_v14 = vpop.f32.mrb[165].mxu0  ;;  %13993 = vmatpush3.bf16.msra.mxu1 %v15456_v2  ;;  %10368 = vmatprep.mubr.bf16.mxu0 %v15461_v59  ;;  %v15479_v28 = vld [vmem:[%s16025_s13 + $0x9a8] ss:$372 sps:$4 sm:$0xff]   ;;  %v15481_v42 = vld [vmem:[%s19059_s1 + $0x1070] sm:$0xff]  }
 0x275   : > { %v13492_v54 = vadd.f32 %v13491_v14, %v13490_v40  ;;  %v13493_v46 = vpop.f32.mrb[166].mxu0  ;;  %13994 = vmatprep.subr.bf16.mxu1 %v15458_v48  ;;  %10433 = vmatprep.mubr.bf16.mxu1 %v15463_v6  ;;  %v15486_v2 = vld [vmem:[%s19059_s1 + $0x10f8] sm:$0xff]   ;;  %v15495_v6 = vld [vmem:[%s19059_s1 + $0x1140] sm:$0xff]  }
 0x276   : > { %v13530_v45 = vpop.f32.mrb[164].mxu1  ;;  %v13494_v35 = vpop.f32.mrb[167].mxu0  ;;  %13955 = vmatpush3.bf16.msra.mxu0 %v15459_v62  ;;  %v15492_v59 = vld [vmem:[%s16025_s13 + $0x108] ss:$372 sps:$4 sm:$0xff]  }
 0x277   : > { %v13531_v61 = vpop.f32.mrb[165].mxu1  ;;  %v9713_v3 = vadd.f32 %v13492_v54, %v17920_v4  ;;  %v13495_v57 = vadd.f32 %v13494_v35, %v13493_v46  ;;  %v15460_v4 = vld [vmem:[%s19059_s1 + $0x1098] sm:$0xff]   ;;  %13956 = vmatprep.subr.bf16.mxu0 %v15467_v16 }
 0x278   : > { %v13532_v17 = vadd.f32 %v13531_v61, %v13530_v45  ;;  %v13533_v52 = vpop.f32.mrb[166].mxu1  ;;  %13995 = vmatpush3.bf16.msra.mxu1 %v15460_v4  ;;  %v15484_v45 = vld [vmem:[%s19059_s1 + $0x10b0] sm:$0xff]  }
 0x279   : > { %v13534_v8 = vpop.f32.mrb[167].mxu1  ;;  %v9716_v0 = vadd.f32 %v13495_v57, %v17930_v26  ;;  %10369 = vmatmul.mubr.bf16.gmra.mrb[248].mxu0 %v15465_v19  ;;  %v15468_v26 = vld [vmem:[%s19059_s1 + $0x10e0] sm:$0xff]  }
 0x27a   : > { %v18053_v7 = vadd.f32 %v13532_v17, %v9713_v3  ;;  %v13535_v32 = vadd.f32 %v13534_v8, %v13533_v52  ;;  %13996 = vmatprep.subr.bf16.mxu1 %v15468_v26  ;;  %13957 = vmatpush3.bf16.msra.mxu0 %v15469_v21  ;;  %v15488_v52 = vld [vmem:[%s19059_s1 + $0x10b8] sm:$0xff]  }
 0x27b   : > { %v13496_v1 = vpop.f32.mrb[168].mxu0  ;;  %10434 = vmatmul.mubr.bf16.gmra.mrb[248].mxu1 %v15466_v12  ;;  %13958 = vmatprep.subr.bf16.mxu0 %v15471_v10  ;;  %v15491_v8 = vld [vmem:[%s16025_s13 + $0x104] ss:$372 sps:$4 sm:$0xff]  }
 0x27c   : > { %v18063_v15 = vadd.f32 %v13535_v32, %v9716_v0  ;;  %v13497_v25 = vpop.f32.mrb[169].mxu0  ;;  %13997 = vmatpush3.bf16.msra.mxu1 %v15470_v24  ;;  %10376 = vmatprep.mubr.bf16.mxu0 %v15475_v49  ;;  %v15494_v0 = vld [vmem:[%s16025_s13 + $0x10c] ss:$372 sps:$4 sm:$0xff]  }
 0x27d   : > { %v13498_v18 = vadd.f32 %v13497_v25, %v13496_v1  ;;  %v13499_v44 = vpop.f32.mrb[170].mxu0  ;;  %13998 = vmatprep.subr.bf16.mxu1 %v15472_v36  ;;  %10441 = vmatprep.mubr.bf16.mxu1 %v15477_v13  ;;  %v15496_v12 = vld [vmem:[%s19059_s1 + $0x11c0] sm:$0xff]  }
 0x27e   : > { %v13536_v9 = vpop.f32.mrb[168].mxu1  ;;  %v13500_v60 = vpop.f32.mrb[171].mxu0  ;;  %13959 = vmatpush3.bf16.msra.mxu0 %v15473_v50  ;;  %v15498_v25 = vld [vmem:[%s19059_s1 + $0x1180] sm:$0xff]  }
 0x27f   : > { %v13537_v27 = vpop.f32.mrb[169].mxu1  ;;  %v9721_v29 = vadd.f32 %v13498_v18, %v17951_v30  ;;  %v13501_v20 = vadd.f32 %v13500_v60, %v13499_v44  ;;  %v15474_v30 = vld [vmem:[%s19059_s1 + $0x10a8] sm:$0xff]   ;;  %13960 = vmatprep.subr.bf16.mxu0 %v15481_v42  ;;  %v15510_v42 = vld [vmem:[%s19059_s1 + $0x11d0] sm:$0xff]  }
 0x280   : > { %v13538_v22 = vadd.f32 %v13537_v27, %v13536_v9  ;;  %v13539_v38 = vpop.f32.mrb[170].mxu1  ;;  %13999 = vmatpush3.bf16.msra.mxu1 %v15474_v30  ;;  %v15499_v27 = vld [vmem:[%s19059_s1 + $0x1148] sm:$0xff]  }
 0x281   : > { %v13540_v53 = vpop.f32.mrb[171].mxu1  ;;  %v9724_v33 = vadd.f32 %v13501_v20, %v17961_v55  ;;  %10377 = vmatmul.mubr.bf16.gmra.mrb[252].mxu0 %v15479_v28  ;;  %v15483_v55 = vld [vmem:[%s19059_s1 + $0x1030] sm:$0xff]   ;;  %14000 = vmatprep.subr.bf16.mxu1 %v15482_v34  ;;  %v15500_v44 = vld [vmem:[%s19059_s1 + $0x11c8] sm:$0xff]  }
 0x282   : > { %v18087_v47 = vadd.f32 %v13538_v22, %v9721_v29  ;;  %v13541_v31 = vadd.f32 %v13540_v53, %v13539_v38  ;;  %13961 = vmatpush3.bf16.msra.mxu0 %v15483_v55  ;;  %10482 = vmatprep.mubr.bf16.mxu0 %v15491_v8  ;;  %v15501_v29 = vld [vmem:[%s19059_s1 + $0x1108] sm:$0xff]   ;;  %v15509_v28 = vld [vmem:[%s19059_s1 + $0x1150] sm:$0xff]  }
 0x283   : > { %v13502_v40 = vpop.f32.mrb[172].mxu0  ;;  %10442 = vmatmul.mubr.bf16.gmra.mrb[252].mxu1 %v15480_v63  ;;  %13962 = vmatprep.subr.bf16.mxu0 %v15485_v56  ;;  %v15503_v20 = vld [vmem:[%s16025_s13 + $0x3e8] ss:$372 sps:$4 sm:$0xff]   ;;  %v15505_v53 = vld [vmem:[%s16025_s13 + $0x3ec] ss:$372 sps:$4 sm:$0xff]   ;;  %v15512_v55 = vld [vmem:[%s19059_s1 + $0x1190] sm:$0xff]  }
 0x284   : > { %v18100_v41 = vadd.f32 %v13541_v31, %v9724_v33  ;;  %v13503_v43 = vpop.f32.mrb[173].mxu0  ;;  %14001 = vmatpush3.bf16.msra.mxu1 %v15484_v45  ;;  %10547 = vmatprep.mubr.bf16.mxu1 %v15494_v0  ;;  %v15506_v31 = vld [vmem:[%s16025_s13 + $0x3f0] ss:$372 sps:$4 sm:$0xff]   ;;  %v15508_v33 = vld [vmem:[%s16025_s13 + $0x3f4] ss:$372 sps:$4 sm:$0xff]  }
 0x285   : > { %v13504_v51 = vadd.f32 %v13503_v43, %v13502_v40  ;;  %v13505_v61 = vpop.f32.mrb[174].mxu0  ;;  %14002 = vmatprep.subr.bf16.mxu1 %v15486_v2  ;;  %v15515_v2 = vld [vmem:[%s19059_s1 + $0x1118] sm:$0xff]   ;;  %v15524_v0 = vld [vmem:[%s19059_s1 + $0x11e0] sm:$0xff]  }
 0x286   : > { %v13542_v37 = vpop.f32.mrb[172].mxu1  ;;  %v13506_v3 = vpop.f32.mrb[175].mxu0  ;;  %13963 = vmatpush3.bf16.msra.mxu0 %v15487_v5 }
 0x287   : > { %v13543_v14 = vpop.f32.mrb[173].mxu1  ;;  %v9729_v17 = vadd.f32 %v13504_v51, %v17985_v58  ;;  %v13507_v35 = vadd.f32 %v13506_v3, %v13505_v61  ;;  %v15489_v58 = vld [vmem:[%s16025_s13 + $0x100] ss:$372 sps:$4 sm:$0xff]   ;;  %14028 = vmatprep.subr.bf16.mxu0 %v15495_v6  ;;  %v15513_v51 = vld [vmem:[%s19059_s1 + $0x1158] sm:$0xff]  }
 0x288   : > { %v13544_v54 = vadd.f32 %v13543_v14, %v13542_v37  ;;  %v13545_v46 = vpop.f32.mrb[174].mxu1  ;;  %14003 = vmatpush3.bf16.msra.mxu1 %v15488_v52  ;;  %v15517_v52 = vld [vmem:[%s16025_s13 + $0x6d0] ss:$372 sps:$4 sm:$0xff]  }
 0x289   : > { %v13546_v62 = vpop.f32.mrb[175].mxu1  ;;  %v9732_v4 = vadd.f32 %v13507_v35, %v17998_v11  ;;  %10483 = vmatmul.mubr.bf16.vlgmr.msra.gmra.mrb[0].mxu0 %v15489_v58  ;;  %v15497_v11 = vld [vmem:[%s19059_s1 + $0x1100] sm:$0xff]   ;;  %14068 = vmatprep.subr.bf16.mxu1 %v15496_v12  ;;  %v15519_v35 = vld [vmem:[%s16025_s13 + $0x6d4] ss:$372 sps:$4 sm:$0xff]   ;;  %v15520_v58 = vld [vmem:[%s16025_s13 + $0x6d8] ss:$372 sps:$4 sm:$0xff]  }
 0x28a   : > { %v18124_v48 = vadd.f32 %v13544_v54, %v9729_v17  ;;  %v13547_v57 = vadd.f32 %v13546_v62, %v13545_v46  ;;  %14029 = vmatpush3.bf16.msra.mxu0 %v15497_v11  ;;  %10490 = vmatprep.mubr.bf16.mxu0 %v15505_v53  ;;  %v15514_v54 = vld [vmem:[%s19059_s1 + $0x11d8] sm:$0xff]  }
 0x28b   : > { %v13564_v32 = vpop.f32.mrb[176].mxu0  ;;  %10548 = vmatmul.mubr.bf16.vlgmr.msra.gmra.mrb[0].mxu1 %v15492_v59  ;;  %14030 = vmatprep.subr.bf16.mxu0 %v15499_v27  ;;  %v15536_v53 = vld [vmem:[%s16025_s13 + $0x9c4] ss:$372 sps:$4 sm:$0xff]  }
 0x28c   : > { %v18134_v19 = vadd.f32 %v13547_v57, %v9732_v4  ;;  %v13565_v16 = vpop.f32.mrb[177].mxu0  ;;  %14069 = vmatpush3.bf16.msra.mxu1 %v15498_v25  ;;  %10555 = vmatprep.mubr.bf16.mxu1 %v15508_v33  ;;  %v15522_v57 = vld [vmem:[%s16025_s13 + $0x6dc] ss:$372 sps:$4 sm:$0xff]   ;;  %v15523_v4 = vld [vmem:[%s19059_s1 + $0x1160] sm:$0xff]  }
 0x28d   : > { %v13566_v9 = vadd.f32 %v13565_v16, %v13564_v32  ;;  %v13567_v18 = vpop.f32.mrb[178].mxu0  ;;  %14070 = vmatprep.subr.bf16.mxu1 %v15500_v44  ;;  %v15526_v16 = vld [vmem:[%s19059_s1 + $0x11a0] sm:$0xff]   ;;  %v15538_v33 = vld [vmem:[%s19059_s1 + $0x11f0] sm:$0xff]  }
 0x28e   : > { %v13568_v10 = vpop.f32.mrb[179].mxu0  ;;  %14031 = vmatpush3.bf16.msra.mxu0 %v15501_v29 }
 0x28f   : > { %v9835_v24 = vadd.f32 %v13566_v9, %v18019_v39  ;;  %v13569_v36 = vadd.f32 %v13568_v10, %v13567_v18  ;;  %v15502_v39 = vld [vmem:[%s19059_s1 + $0x1188] sm:$0xff]   ;;  %14032 = vmatprep.subr.bf16.mxu0 %v15509_v28  ;;  %v15539_v28 = vld [vmem:[%s19059_s1 + $0x1130] sm:$0xff]  }
 0x290   : > { %14071 = vmatpush3.bf16.msra.mxu1 %v15502_v39  ;;  %v15528_v18 = vld [vmem:[%s19059_s1 + $0x11e8] sm:$0xff]   ;;  %v15533_v39 = vld [vmem:[%s16025_s13 + $0x9bc] ss:$372 sps:$4 sm:$0xff]  }
 0x291   : > { %v9838_v30 = vadd.f32 %v13569_v36, %v18029_v23  ;;  %10491 = vmatmul.mubr.bf16.gmra.mrb[4].mxu0 %v15503_v20  ;;  %v15511_v23 = vld [vmem:[%s19059_s1 + $0x1110] sm:$0xff]   ;;  %14072 = vmatprep.subr.bf16.mxu1 %v15510_v42  ;;  %v15531_v36 = vld [vmem:[%s16025_s13 + $0x9b8] ss:$372 sps:$4 sm:$0xff]  }
 0x292   : > { %14033 = vmatpush3.bf16.msra.mxu0 %v15511_v23  ;;  %10498 = vmatprep.mubr.bf16.mxu0 %v15519_v35  ;;  %v15534_v20 = vld [vmem:[%s16025_s13 + $0x9c0] ss:$372 sps:$4 sm:$0xff]   ;;  %v15550_v35 = vld [vmem:[%s16025_s13 + $0x11c] ss:$372 sps:$4 sm:$0xff]  }
 0x293   : > { %v13570_v49 = vpop.f32.mrb[180].mxu0  ;;  %10556 = vmatmul.mubr.bf16.gmra.mrb[4].mxu1 %v15506_v31  ;;  %14034 = vmatprep.subr.bf16.mxu0 %v15513_v51  ;;  %v15537_v31 = vld [vmem:[%s19059_s1 + $0x1170] sm:$0xff]  }
 0x294   : > { %v13571_v40 = vpop.f32.mrb[181].mxu0  ;;  %14073 = vmatpush3.bf16.msra.mxu1 %v15512_v55  ;;  %10563 = vmatprep.mubr.bf16.mxu1 %v15522_v57 }
 0x295   : > { %v13572_v34 = vadd.f32 %v13571_v40, %v13570_v49  ;;  %v13573_v45 = vpop.f32.mrb[182].mxu0  ;;  %14074 = vmatprep.subr.bf16.mxu1 %v15514_v54  ;;  %v15540_v40 = vld [vmem:[%s19059_s1 + $0x11b0] sm:$0xff]  }
 0x296   : > { %v13574_v61 = vpop.f32.mrb[183].mxu0  ;;  %14035 = vmatpush3.bf16.msra.mxu0 %v15515_v2 }
 0x297   : > { %v9843_v14 = vadd.f32 %v13572_v34, %v18053_v7  ;;  %v13575_v46 = vadd.f32 %v13574_v61, %v13573_v45  ;;  %v15516_v7 = vld [vmem:[%s19059_s1 + $0x1198] sm:$0xff]   ;;  %14036 = vmatprep.subr.bf16.mxu0 %v15523_v4 }
 0x298   : > { %14075 = vmatpush3.bf16.msra.mxu1 %v15516_v7  ;;  %v15542_v45 = vld [vmem:[%s19059_s1 + $0x11f8] sm:$0xff]  }
 0x299   : > { %v9846_v62 = vadd.f32 %v13575_v46, %v18063_v15  ;;  %10499 = vmatmul.mubr.bf16.gmra.mrb[8].mxu0 %v15517_v52  ;;  %v15525_v15 = vld [vmem:[%s19059_s1 + $0x1120] sm:$0xff]   ;;  %14076 = vmatprep.subr.bf16.mxu1 %v15524_v0 }
 0x29a   : > { %14037 = vmatpush3.bf16.msra.mxu0 %v15525_v15  ;;  %10506 = vmatprep.mubr.bf16.mxu0 %v15533_v39  ;;  %v15545_v46 = vld [vmem:[%s16025_s13 + $0x110] ss:$372 sps:$4 sm:$0xff]  }
 0x29b   : > { %10564 = vmatmul.mubr.bf16.gmra.mrb[8].mxu1 %v15520_v58  ;;  %v15551_v58 = vld [vmem:[%s19059_s1 + $0x1240] sm:$0xff]   ;;  %v15565_v39 = vld [vmem:[%s19059_s1 + $0x1250] sm:$0xff]  }
 0x29c   : > { %14077 = vmatpush3.bf16.msra.mxu1 %v15526_v16  ;;  %10571 = vmatprep.mubr.bf16.mxu1 %v15536_v53  ;;  %v15566_v53 = vld [vmem:[%s19059_s1 + $0x12d0] sm:$0xff]  }
 0x29d   : > { %14078 = vmatprep.subr.bf16.mxu1 %v15528_v18 }
 0x2a1   : > { %10507 = vmatmul.mubr.bf16.gmra.mrb[12].mxu0 %v15531_v36  ;;  %v15564_v36 = vld [vmem:[%s16025_s13 + $0x404] ss:$372 sps:$4 sm:$0xff]  }
 0x2a3   : > { %10572 = vmatmul.mubr.bf16.gmra.mrb[12].mxu1 %v15534_v20 }
 0x2a4   : > { %10677 = vmatprep.mubr.bf16.mxu1 %v15550_v35  ;;  %v15580_v35 = vld [vmem:[%s19059_s1 + $0x12e0] sm:$0xff]  }
 0x2ad   : > { %v13604_v1 = vpop.f32.mrb[176].mxu1 }
 0x2ae   : > { %v13605_v26 = vpop.f32.mrb[177].mxu1 }
 0x2af   : > { %v13606_v21 = vadd.f32 %v13605_v26, %v13604_v1  ;;  %v13607_v22 = vpop.f32.mrb[178].mxu1  ;;  %v15527_v26 = vld [vmem:[%s19059_s1 + $0x1168] sm:$0xff]  }
 0x2b0   : > { %v13608_v60 = vpop.f32.mrb[179].mxu1  ;;  %14038 = vmatprep.subr.bf16.mxu0 %v15527_v26 }
 0x2b1   : > { %v18155_v38 = vadd.f32 %v13606_v21, %v9835_v24  ;;  %v13609_v50 = vadd.f32 %v13608_v60, %v13607_v22  ;;  %v13576_v8 = vpop.f32.mrb[184].mxu0  ;;  %v15529_v24 = vld [vmem:[%s19059_s1 + $0x1128] sm:$0xff]  }
 0x2b2   : > { %v13577_v6 = vpop.f32.mrb[185].mxu0  ;;  %14039 = vmatpush3.bf16.msra.mxu0 %v15529_v24 }
 0x2b3   : > { %v18165_v13 = vadd.f32 %v13609_v50, %v9838_v30  ;;  %v13578_v1 = vadd.f32 %v13577_v6, %v13576_v8  ;;  %v13579_v9 = vpop.f32.mrb[186].mxu0  ;;  %14040 = vmatprep.subr.bf16.mxu0 %v15537_v31  ;;  %v15552_v8 = vld [vmem:[%s19059_s1 + $0x12c0] sm:$0xff]  }
 0x2b4   : > { %v13580_v27 = vpop.f32.mrb[187].mxu0  ;;  %v15554_v6 = vld [vmem:[%s19059_s1 + $0x1280] sm:$0xff]  }
 0x2b5   : > { %v13610_v63 = vpop.f32.mrb[180].mxu1  ;;  %v9851_v25 = vadd.f32 %v13578_v1, %v18087_v47  ;;  %v13581_v44 = vadd.f32 %v13580_v27, %v13579_v9  ;;  %v15530_v47 = vld [vmem:[%s19059_s1 + $0x11a8] sm:$0xff]  }
 0x2b6   : > { %v13611_v37 = vpop.f32.mrb[181].mxu1  ;;  %14079 = vmatpush3.bf16.msra.mxu1 %v15530_v47  ;;  %14041 = vmatpush3.bf16.msra.mxu0 %v15539_v28  ;;  %v15556_v9 = vld [vmem:[%s19059_s1 + $0x12c8] sm:$0xff]  }
 0x2b7   : > { %v13612_v43 = vadd.f32 %v13611_v37, %v13610_v63  ;;  %v13613_v56 = vpop.f32.mrb[182].mxu1  ;;  %v9854_v60 = vadd.f32 %v13581_v44, %v18100_v41  ;;  %14080 = vmatprep.subr.bf16.mxu1 %v15538_v33  ;;  %v15541_v37 = vld [vmem:[%s19059_s1 + $0x1178] sm:$0xff]  }
 0x2b8   : > { %v13614_v5 = vpop.f32.mrb[183].mxu1  ;;  %14042 = vmatprep.subr.bf16.mxu0 %v15541_v37  ;;  %v15559_v44 = vld [vmem:[%s16025_s13 + $0x3f8] ss:$372 sps:$4 sm:$0xff]  }
 0x2b9   : > { %v18189_v17 = vadd.f32 %v13612_v43, %v9843_v14  ;;  %v13615_v3 = vadd.f32 %v13614_v5, %v13613_v56  ;;  %v15543_v14 = vld [vmem:[%s19059_s1 + $0x1138] sm:$0xff]   ;;  %v15547_v5 = vld [vmem:[%s16025_s13 + $0x114] ss:$372 sps:$4 sm:$0xff]  }
 0x2ba   : > { %v13582_v50 = vpop.f32.mrb[188].mxu0  ;;  %14081 = vmatpush3.bf16.msra.mxu1 %v15540_v40  ;;  %14043 = vmatpush3.bf16.msra.mxu0 %v15543_v14 }
 0x2bb   : > { %v18202_v32 = vadd.f32 %v13615_v3, %v9846_v62  ;;  %v13583_v41 = vpop.f32.mrb[189].mxu0  ;;  %14082 = vmatprep.subr.bf16.mxu1 %v15542_v45  ;;  %v15548_v3 = vld [vmem:[%s16025_s13 + $0x118] ss:$372 sps:$4 sm:$0xff]   ;;  %10612 = vmatprep.mubr.bf16.mxu0 %v15547_v5 }
 0x2bc   : > { %v13584_v63 = vadd.f32 %v13583_v41, %v13582_v50  ;;  %v13585_v34 = vpop.f32.mrb[190].mxu0  ;;  %14108 = vmatprep.subr.bf16.mxu0 %v15551_v58  ;;  %v15568_v41 = vld [vmem:[%s19059_s1 + $0x1290] sm:$0xff]   ;;  %v15578_v5 = vld [vmem:[%s16025_s13 + $0x6ec] ss:$372 sps:$4 sm:$0xff]  }
 0x2bd   : > { %v13616_v59 = vpop.f32.mrb[184].mxu1  ;;  %v13586_v51 = vpop.f32.mrb[191].mxu0  ;;  %10613 = vmatmul.mubr.bf16.vlgmr.msra.gmra.mrb[16].mxu0 %v15545_v46  ;;  %v15576_v46 = vld [vmem:[%s16025_s13 + $0x6e8] ss:$372 sps:$4 sm:$0xff]   ;;  %v15581_v58 = vld [vmem:[%s19059_s1 + $0x1220] sm:$0xff]  }
 0x2be   : > { %v13617_v12 = vpop.f32.mrb[185].mxu1  ;;  %v9859_v55 = vadd.f32 %v13584_v63, %v18124_v48  ;;  %v13587_v54 = vadd.f32 %v13586_v51, %v13585_v34  ;;  %v15544_v48 = vld [vmem:[%s19059_s1 + $0x11b8] sm:$0xff]  }
 0x2bf   : > { %v13618_v11 = vadd.f32 %v13617_v12, %v13616_v59  ;;  %v13619_v21 = vpop.f32.mrb[186].mxu1  ;;  %14083 = vmatpush3.bf16.msra.mxu1 %v15544_v48  ;;  %v15555_v12 = vld [vmem:[%s19059_s1 + $0x1248] sm:$0xff]   ;;  %v15570_v34 = vld [vmem:[%s19059_s1 + $0x12d8] sm:$0xff]  }
 0x2c0   : > { %v13620_v10 = vpop.f32.mrb[187].mxu1  ;;  %v9862_v7 = vadd.f32 %v13587_v54, %v18134_v19  ;;  %v15553_v19 = vld [vmem:[%s19059_s1 + $0x1200] sm:$0xff]   ;;  %14148 = vmatprep.subr.bf16.mxu1 %v15552_v8 }
 0x2c1   : > { %v18223_v22 = vadd.f32 %v13618_v11, %v9851_v25  ;;  %v13621_v29 = vadd.f32 %v13620_v10, %v13619_v21  ;;  %14109 = vmatpush3.bf16.msra.mxu0 %v15553_v19  ;;  %v15557_v25 = vld [vmem:[%s19059_s1 + $0x1208] sm:$0xff]   ;;  %v15561_v10 = vld [vmem:[%s16025_s13 + $0x3fc] ss:$372 sps:$4 sm:$0xff]   ;;  %v15573_v54 = vld [vmem:[%s16025_s13 + $0x6e0] ss:$372 sps:$4 sm:$0xff]  }
 0x2c2   : > { %10678 = vmatmul.mubr.bf16.vlgmr.msra.gmra.mrb[16].mxu1 %v15548_v3  ;;  %14110 = vmatprep.subr.bf16.mxu0 %v15555_v12  ;;  %v15575_v48 = vld [vmem:[%s16025_s13 + $0x6e4] ss:$372 sps:$4 sm:$0xff]  }
 0x2c3   : > { %v18233_v30 = vadd.f32 %v13621_v29, %v9854_v60  ;;  %14149 = vmatpush3.bf16.msra.mxu1 %v15554_v6  ;;  %v15562_v29 = vld [vmem:[%s16025_s13 + $0x400] ss:$372 sps:$4 sm:$0xff]   ;;  %10620 = vmatprep.mubr.bf16.mxu0 %v15561_v10 }
 0x2c4   : > { %14150 = vmatprep.subr.bf16.mxu1 %v15556_v9  ;;  %10685 = vmatprep.mubr.bf16.mxu1 %v15564_v36  ;;  %v15579_v3 = vld [vmem:[%s19059_s1 + $0x1260] sm:$0xff]   ;;  %v15592_v10 = vld [vmem:[%s16025_s13 + $0x9d4] ss:$372 sps:$4 sm:$0xff]  }
 0x2c5   : > { %v13622_v49 = vpop.f32.mrb[188].mxu1  ;;  %14111 = vmatpush3.bf16.msra.mxu0 %v15557_v25 }
 0x2c6   : > { %v13623_v42 = vpop.f32.mrb[189].mxu1  ;;  %10621 = vmatmul.mubr.bf16.gmra.mrb[20].mxu0 %v15559_v44  ;;  %14112 = vmatprep.subr.bf16.mxu0 %v15565_v39 }
 0x2c7   : > { %v13624_v23 = vadd.f32 %v13623_v42, %v13622_v49  ;;  %v13625_v43 = vpop.f32.mrb[190].mxu1  ;;  %v15569_v42 = vld [vmem:[%s19059_s1 + $0x1258] sm:$0xff]   ;;  %10628 = vmatprep.mubr.bf16.mxu0 %v15575_v48  ;;  %v15607_v48 = vld [vmem:[%s19059_s1 + $0x1340] sm:$0xff]  }
 0x2c8   : > { %v13626_v61 = vpop.f32.mrb[191].mxu1 }
 0x2c9   : > { %v18257_v56 = vadd.f32 %v13624_v23, %v9859_v55  ;;  %v13627_v2 = vadd.f32 %v13626_v61, %v13625_v43  ;;  %v15571_v55 = vld [vmem:[%s19059_s1 + $0x1218] sm:$0xff]  }
 0x2ca   : > { %10686 = vmatmul.mubr.bf16.gmra.mrb[20].mxu1 %v15562_v29  ;;  %v15593_v29 = vld [vmem:[%s19059_s1 + $0x1270] sm:$0xff]  }
 0x2cb   : > { %v13644_v52 = vpop.f32.mrb[192].mxu0  ;;  %v18267_v62 = vadd.f32 %v13627_v2, %v9862_v7  ;;  %10693 = vmatprep.mubr.bf16.mxu1 %v15578_v5  ;;  %v15608_v5 = vld [vmem:[%s19059_s1 + $0x13c0] sm:$0xff]  }
 0x2cc   : > { %v13645_v4 = vpop.f32.mrb[193].mxu0 }
 0x2cd   : > { %v13646_v59 = vadd.f32 %v13645_v4, %v13644_v52  ;;  %v13647_v1 = vpop.f32.mrb[194].mxu0  ;;  %v15582_v4 = vld [vmem:[%s19059_s1 + $0x12a0] sm:$0xff]  }
 0x2ce   : > { %v13648_v26 = vpop.f32.mrb[195].mxu0  ;;  %10629 = vmatmul.mubr.bf16.gmra.mrb[24].mxu0 %v15573_v54  ;;  %v15606_v54 = vld [vmem:[%s16025_s13 + $0x12c] ss:$372 sps:$4 sm:$0xff]  }
 0x2cf   : > { %v9965_v16 = vadd.f32 %v13646_v59, %v18155_v38  ;;  %v13649_v18 = vadd.f32 %v13648_v26, %v13647_v1  ;;  %v15558_v38 = vld [vmem:[%s19059_s1 + $0x1288] sm:$0xff]  }
 0x2d0   : > { %14151 = vmatpush3.bf16.msra.mxu1 %v15558_v38  ;;  %v15584_v1 = vld [vmem:[%s19059_s1 + $0x12e8] sm:$0xff]  }
 0x2d1   : > { %v9968_v47 = vadd.f32 %v13649_v18, %v18165_v13  ;;  %v15567_v13 = vld [vmem:[%s19059_s1 + $0x1210] sm:$0xff]   ;;  %14152 = vmatprep.subr.bf16.mxu1 %v15566_v53  ;;  %v15587_v18 = vld [vmem:[%s16025_s13 + $0x9c8] ss:$372 sps:$4 sm:$0xff]  }
 0x2d2   : > { %14113 = vmatpush3.bf16.msra.mxu0 %v15567_v13  ;;  %10694 = vmatmul.mubr.bf16.gmra.mrb[24].mxu1 %v15576_v46 }
 0x2d3   : > { %v13684_v57 = vpop.f32.mrb[192].mxu1  ;;  %14114 = vmatprep.subr.bf16.mxu0 %v15569_v42  ;;  %10701 = vmatprep.mubr.bf16.mxu1 %v15592_v10  ;;  %v15622_v10 = vld [vmem:[%s19059_s1 + $0x13d0] sm:$0xff]  }
 0x2d4   : > { %v13685_v0 = vpop.f32.mrb[193].mxu1  ;;  %14153 = vmatpush3.bf16.msra.mxu1 %v15568_v41 }
 0x2d5   : > { %v13686_v15 = vadd.f32 %v13685_v0, %v13684_v57  ;;  %v13687_v11 = vpop.f32.mrb[194].mxu1  ;;  %v13650_v60 = vpop.f32.mrb[196].mxu0  ;;  %14154 = vmatprep.subr.bf16.mxu1 %v15570_v34  ;;  %v15583_v0 = vld [vmem:[%s19059_s1 + $0x1268] sm:$0xff]  }
 0x2d6   : > { %v13688_v27 = vpop.f32.mrb[195].mxu1  ;;  %v13651_v31 = vpop.f32.mrb[197].mxu0  ;;  %14115 = vmatpush3.bf16.msra.mxu0 %v15571_v55 }
 0x2d7   : > { %v18291_v21 = vadd.f32 %v13686_v15, %v9965_v16  ;;  %v13689_v24 = vadd.f32 %v13688_v27, %v13687_v11  ;;  %v13652_v49 = vadd.f32 %v13651_v31, %v13650_v60  ;;  %v13653_v63 = vpop.f32.mrb[198].mxu0  ;;  %14116 = vmatprep.subr.bf16.mxu0 %v15579_v3  ;;  %v15585_v16 = vld [vmem:[%s19059_s1 + $0x1228] sm:$0xff]   ;;  %v15594_v60 = vld [vmem:[%s19059_s1 + $0x12f0] sm:$0xff]  }
 0x2d8   : > { %v13654_v37 = vpop.f32.mrb[199].mxu0  ;;  %v15589_v27 = vld [vmem:[%s16025_s13 + $0x9cc] ss:$372 sps:$4 sm:$0xff]   ;;  %v15596_v31 = vld [vmem:[%s19059_s1 + $0x12b0] sm:$0xff]  }
 0x2d9   : > { %v18304_v50 = vadd.f32 %v13689_v24, %v9968_v47  ;;  %v9973_v40 = vadd.f32 %v13652_v49, %v18189_v17  ;;  %v13655_v45 = vadd.f32 %v13654_v37, %v13653_v63  ;;  %v15572_v17 = vld [vmem:[%s19059_s1 + $0x1298] sm:$0xff]   ;;  %v15590_v24 = vld [vmem:[%s16025_s13 + $0x9d0] ss:$372 sps:$4 sm:$0xff]   ;;  %10636 = vmatprep.mubr.bf16.mxu0 %v15589_v27  ;;  %v15620_v27 = vld [vmem:[%s16025_s13 + $0x414] ss:$372 sps:$4 sm:$0xff]  }
 0x2da   : > { %14155 = vmatpush3.bf16.msra.mxu1 %v15572_v17  ;;  %14117 = vmatpush3.bf16.msra.mxu0 %v15581_v58  ;;  %v15598_v63 = vld [vmem:[%s19059_s1 + $0x12f8] sm:$0xff]  }
 0x2db   : > { %v9976_v61 = vadd.f32 %v13655_v45, %v18202_v32  ;;  %14156 = vmatprep.subr.bf16.mxu1 %v15580_v35  ;;  %14118 = vmatprep.subr.bf16.mxu0 %v15583_v0  ;;  %v15601_v45 = vld [vmem:[%s16025_s13 + $0x120] ss:$372 sps:$4 sm:$0xff]  }
 0x2dc   : > { %v13690_v20 = vpop.f32.mrb[196].mxu1  ;;  %10637 = vmatmul.mubr.bf16.gmra.mrb[28].mxu0 %v15587_v18  ;;  %10702 = vmatmul.mubr.bf16.gmra.mrb[28].mxu1 %v15590_v24  ;;  %v15618_v18 = vld [vmem:[%s16025_s13 + $0x410] ss:$372 sps:$4 sm:$0xff]  }
 0x2dd   : > { %v13691_v33 = vpop.f32.mrb[197].mxu1  ;;  %10807 = vmatprep.mubr.bf16.mxu1 %v15606_v54  ;;  %v15621_v24 = vld [vmem:[%s19059_s1 + $0x1350] sm:$0xff]  }
 0x2de   : > { %v13692_v28 = vadd.f32 %v13691_v33, %v13690_v20  ;;  %v13693_v23 = vpop.f32.mrb[198].mxu1  ;;  %14157 = vmatpush3.bf16.msra.mxu1 %v15582_v4  ;;  %14119 = vmatpush3.bf16.msra.mxu0 %v15585_v16  ;;  %v15597_v33 = vld [vmem:[%s19059_s1 + $0x1278] sm:$0xff]  }
 0x2df   : > { %v13694_v51 = vpop.f32.mrb[199].mxu1  ;;  %v13656_v2 = vpop.f32.mrb[200].mxu0  ;;  %14158 = vmatprep.subr.bf16.mxu1 %v15584_v1  ;;  %14120 = vmatprep.subr.bf16.mxu0 %v15593_v29  ;;  %v15623_v29 = vld [vmem:[%s19059_s1 + $0x1310] sm:$0xff]  }
 0x2e0   : > { %v18325_v43 = vadd.f32 %v13692_v28, %v9973_v40  ;;  %v13695_v14 = vadd.f32 %v13694_v51, %v13693_v23  ;;  %v13657_v32 = vpop.f32.mrb[201].mxu0  ;;  %v15599_v40 = vld [vmem:[%s19059_s1 + $0x1238] sm:$0xff]  }
 0x2e1   : > { %v13658_v57 = vadd.f32 %v13657_v32, %v13656_v2  ;;  %v13659_v59 = vpop.f32.mrb[202].mxu0  ;;  %v15603_v51 = vld [vmem:[%s16025_s13 + $0x124] ss:$372 sps:$4 sm:$0xff]  }
 0x2e2   : > { %v18335_v7 = vadd.f32 %v13695_v14, %v9976_v61  ;;  %v13660_v12 = vpop.f32.mrb[203].mxu0  ;;  %v15604_v14 = vld [vmem:[%s16025_s13 + $0x128] ss:$372 sps:$4 sm:$0xff]   ;;  %10742 = vmatprep.mubr.bf16.mxu0 %v15603_v51  ;;  %v15610_v32 = vld [vmem:[%s19059_s1 + $0x1380] sm:$0xff]  }
 0x2e3   : > { %v9981_v6 = vadd.f32 %v13658_v57, %v18223_v22  ;;  %v13661_v9 = vadd.f32 %v13660_v12, %v13659_v59  ;;  %v15586_v22 = vld [vmem:[%s19059_s1 + $0x12a8] sm:$0xff]   ;;  %v15634_v51 = vld [vmem:[%s16025_s13 + $0x6fc] ss:$372 sps:$4 sm:$0xff]  }
 0x2e4   : > { %v13696_v52 = vpop.f32.mrb[200].mxu1  ;;  %14159 = vmatpush3.bf16.msra.mxu1 %v15586_v22  ;;  %v15612_v59 = vld [vmem:[%s19059_s1 + $0x13c8] sm:$0xff]  }
 0x2e5   : > { %v13697_v8 = vpop.f32.mrb[201].mxu1  ;;  %v9984_v38 = vadd.f32 %v13661_v9, %v18233_v30  ;;  %v15595_v30 = vld [vmem:[%s19059_s1 + $0x1230] sm:$0xff]   ;;  %14160 = vmatprep.subr.bf16.mxu1 %v15594_v60  ;;  %v15615_v9 = vld [vmem:[%s16025_s13 + $0x408] ss:$372 sps:$4 sm:$0xff]   ;;  %v15617_v22 = vld [vmem:[%s16025_s13 + $0x40c] ss:$372 sps:$4 sm:$0xff]  }
 0x2e6   : > { %v13698_v19 = vadd.f32 %v13697_v8, %v13696_v52  ;;  %v13699_v15 = vpop.f32.mrb[202].mxu1  ;;  %14121 = vmatpush3.bf16.msra.mxu0 %v15595_v30  ;;  %v15611_v8 = vld [vmem:[%s19059_s1 + $0x1348] sm:$0xff]  }
 0x2e7   : > { %v13700_v26 = vpop.f32.mrb[203].mxu1  ;;  %v13662_v44 = vpop.f32.mrb[204].mxu0  ;;  %14122 = vmatprep.subr.bf16.mxu0 %v15597_v33 }
 0x2e8   : > { %v18359_v11 = vadd.f32 %v13698_v19, %v9981_v6  ;;  %v13701_v25 = vadd.f32 %v13700_v26, %v13699_v15  ;;  %v13663_v39 = vpop.f32.mrb[205].mxu0  ;;  %14161 = vmatpush3.bf16.msra.mxu1 %v15596_v31  ;;  %v15613_v6 = vld [vmem:[%s19059_s1 + $0x1308] sm:$0xff]  }
 0x2e9   : > { %v13664_v20 = vadd.f32 %v13663_v39, %v13662_v44  ;;  %v13665_v49 = vpop.f32.mrb[206].mxu0  ;;  %14162 = vmatprep.subr.bf16.mxu1 %v15598_v63  ;;  %v15624_v39 = vld [vmem:[%s19059_s1 + $0x1390] sm:$0xff]  }
 0x2ea   : > { %v18369_v47 = vadd.f32 %v13701_v25, %v9984_v38  ;;  %v13666_v42 = vpop.f32.mrb[207].mxu0  ;;  %14123 = vmatpush3.bf16.msra.mxu0 %v15599_v40 }
 0x2eb   : > { %v9989_v41 = vadd.f32 %v13664_v20, %v18257_v56  ;;  %v13667_v34 = vadd.f32 %v13666_v42, %v13665_v49  ;;  %v15600_v56 = vld [vmem:[%s19059_s1 + $0x12b8] sm:$0xff]   ;;  %14188 = vmatprep.subr.bf16.mxu0 %v15607_v48 }
 0x2ec   : > { %v13702_v36 = vpop.f32.mrb[204].mxu1  ;;  %14163 = vmatpush3.bf16.msra.mxu1 %v15600_v56  ;;  %v15626_v49 = vld [vmem:[%s19059_s1 + $0x13d8] sm:$0xff]  }
 0x2ed   : > { %v13703_v53 = vpop.f32.mrb[205].mxu1  ;;  %v9992_v17 = vadd.f32 %v13667_v34, %v18267_v62  ;;  %10743 = vmatmul.mubr.bf16.vlgmr.msra.gmra.mrb[32].mxu0 %v15601_v45  ;;  %v15609_v62 = vld [vmem:[%s19059_s1 + $0x1300] sm:$0xff]   ;;  %14228 = vmatprep.subr.bf16.mxu1 %v15608_v5 }
 0x2ee   : > { %v13704_v13 = vadd.f32 %v13703_v53, %v13702_v36  ;;  %v13705_v28 = vpop.f32.mrb[206].mxu1  ;;  %14189 = vmatpush3.bf16.msra.mxu0 %v15609_v62  ;;  %10750 = vmatprep.mubr.bf16.mxu0 %v15617_v22  ;;  %v15625_v53 = vld [vmem:[%s19059_s1 + $0x1358] sm:$0xff]   ;;  %v15629_v34 = vld [vmem:[%s16025_s13 + $0x6f0] ss:$372 sps:$4 sm:$0xff]  }
 0x2ef   : > { %v13706_v37 = vpop.f32.mrb[207].mxu1  ;;  %10808 = vmatmul.mubr.bf16.vlgmr.msra.gmra.mrb[32].mxu1 %v15604_v14  ;;  %14190 = vmatprep.subr.bf16.mxu0 %v15611_v8  ;;  %v15635_v14 = vld [vmem:[%s19059_s1 + $0x1360] sm:$0xff]   ;;  %v15649_v22 = vld [vmem:[%s19059_s1 + $0x1370] sm:$0xff]  }
 0x2f0   : > { %v18393_v23 = vadd.f32 %v13704_v13, %v9989_v41  ;;  %v13707_v55 = vadd.f32 %v13706_v37, %v13705_v28  ;;  %14229 = vmatpush3.bf16.msra.mxu1 %v15610_v32  ;;  %10815 = vmatprep.mubr.bf16.mxu1 %v15620_v27  ;;  %v15627_v41 = vld [vmem:[%s19059_s1 + $0x1318] sm:$0xff]   ;;  %v15631_v37 = vld [vmem:[%s16025_s13 + $0x6f4] ss:$372 sps:$4 sm:$0xff]  }
 0x2f1   : > { %14230 = vmatprep.subr.bf16.mxu1 %v15612_v59  ;;  %v15650_v27 = vld [vmem:[%s19059_s1 + $0x13f0] sm:$0xff]  }
 0x2f2   : > { %v18406_v2 = vadd.f32 %v13707_v55, %v9992_v17  ;;  %14191 = vmatpush3.bf16.msra.mxu0 %v15613_v6  ;;  %v15632_v55 = vld [vmem:[%s16025_s13 + $0x6f8] ss:$372 sps:$4 sm:$0xff]  }
 0x2f3   : > { %14192 = vmatprep.subr.bf16.mxu0 %v15621_v24 }
 0x2f4   : > { %v13724_v61 = vpop.f32.mrb[208].mxu0 }
 0x2f5   : > { %v13725_v3 = vpop.f32.mrb[209].mxu0  ;;  %10751 = vmatmul.mubr.bf16.gmra.mrb[36].mxu0 %v15615_v9  ;;  %v15648_v9 = vld [vmem:[%s16025_s13 + $0x9e4] ss:$372 sps:$4 sm:$0xff]  }
 0x2f6   : > { %v13764_v46 = vpop.f32.mrb[208].mxu1  ;;  %v13726_v52 = vadd.f32 %v13725_v3, %v13724_v61  ;;  %v13727_v57 = vpop.f32.mrb[210].mxu0  ;;  %14193 = vmatpush3.bf16.msra.mxu0 %v15623_v29  ;;  %10758 = vmatprep.mubr.bf16.mxu0 %v15631_v37  ;;  %v15636_v61 = vld [vmem:[%s19059_s1 + $0x13e0] sm:$0xff]   ;;  %v15662_v37 = vld [vmem:[%s16025_s13 + $0x13c] ss:$372 sps:$4 sm:$0xff]  }
 0x2f7   : > { %v13765_v35 = vpop.f32.mrb[209].mxu1  ;;  %v13728_v0 = vpop.f32.mrb[211].mxu0  ;;  %10816 = vmatmul.mubr.bf16.gmra.mrb[36].mxu1 %v15618_v18  ;;  %14194 = vmatprep.subr.bf16.mxu0 %v15625_v53  ;;  %v15638_v3 = vld [vmem:[%s19059_s1 + $0x13a0] sm:$0xff]  }
 0x2f8   : > { %v13766_v58 = vadd.f32 %v13765_v35, %v13764_v46  ;;  %v10095_v4 = vadd.f32 %v13726_v52, %v18291_v21  ;;  %v13767_v19 = vpop.f32.mrb[210].mxu1  ;;  %v13729_v1 = vadd.f32 %v13728_v0, %v13727_v57  ;;  %v15614_v21 = vld [vmem:[%s19059_s1 + $0x1388] sm:$0xff]   ;;  %10823 = vmatprep.mubr.bf16.mxu1 %v15634_v51  ;;  %v15664_v51 = vld [vmem:[%s19059_s1 + $0x14c0] sm:$0xff]  }
 0x2f9   : > { %v13768_v12 = vpop.f32.mrb[211].mxu1  ;;  %14231 = vmatpush3.bf16.msra.mxu1 %v15614_v21  ;;  %v15639_v35 = vld [vmem:[%s19059_s1 + $0x1368] sm:$0xff]  }
 0x2fa   : > { %v18427_v15 = vadd.f32 %v13766_v58, %v10095_v4  ;;  %v13769_v16 = vadd.f32 %v13768_v12, %v13767_v19  ;;  %v10098_v26 = vadd.f32 %v13729_v1, %v18304_v50  ;;  %14232 = vmatprep.subr.bf16.mxu1 %v15622_v10  ;;  %14195 = vmatpush3.bf16.msra.mxu0 %v15627_v41  ;;  %v15640_v57 = vld [vmem:[%s19059_s1 + $0x13e8] sm:$0xff]   ;;  %v15645_v12 = vld [vmem:[%s16025_s13 + $0x9dc] ss:$372 sps:$4 sm:$0xff]  }
 0x2fb   : > { %14196 = vmatprep.subr.bf16.mxu0 %v15635_v14  ;;  %v15641_v4 = vld [vmem:[%s19059_s1 + $0x1328] sm:$0xff]   ;;  %v15665_v14 = vld [vmem:[%s19059_s1 + $0x1400] sm:$0xff]  }
 0x2fc   : > { %v13730_v25 = vpop.f32.mrb[212].mxu0  ;;  %v18437_v38 = vadd.f32 %v13769_v16, %v10098_v26  ;;  %v15643_v1 = vld [vmem:[%s16025_s13 + $0x9d8] ss:$372 sps:$4 sm:$0xff]   ;;  %v15646_v16 = vld [vmem:[%s16025_s13 + $0x9e0] ss:$372 sps:$4 sm:$0xff]  }
 0x2fd   : > { %v13731_v50 = vpop.f32.mrb[213].mxu0  ;;  %14233 = vmatpush3.bf16.msra.mxu1 %v15624_v39  ;;  %10759 = vmatmul.mubr.bf16.gmra.mrb[40].mxu0 %v15629_v34  ;;  %v15660_v34 = vld [vmem:[%s16025_s13 + $0x138] ss:$372 sps:$4 sm:$0xff]  }
 0x2fe   : > { %v13770_v44 = vpop.f32.mrb[212].mxu1  ;;  %v13732_v36 = vadd.f32 %v13731_v50, %v13730_v25  ;;  %v13733_v20 = vpop.f32.mrb[214].mxu0  ;;  %14234 = vmatprep.subr.bf16.mxu1 %v15626_v49  ;;  %10766 = vmatprep.mubr.bf16.mxu0 %v15645_v12  ;;  %v15652_v50 = vld [vmem:[%s19059_s1 + $0x13b0] sm:$0xff]   ;;  %v15676_v12 = vld [vmem:[%s16025_s13 + $0x424] ss:$372 sps:$4 sm:$0xff]  }
 0x2ff   : > { %v13771_v60 = vpop.f32.mrb[213].mxu1  ;;  %v13734_v33 = vpop.f32.mrb[215].mxu0  ;;  %10824 = vmatmul.mubr.bf16.gmra.mrb[40].mxu1 %v15632_v55  ;;  %v15663_v55 = vld [vmem:[%s19059_s1 + $0x1440] sm:$0xff]  }
 0x300   : > { %v13772_v30 = vadd.f32 %v13771_v60, %v13770_v44  ;;  %v10103_v31 = vadd.f32 %v13732_v36, %v18325_v43  ;;  %v13773_v13 = vpop.f32.mrb[214].mxu1  ;;  %v13735_v63 = vadd.f32 %v13734_v33, %v13733_v20  ;;  %v15628_v43 = vld [vmem:[%s19059_s1 + $0x1398] sm:$0xff]   ;;  %10831 = vmatprep.mubr.bf16.mxu1 %v15648_v9 }
 0x301   : > { %v13774_v42 = vpop.f32.mrb[215].mxu1  ;;  %14235 = vmatpush3.bf16.msra.mxu1 %v15628_v43  ;;  %v15653_v60 = vld [vmem:[%s19059_s1 + $0x1378] sm:$0xff]   ;;  %v15659_v43 = vld [vmem:[%s16025_s13 + $0x134] ss:$372 sps:$4 sm:$0xff]  }
 0x302   : > { %v18461_v28 = vadd.f32 %v13772_v30, %v10103_v31  ;;  %v13775_v40 = vadd.f32 %v13774_v42, %v13773_v13  ;;  %v10106_v56 = vadd.f32 %v13735_v63, %v18335_v7  ;;  %v15637_v7 = vld [vmem:[%s19059_s1 + $0x1320] sm:$0xff]   ;;  %14236 = vmatprep.subr.bf16.mxu1 %v15636_v61  ;;  %v15654_v20 = vld [vmem:[%s19059_s1 + $0x13f8] sm:$0xff]  }
 0x303   : > { %14197 = vmatpush3.bf16.msra.mxu0 %v15637_v7  ;;  %v15655_v31 = vld [vmem:[%s19059_s1 + $0x1338] sm:$0xff]   ;;  %v15657_v63 = vld [vmem:[%s16025_s13 + $0x130] ss:$372 sps:$4 sm:$0xff]  }
 0x304   : > { %v13736_v45 = vpop.f32.mrb[216].mxu0  ;;  %v18471_v17 = vadd.f32 %v13775_v40, %v10106_v56  ;;  %14198 = vmatprep.subr.bf16.mxu0 %v15639_v35 }
 0x305   : > { %v13737_v48 = vpop.f32.mrb[217].mxu0  ;;  %14237 = vmatpush3.bf16.msra.mxu1 %v15638_v3  ;;  %10767 = vmatmul.mubr.bf16.gmra.mrb[44].mxu0 %v15643_v1 }
 0x306   : > { %v13776_v54 = vpop.f32.mrb[216].mxu1  ;;  %v13738_v46 = vadd.f32 %v13737_v48, %v13736_v45  ;;  %v13739_v52 = vpop.f32.mrb[218].mxu0  ;;  %14238 = vmatprep.subr.bf16.mxu1 %v15640_v57  ;;  %10872 = vmatprep.mubr.bf16.mxu0 %v15659_v43  ;;  %v15666_v48 = vld [vmem:[%s19059_s1 + $0x1480] sm:$0xff]  }
 0x307   : > { %v13777_v5 = vpop.f32.mrb[217].mxu1  ;;  %v13740_v8 = vpop.f32.mrb[219].mxu0  ;;  %14199 = vmatpush3.bf16.msra.mxu0 %v15641_v4  ;;  %10832 = vmatmul.mubr.bf16.gmra.mrb[44].mxu1 %v15646_v16  ;;  %v15677_v16 = vld [vmem:[%s19059_s1 + $0x1450] sm:$0xff]   ;;  %v15691_v43 = vld [vmem:[%s19059_s1 + $0x1460] sm:$0xff]  }
 0x308   : > { %v13778_v62 = vadd.f32 %v13777_v5, %v13776_v54  ;;  %v10111_v32 = vadd.f32 %v13738_v46, %v18359_v11  ;;  %v13779_v58 = vpop.f32.mrb[218].mxu1  ;;  %v13741_v59 = vadd.f32 %v13740_v8, %v13739_v52  ;;  %v15642_v11 = vld [vmem:[%s19059_s1 + $0x13a8] sm:$0xff]   ;;  %14200 = vmatprep.subr.bf16.mxu0 %v15649_v22  ;;  %10937 = vmatprep.mubr.bf16.mxu1 %v15662_v37  ;;  %v15692_v37 = vld [vmem:[%s19059_s1 + $0x14e0] sm:$0xff]  }
 0x309   : > { %v13780_v0 = vpop.f32.mrb[219].mxu1  ;;  %14239 = vmatpush3.bf16.msra.mxu1 %v15642_v11  ;;  %v15667_v5 = vld [vmem:[%s19059_s1 + $0x1448] sm:$0xff]  }
 0x30a   : > { %v18495_v19 = vadd.f32 %v13778_v62, %v10111_v32  ;;  %v13781_v6 = vadd.f32 %v13780_v0, %v13779_v58  ;;  %v10114_v21 = vadd.f32 %v13741_v59, %v18369_v47  ;;  %v15651_v47 = vld [vmem:[%s19059_s1 + $0x1330] sm:$0xff]   ;;  %14240 = vmatprep.subr.bf16.mxu1 %v15650_v27  ;;  %v15668_v52 = vld [vmem:[%s19059_s1 + $0x14c8] sm:$0xff]  }
 0x30b   : > { %14201 = vmatpush3.bf16.msra.mxu0 %v15651_v47  ;;  %v15669_v32 = vld [vmem:[%s19059_s1 + $0x1408] sm:$0xff]   ;;  %v15673_v0 = vld [vmem:[%s16025_s13 + $0x41c] ss:$372 sps:$4 sm:$0xff]  }
 0x30c   : > { %v18508_v25 = vadd.f32 %v13781_v6, %v10114_v21  ;;  %14202 = vmatprep.subr.bf16.mxu0 %v15653_v60  ;;  %v15671_v59 = vld [vmem:[%s16025_s13 + $0x418] ss:$372 sps:$4 sm:$0xff]   ;;  %v15674_v6 = vld [vmem:[%s16025_s13 + $0x420] ss:$372 sps:$4 sm:$0xff]  }
 0x30d   : > { %14241 = vmatpush3.bf16.msra.mxu1 %v15652_v50 }
 0x30e   : > { %v13782_v18 = vpop.f32.mrb[220].mxu1  ;;  %14242 = vmatprep.subr.bf16.mxu1 %v15654_v20 }
 0x30f   : > { %v13783_v10 = vpop.f32.mrb[221].mxu1  ;;  %14203 = vmatpush3.bf16.msra.mxu0 %v15655_v31 }
 0x310   : > { %v13742_v26 = vpop.f32.mrb[220].mxu0  ;;  %v13784_v29 = vadd.f32 %v13783_v10, %v13782_v18  ;;  %v13785_v30 = vpop.f32.mrb[222].mxu1  ;;  %14268 = vmatprep.subr.bf16.mxu0 %v15663_v55  ;;  %v15681_v10 = vld [vmem:[%s19059_s1 + $0x1458] sm:$0xff]  }
 0x311   : > { %v13743_v24 = vpop.f32.mrb[221].mxu0  ;;  %v13786_v33 = vpop.f32.mrb[223].mxu1 }
 0x312   : > { %v13744_v44 = vadd.f32 %v13743_v24, %v13742_v26  ;;  %v13745_v36 = vpop.f32.mrb[222].mxu0  ;;  %v13787_v41 = vadd.f32 %v13786_v33, %v13785_v30  ;;  %10873 = vmatmul.mubr.bf16.vlgmr.msra.gmra.mrb[48].mxu0 %v15657_v63  ;;  %v15678_v26 = vld [vmem:[%s19059_s1 + $0x14d0] sm:$0xff]   ;;  %v15687_v33 = vld [vmem:[%s16025_s13 + $0x704] ss:$372 sps:$4 sm:$0xff]   ;;  %v15690_v63 = vld [vmem:[%s16025_s13 + $0x70c] ss:$372 sps:$4 sm:$0xff]  }
 0x313   : > { %v13746_v53 = vpop.f32.mrb[223].mxu0  ;;  %14269 = vmatpush3.bf16.msra.mxu0 %v15665_v14  ;;  %10880 = vmatprep.mubr.bf16.mxu0 %v15673_v0  ;;  %v15680_v24 = vld [vmem:[%s19059_s1 + $0x1490] sm:$0xff]  }
 0x314   : > { %v10119_v39 = vadd.f32 %v13744_v44, %v18393_v23  ;;  %v13747_v49 = vadd.f32 %v13746_v53, %v13745_v36  ;;  %v15656_v23 = vld [vmem:[%s19059_s1 + $0x13b8] sm:$0xff]   ;;  %14270 = vmatprep.subr.bf16.mxu0 %v15667_v5  ;;  %v15704_v0 = vld [vmem:[%s16025_s13 + $0x9f4] ss:$372 sps:$4 sm:$0xff]  }
 0x315   : > { %14243 = vmatpush3.bf16.msra.mxu1 %v15656_v23  ;;  %v15682_v36 = vld [vmem:[%s19059_s1 + $0x14d8] sm:$0xff]  }
 0x316   : > { %v18529_v13 = vadd.f32 %v13784_v29, %v10119_v39  ;;  %v10122_v42 = vadd.f32 %v13747_v49, %v18406_v2  ;;  %14308 = vmatprep.subr.bf16.mxu1 %v15664_v51  ;;  %v15683_v39 = vld [vmem:[%s19059_s1 + $0x1418] sm:$0xff]   ;;  %v15685_v49 = vld [vmem:[%s16025_s13 + $0x700] ss:$372 sps:$4 sm:$0xff]  }
 0x317   : > { %14271 = vmatpush3.bf16.msra.mxu0 %v15669_v32 }
 0x318   : > { %v13804_v40 = vpop.f32.mrb[224].mxu0  ;;  %v18539_v56 = vadd.f32 %v13787_v41, %v10122_v42  ;;  %10938 = vmatmul.mubr.bf16.vlgmr.msra.gmra.mrb[48].mxu1 %v15660_v34  ;;  %14272 = vmatprep.subr.bf16.mxu0 %v15677_v16  ;;  %v15688_v41 = vld [vmem:[%s16025_s13 + $0x708] ss:$372 sps:$4 sm:$0xff]   ;;  %v15707_v16 = vld [vmem:[%s19059_s1 + $0x1430] sm:$0xff]  }
 0x319   : > { %v13805_v2 = vpop.f32.mrb[225].mxu0  ;;  %14309 = vmatpush3.bf16.msra.mxu1 %v15666_v48  ;;  %10945 = vmatprep.mubr.bf16.mxu1 %v15676_v12  ;;  %v15706_v12 = vld [vmem:[%s19059_s1 + $0x14f0] sm:$0xff]  }
 0x31a   : > { %v13844_v45 = vpop.f32.mrb[224].mxu1  ;;  %v13806_v54 = vadd.f32 %v13805_v2, %v13804_v40  ;;  %v13807_v46 = vpop.f32.mrb[226].mxu0  ;;  %14310 = vmatprep.subr.bf16.mxu1 %v15668_v52  ;;  %10881 = vmatmul.mubr.bf16.gmra.mrb[52].mxu0 %v15671_v59  ;;  %v15694_v2 = vld [vmem:[%s19059_s1 + $0x14a0] sm:$0xff]  }
 0x31b   : > { %v13845_v61 = vpop.f32.mrb[225].mxu1  ;;  %v13808_v35 = vpop.f32.mrb[227].mxu0  ;;  %10888 = vmatprep.mubr.bf16.mxu0 %v15687_v33  ;;  %v15702_v59 = vld [vmem:[%s16025_s13 + $0x9f0] ss:$372 sps:$4 sm:$0xff]   ;;  %v15718_v33 = vld [vmem:[%s16025_s13 + $0x14c] ss:$372 sps:$4 sm:$0xff]  }
 0x31c   : > { %v13846_v7 = vadd.f32 %v13845_v61, %v13844_v45  ;;  %v10225_v3 = vadd.f32 %v13806_v54, %v18427_v15  ;;  %v13847_v62 = vpop.f32.mrb[226].mxu1  ;;  %v13809_v57 = vadd.f32 %v13808_v35, %v13807_v46  ;;  %v15670_v15 = vld [vmem:[%s19059_s1 + $0x1488] sm:$0xff]  }
 0x31d   : > { %v13848_v8 = vpop.f32.mrb[227].mxu1  ;;  %14311 = vmatpush3.bf16.msra.mxu1 %v15670_v15  ;;  %v15695_v61 = vld [vmem:[%s19059_s1 + $0x1468] sm:$0xff]  }
 0x31e   : > { %v18563_v58 = vadd.f32 %v13846_v7, %v10225_v3  ;;  %v13849_v4 = vadd.f32 %v13848_v8, %v13847_v62  ;;  %v10228_v11 = vadd.f32 %v13809_v57, %v18437_v38  ;;  %v15679_v38 = vld [vmem:[%s19059_s1 + $0x1410] sm:$0xff]   ;;  %14312 = vmatprep.subr.bf16.mxu1 %v15678_v26  ;;  %v15696_v46 = vld [vmem:[%s19059_s1 + $0x14e8] sm:$0xff]  }
 0x31f   : > { %14273 = vmatpush3.bf16.msra.mxu0 %v15679_v38  ;;  %v15697_v3 = vld [vmem:[%s19059_s1 + $0x1428] sm:$0xff]  }
 0x320   : > { %v13810_v1 = vpop.f32.mrb[228].mxu0  ;;  %v18573_v21 = vadd.f32 %v13849_v4, %v10228_v11  ;;  %10946 = vmatmul.mubr.bf16.gmra.mrb[52].mxu1 %v15674_v6  ;;  %14274 = vmatprep.subr.bf16.mxu0 %v15681_v10  ;;  %v15699_v57 = vld [vmem:[%s16025_s13 + $0x9e8] ss:$372 sps:$4 sm:$0xff]   ;;  %v15701_v15 = vld [vmem:[%s16025_s13 + $0x9ec] ss:$372 sps:$4 sm:$0xff]   ;;  %v15705_v6 = vld [vmem:[%s19059_s1 + $0x1470] sm:$0xff]  }
 0x321   : > { %v13811_v22 = vpop.f32.mrb[229].mxu0  ;;  %14313 = vmatpush3.bf16.msra.mxu1 %v15680_v24  ;;  %10953 = vmatprep.mubr.bf16.mxu1 %v15690_v63 }
 0x322   : > { %v13850_v9 = vpop.f32.mrb[228].mxu1  ;;  %v13812_v18 = vadd.f32 %v13811_v22, %v13810_v1  ;;  %v13813_v44 = vpop.f32.mrb[230].mxu0  ;;  %14314 = vmatprep.subr.bf16.mxu1 %v15682_v36  ;;  %10889 = vmatmul.mubr.bf16.gmra.mrb[56].mxu0 %v15685_v49  ;;  %v15708_v22 = vld [vmem:[%s19059_s1 + $0x14b0] sm:$0xff]  }
 0x323   : > { %v13851_v27 = vpop.f32.mrb[229].mxu1  ;;  %v13814_v60 = vpop.f32.mrb[231].mxu0  ;;  %14275 = vmatpush3.bf16.msra.mxu0 %v15683_v39  ;;  %10896 = vmatprep.mubr.bf16.mxu0 %v15701_v15  ;;  %v15733_v15 = vld [vmem:[%s19059_s1 + $0x1550] sm:$0xff]  }
 0x324   : > { %v13852_v47 = vadd.f32 %v13851_v27, %v13850_v9  ;;  %v10233_v50 = vadd.f32 %v13812_v18, %v18461_v28  ;;  %v13853_v29 = vpop.f32.mrb[230].mxu1  ;;  %v13815_v20 = vadd.f32 %v13814_v60, %v13813_v44  ;;  %v15684_v28 = vld [vmem:[%s19059_s1 + $0x1498] sm:$0xff]   ;;  %14276 = vmatprep.subr.bf16.mxu0 %v15691_v43 }
 0x325   : > { %v13854_v53 = vpop.f32.mrb[231].mxu1  ;;  %14315 = vmatpush3.bf16.msra.mxu1 %v15684_v28  ;;  %v15709_v27 = vld [vmem:[%s19059_s1 + $0x1478] sm:$0xff]  }
 0x326   : > { %v18597_v30 = vadd.f32 %v13852_v47, %v10233_v50  ;;  %v13855_v31 = vadd.f32 %v13854_v53, %v13853_v29  ;;  %v10236_v23 = vadd.f32 %v13815_v20, %v18471_v17  ;;  %v15693_v17 = vld [vmem:[%s19059_s1 + $0x1420] sm:$0xff]   ;;  %14316 = vmatprep.subr.bf16.mxu1 %v15692_v37  ;;  %v15710_v44 = vld [vmem:[%s19059_s1 + $0x14f8] sm:$0xff]  }
 0x327   : > { %14277 = vmatpush3.bf16.msra.mxu0 %v15693_v17  ;;  %v15711_v50 = vld [vmem:[%s19059_s1 + $0x1438] sm:$0xff]   ;;  %v15713_v20 = vld [vmem:[%s16025_s13 + $0x140] ss:$372 sps:$4 sm:$0xff]  }
 0x328   : > { %v18610_v40 = vadd.f32 %v13855_v31, %v10236_v23  ;;  %10954 = vmatmul.mubr.bf16.gmra.mrb[56].mxu1 %v15688_v41  ;;  %14278 = vmatprep.subr.bf16.mxu0 %v15695_v61  ;;  %v15715_v53 = vld [vmem:[%s16025_s13 + $0x144] ss:$372 sps:$4 sm:$0xff]   ;;  %v15716_v31 = vld [vmem:[%s16025_s13 + $0x148] ss:$372 sps:$4 sm:$0xff]  }
 0x329   : > { %14317 = vmatpush3.bf16.msra.mxu1 %v15694_v2  ;;  %10961 = vmatprep.mubr.bf16.mxu1 %v15704_v0  ;;  %v15719_v41 = vld [vmem:[%s19059_s1 + $0x1540] sm:$0xff]   ;;  %v15734_v0 = vld [vmem:[%s19059_s1 + $0x15d0] sm:$0xff]  }
 0x32a   : > { %v13856_v34 = vpop.f32.mrb[232].mxu1  ;;  %14318 = vmatprep.subr.bf16.mxu1 %v15696_v46  ;;  %10897 = vmatmul.mubr.bf16.gmra.mrb[60].mxu0 %v15699_v57  ;;  %v15732_v57 = vld [vmem:[%s16025_s13 + $0x434] ss:$372 sps:$4 sm:$0xff]  }
 0x32b   : > { %v13857_v51 = vpop.f32.mrb[233].mxu1  ;;  %14279 = vmatpush3.bf16.msra.mxu0 %v15697_v3  ;;  %11002 = vmatprep.mubr.bf16.mxu0 %v15715_v53  ;;  %v15746_v53 = vld [vmem:[%s16025_s13 + $0x71c] ss:$372 sps:$4 sm:$0xff]  }
 0x32c   : > { %v13816_v42 = vpop.f32.mrb[232].mxu0  ;;  %v13858_v14 = vadd.f32 %v13857_v51, %v13856_v34  ;;  %v13859_v7 = vpop.f32.mrb[234].mxu1  ;;  %14280 = vmatprep.subr.bf16.mxu0 %v15705_v6  ;;  %v15723_v51 = vld [vmem:[%s19059_s1 + $0x1548] sm:$0xff]  }
 0x32d   : > { %v13817_v55 = vpop.f32.mrb[233].mxu0  ;;  %v13860_v35 = vpop.f32.mrb[235].mxu1 }
 0x32e   : > { %v13818_v45 = vadd.f32 %v13817_v55, %v13816_v42  ;;  %v13819_v54 = vpop.f32.mrb[234].mxu0  ;;  %v13861_v32 = vadd.f32 %v13860_v35, %v13859_v7  ;;  %v15720_v42 = vld [vmem:[%s19059_s1 + $0x15c0] sm:$0xff]  }
 0x32f   : > { %v13820_v5 = vpop.f32.mrb[235].mxu0  ;;  %14281 = vmatpush3.bf16.msra.mxu0 %v15707_v16  ;;  %v15722_v55 = vld [vmem:[%s19059_s1 + $0x1580] sm:$0xff]  }
 0x330   : > { %v10241_v48 = vadd.f32 %v13818_v45, %v18495_v19  ;;  %v13821_v52 = vadd.f32 %v13820_v5, %v13819_v54  ;;  %v15698_v19 = vld [vmem:[%s19059_s1 + $0x14a8] sm:$0xff]   ;;  %10962 = vmatmul.mubr.bf16.gmra.mrb[60].mxu1 %v15702_v59  ;;  %14282 = vmatprep.subr.bf16.mxu0 %v15709_v27 }
 0x331   : > { %14319 = vmatpush3.bf16.msra.mxu1 %v15698_v19  ;;  %11067 = vmatprep.mubr.bf16.mxu1 %v15718_v33  ;;  %v15724_v54 = vld [vmem:[%s19059_s1 + $0x15c8] sm:$0xff]   ;;  %v15748_v33 = vld [vmem:[%s19059_s1 + $0x15e0] sm:$0xff]  }
 0x332   : > { %v18631_v62 = vadd.f32 %v13858_v14, %v10241_v48  ;;  %v10244_v8 = vadd.f32 %v13821_v52, %v18508_v25  ;;  %v13862_v1 = vpop.f32.mrb[236].mxu1  ;;  %14320 = vmatprep.subr.bf16.mxu1 %v15706_v12  ;;  %v15725_v48 = vld [vmem:[%s19059_s1 + $0x1508] sm:$0xff]  }
 0x333   : > { %v13863_v26 = vpop.f32.mrb[237].mxu1  ;;  %14283 = vmatpush3.bf16.msra.mxu0 %v15711_v50  ;;  %v15727_v52 = vld [vmem:[%s16025_s13 + $0x428] ss:$372 sps:$4 sm:$0xff]   ;;  %v15729_v35 = vld [vmem:[%s16025_s13 + $0x42c] ss:$372 sps:$4 sm:$0xff]  }
 0x334   : > { %v13822_v4 = vpop.f32.mrb[236].mxu0  ;;  %v18641_v11 = vadd.f32 %v13861_v32, %v10244_v8  ;;  %v13864_v38 = vadd.f32 %v13863_v26, %v13862_v1  ;;  %v13865_v47 = vpop.f32.mrb[238].mxu1  ;;  %14348 = vmatprep.subr.bf16.mxu0 %v15719_v41  ;;  %v15730_v32 = vld [vmem:[%s16025_s13 + $0x430] ss:$372 sps:$4 sm:$0xff]   ;;  %v15737_v26 = vld [vmem:[%s19059_s1 + $0x1558] sm:$0xff]  }
 0x335   : > { %v13823_v25 = vpop.f32.mrb[237].mxu0  ;;  %14321 = vmatpush3.bf16.msra.mxu1 %v15708_v22  ;;  %v13866_v60 = vpop.f32.mrb[239].mxu1  ;;  %v15749_v41 = vld [vmem:[%s19059_s1 + $0x1520] sm:$0xff]  }
 0x336   : > { %v13824_v9 = vadd.f32 %v13823_v25, %v13822_v4  ;;  %v13825_v18 = vpop.f32.mrb[238].mxu0  ;;  %14322 = vmatprep.subr.bf16.mxu1 %v15710_v44  ;;  %v13867_v39 = vadd.f32 %v13866_v60, %v13865_v47  ;;  %11003 = vmatmul.mubr.bf16.vlgmr.msra.gmra.mrb[64].mxu0 %v15713_v20  ;;  %v15736_v25 = vld [vmem:[%s19059_s1 + $0x1590] sm:$0xff]   ;;  %v15744_v20 = vld [vmem:[%s16025_s13 + $0x718] ss:$372 sps:$4 sm:$0xff]  }
 0x337   : > { %v13826_v10 = vpop.f32.mrb[239].mxu0  ;;  %11010 = vmatprep.mubr.bf16.mxu0 %v15729_v35  ;;  %v15760_v35 = vld [vmem:[%s16025_s13 + $0xa04] ss:$372 sps:$4 sm:$0xff]  }
 0x338   : > { %v10249_v24 = vadd.f32 %v13824_v9, %v18529_v13  ;;  %v13827_v36 = vadd.f32 %v13826_v10, %v13825_v18  ;;  %v15712_v13 = vld [vmem:[%s19059_s1 + $0x14b8] sm:$0xff]  }
 0x339   : > { %14323 = vmatpush3.bf16.msra.mxu1 %v15712_v13  ;;  %v15738_v18 = vld [vmem:[%s19059_s1 + $0x15d8] sm:$0xff]   ;;  %v15743_v13 = vld [vmem:[%s16025_s13 + $0x714] ss:$372 sps:$4 sm:$0xff]  }
 0x33a   : > { %v18665_v29 = vadd.f32 %v13864_v38, %v10249_v24  ;;  %v10252_v28 = vadd.f32 %v13827_v36, %v18539_v56  ;;  %v15721_v56 = vld [vmem:[%s19059_s1 + $0x1500] sm:$0xff]   ;;  %14388 = vmatprep.subr.bf16.mxu1 %v15720_v42  ;;  %v15739_v24 = vld [vmem:[%s19059_s1 + $0x1518] sm:$0xff]  }
 0x33b   : > { %14349 = vmatpush3.bf16.msra.mxu0 %v15721_v56  ;;  %v15741_v36 = vld [vmem:[%s16025_s13 + $0x710] ss:$372 sps:$4 sm:$0xff]  }
 0x33c   : > { %v13884_v49 = vpop.f32.mrb[240].mxu0  ;;  %v18675_v23 = vadd.f32 %v13867_v39, %v10252_v28  ;;  %11068 = vmatmul.mubr.bf16.vlgmr.msra.gmra.mrb[64].mxu1 %v15716_v31  ;;  %14350 = vmatprep.subr.bf16.mxu0 %v15723_v51  ;;  %v15747_v31 = vld [vmem:[%s19059_s1 + $0x1560] sm:$0xff]  }
 0x33d   : > { %v13885_v43 = vpop.f32.mrb[241].mxu0  ;;  %14389 = vmatpush3.bf16.msra.mxu1 %v15722_v55  ;;  %11075 = vmatprep.mubr.bf16.mxu1 %v15732_v57 }
 0x33e   : > { %v13924_v63 = vpop.f32.mrb[240].mxu1  ;;  %v13886_v34 = vadd.f32 %v13885_v43, %v13884_v49  ;;  %v13887_v45 = vpop.f32.mrb[242].mxu0  ;;  %14390 = vmatprep.subr.bf16.mxu1 %v15724_v54  ;;  %11011 = vmatmul.mubr.bf16.gmra.mrb[68].mxu0 %v15727_v52  ;;  %v15750_v43 = vld [vmem:[%s19059_s1 + $0x15a0] sm:$0xff]  }
 0x33f   : > { %v13925_v37 = vpop.f32.mrb[241].mxu1  ;;  %v13888_v61 = vpop.f32.mrb[243].mxu0  ;;  %14351 = vmatpush3.bf16.msra.mxu0 %v15725_v48  ;;  %11018 = vmatprep.mubr.bf16.mxu0 %v15743_v13  ;;  %v15775_v13 = vld [vmem:[%s19059_s1 + $0x1640] sm:$0xff]  }
 0x340   : > { %v13926_v17 = vadd.f32 %v13925_v37, %v13924_v63  ;;  %v10355_v2 = vadd.f32 %v13886_v34, %v18563_v58  ;;  %v13927_v14 = vpop.f32.mrb[242].mxu1  ;;  %v13889_v46 = vadd.f32 %v13888_v61, %v13887_v45  ;;  %v15726_v58 = vld [vmem:[%s19059_s1 + $0x1588] sm:$0xff]   ;;  %14352 = vmatprep.subr.bf16.mxu0 %v15733_v15 }
 0x341   : > { %v13928_v5 = vpop.f32.mrb[243].mxu1  ;;  %14391 = vmatpush3.bf16.msra.mxu1 %v15726_v58  ;;  %v15751_v37 = vld [vmem:[%s19059_s1 + $0x1568] sm:$0xff]  }
 0x342   : > { %v18699_v7 = vadd.f32 %v13926_v17, %v10355_v2  ;;  %v13929_v3 = vadd.f32 %v13928_v5, %v13927_v14  ;;  %v10358_v19 = vadd.f32 %v13889_v46, %v18573_v21  ;;  %v15735_v21 = vld [vmem:[%s19059_s1 + $0x1510] sm:$0xff]   ;;  %14392 = vmatprep.subr.bf16.mxu1 %v15734_v0  ;;  %v15752_v45 = vld [vmem:[%s19059_s1 + $0x15e8] sm:$0xff]  }
 0x343   : > { %14353 = vmatpush3.bf16.msra.mxu0 %v15735_v21  ;;  %v15753_v2 = vld [vmem:[%s19059_s1 + $0x1528] sm:$0xff]   ;;  %v15757_v5 = vld [vmem:[%s16025_s13 + $0x9fc] ss:$372 sps:$4 sm:$0xff]  }
 0x344   : > { %v13890_v8 = vpop.f32.mrb[244].mxu0  ;;  %v18712_v4 = vadd.f32 %v13929_v3, %v10358_v19  ;;  %11076 = vmatmul.mubr.bf16.gmra.mrb[68].mxu1 %v15730_v32  ;;  %14354 = vmatprep.subr.bf16.mxu0 %v15737_v26  ;;  %v15755_v46 = vld [vmem:[%s16025_s13 + $0x9f8] ss:$372 sps:$4 sm:$0xff]   ;;  %v15758_v3 = vld [vmem:[%s16025_s13 + $0xa00] ss:$372 sps:$4 sm:$0xff]  }
 0x345   : > { %v13891_v6 = vpop.f32.mrb[245].mxu0  ;;  %14393 = vmatpush3.bf16.msra.mxu1 %v15736_v25  ;;  %11083 = vmatprep.mubr.bf16.mxu1 %v15746_v53  ;;  %v15761_v32 = vld [vmem:[%s19059_s1 + $0x1570] sm:$0xff]   ;;  %v15776_v53 = vld [vmem:[%s19059_s1 + $0x16c0] sm:$0xff]  }
 0x346   : > { %v13930_v59 = vpop.f32.mrb[244].mxu1  ;;  %v13892_v1 = vadd.f32 %v13891_v6, %v13890_v8  ;;  %v13893_v9 = vpop.f32.mrb[246].mxu0  ;;  %14394 = vmatprep.subr.bf16.mxu1 %v15738_v18  ;;  %11019 = vmatmul.mubr.bf16.gmra.mrb[72].mxu0 %v15741_v36  ;;  %v15762_v8 = vld [vmem:[%s19059_s1 + $0x15f0] sm:$0xff]  }
 0x347   : > { %v13931_v12 = vpop.f32.mrb[245].mxu1  ;;  %v13894_v27 = vpop.f32.mrb[247].mxu0  ;;  %14355 = vmatpush3.bf16.msra.mxu0 %v15739_v24  ;;  %11026 = vmatprep.mubr.bf16.mxu0 %v15757_v5  ;;  %v15764_v6 = vld [vmem:[%s19059_s1 + $0x15b0] sm:$0xff]   ;;  %v15788_v5 = vld [vmem:[%s16025_s13 + $0x444] ss:$372 sps:$4 sm:$0xff]  }
 0x348   : > { %v13932_v16 = vadd.f32 %v13931_v12, %v13930_v59  ;;  %v10363_v22 = vadd.f32 %v13892_v1, %v18597_v30  ;;  %v13933_v38 = vpop.f32.mrb[246].mxu1  ;;  %v13895_v44 = vadd.f32 %v13894_v27, %v13893_v9  ;;  %v15740_v30 = vld [vmem:[%s19059_s1 + $0x1598] sm:$0xff]   ;;  %14356 = vmatprep.subr.bf16.mxu0 %v15747_v31 }
 0x349   : > { %v13934_v10 = vpop.f32.mrb[247].mxu1  ;;  %14395 = vmatpush3.bf16.msra.mxu1 %v15740_v30  ;;  %v15765_v12 = vld [vmem:[%s19059_s1 + $0x1578] sm:$0xff]  }
 0x34a   : > { %v18733_v47 = vadd.f32 %v13932_v16, %v10363_v22  ;;  %v13935_v50 = vadd.f32 %v13934_v10, %v13933_v38  ;;  %v10366_v60 = vadd.f32 %v13895_v44, %v18610_v40  ;;  %14396 = vmatprep.subr.bf16.mxu1 %v15748_v33  ;;  %v15766_v9 = vld [vmem:[%s19059_s1 + $0x15f8] sm:$0xff]   ;;  %v15769_v44 = vld [vmem:[%s16025_s13 + $0x150] ss:$372 sps:$4 sm:$0xff]   ;;  %v15771_v10 = vld [vmem:[%s16025_s13 + $0x154] ss:$372 sps:$4 sm:$0xff]  }
 0x34b   : > { %14357 = vmatpush3.bf16.msra.mxu0 %v15749_v41  ;;  %v15767_v22 = vld [vmem:[%s19059_s1 + $0x1538] sm:$0xff]  }
 0x34c   : > { %v13896_v39 = vpop.f32.mrb[248].mxu0  ;;  %v18743_v28 = vadd.f32 %v13935_v50, %v10366_v60  ;;  %11084 = vmatmul.mubr.bf16.gmra.mrb[72].mxu1 %v15744_v20  ;;  %14358 = vmatprep.subr.bf16.mxu0 %v15751_v37  ;;  %v15772_v50 = vld [vmem:[%s16025_s13 + $0x158] ss:$372 sps:$4 sm:$0xff]   ;;  %v15774_v36 = vld [vmem:[%s16025_s13 + $0x15c] ss:$372 sps:$4 sm:$0xff]  }
 0x34d   : > { %v13897_v40 = vpop.f32.mrb[249].mxu0  ;;  %14397 = vmatpush3.bf16.msra.mxu1 %v15750_v43  ;;  %11091 = vmatprep.mubr.bf16.mxu1 %v15760_v35  ;;  %v15790_v35 = vld [vmem:[%s19059_s1 + $0x16d0] sm:$0xff]  }
 0x34e   : > { %v13936_v49 = vpop.f32.mrb[248].mxu1  ;;  %v13898_v63 = vadd.f32 %v13897_v40, %v13896_v39  ;;  %v13899_v34 = vpop.f32.mrb[250].mxu0  ;;  %14398 = vmatprep.subr.bf16.mxu1 %v15752_v45  ;;  %11027 = vmatmul.mubr.bf16.gmra.mrb[76].mxu0 %v15755_v46  ;;  %v15778_v40 = vld [vmem:[%s19059_s1 + $0x1680] sm:$0xff]  }
 0x34f   : > { %v13937_v42 = vpop.f32.mrb[249].mxu1  ;;  %v13900_v51 = vpop.f32.mrb[251].mxu0  ;;  %14359 = vmatpush3.bf16.msra.mxu0 %v15753_v2  ;;  %11132 = vmatprep.mubr.bf16.mxu0 %v15771_v10  ;;  %v15786_v46 = vld [vmem:[%s16025_s13 + $0x440] ss:$372 sps:$4 sm:$0xff]  }
 0x350   : > { %v13938_v56 = vadd.f32 %v13937_v42, %v13936_v49  ;;  %v10371_v55 = vadd.f32 %v13898_v63, %v18631_v62  ;;  %v13939_v17 = vpop.f32.mrb[250].mxu1  ;;  %v13901_v54 = vadd.f32 %v13900_v51, %v13899_v34  ;;  %v15754_v62 = vld [vmem:[%s19059_s1 + $0x15a8] sm:$0xff]   ;;  %14360 = vmatprep.subr.bf16.mxu0 %v15761_v32  ;;  %v15791_v32 = vld [vmem:[%s19059_s1 + $0x1610] sm:$0xff]  }
 0x351   : > { %v13940_v61 = vpop.f32.mrb[251].mxu1  ;;  %14399 = vmatpush3.bf16.msra.mxu1 %v15754_v62  ;;  %v15779_v42 = vld [vmem:[%s19059_s1 + $0x1648] sm:$0xff]   ;;  %v15785_v62 = vld [vmem:[%s16025_s13 + $0x43c] ss:$372 sps:$4 sm:$0xff]  }
 0x352   : > { %v18767_v14 = vadd.f32 %v13938_v56, %v10371_v55  ;;  %v13941_v48 = vadd.f32 %v13940_v61, %v13939_v17  ;;  %v10374_v58 = vadd.f32 %v13901_v54, %v18641_v11  ;;  %v15763_v11 = vld [vmem:[%s19059_s1 + $0x1530] sm:$0xff]   ;;  %14400 = vmatprep.subr.bf16.mxu1 %v15762_v8  ;;  %v15780_v34 = vld [vmem:[%s19059_s1 + $0x16c8] sm:$0xff]  }
 0x353   : > { %14361 = vmatpush3.bf16.msra.mxu0 %v15763_v11  ;;  %v15781_v55 = vld [vmem:[%s19059_s1 + $0x1608] sm:$0xff]  }
 0x354   : > { %v13902_v52 = vpop.f32.mrb[252].mxu0  ;;  %v18777_v19 = vadd.f32 %v13941_v48, %v10374_v58  ;;  %11092 = vmatmul.mubr.bf16.gmra.mrb[76].mxu1 %v15758_v3  ;;  %14362 = vmatprep.subr.bf16.mxu0 %v15765_v12  ;;  %v15783_v54 = vld [vmem:[%s16025_s13 + $0x438] ss:$372 sps:$4 sm:$0xff]   ;;  %v15789_v3 = vld [vmem:[%s19059_s1 + $0x1650] sm:$0xff]  }
 0x355   : > { %v13903_v15 = vpop.f32.mrb[253].mxu0  ;;  %14401 = vmatpush3.bf16.msra.mxu1 %v15764_v6  ;;  %11197 = vmatprep.mubr.bf16.mxu1 %v15774_v36  ;;  %v15802_v10 = vld [vmem:[%s16025_s13 + $0x72c] ss:$372 sps:$4 sm:$0xff]  }
 0x356   : > { %v13942_v57 = vpop.f32.mrb[252].mxu1  ;;  %v13904_v59 = vadd.f32 %v13903_v15, %v13902_v52  ;;  %v13905_v1 = vpop.f32.mrb[254].mxu0  ;;  %14402 = vmatprep.subr.bf16.mxu1 %v15766_v9  ;;  %v15792_v15 = vld [vmem:[%s19059_s1 + $0x1690] sm:$0xff]  }
 0x357   : > { %v13943_v0 = vpop.f32.mrb[253].mxu1  ;;  %v13906_v26 = vpop.f32.mrb[255].mxu0  ;;  %14363 = vmatpush3.bf16.msra.mxu0 %v15767_v22 }
 0x358   : > { %v13944_v21 = vadd.f32 %v13943_v0, %v13942_v57  ;;  %v10379_v25 = vadd.f32 %v13904_v59, %v18665_v29  ;;  %v13945_v16 = vpop.f32.mrb[254].mxu1  ;;  %v13907_v18 = vadd.f32 %v13906_v26, %v13905_v1  ;;  %v15768_v29 = vld [vmem:[%s19059_s1 + $0x15b8] sm:$0xff]   ;;  %14428 = vmatprep.subr.bf16.mxu0 %v15775_v13 }
 0x359   : > { %v13946_v27 = vpop.f32.mrb[255].mxu1  ;;  %14403 = vmatpush3.bf16.msra.mxu1 %v15768_v29  ;;  %v15793_v0 = vld [vmem:[%s19059_s1 + $0x1658] sm:$0xff]  }
 0x35a   : > { %v18801_v38 = vadd.f32 %v13944_v21, %v10379_v25  ;;  %v13947_v24 = vadd.f32 %v13946_v27, %v13945_v16  ;;  %v10382_v30 = vadd.f32 %v13907_v18, %v18675_v23  ;;  %11133 = vmatmul.mubr.bf16.vlgmr.msra.gmra.mrb[80].mxu0 %v15769_v44  ;;  %v15777_v23 = vld [vmem:[%s19059_s1 + $0x1600] sm:$0xff]   ;;  %14468 = vmatprep.subr.bf16.mxu1 %v15776_v53  ;;  %v15794_v1 = vld [vmem:[%s19059_s1 + $0x16d8] sm:$0xff]  }
 0x35b   : > { %14429 = vmatpush3.bf16.msra.mxu0 %v15777_v23  ;;  %11140 = vmatprep.mubr.bf16.mxu0 %v15785_v62  ;;  %v15795_v25 = vld [vmem:[%s19059_s1 + $0x1618] sm:$0xff]   ;;  %v15797_v18 = vld [vmem:[%s16025_s13 + $0x720] ss:$372 sps:$4 sm:$0xff]  }
 0x35c   : > { %v13964_v60 = vpop.f32.mrb[0].mxu0  ;;  %v18814_v39 = vadd.f32 %v13947_v24, %v10382_v30  ;;  %11198 = vmatmul.mubr.bf16.vlgmr.msra.gmra.mrb[80].mxu1 %v15772_v50  ;;  %14430 = vmatprep.subr.bf16.mxu0 %v15779_v42  ;;  %v15799_v27 = vld [vmem:[%s16025_s13 + $0x724] ss:$372 sps:$4 sm:$0xff]   ;;  %v15800_v24 = vld [vmem:[%s16025_s13 + $0x728] ss:$372 sps:$4 sm:$0xff]   ;;  %v15817_v62 = vld [vmem:[%s19059_s1 + $0x1670] sm:$0xff]  }
 0x35d   : > { %v13965_v31 = vpop.f32.mrb[1].mxu0  ;;  %14469 = vmatpush3.bf16.msra.mxu1 %v15778_v40  ;;  %11205 = vmatprep.mubr.bf16.mxu1 %v15788_v5  ;;  %v15803_v50 = vld [vmem:[%s19059_s1 + $0x1660] sm:$0xff]   ;;  %v15818_v5 = vld [vmem:[%s19059_s1 + $0x16f0] sm:$0xff]  }
 0x35e   : > { %v14004_v20 = vpop.f32.mrb[0].mxu1  ;;  %v13966_v49 = vadd.f32 %v13965_v31, %v13964_v60  ;;  %v13967_v63 = vpop.f32.mrb[2].mxu0  ;;  %14470 = vmatprep.subr.bf16.mxu1 %v15780_v34  ;;  %v15804_v60 = vld [vmem:[%s19059_s1 + $0x16e0] sm:$0xff]  }
 0x35f   : > { %v14005_v33 = vpop.f32.mrb[1].mxu1  ;;  %v13968_v37 = vpop.f32.mrb[3].mxu0  ;;  %14431 = vmatpush3.bf16.msra.mxu0 %v15781_v55  ;;  %v15806_v31 = vld [vmem:[%s19059_s1 + $0x16a0] sm:$0xff]  }
 0x360   : > { %v14006_v41 = vadd.f32 %v14005_v33, %v14004_v20  ;;  %v10485_v43 = vadd.f32 %v13966_v49, %v18699_v7  ;;  %v14007_v56 = vpop.f32.mrb[2].mxu1  ;;  %v13969_v45 = vadd.f32 %v13968_v37, %v13967_v63  ;;  %v15782_v7 = vld [vmem:[%s19059_s1 + $0x1688] sm:$0xff]   ;;  %14432 = vmatprep.subr.bf16.mxu0 %v15789_v3 }
 0x361   : > { %v14008_v51 = vpop.f32.mrb[3].mxu1  ;;  %14471 = vmatpush3.bf16.msra.mxu1 %v15782_v7  ;;  %v15807_v33 = vld [vmem:[%s19059_s1 + $0x1668] sm:$0xff]  }
 0x362   : > { %v18835_v17 = vadd.f32 %v14006_v41, %v10485_v43  ;;  %v14009_v2 = vadd.f32 %v14008_v51, %v14007_v56  ;;  %v10488_v61 = vadd.f32 %v13969_v45, %v18712_v4  ;;  %11141 = vmatmul.mubr.bf16.gmra.mrb[84].mxu0 %v15783_v54  ;;  %14472 = vmatprep.subr.bf16.mxu1 %v15790_v35  ;;  %v15808_v63 = vld [vmem:[%s19059_s1 + $0x16e8] sm:$0xff]  }
 0x363   : > { %14433 = vmatpush3.bf16.msra.mxu0 %v15791_v32  ;;  %11148 = vmatprep.mubr.bf16.mxu0 %v15799_v27  ;;  %v15809_v43 = vld [vmem:[%s19059_s1 + $0x1628] sm:$0xff]  }
 0x364   : > { %v13970_v48 = vpop.f32.mrb[4].mxu0  ;;  %v18845_v58 = vadd.f32 %v14009_v2, %v10488_v61  ;;  %11206 = vmatmul.mubr.bf16.gmra.mrb[84].mxu1 %v15786_v46  ;;  %14434 = vmatprep.subr.bf16.mxu0 %v15793_v0  ;;  %v15811_v45 = vld [vmem:[%s16025_s13 + $0xa08] ss:$372 sps:$4 sm:$0xff]   ;;  %v15813_v51 = vld [vmem:[%s16025_s13 + $0xa0c] ss:$372 sps:$4 sm:$0xff]  }
 0x365   : > { %v13971_v4 = vpop.f32.mrb[5].mxu0  ;;  %14473 = vmatpush3.bf16.msra.mxu1 %v15792_v15  ;;  %11213 = vmatprep.mubr.bf16.mxu1 %v15802_v10  ;;  %v15814_v2 = vld [vmem:[%s16025_s13 + $0xa10] ss:$372 sps:$4 sm:$0xff]   ;;  %v15816_v54 = vld [vmem:[%s16025_s13 + $0xa14] ss:$372 sps:$4 sm:$0xff]  }
 0x366   : > { %v14010_v52 = vpop.f32.mrb[4].mxu1  ;;  %v13972_v57 = vadd.f32 %v13971_v4, %v13970_v48  ;;  %v13973_v59 = vpop.f32.mrb[6].mxu0  ;;  %14474 = vmatprep.subr.bf16.mxu1 %v15794_v1  ;;  %v15820_v4 = vld [vmem:[%s19059_s1 + $0x16b0] sm:$0xff]   ;;  %v15830_v27 = vld [vmem:[%s16025_s13 + $0x16c] ss:$372 sps:$4 sm:$0xff]  }
 0x367   : > { %v14011_v8 = vpop.f32.mrb[5].mxu1  ;;  %v13974_v12 = vpop.f32.mrb[7].mxu0  ;;  %14435 = vmatpush3.bf16.msra.mxu0 %v15795_v25 }
 0x368   : > { %v14012_v11 = vadd.f32 %v14011_v8, %v14010_v52  ;;  %v10493_v6 = vadd.f32 %v13972_v57, %v18733_v47  ;;  %v14013_v21 = vpop.f32.mrb[6].mxu1  ;;  %v13975_v9 = vadd.f32 %v13974_v12, %v13973_v59  ;;  %v15796_v47 = vld [vmem:[%s19059_s1 + $0x1698] sm:$0xff]   ;;  %14436 = vmatprep.subr.bf16.mxu0 %v15803_v50 }
 0x369   : > { %v14014_v26 = vpop.f32.mrb[7].mxu1  ;;  %14475 = vmatpush3.bf16.msra.mxu1 %v15796_v47  ;;  %v15821_v8 = vld [vmem:[%s19059_s1 + $0x1678] sm:$0xff]  }
 0x36a   : > { %v18869_v16 = vadd.f32 %v14012_v11, %v10493_v6  ;;  %v14015_v22 = vadd.f32 %v14014_v26, %v14013_v21  ;;  %v10496_v29 = vadd.f32 %v13975_v9, %v18743_v28  ;;  %11149 = vmatmul.mubr.bf16.gmra.mrb[88].mxu0 %v15797_v18  ;;  %v15805_v28 = vld [vmem:[%s19059_s1 + $0x1620] sm:$0xff]   ;;  %14476 = vmatprep.subr.bf16.mxu1 %v15804_v60  ;;  %v15822_v59 = vld [vmem:[%s19059_s1 + $0x16f8] sm:$0xff]  }
 0x36b   : > { %14437 = vmatpush3.bf16.msra.mxu0 %v15805_v28  ;;  %11156 = vmatprep.mubr.bf16.mxu0 %v15813_v51  ;;  %v15823_v6 = vld [vmem:[%s19059_s1 + $0x1638] sm:$0xff]   ;;  %v15825_v9 = vld [vmem:[%s16025_s13 + $0x160] ss:$372 sps:$4 sm:$0xff]  }
 0x36c   : > { %v13976_v44 = vpop.f32.mrb[8].mxu0  ;;  %v18879_v30 = vadd.f32 %v14015_v22, %v10496_v29  ;;  %11214 = vmatmul.mubr.bf16.gmra.mrb[88].mxu1 %v15800_v24  ;;  %14438 = vmatprep.subr.bf16.mxu0 %v15807_v33  ;;  %v15827_v47 = vld [vmem:[%s16025_s13 + $0x164] ss:$372 sps:$4 sm:$0xff]   ;;  %v15828_v18 = vld [vmem:[%s16025_s13 + $0x168] ss:$372 sps:$4 sm:$0xff]  }
 0x36d   : > { %v13977_v13 = vpop.f32.mrb[9].mxu0  ;;  %14477 = vmatpush3.bf16.msra.mxu1 %v15806_v31  ;;  %11221 = vmatprep.mubr.bf16.mxu1 %v15816_v54  ;;  %v15831_v24 = vld [vmem:[%s19059_s1 + $0x1700] sm:$0xff]  }
 0x36e   : > { %v14016_v36 = vpop.f32.mrb[8].mxu1  ;;  %v13978_v20 = vadd.f32 %v13977_v13, %v13976_v44  ;;  %v13979_v49 = vpop.f32.mrb[10].mxu0  ;;  %14478 = vmatprep.subr.bf16.mxu1 %v15808_v63  ;;  %v15836_v63 = vld [vmem:[%s16025_s13 + $0x450] ss:$372 sps:$4 sm:$0xff]  }
 0x36f   : > { %v14017_v53 = vpop.f32.mrb[9].mxu1  ;;  %v13980_v42 = vpop.f32.mrb[11].mxu0  ;;  %14439 = vmatpush3.bf16.msra.mxu0 %v15809_v43 }
 0x370   : > { %v14018_v23 = vadd.f32 %v14017_v53, %v14016_v36  ;;  %v10501_v40 = vadd.f32 %v13978_v20, %v18767_v14  ;;  %v14019_v41 = vpop.f32.mrb[10].mxu1  ;;  %v13981_v34 = vadd.f32 %v13980_v42, %v13979_v49  ;;  %v15810_v14 = vld [vmem:[%s19059_s1 + $0x16a8] sm:$0xff]   ;;  %14440 = vmatprep.subr.bf16.mxu0 %v15817_v62 }
 0x371   : > { %v14020_v37 = vpop.f32.mrb[11].mxu1  ;;  %14479 = vmatpush3.bf16.msra.mxu1 %v15810_v14  ;;  %v15835_v36 = vld [vmem:[%s16025_s13 + $0x44c] ss:$372 sps:$4 sm:$0xff]   ;;  %v15833_v20 = vld [vmem:[%s16025_s13 + $0x448] ss:$372 sps:$4 sm:$0xff]  }
 0x372   : > { %v18903_v56 = vadd.f32 %v14018_v23, %v10501_v40  ;;  %v14021_v55 = vadd.f32 %v14020_v37, %v14019_v41  ;;  %v10504_v7 = vadd.f32 %v13981_v34, %v18777_v19  ;;  %11157 = vmatmul.mubr.bf16.gmra.mrb[92].mxu0 %v15811_v45  ;;  %v15819_v19 = vld [vmem:[%s19059_s1 + $0x1630] sm:$0xff]   ;;  %14480 = vmatprep.subr.bf16.mxu1 %v15818_v5  ;;  %v15843_v62 = vld [vmem:[%s16025_s13 + $0x738] ss:$372 sps:$4 sm:$0xff]  }
 0x373   : > { %14441 = vmatpush3.bf16.msra.mxu0 %v15819_v19  ;;  %11262 = vmatprep.mubr.bf16.mxu0 %v15827_v47  ;;  %v15838_v23 = vld [vmem:[%s16025_s13 + $0x454] ss:$372 sps:$4 sm:$0xff]   ;;  %v15845_v14 = vld [vmem:[%s16025_s13 + $0x73c] ss:$372 sps:$4 sm:$0xff]  }
 0x374   : > { %v13982_v61 = vpop.f32.mrb[12].mxu0  ;;  %v18916_v48 = vadd.f32 %v14021_v55, %v10504_v7  ;;  %11222 = vmatmul.mubr.bf16.gmra.mrb[92].mxu1 %v15814_v2  ;;  %14442 = vmatprep.subr.bf16.mxu0 %v15821_v8  ;;  %v15839_v40 = vld [vmem:[%s19059_s1 + $0x1710] sm:$0xff]  }
 0x375   : > { %v13983_v3 = vpop.f32.mrb[13].mxu0  ;;  %14481 = vmatpush3.bf16.msra.mxu1 %v15820_v4  ;;  %11327 = vmatprep.mubr.bf16.mxu1 %v15830_v27  ;;  %v15842_v42 = vld [vmem:[%s16025_s13 + $0x734] ss:$372 sps:$4 sm:$0xff]   ;;  %v15840_v7 = vld [vmem:[%s16025_s13 + $0x730] ss:$372 sps:$4 sm:$0xff]  }
 0x376   : > { %v14022_v46 = vpop.f32.mrb[12].mxu1  ;;  %v13984_v52 = vadd.f32 %v13983_v3, %v13982_v61  ;;  %v13985_v57 = vpop.f32.mrb[14].mxu0  ;;  %14482 = vmatprep.subr.bf16.mxu1 %v15822_v59  ;;  %v15850_v3 = vld [vmem:[%s16025_s13 + $0xa1c] ss:$372 sps:$4 sm:$0xff]  }
 0x377   : > { %v14023_v35 = vpop.f32.mrb[13].mxu1  ;;  %v13986_v0 = vpop.f32.mrb[15].mxu0  ;;  %14443 = vmatpush3.bf16.msra.mxu0 %v15823_v6  ;;  %v15854_v4 = vld [vmem:[%s19059_s1 + $0x1728] ss:$0 sps:$4 sm:$0x11]  }
 0x378   : > { %v14024_v32 = vadd.f32 %v14023_v35, %v14022_v46  ;;  %v10509_v15 = vadd.f32 %v13984_v52, %v18801_v38  ;;  %v14025_v11 = vpop.f32.mrb[14].mxu1  ;;  %v13987_v1 = vadd.f32 %v13986_v0, %v13985_v57  ;;  %v15824_v38 = vld [vmem:[%s19059_s1 + $0x16b8] sm:$0xff]   ;;  %14518 = vmatprep.subr.bf16.mxu0 %v15831_v24  ;;  %v15847_v46 = vld [vmem:[%s19059_s1 + $0x1720] sm:$0xff]   ;;  %v8368_v59 = vsel %vm8366_vm0, %v15854_v4, 0 }
 0x379   : > { %v14026_v12 = vpop.f32.mrb[15].mxu1  ;;  %14483 = vmatpush3.bf16.msra.mxu1 %v15824_v38  ;;  %v15853_v35 = vld [vmem:[%s16025_s13 + $0xa24] ss:$372 sps:$4 sm:$0xff]  }
 0x37a   : > { %v18937_v21 = vadd.f32 %v14024_v32, %v10509_v15  ;;  %v14027_v25 = vadd.f32 %v14026_v12, %v14025_v11  ;;  %v10512_v26 = vadd.f32 %v13987_v1, %v18814_v39  ;;  %11263 = vmatmul.mubr.bf16.vlgmr.msra.gmra.mrb[96].mxu0 %v15825_v9  ;;  %v15832_v39 = vld [vmem:[%s19059_s1 + $0x1708] sm:$0xff]   ;;  %14538 = vmatprep.subr.bf16.mxu1 %v15831_v24  ;;  %v15855_v9 = vld [vmem:[%s16025_s13 + $0x170] ss:$372 sps:$4 sm:$0xff]  }
 0x37b   : > { %14519 = vmatpush3.bf16.msra.mxu0 %v15831_v24  ;;  %11270 = vmatprep.mubr.bf16.mxu0 %v15835_v36  ;;  %v15848_v6 = vld [vmem:[%s16025_s13 + $0xa18] ss:$372 sps:$4 sm:$0xff]  }
 0x37c   : > { %v18947_v29 = vadd.f32 %v14027_v25, %v10512_v26  ;;  %11328 = vmatmul.mubr.bf16.vlgmr.msra.gmra.mrb[96].mxu1 %v15828_v18  ;;  %14520 = vmatprep.subr.bf16.mxu0 %v15832_v39  ;;  %v15851_v25 = vld [vmem:[%s16025_s13 + $0xa20] ss:$372 sps:$4 sm:$0xff]  }
 0x37d   : > { %14544 = vmatpush3.bf16.msra.mxu1 %v15831_v24  ;;  %11335 = vmatprep.mubr.bf16.mxu1 %v15838_v23 }
 0x37e   : > { %14539 = vmatprep.subr.bf16.mxu1 %v15832_v39 }
 0x37f   : > { %14521 = vmatpush3.bf16.msra.mxu0 %v15832_v39 }
 0x380   : > { %14522 = vmatprep.subr.bf16.mxu0 %v15839_v40 }
 0x381   : > { %14545 = vmatpush3.bf16.msra.mxu1 %v15832_v39 }
 0x382   : > { %11271 = vmatmul.mubr.bf16.gmra.mrb[100].mxu0 %v15833_v20  ;;  %14540 = vmatprep.subr.bf16.mxu1 %v15839_v40  ;;  %v15858_v20 = vld [vmem:[%s16025_s13 + $0xa28] ss:$372 sps:$4 sm:$0xff]  }
 0x383   : > { %11278 = vmatprep.mubr.bf16.mxu0 %v15842_v42  ;;  %14523 = vmatpush3.bf16.msra.mxu0 %v15839_v40 }
 0x384   : > { %11336 = vmatmul.mubr.bf16.gmra.mrb[100].mxu1 %v15836_v63 }
 0x385   : > { %11343 = vmatprep.mubr.bf16.mxu1 %v15845_v14  ;;  %14546 = vmatpush3.bf16.msra.mxu1 %v15839_v40 }
 0x38a   : > { %11279 = vmatmul.mubr.bf16.gmra.mrb[104].mxu0 %v15840_v7 }
 0x38b   : > { %11286 = vmatprep.mubr.bf16.mxu0 %v15850_v3 }
 0x38c   : > { %11344 = vmatmul.mubr.bf16.gmra.mrb[104].mxu1 %v15843_v62 }
 0x38d   : > { %11351 = vmatprep.mubr.bf16.mxu1 %v15853_v35 }
 0x390   : > { %v14044_v22 = vpop.f32.mrb[16].mxu0 }
 0x391   : > { %v14045_v10 = vpop.f32.mrb[17].mxu0 }
 0x392   : > { %v14046_v60 = vadd.f32 %v14045_v10, %v14044_v22  ;;  %v14047_v28 = vpop.f32.mrb[18].mxu0  ;;  %v15856_v22 = vld [vmem:[%s16025_s13 + $0x740] ss:$372 sps:$4 sm:$0xff]   ;;  %11287 = vmatmul.mubr.bf16.gmra.mrb[108].mxu0 %v15848_v6 }
 0x393   : > { %v14048_v31 = vpop.f32.mrb[19].mxu0  ;;  %14530 = vmatprep.mubr.msk.bf16.mxu0 %vm8353_vm1, %v15855_v9 }
 0x394   : > { %v10615_v49 = vadd.f32 %v14046_v60, %v18835_v17  ;;  %v14049_v33 = vadd.f32 %v14048_v31, %v14047_v28  ;;  %v15846_v17 = vld [vmem:[%s19059_s1 + $0x1718] sm:$0xff]   ;;  %11352 = vmatmul.mubr.bf16.gmra.mrb[108].mxu1 %v15851_v25 }
 0x395   : > { %v14084_v44 = vpop.f32.mrb[16].mxu1  ;;  %14524 = vmatprep.subr.bf16.mxu0 %v15846_v17  ;;  %14541 = vmatprep.subr.bf16.mxu1 %v15846_v17  ;;  %v15857_v28 = vld [vmem:[%s16025_s13 + $0x458] ss:$372 sps:$4 sm:$0xff]   ;;  %s11546_s13 = sshll.u32 %s19063_s19, 3 }
 0x396   : > { %v14085_v50 = vpop.f32.mrb[17].mxu1  ;;  %v10618_v34 = vadd.f32 %v14049_v33, %v18845_v58  ;;  %14525 = vmatpush3.bf16.msra.mxu0 %v15846_v17  ;;  %14547 = vmatpush3.bf16.msra.mxu1 %v15846_v17  ;;  %s175_s15 = scalar_lea.vmem %s19061_s3, %s11546_s13 }
 0x397   : > { %v14086_v13 = vadd.f32 %v14085_v50, %v14084_v44  ;;  %v14087_v53 = vpop.f32.mrb[18].mxu1  ;;  %14526 = vmatprep.subr.bf16.mxu0 %v15847_v46  ;;  %14542 = vmatprep.subr.bf16.mxu1 %v15847_v46 }
 0x398   : > { %v14088_v41 = vpop.f32.mrb[19].mxu1  ;;  %14534 = vmatprep.mubr.msk.bf16.mxu1 %vm8353_vm1, %v15856_v22 }
 0x399   : > { %v18964_v43 = vadd.f32 %v14086_v13, %v10615_v49  ;;  %v14089_v37 = vadd.f32 %v14088_v41, %v14087_v53  ;;  %v14050_v45 = vpop.f32.mrb[20].mxu0 }
 0x39a   : > { %v14051_v51 = vpop.f32.mrb[21].mxu0  ;;  %14527 = vmatpush3.bf16.msra.mxu0 %v15847_v46  ;;  %14548 = vmatpush3.bf16.msra.mxu1 %v15847_v46 }
 0x39b   : > { %v18971_v55 = vadd.f32 %v14089_v37, %v10618_v34  ;;  %v14052_v2 = vadd.f32 %v14051_v51, %v14050_v45  ;;  %v14053_v61 = vpop.f32.mrb[22].mxu0  ;;  %14550 = vmatprep.subr.msk.bf16.mxu0 %vm8366_vm0, %v15854_v4  ;;  %14551 = vmatprep.subr.msk.bf16.mxu1 %vm8366_vm0, %v15854_v4 }
 0x39c   : > { %v14054_v57 = vpop.f32.mrb[23].mxu0 }
 0x39d   : > { %v14090_v58 = vpop.f32.mrb[20].mxu1  ;;  %v10623_v19 = vadd.f32 %v14052_v2, %v18869_v16  ;;  %v14055_v8 = vadd.f32 %v14054_v57, %v14053_v61 }
 0x39e   : > { %v14091_v54 = vpop.f32.mrb[21].mxu1  ;;  %14529 = vmatpush3.bf16.msra.mxu0 %v8368_v59  ;;  %14549 = vmatpush3.bf16.msra.mxu1 %v8368_v59 }
 0x39f   : > { %v14092_v5 = vadd.f32 %v14091_v54, %v14090_v58  ;;  %v14093_v52 = vpop.f32.mrb[22].mxu1  ;;  %v10626_v16 = vadd.f32 %v14055_v8, %v18879_v30 }
 0x3a0   : > { %v14094_v15 = vpop.f32.mrb[23].mxu1 }
 0x3a1   : > { %v18984_v32 = vadd.f32 %v14092_v5, %v10623_v19  ;;  %v14095_v11 = vadd.f32 %v14094_v15, %v14093_v52  ;;  %v14056_v0 = vpop.f32.mrb[24].mxu0  ;;  %14531 = vmatmul.mubr.msk.bf16.vlgmr.msra.gmra.mrb[112].mxu0 %vm8353_vm1, %v15857_v28  ;;  %14535 = vmatmul.mubr.msk.bf16.vlgmr.msra.gmra.mrb[112].mxu1 %vm8353_vm1, %v15858_v20 }
 0x3a2   : > { %v14057_v38 = vpop.f32.mrb[25].mxu0 }
 0x3a3   : > { %v18988_v1 = vadd.f32 %v14095_v11, %v10626_v16  ;;  %v14058_v26 = vadd.f32 %v14057_v38, %v14056_v0  ;;  %v14059_v30 = vpop.f32.mrb[26].mxu0 }
 0x3a4   : > { %v14060_v24 = vpop.f32.mrb[27].mxu0 }
 0x3a5   : > { %v14096_v12 = vpop.f32.mrb[24].mxu1  ;;  %v10631_v44 = vadd.f32 %v14058_v26, %v18903_v56  ;;  %v14061_v39 = vadd.f32 %v14060_v24, %v14059_v30 }
 0x3a6   : > { %v14097_v47 = vpop.f32.mrb[25].mxu1 }
 0x3a7   : > { %v14098_v18 = vadd.f32 %v14097_v47, %v14096_v12  ;;  %v14099_v27 = vpop.f32.mrb[26].mxu1  ;;  %v10634_v60 = vadd.f32 %v14061_v39, %v18916_v48 }
 0x3a8   : > { %v14100_v10 = vpop.f32.mrb[27].mxu1 }
 0x3a9   : > { %v14101_v50 = vadd.f32 %v14100_v10, %v14099_v27  ;;  %v18995_v36 = vadd.f32 %v14098_v18, %v10631_v44 }
 0x3ab   : > { %v18999_v13 = vadd.f32 %v14101_v50, %v10634_v60 }
 0x3af   : > { %v14062_v53 = vpop.f32.mrb[28].mxu0  ;;  %v14102_v56 = vpop.f32.mrb[28].mxu1 }
 0x3b0   : > { %v14063_v31 = vpop.f32.mrb[29].mxu0  ;;  %v14103_v33 = vpop.f32.mrb[29].mxu1 }
 0x3b1   : > { %v14064_v23 = vadd.f32 %v14063_v31, %v14062_v53  ;;  %v14065_v49 = vpop.f32.mrb[30].mxu0  ;;  %v14104_v48 = vadd.f32 %v14103_v33, %v14102_v56  ;;  %v14105_v63 = vpop.f32.mrb[30].mxu1 }
 0x3b2   : > { %v14066_v40 = vpop.f32.mrb[31].mxu0  ;;  %v14106_v34 = vpop.f32.mrb[31].mxu1 }
 0x3b3   : > { %v10639_v41 = vadd.f32 %v14064_v23, %v18937_v21  ;;  %v14067_v42 = vadd.f32 %v14066_v40, %v14065_v49  ;;  %v14107_v17 = vadd.f32 %v14106_v34, %v14105_v63 }
 0x3b5   : > { %v10704_v37 = vadd.f32 %v14104_v48, %v10639_v41  ;;  %v10642_v14 = vadd.f32 %v14067_v42, %v18947_v29 }
 0x3b7   : > { %v19007_v45 = vadd.f32 %v14107_v17, %v10642_v14 }
 0x3c0   : > { %v14124_v58 = vpop.f32.mrb[32].mxu0 }
 0x3c1   : > { %v14125_v7 = vpop.f32.mrb[33].mxu0 }
 0x3c2   : > { %v14164_v51 = vpop.f32.mrb[32].mxu1  ;;  %v14126_v2 = vadd.f32 %v14125_v7, %v14124_v58  ;;  %v14127_v61 = vpop.f32.mrb[34].mxu0 }
 0x3c3   : > { %v14165_v54 = vpop.f32.mrb[33].mxu1  ;;  %v14128_v5 = vpop.f32.mrb[35].mxu0 }
 0x3c4   : > { %v14166_v62 = vadd.f32 %v14165_v54, %v14164_v51  ;;  %v14167_v46 = vpop.f32.mrb[34].mxu1  ;;  %v10745_v21 = vadd.f32 %v14126_v2, %v18964_v43  ;;  %v14129_v3 = vadd.f32 %v14128_v5, %v14127_v61 }
 0x3c5   : > { %v14168_v19 = vpop.f32.mrb[35].mxu1 }
 0x3c6   : > { %v14169_v52 = vadd.f32 %v14168_v19, %v14167_v46  ;;  %v10810_v35 = vadd.f32 %v14166_v62, %v10745_v21  ;;  %v10748_v29 = vadd.f32 %v14129_v3, %v18971_v55 }
 0x3c8   : > { %v19011_v4 = vadd.f32 %v14169_v52, %v10748_v29  ;;  %v14130_v57 = vpop.f32.mrb[36].mxu0 }
 0x3c9   : > { %v14131_v16 = vpop.f32.mrb[37].mxu0 }
 0x3ca   : > { %v14170_v8 = vpop.f32.mrb[36].mxu1  ;;  %v14132_v15 = vadd.f32 %v14131_v16, %v14130_v57  ;;  %v14133_v59 = vpop.f32.mrb[38].mxu0 }
 0x3cb   : > { %v14171_v11 = vpop.f32.mrb[37].mxu1  ;;  %v14134_v12 = vpop.f32.mrb[39].mxu0 }
 0x3cc   : > { %v14172_v0 = vadd.f32 %v14171_v11, %v14170_v8  ;;  %v14173_v6 = vpop.f32.mrb[38].mxu1  ;;  %v10753_v38 = vadd.f32 %v14132_v15, %v18984_v32  ;;  %v14135_v43 = vadd.f32 %v14134_v12, %v14133_v59 }
 0x3cd   : > { %v14174_v25 = vpop.f32.mrb[39].mxu1 }
 0x3ce   : > { %v14175_v9 = vadd.f32 %v14174_v25, %v14173_v6  ;;  %v10818_v26 = vadd.f32 %v14172_v0, %v10753_v38  ;;  %v10756_v47 = vadd.f32 %v14135_v43, %v18988_v1 }
 0x3d0   : > { %v10821_v55 = vadd.f32 %v14175_v9, %v10756_v47  ;;  %v14136_v30 = vpop.f32.mrb[40].mxu0 }
 0x3d1   : > { %v14137_v22 = vpop.f32.mrb[41].mxu0 }
 0x3d2   : > { %v14176_v18 = vpop.f32.mrb[40].mxu1  ;;  %v14138_v27 = vadd.f32 %v14137_v22, %v14136_v30  ;;  %v14139_v24 = vpop.f32.mrb[42].mxu0 }
 0x3d3   : > { %v14177_v44 = vpop.f32.mrb[41].mxu1  ;;  %v14140_v39 = vpop.f32.mrb[43].mxu0 }
 0x3d4   : > { %v10761_v10 = vadd.f32 %v14138_v27, %v18995_v36  ;;  %v14178_v50 = vadd.f32 %v14177_v44, %v14176_v18  ;;  %v14179_v60 = vpop.f32.mrb[42].mxu1  ;;  %v14141_v28 = vadd.f32 %v14140_v39, %v14139_v24 }
 0x3d5   : > { %v14180_v32 = vpop.f32.mrb[43].mxu1 }
 0x3d6   : > { %v10826_v20 = vadd.f32 %v14178_v50, %v10761_v10  ;;  %v10764_v53 = vadd.f32 %v14141_v28, %v18999_v13  ;;  %v14181_v31 = vadd.f32 %v14180_v32, %v14179_v60 }
 0x3d8   : > { %v19017_v56 = vadd.f32 %v14181_v31, %v10764_v53  ;;  %v14142_v1 = vpop.f32.mrb[44].mxu0 }
 0x3d9   : > { %v14143_v49 = vpop.f32.mrb[45].mxu0 }
 0x3da   : > { %v14182_v23 = vpop.f32.mrb[44].mxu1  ;;  %v14144_v33 = vadd.f32 %v14143_v49, %v14142_v1  ;;  %v14145_v41 = vpop.f32.mrb[46].mxu0 }
 0x3db   : > { %v14183_v40 = vpop.f32.mrb[45].mxu1  ;;  %v14146_v42 = vpop.f32.mrb[47].mxu0 }
 0x3dc   : > { %v14184_v48 = vadd.f32 %v14183_v40, %v14182_v23  ;;  %v14185_v63 = vpop.f32.mrb[46].mxu1  ;;  %v10769_v36 = vadd.f32 %v14144_v33, %v10704_v37  ;;  %v14147_v34 = vadd.f32 %v14146_v42, %v14145_v41 }
 0x3dd   : > { %v14186_v14 = vpop.f32.mrb[47].mxu1 }
 0x3de   : > { %v14187_v17 = vadd.f32 %v14186_v14, %v14185_v63  ;;  %v10834_v58 = vadd.f32 %v14184_v48, %v10769_v36  ;;  %v10772_v51 = vadd.f32 %v14147_v34, %v19007_v45 }
 0x3e0   : > { %v19020_v13 = vadd.f32 %v14187_v17, %v10772_v51 }
 0x3e5   : > { %v14204_v7 = vpop.f32.mrb[48].mxu0 }
 0x3e6   : > { %v14205_v54 = vpop.f32.mrb[49].mxu0 }
 0x3e7   : > { %v14206_v61 = vadd.f32 %v14205_v54, %v14204_v7  ;;  %v14207_v46 = vpop.f32.mrb[50].mxu0 }
 0x3e8   : > { %v14208_v3 = vpop.f32.mrb[51].mxu0 }
 0x3e9   : > { %v10875_v19 = vadd.f32 %v14206_v61, %v10810_v35  ;;  %v14209_v52 = vadd.f32 %v14208_v3, %v14207_v46 }
 0x3eb   : > { %v14244_v2 = vpop.f32.mrb[48].mxu1  ;;  %v10878_v8 = vadd.f32 %v14209_v52, %v19011_v4 }
 0x3ec   : > { %v14245_v62 = vpop.f32.mrb[49].mxu1 }
 0x3ed   : > { %v14246_v5 = vadd.f32 %v14245_v62, %v14244_v2  ;;  %v14247_v21 = vpop.f32.mrb[50].mxu1  ;;  %v14210_v45 = vpop.f32.mrb[52].mxu0 }
 0x3ee   : > { %v14248_v37 = vpop.f32.mrb[51].mxu1  ;;  %v14211_v15 = vpop.f32.mrb[53].mxu0 }
 0x3ef   : > { %v14249_v29 = vadd.f32 %v14248_v37, %v14247_v21  ;;  %v10940_v57 = vadd.f32 %v14246_v5, %v10875_v19  ;;  %v14212_v59 = vadd.f32 %v14211_v15, %v14210_v45  ;;  %v14213_v0 = vpop.f32.mrb[54].mxu0 }
 0x3f0   : > { %v14214_v12 = vpop.f32.mrb[55].mxu0 }
 0x3f1   : > { %v10943_v16 = vadd.f32 %v14249_v29, %v10878_v8  ;;  %v10883_v38 = vadd.f32 %v14212_v59, %v10818_v26  ;;  %v14215_v9 = vadd.f32 %v14214_v12, %v14213_v0 }
 0x3f3   : > { %v14250_v11 = vpop.f32.mrb[52].mxu1  ;;  %v10886_v30 = vadd.f32 %v14215_v9, %v10821_v55 }
 0x3f4   : > { %v14251_v6 = vpop.f32.mrb[53].mxu1 }
 0x3f5   : > { %v14252_v43 = vadd.f32 %v14251_v6, %v14250_v11  ;;  %v14253_v25 = vpop.f32.mrb[54].mxu1  ;;  %v14216_v27 = vpop.f32.mrb[56].mxu0 }
 0x3f6   : > { %v14254_v47 = vpop.f32.mrb[55].mxu1  ;;  %v14217_v24 = vpop.f32.mrb[57].mxu0 }
 0x3f7   : > { %v10948_v35 = vadd.f32 %v14252_v43, %v10883_v38  ;;  %v14255_v22 = vadd.f32 %v14254_v47, %v14253_v25  ;;  %v14218_v44 = vadd.f32 %v14217_v24, %v14216_v27  ;;  %v14219_v10 = vpop.f32.mrb[58].mxu0 }
 0x3f8   : > { %v14220_v28 = vpop.f32.mrb[59].mxu0 }
 0x3f9   : > { %v19023_v18 = vadd.f32 %v14255_v22, %v10886_v30  ;;  %v10891_v32 = vadd.f32 %v14218_v44, %v10826_v20  ;;  %v14221_v26 = vadd.f32 %v14220_v28, %v14219_v10 }
 0x3fb   : > { %v14256_v4 = vpop.f32.mrb[56].mxu1  ;;  %v10894_v23 = vadd.f32 %v14221_v26, %v19017_v56 }
 0x3fc   : > { %v14257_v39 = vpop.f32.mrb[57].mxu1 }
 0x3fd   : > { %v14258_v50 = vadd.f32 %v14257_v39, %v14256_v4  ;;  %v14259_v60 = vpop.f32.mrb[58].mxu1  ;;  %v14222_v49 = vpop.f32.mrb[60].mxu0 }
 0x3fe   : > { %v14260_v53 = vpop.f32.mrb[59].mxu1  ;;  %v14223_v40 = vpop.f32.mrb[61].mxu0 }
 0x3ff   : > { %v14261_v31 = vadd.f32 %v14260_v53, %v14259_v60  ;;  %v10956_v1 = vadd.f32 %v14258_v50, %v10891_v32  ;;  %v14224_v41 = vadd.f32 %v14223_v40, %v14222_v49  ;;  %v14225_v63 = vpop.f32.mrb[62].mxu0 }
 0x400   : > { %v14226_v34 = vpop.f32.mrb[63].mxu0 }
 0x401   : > { %v19026_v55 = vadd.f32 %v14261_v31, %v10894_v23  ;;  %v10899_v14 = vadd.f32 %v14224_v41, %v10834_v58  ;;  %v14227_v17 = vadd.f32 %v14226_v34, %v14225_v63 }
 0x403   : > { %v14262_v33 = vpop.f32.mrb[60].mxu1  ;;  %v10902_v2 = vadd.f32 %v14227_v17, %v19020_v13 }
 0x404   : > { %v14263_v48 = vpop.f32.mrb[61].mxu1 }
 0x405   : > { %v14264_v42 = vadd.f32 %v14263_v48, %v14262_v33  ;;  %v14265_v36 = vpop.f32.mrb[62].mxu1 }
 0x406   : > { %v14266_v20 = vpop.f32.mrb[63].mxu1 }
 0x407   : > { %v14267_v51 = vadd.f32 %v14266_v20, %v14265_v36  ;;  %v10964_v7 = vadd.f32 %v14264_v42, %v10899_v14 }
 0x409   : > { %v10967_v54 = vadd.f32 %v14267_v51, %v10902_v2  ;;  %v14284_v56 = vpop.f32.mrb[64].mxu0 }
 0x40a   : > { %v14285_v61 = vpop.f32.mrb[65].mxu0 }
 0x40b   : > { %v14286_v46 = vadd.f32 %v14285_v61, %v14284_v56  ;;  %v14287_v5 = vpop.f32.mrb[66].mxu0 }
 0x40c   : > { %v14288_v3 = vpop.f32.mrb[67].mxu0 }
 0x40d   : > { %v11005_v19 = vadd.f32 %v14286_v46, %v10940_v57  ;;  %v14289_v29 = vadd.f32 %v14288_v3, %v14287_v5 }
 0x40f   : > { %v14324_v62 = vpop.f32.mrb[64].mxu1  ;;  %v11008_v45 = vadd.f32 %v14289_v29, %v10943_v16 }
 0x410   : > { %v14325_v21 = vpop.f32.mrb[65].mxu1 }
 0x411   : > { %v14326_v52 = vadd.f32 %v14325_v21, %v14324_v62  ;;  %v14327_v37 = vpop.f32.mrb[66].mxu1  ;;  %v14290_v59 = vpop.f32.mrb[68].mxu0 }
 0x412   : > { %v14328_v8 = vpop.f32.mrb[67].mxu1  ;;  %v14291_v0 = vpop.f32.mrb[69].mxu0 }
 0x413   : > { %v11070_v58 = vadd.f32 %v14326_v52, %v11005_v19  ;;  %v14329_v15 = vadd.f32 %v14328_v8, %v14327_v37  ;;  %v14292_v6 = vadd.f32 %v14291_v0, %v14290_v59  ;;  %v14293_v38 = vpop.f32.mrb[70].mxu0 }
 0x414   : > { %v14294_v9 = vpop.f32.mrb[71].mxu0 }
 0x415   : > { %v19029_v11 = vadd.f32 %v14329_v15, %v11008_v45  ;;  %v11013_v47 = vadd.f32 %v14292_v6, %v10948_v35  ;;  %v14295_v57 = vadd.f32 %v14294_v9, %v14293_v38 }
 0x417   : > { %v14330_v13 = vpop.f32.mrb[68].mxu1  ;;  %v11016_v4 = vadd.f32 %v14295_v57, %v19023_v18 }
 0x418   : > { %v14331_v12 = vpop.f32.mrb[69].mxu1 }
 0x419   : > { %v14332_v43 = vadd.f32 %v14331_v12, %v14330_v13  ;;  %v14333_v25 = vpop.f32.mrb[70].mxu1  ;;  %v14296_v24 = vpop.f32.mrb[72].mxu0 }
 0x41a   : > { %v14334_v30 = vpop.f32.mrb[71].mxu1  ;;  %v14297_v39 = vpop.f32.mrb[73].mxu0 }
 0x41b   : > { %v14335_v22 = vadd.f32 %v14334_v30, %v14333_v25  ;;  %v11078_v27 = vadd.f32 %v14332_v43, %v11013_v47  ;;  %v14298_v10 = vadd.f32 %v14297_v39, %v14296_v24  ;;  %v14299_v60 = vpop.f32.mrb[74].mxu0 }
 0x41c   : > { %v14300_v26 = vpop.f32.mrb[75].mxu0 }
 0x41d   : > { %v19032_v16 = vadd.f32 %v14335_v22, %v11016_v4  ;;  %v11021_v53 = vadd.f32 %v14298_v10, %v10956_v1  ;;  %v14301_v31 = vadd.f32 %v14300_v26, %v14299_v60 }
 0x41f   : > { %v14336_v44 = vpop.f32.mrb[72].mxu1  ;;  %v11024_v33 = vadd.f32 %v14301_v31, %v19026_v55 }
 0x420   : > { %v14337_v50 = vpop.f32.mrb[73].mxu1 }
 0x421   : > { %v14338_v28 = vadd.f32 %v14337_v50, %v14336_v44  ;;  %v14339_v32 = vpop.f32.mrb[74].mxu1  ;;  %v14302_v18 = vpop.f32.mrb[76].mxu0 }
 0x422   : > { %v14340_v35 = vpop.f32.mrb[75].mxu1  ;;  %v14303_v41 = vpop.f32.mrb[77].mxu0 }
 0x423   : > { %v14341_v23 = vadd.f32 %v14340_v35, %v14339_v32  ;;  %v11086_v49 = vadd.f32 %v14338_v28, %v11021_v53  ;;  %v14304_v63 = vadd.f32 %v14303_v41, %v14302_v18  ;;  %v14305_v42 = vpop.f32.mrb[78].mxu0 }
 0x424   : > { %v14306_v34 = vpop.f32.mrb[79].mxu0 }
 0x425   : > { %v11089_v40 = vadd.f32 %v14341_v23, %v11024_v33  ;;  %v11029_v14 = vadd.f32 %v14304_v63, %v10964_v7  ;;  %v14307_v51 = vadd.f32 %v14306_v34, %v14305_v42 }
 0x427   : > { %v14342_v48 = vpop.f32.mrb[76].mxu1  ;;  %v11032_v56 = vadd.f32 %v14307_v51, %v10967_v54 }
 0x428   : > { %v14343_v36 = vpop.f32.mrb[77].mxu1 }
 0x429   : > { %v14344_v17 = vadd.f32 %v14343_v36, %v14342_v48  ;;  %v14345_v20 = vpop.f32.mrb[78].mxu1 }
 0x42a   : > { %v14346_v2 = vpop.f32.mrb[79].mxu1 }
 0x42b   : > { %v11094_v1 = vadd.f32 %v14344_v17, %v11029_v14  ;;  %v14347_v61 = vadd.f32 %v14346_v2, %v14345_v20 }
 0x42d   : > { %v19035_v62 = vadd.f32 %v14347_v61, %v11032_v56  ;;  %v14364_v46 = vpop.f32.mrb[80].mxu0 }
 0x42e   : > { %v14365_v5 = vpop.f32.mrb[81].mxu0 }
 0x42f   : > { %v14404_v55 = vpop.f32.mrb[80].mxu1  ;;  %v14366_v21 = vadd.f32 %v14365_v5, %v14364_v46  ;;  %v14367_v19 = vpop.f32.mrb[82].mxu0 }
 0x430   : > { %v14405_v3 = vpop.f32.mrb[81].mxu1  ;;  %v14368_v29 = vpop.f32.mrb[83].mxu0 }
 0x431   : > { %v14406_v52 = vadd.f32 %v14405_v3, %v14404_v55  ;;  %v14407_v37 = vpop.f32.mrb[82].mxu1  ;;  %v11135_v8 = vadd.f32 %v14366_v21, %v11070_v58  ;;  %v14369_v7 = vadd.f32 %v14368_v29, %v14367_v19 }
 0x432   : > { %v14408_v45 = vpop.f32.mrb[83].mxu1 }
 0x433   : > { %v14409_v15 = vadd.f32 %v14408_v45, %v14407_v37  ;;  %v11200_v59 = vadd.f32 %v14406_v52, %v11135_v8  ;;  %v11138_v13 = vadd.f32 %v14369_v7, %v19029_v11 }
 0x435   : > { %v11203_v54 = vadd.f32 %v14409_v15, %v11138_v13  ;;  %v14370_v0 = vpop.f32.mrb[84].mxu0 }
 0x436   : > { %v14371_v12 = vpop.f32.mrb[85].mxu0 }
 0x437   : > { %v14410_v6 = vpop.f32.mrb[84].mxu1  ;;  %v14372_v38 = vadd.f32 %v14371_v12, %v14370_v0  ;;  %v14373_v25 = vpop.f32.mrb[86].mxu0 }
 0x438   : > { %v14411_v43 = vpop.f32.mrb[85].mxu1  ;;  %v14374_v57 = vpop.f32.mrb[87].mxu0 }
 0x439   : > { %v14412_v9 = vadd.f32 %v14411_v43, %v14410_v6  ;;  %v14413_v47 = vpop.f32.mrb[86].mxu1  ;;  %v11143_v30 = vadd.f32 %v14372_v38, %v11078_v27  ;;  %v14375_v22 = vadd.f32 %v14374_v57, %v14373_v25 }
 0x43a   : > { %v14414_v4 = vpop.f32.mrb[87].mxu1 }
 0x43b   : > { %v14415_v58 = vadd.f32 %v14414_v4, %v14413_v47  ;;  %v11208_v24 = vadd.f32 %v14412_v9, %v11143_v30  ;;  %v11146_v44 = vadd.f32 %v14375_v22, %v19032_v16 }
 0x43d   : > { %v11211_v39 = vadd.f32 %v14415_v58, %v11146_v44  ;;  %v14376_v10 = vpop.f32.mrb[88].mxu0 }
 0x43e   : > { %v14377_v11 = vpop.f32.mrb[89].mxu0 }
 0x43f   : > { %v14416_v50 = vpop.f32.mrb[88].mxu1  ;;  %v14378_v60 = vadd.f32 %v14377_v11, %v14376_v10  ;;  %v14379_v28 = vpop.f32.mrb[90].mxu0 }
 0x440   : > { %v14417_v32 = vpop.f32.mrb[89].mxu1  ;;  %v14380_v26 = vpop.f32.mrb[91].mxu0 }
 0x441   : > { %v11151_v53 = vadd.f32 %v14378_v60, %v11086_v49  ;;  %v14418_v31 = vadd.f32 %v14417_v32, %v14416_v50  ;;  %v14419_v35 = vpop.f32.mrb[90].mxu1  ;;  %v14381_v23 = vadd.f32 %v14380_v26, %v14379_v28 }
 0x442   : > { %v14420_v33 = vpop.f32.mrb[91].mxu1 }
 0x443   : > { %v11216_v27 = vadd.f32 %v14418_v31, %v11151_v53  ;;  %v11154_v18 = vadd.f32 %v14381_v23, %v11089_v40  ;;  %v14421_v41 = vadd.f32 %v14420_v33, %v14419_v35 }
 0x445   : > { %v11219_v48 = vadd.f32 %v14421_v41, %v11154_v18  ;;  %v14382_v63 = vpop.f32.mrb[92].mxu0 }
 0x446   : > { %v14383_v16 = vpop.f32.mrb[93].mxu0 }
 0x447   : > { %v14422_v42 = vpop.f32.mrb[92].mxu1  ;;  %v14384_v36 = vadd.f32 %v14383_v16, %v14382_v63  ;;  %v14385_v14 = vpop.f32.mrb[94].mxu0 }
 0x448   : > { %v14423_v34 = vpop.f32.mrb[93].mxu1  ;;  %v14386_v51 = vpop.f32.mrb[95].mxu0 }
 0x449   : > { %v14424_v17 = vadd.f32 %v14423_v34, %v14422_v42  ;;  %v14425_v20 = vpop.f32.mrb[94].mxu1  ;;  %v11159_v2 = vadd.f32 %v14384_v36, %v11094_v1  ;;  %v14387_v56 = vadd.f32 %v14386_v51, %v14385_v14 }
 0x44a   : > { %v14426_v49 = vpop.f32.mrb[95].mxu1 }
 0x44b   : > { %v14427_v61 = vadd.f32 %v14426_v49, %v14425_v20  ;;  %v11224_v46 = vadd.f32 %v14424_v17, %v11159_v2  ;;  %v11162_v55 = vadd.f32 %v14387_v56, %v19035_v62 }
 0x44d   : > { %v11227_v5 = vadd.f32 %v14427_v61, %v11162_v55  ;;  %v14444_v40 = vpop.f32.mrb[96].mxu0 }
 0x44e   : > { %v14445_v3 = vpop.f32.mrb[97].mxu0 }
 0x44f   : > { %v14484_v21 = vpop.f32.mrb[96].mxu1  ;;  %v14446_v19 = vadd.f32 %v14445_v3, %v14444_v40  ;;  %v14447_v37 = vpop.f32.mrb[98].mxu0 }
 0x450   : > { %v14485_v52 = vpop.f32.mrb[97].mxu1  ;;  %v14448_v7 = vpop.f32.mrb[99].mxu0 }
 0x451   : > { %v14486_v29 = vadd.f32 %v14485_v52, %v14484_v21  ;;  %v14487_v8 = vpop.f32.mrb[98].mxu1  ;;  %v11265_v45 = vadd.f32 %v14446_v19, %v11200_v59  ;;  %v14449_v15 = vadd.f32 %v14448_v7, %v14447_v37 }
 0x452   : > { %v14488_v13 = vpop.f32.mrb[99].mxu1 }
 0x453   : > { %v14489_v1 = vadd.f32 %v14488_v13, %v14487_v8  ;;  %v11268_v0 = vadd.f32 %v14449_v15, %v11203_v54  ;;  %v11330_v6 = vadd.f32 %v14486_v29, %v11265_v45 }
 0x455   : > { %v14450_v12 = vpop.f32.mrb[100].mxu0  ;;  %v19040_v38 = vadd.f32 %v14489_v1, %v11268_v0 }
 0x456   : > { %v14451_v43 = vpop.f32.mrb[101].mxu0 }
 0x457   : > { %v14490_v62 = vpop.f32.mrb[100].mxu1  ;;  %v14452_v25 = vadd.f32 %v14451_v43, %v14450_v12  ;;  %v14453_v47 = vpop.f32.mrb[102].mxu0 }
 0x458   : > { %v14491_v9 = vpop.f32.mrb[101].mxu1  ;;  %v14454_v22 = vpop.f32.mrb[103].mxu0 }
 0x459   : > { %v14492_v57 = vadd.f32 %v14491_v9, %v14490_v62  ;;  %v14493_v30 = vpop.f32.mrb[102].mxu1  ;;  %v11273_v4 = vadd.f32 %v14452_v25, %v11208_v24  ;;  %v14455_v58 = vadd.f32 %v14454_v22, %v14453_v47 }
 0x45a   : > { %v14494_v44 = vpop.f32.mrb[103].mxu1 }
 0x45b   : > { %v14495_v59 = vadd.f32 %v14494_v44, %v14493_v30  ;;  %v11276_v10 = vadd.f32 %v14455_v58, %v11211_v39  ;;  %v11338_v11 = vadd.f32 %v14492_v57, %v11273_v4 }
 0x45d   : > { %v14456_v50 = vpop.f32.mrb[104].mxu0  ;;  %v11341_v54 = vadd.f32 %v14495_v59, %v11276_v10 }
 0x45e   : > { %v14457_v28 = vpop.f32.mrb[105].mxu0 }
 0x45f   : > { %v14496_v60 = vpop.f32.mrb[104].mxu1  ;;  %v14458_v32 = vadd.f32 %v14457_v28, %v14456_v50  ;;  %v14459_v53 = vpop.f32.mrb[106].mxu0 }
 0x460   : > { %v14497_v26 = vpop.f32.mrb[105].mxu1  ;;  %v14460_v23 = vpop.f32.mrb[107].mxu0 }
 0x461   : > { %v14498_v31 = vadd.f32 %v14497_v26, %v14496_v60  ;;  %v14499_v35 = vpop.f32.mrb[106].mxu1  ;;  %v11281_v33 = vadd.f32 %v14458_v32, %v11216_v27  ;;  %v14461_v18 = vadd.f32 %v14460_v23, %v14459_v53 }
 0x462   : > { %v14500_v41 = vpop.f32.mrb[107].mxu1 }
 0x463   : > { %v14501_v63 = vadd.f32 %v14500_v41, %v14499_v35  ;;  %v11284_v24 = vadd.f32 %v14461_v18, %v11219_v48  ;;  %v11346_v42 = vadd.f32 %v14498_v31, %v11281_v33 }
 0x465   : > { %v14462_v16 = vpop.f32.mrb[108].mxu0  ;;  %v11349_v36 = vadd.f32 %v14501_v63, %v11284_v24 }
 0x466   : > { %v14463_v34 = vpop.f32.mrb[109].mxu0 }
 0x467   : > { %v14502_v39 = vpop.f32.mrb[108].mxu1  ;;  %v14464_v14 = vadd.f32 %v14463_v34, %v14462_v16  ;;  %v14465_v20 = vpop.f32.mrb[110].mxu0 }
 0x468   : > { %v14503_v17 = vpop.f32.mrb[109].mxu1  ;;  %v14466_v56 = vpop.f32.mrb[111].mxu0 }
 0x469   : > { %v14504_v51 = vadd.f32 %v14503_v17, %v14502_v39  ;;  %v14505_v2 = vpop.f32.mrb[110].mxu1  ;;  %v11289_v49 = vadd.f32 %v14464_v14, %v11224_v46  ;;  %v14467_v61 = vadd.f32 %v14466_v56, %v14465_v20 }
 0x46a   : > { %v14506_v55 = vpop.f32.mrb[111].mxu1 }
 0x46b   : > { %v14507_v40 = vadd.f32 %v14506_v55, %v14505_v2  ;;  %v11292_v27 = vadd.f32 %v14467_v61, %v11227_v5  ;;  %v11354_v21 = vadd.f32 %v14504_v51, %v11289_v49 }
 0x46d   : > { %v11357_v19 = vadd.f32 %v14507_v40, %v11292_v27 }
 0x474   : > { %v14532_v3 = vpop.f32.mrb[112].mxu0  ;;  %v14536_v52 = vpop.f32.mrb[112].mxu1 }
 0x475   : > { %v11403_v48 = vadd.f32 %v14532_v3, %v11338_v11  ;;  %v11394_v37 = vpop.f32.mrb[113].mxu0  ;;  %v11419_v29 = vadd.f32 %v14536_v52, %v11354_v21  ;;  %v11410_v7 = vpop.f32.mrb[113].mxu1 }
 0x476   : > { %v11395_v8 = vadd.f32 %v11394_v37, %v11330_v6  ;;  %v14533_v45 = vpop.f32.mrb[114].mxu0  ;;  %v11411_v13 = vadd.f32 %v11410_v7, %v11346_v42  ;;  %v14537_v0 = vpop.f32.mrb[114].mxu1 }
 0x477   : > { %v11427_v15 = vsub.f32 0.0, %v11403_v48  ;;  %v11406_v1 = vadd.f32 %v14533_v45, %v11341_v54  ;;  %v11397_v12 = vpop.f32.mrb[115].mxu0  ;;  %v11431_v46 = vsub.f32 0.0, %v11419_v29  ;;  %v11422_v43 = vadd.f32 %v14537_v0, %v11357_v19  ;;  %v11413_v25 = vpop.f32.mrb[115].mxu1 }
 0x478   : > { %v11425_v62 = vsub.f32 0.0, %v11395_v8  ;;  %v11398_v5 = vadd.f32 %v11397_v12, %v19040_v38  ;;  %v11429_v47 = vsub.f32 0.0, %v11411_v13  ;;  %v11414_v30 = vadd.f32 %v11413_v25, %v11349_v36 }
 0x479   : > { %v11437_v9 = vmul.f32 1.442695, %v11427_v15  ;;  %v11428_v57 = vsub.f32 0.0, %v11406_v1  ;;  %v11445_v22 = vmul.f32 1.442695, %v11431_v46  ;;  %v11432_v6 = vsub.f32 0.0, %v11422_v43 }
 0x47a   : > { %v11433_v4 = vmul.f32 1.442695, %v11425_v62  ;;  %v11426_v58 = vsub.f32 0.0, %v11398_v5  ;;  %v11441_v44 = vmul.f32 1.442695, %v11429_v47  ;;  %v11430_v10 = vsub.f32 0.0, %v11414_v30 }
 0x47b   : > { %15859 = vpow2.f32 %v11437_v9  ;;  %v11439_v59 = vmul.f32 1.442695, %v11428_v57  ;;  %v11447_v11 = vmul.f32 1.442695, %v11432_v6 }
 0x47c   : > { %15861 = vpow2.f32 %v11445_v22  ;;  %v11435_v50 = vmul.f32 1.442695, %v11426_v58  ;;  %v11443_v54 = vmul.f32 1.442695, %v11430_v10 }
 0x47d   : > { %15863 = vpow2.f32 %v11433_v4 }
 0x47e   : > { %15865 = vpow2.f32 %v11441_v44 }
 0x47f   : > { %15867 = vpow2.f32 %v11439_v59 }
 0x480   : > { %15869 = vpow2.f32 %v11447_v11 }
 0x481   : > { %15871 = vpow2.f32 %v11435_v50 }
 0x482   : > { %15873 = vpow2.f32 %v11443_v54 }
 0x485   : > { %v15860_v38 = vpop.eup %15859 }
 0x486   : > { %v15862_v60 = vpop.eup %15861  ;;  %v11451_v28 = vadd.f32 1.0, %v15860_v38 }
 0x487   : > { %v15864_v32 = vpop.eup %15863  ;;  %v11455_v26 = vadd.f32 1.0, %v15862_v60 }
 0x488   : > { %v15866_v53 = vpop.eup %15865  ;;  %15875 = vrcp.f32 %v11451_v28  ;;  %v11449_v31 = vadd.f32 1.0, %v15864_v32 }
 0x489   : > { %v15868_v35 = vpop.eup %15867  ;;  %15877 = vrcp.f32 %v11455_v26  ;;  %v11453_v23 = vadd.f32 1.0, %v15866_v53 }
 0x48a   : > { %v15870_v33 = vpop.eup %15869  ;;  %15879 = vrcp.f32 %v11449_v31  ;;  %v11452_v18 = vadd.f32 1.0, %v15868_v35 }
 0x48b   : > { %v15872_v41 = vpop.eup %15871  ;;  %15881 = vrcp.f32 %v11453_v23  ;;  %v11456_v63 = vadd.f32 1.0, %v15870_v33 }
 0x48c   : > { %v15874_v24 = vpop.eup %15873  ;;  %15883 = vrcp.f32 %v11452_v18  ;;  %v11450_v42 = vadd.f32 1.0, %v15872_v41 }
 0x48d   : > { %15885 = vrcp.f32 %v11456_v63  ;;  %v11454_v16 = vadd.f32 1.0, %v15874_v24 }
 0x48e   : > { %15887 = vrcp.f32 %v11450_v42 }
 0x48f   : > { %15889 = vrcp.f32 %v11454_v16 }
 0x492   : > { %v15876_v36 = vpop.eup %15875 }
 0x493   : > { %v15878_v39 = vpop.eup %15877  ;;  %11476 = vst.msk [vmem:[%s175_s15 + $0x10] sm:$0xff] %vm11473_vm2, %v15876_v36 }
 0x494   : > { %v15880_v34 = vpop.eup %15879  ;;  %11480 = vst.msk [vmem:[%s175_s15 + $0x30] sm:$0xff] %vm11473_vm2, %v15878_v39 }
 0x495   : > { %v15882_v14 = vpop.eup %15881  ;;  %11474 = vst.msk [vmem:[%s175_s15] sm:$0xff] %vm11473_vm2, %v15880_v34 }
 0x496   : > { %v15884_v17 = vpop.eup %15883  ;;  %11478 = vst.msk [vmem:[%s175_s15 + $0x20] sm:$0xff] %vm11473_vm2, %v15882_v14 }
 0x497   : > { %v15886_v20 = vpop.eup %15885  ;;  %11477 = vst.msk [vmem:[%s175_s15 + $0x18] sm:$0xff] %vm11473_vm2, %v15884_v17 }
 0x498   : > { %v15888_v51 = vpop.eup %15887  ;;  %11481 = vst.msk [vmem:[%s175_s15 + $0x38] sm:$0xff] %vm11473_vm2, %v15886_v20 }
 0x499   : > { %v15890_v2 = vpop.eup %15889  ;;  %11475 = vst.msk [vmem:[%s175_s15 + $0x8] sm:$0xff] %vm11473_vm2, %v15888_v51 }
 0x49a   : > { %11479 = vst.msk [vmem:[%s175_s15 + $0x28] sm:$0xff] %vm11473_vm2, %v15890_v2 }
 0x49b PF: > { %s13_s12 = sadd.s32 1, %s15897_s12  }
 0x49c   : > { %p10_p4 = scmp.ge.s32.totalorder %s13_s12, 4  }
 0x49e   :  { %12 = sbr.rel (!%p10_p4) target bundleno = 1 (0x1), region = 62 }

</bundles_post_ra>
